<compile_context>
chip_gen: v7x
topology: tpu7x:2x2x1
jax: 0.10.0
libtpu: 0.0.40
codegen_flags: <defaults>
</compile_context>

<pallas_src>
import functools

import jax
import jax.numpy as jnp
from jax.experimental import pallas as pl
from jax.experimental.pallas import tpu as pltpu

C_PAD = 128                       # activation channel padding (one full lane width)
K_PAD = 128                       # class-dim padding (one full lane width)
TM_MAX = 1024                     # max flattened-output rows per kernel tile
_VMEM_LIMIT = 32 * 1024 * 1024    # tiles are tiny; 32 MiB is safe on v5e/v6e/v7x


def _round_up(v, m):
    return (v + m - 1) // m * m


def _cdiv(a, b):
    return -(-a // b)


def _tiles(m):
    """Row-tile size: <= TM_MAX, multiple of 8, >= 2 tiles when there is work."""
    mp = _round_up(m, 8)
    tm = min(TM_MAX, mp)
    if mp >= 16 and tm == mp:          # give megacore / 2-TC chips >= 2 tiles
        tm = _round_up(_cdiv(mp, 2), 8)
    mpad = _round_up(mp, tm)
    return tm, mpad, mpad // tm


# ----------------------------- Pallas kernels ------------------------------------

def _conv_kernel(x_ref, w_ref, shift_ref, *rest, relu, has_res):
    # x_ref:     (tm, Kp)      packed taps x real input channels (bf16)
    # w_ref:     (Kp, C_PAD)   packed weight, BN scale folded (bf16), VMEM-resident
    # shift_ref: (1, C_PAD)    folded BN shift (f32)
    # res_ref:   (tm, C_PAD)   optional residual tile (bf16)
    # o_ref:     (tm, C_PAD)   lane-dense bf16 output tile
    # Single dot per tile: the MXU accumulates over the whole packed K, so there
    # is no VMEM accumulator read-modify-write loop.
    if has_res:
        res_ref, o_ref = rest
    else:
        (o_ref,) = rest
    y = jnp.dot(x_ref[...], w_ref[...], preferred_element_type=jnp.float32)
    y = y + shift_ref[...]
    if has_res:
        y = y + res_ref[...].astype(jnp.float32)
    if relu:
        y = jnp.maximum(y, 0.0)
    o_ref[...] = y.astype(o_ref.dtype)


def _pool_max_kernel(x_ref, o_ref):
    # x_ref: (T, tm, C_PAD) stacked pooling taps; o_ref: (tm, C_PAD)
    o_ref[...] = jnp.max(x_ref[...], axis=0)


def _wildcat_head_kernel(f_ref, w_ref, b_ref, o_ref):
    # f: (HW, C_PAD) one image   w: (C_PAD, K_PAD)   b: (1, K_PAD)   o: (1, K_PAD)
    # 1x1-conv classifier fused with WildcatPool2d(kmax=1, kmin=1, alpha=1):
    #   out = 0.5 * (max_hw(score) + min_hw(score))
    # which matches the reference wildcat (mean_topk + alpha*mean_botk).div_(2)
    # with k=1.
    # TODO(synk): general kmax/kmin > 1 top-k averaging needs an in-kernel top_k.
    s = jnp.dot(f_ref[...], w_ref[...], preferred_element_type=jnp.float32)
    s = s + b_ref[...]
    mx = jnp.max(s, axis=0, keepdims=True)
    mn = jnp.min(s, axis=0, keepdims=True)
    o_ref[...] = 0.5 * (mx + mn)


def _dense_head_kernel(f_ref, w_ref, b_ref, o_ref):
    # dense=True path: full class-score map tile (lane-dense padded classes)
    o_ref[...] = (jnp.dot(f_ref[...], w_ref[...], preferred_element_type=jnp.float32)
                  + b_ref[...])


# ----------------------------- data prep (JAX glue) --------------------------------

def _im2col_pack(x, kh, kw, stride, pad, cin):
    """(N,H,W,C>=cin) -> (N*Ho*Wo, Kp): taps x real channels packed into K.

    One XLA data-movement pass; no 128-wide per-tap zero padding lands in HBM.
    """
    N, H, W, _ = x.shape
    ho = (H + 2 * pad - kh) // stride + 1
    wo = (W + 2 * pad - kw) // stride + 1
    xr = x[..., :cin]
    if pad:
        xr = jnp.pad(xr, ((0, 0), (pad, pad), (pad, pad), (0, 0)))
    cols = [xr[:, ki:ki + stride * ho:stride, kj:kj + stride * wo:stride, :]
            for ki in range(kh) for kj in range(kw)]
    xc = cols[0] if len(cols) == 1 else jnp.concatenate(cols, axis=-1)
    k = kh * kw * cin
    kp = _round_up(k, 128)
    if kp > k:
        xc = jnp.pad(xc, ((0, 0), (0, 0), (0, 0), (0, kp - k)))
    return xc.reshape(N * ho * wo, kp), ho, wo, kp


# ----------------------------- conv / pool wrappers --------------------------------

def conv_bn(x, p, *, kh, kw, stride, pad, cin, cout, relu=True, res=None):
    N = x.shape[0]
    if kh == 1 and kw == 1:
        # 1x1 conv (downsample path): use the stored 128-padded channels
        # directly (K=128 is the MXU minimum anyway) -> no repack glue.
        if stride > 1:
            x = x[:, ::stride, ::stride, :]
        ho, wo, kp = x.shape[1], x.shape[2], x.shape[3]
        xf = x.reshape(N * ho * wo, kp)
    else:
        xf, ho, wo, kp = _im2col_pack(x, kh, kw, stride, pad, cin)
    xf = xf.astype(jnp.bfloat16)
    m = N * ho * wo
    tm, mpad, num_m = _tiles(m)
    if mpad > m:
        xf = jnp.pad(xf, ((0, mpad - m), (0, 0)))

    has_res = res is not None
    inputs = [xf, p["w"], p["shift"]]
    in_specs = [
        pl.BlockSpec((tm, kp), lambda i: (i, 0)),
        pl.BlockSpec((kp, C_PAD), lambda i: (0, 0)),      # resident across tiles
        pl.BlockSpec((1, C_PAD), lambda i: (0, 0)),
    ]
    bytes_accessed = xf.size * 2 + p["w"].size * 2 + p["shift"].size * 4 + mpad * C_PAD * 2
    if has_res:
        rf = res.reshape(m, C_PAD).astype(jnp.bfloat16)    # free reshape, no re-pad
        if mpad > m:
            rf = jnp.pad(rf, ((0, mpad - m), (0, 0)))
        inputs.append(rf)
        in_specs.append(pl.BlockSpec((tm, C_PAD), lambda i: (i, 0)))
        bytes_accessed += rf.size * 2

    out = pl.pallas_call(
        functools.partial(_conv_kernel, relu=relu, has_res=has_res),
        out_shape=jax.ShapeDtypeStruct((mpad, C_PAD), jnp.bfloat16),
        grid=(num_m,),
        in_specs=in_specs,
        out_specs=pl.BlockSpec((tm, C_PAD), lambda i: (i, 0)),
        compiler_params=pltpu.CompilerParams(
            dimension_semantics=("parallel",),
            vmem_limit_bytes=_VMEM_LIMIT),
        cost_estimate=pl.CostEstimate(
            flops=int(2 * m * kh * kw * cin * cout),       # real-channel FLOPs
            transcendentals=0,
            bytes_accessed=int(bytes_accessed)),
    )(*inputs)
    return out[:m].reshape(N, ho, wo, C_PAD)


def maxpool(x, k=3, stride=2, pad=1):
    # nn.MaxPool2d(kernel_size=3, stride=2, padding=1).  Taps are stacked along a
    # leading axis (tiny blow-up of a small activation) so the kernel is one
    # lane-dense elementwise max per tile; padded channel lanes stay exactly 0.
    N, H, W, C = x.shape
    ho = (H + 2 * pad - k) // stride + 1
    wo = (W + 2 * pad - k) // stride + 1
    xp = jnp.pad(x, ((0, 0), (pad, pad), (pad, pad), (0, 0)), constant_values=-1e30)
    taps = jnp.stack([xp[:, ki:ki + stride * ho:stride, kj:kj + stride * wo:stride, :]
                      for ki in range(k) for kj in range(k)], axis=0)
    T = k * k
    m = N * ho * wo
    taps = taps.reshape(T, m, C)
    tm, mpad, num_m = _tiles(m)
    if mpad > m:
        taps = jnp.pad(taps, ((0, 0), (0, mpad - m), (0, 0)), constant_values=-1e30)
    out = pl.pallas_call(
        _pool_max_kernel,
        out_shape=jax.ShapeDtypeStruct((mpad, C), x.dtype),
        grid=(num_m,),
        in_specs=[pl.BlockSpec((T, tm, C), lambda i: (0, i, 0))],
        out_specs=pl.BlockSpec((tm, C), lambda i: (i, 0)),
        compiler_params=pltpu.CompilerParams(
            dimension_semantics=("parallel",),
            vmem_limit_bytes=_VMEM_LIMIT),
    )(taps)
    return out[:m].reshape(N, ho, wo, C)


def basic_block(x, blk, cin, cout, stride):
    if "down" in blk:
        identity = conv_bn(x, blk["down"], kh=1, kw=1, stride=stride, pad=0,
                           cin=cin, cout=cout, relu=False)
    else:
        identity = x
    out = conv_bn(x, blk["conv1"], kh=3, kw=3, stride=stride, pad=1,
                  cin=cin, cout=cout, relu=True)
    out = conv_bn(out, blk["conv2"], kh=3, kw=3, stride=1, pad=1,
                  cin=cout, cout=cout, relu=True, res=identity)   # add + relu fused
    return out


# ----------------------------- parameter init -------------------------------------

def _init_conv_bn(key, kh, kw, cin, cout):
    k1, k2, k3 = jax.random.split(key, 3)
    w = jax.random.normal(k1, (kh, kw, cin, cout), jnp.float32) / jnp.sqrt(kh * kw * cin)
    scale = 1.0 + 0.05 * jax.random.normal(k2, (cout,), jnp.float32)
    shift = 0.05 * jax.random.normal(k3, (cout,), jnp.float32)
    w = w * scale[None, None, None, :]           # offline BN-scale folding
    if kh == 1 and kw == 1:
        # consumed against the 128-padded stored activation
        wp = jnp.pad(w.reshape(cin, cout), ((0, C_PAD - cin), (0, C_PAD - cout)))
    else:
        k = kh * kw * cin                         # packed taps x real channels
        kp = _round_up(k, 128)
        wp = jnp.pad(w.reshape(k, cout), ((0, kp - k), (0, C_PAD - cout)))
    shift = jnp.pad(shift, (0, C_PAD - cout)).reshape(1, C_PAD).astype(jnp.float32)
    return {"w": wp.astype(jnp.bfloat16), "shift": shift}


def init_params(key, width=8, num_classes=5):
    keys = iter(jax.random.split(key, 64))
    p = {"stem": _init_conv_bn(next(keys), 7, 7, 3, width), "layers": []}
    cin = width
    for cout, stride in [(width, 1), (2 * width, 2), (4 * width, 2), (8 * width, 2)]:
        blocks = []
        for b in range(2):                        # 2 BasicBlocks / stage (ResNet-18 shaped)
            s = stride if b == 0 else 1
            blk = {"conv1": _init_conv_bn(next(keys), 3, 3, cin, cout),
                   "conv2": _init_conv_bn(next(keys), 3, 3, cout, cout)}
            if s != 1 or cin != cout:
                blk["down"] = _init_conv_bn(next(keys), 1, 1, cin, cout)
            blocks.append(blk)
            cin = cout
        p["layers"].append(blocks)
    num_features = 8 * width                      # == model.layer4[1].conv1.in_channels
    kc1, kc2 = jax.random.split(next(keys))
    cw = jax.random.normal(kc1, (num_features, num_classes), jnp.float32) / jnp.sqrt(num_features)
    cb = 0.01 * jax.random.normal(kc2, (1, num_classes), jnp.float32)
    p["cls_w"] = jnp.pad(cw, ((0, C_PAD - num_features),
                              (0, K_PAD - num_classes))).astype(jnp.bfloat16)
    p["cls_b"] = jnp.pad(cb, ((0, 0), (0, K_PAD - num_classes))).astype(jnp.float32)
    return p


# ----------------------------- forward (ResNetWSL) --------------------------------

def resnet_wsl_forward(params, x_nchw, *, width=8, num_classes=5, dense=False):
    # x_nchw: (N, 3, H, W), matching PyTorch's input convention.
    x = jnp.transpose(x_nchw, (0, 2, 3, 1)).astype(jnp.bfloat16)        # -> NHWC, real 3 ch

    # features = conv1 + bn1 + relu + maxpool + layer1..layer4
    x = conv_bn(x, params["stem"], kh=7, kw=7, stride=2, pad=3,
                cin=3, cout=width, relu=True)
    x = maxpool(x, 3, 2, 1)
    cin = width
    for si, (cout, stride) in enumerate(
            [(width, 1), (2 * width, 2), (4 * width, 2), (8 * width, 2)]):
        for bi in range(2):
            s = stride if bi == 0 else 1
            x = basic_block(x, params["layers"][si][bi], cin, cout, s)
            cin = cout

    n, h, w, _ = x.shape
    hw = h * w

    if dense:
        m = n * hw
        tm, mpad, num_m = _tiles(m)
        f = x.reshape(m, C_PAD)
        if mpad > m:
            f = jnp.pad(f, ((0, mpad - m), (0, 0)))
        smap = pl.pallas_call(
            _dense_head_kernel,
            out_shape=jax.ShapeDtypeStruct((mpad, K_PAD), jnp.float32),
            grid=(num_m,),
            in_specs=[pl.BlockSpec((tm, C_PAD), lambda i: (i, 0)),
                      pl.BlockSpec((C_PAD, K_PAD), lambda i: (0, 0)),
                      pl.BlockSpec((1, K_PAD), lambda i: (0, 0))],
            out_specs=pl.BlockSpec((tm, K_PAD), lambda i: (i, 0)),
            compiler_params=pltpu.CompilerParams(
                dimension_semantics=("parallel",),
                vmem_limit_bytes=_VMEM_LIMIT),
        )(f, params["cls_w"], params["cls_b"])
        smap = smap[:m].reshape(n, h, w, K_PAD)[..., :num_classes]
        return jnp.transpose(smap, (0, 3, 1, 2))                        # NCHW class map

    # classifier (1x1 conv) + WildcatPool2d fused; gridded over the batch.
    f = x.reshape(n, hw, C_PAD)
    out = pl.pallas_call(
        _wildcat_head_kernel,
        out_shape=jax.ShapeDtypeStruct((n, 1, K_PAD), jnp.float32),
        grid=(n,),
        in_specs=[pl.BlockSpec((None, hw, C_PAD), lambda i: (i, 0, 0)),
                  pl.BlockSpec((C_PAD, K_PAD), lambda i: (0, 0)),
                  pl.BlockSpec((1, K_PAD), lambda i: (0, 0))],
        out_specs=pl.BlockSpec((None, 1, K_PAD), lambda i: (i, 0, 0)),
        compiler_params=pltpu.CompilerParams(
            dimension_semantics=("parallel",),
            vmem_limit_bytes=_VMEM_LIMIT),
    )(f, params["cls_w"], params["cls_b"])
    return out.reshape(n, K_PAD)[:, :num_classes]                       # (N, num_classes)


# ----------------------------------- main ------------------------------------------

if __name__ == "__main__":
    key = jax.random.PRNGKey(0)
    kx, kp = jax.random.split(key)

    # small, ResNet-consistent shapes: batch=2, 3 input channels, 64x64 image
    x = jax.random.normal(kx, (2, 3, 64, 64), jnp.float32)
    params = init_params(kp, width=8, num_classes=5)

    fwd = jax.jit(functools.partial(resnet_wsl_forward,
                                    width=8, num_classes=5, dense=False))
    out = jax.block_until_ready(fwd(params, x))

    assert out.shape == (2, 5), out.shape
    assert bool(jnp.all(jnp.isfinite(out)))
    print("KERNEL_OK")
</pallas_src>

<mosaic_0001>
module attributes {stable_mosaic.version = 11 : i64} {
  func.func @_conv_kernel(%arg0: i32, %arg1: memref<1024x256xbf16, #tpu.memory_space<vmem>>, %arg2: memref<256x128xbf16, #tpu.memory_space<vmem>>, %arg3: memref<1x128xf32, #tpu.memory_space<vmem>>, %arg4: memref<1024x128xbf16, #tpu.memory_space<vmem>>) attributes {dimension_semantics = [#tpu.dimension_semantics<parallel>], iteration_bounds = array<i64: 2>, scalar_prefetch = 0 : i64, scratch_operands = 0 : i64, tpu.core_type = #tpu.core_type<tc>, window_params = [{transform_indices = @transform_0, window_bounds = array<i64: 1024, 256>}, {pipeline_mode = #tpu.pipeline_mode<synchronous>, transform_indices = @transform_1, window_bounds = array<i64: 256, 128>}, {pipeline_mode = #tpu.pipeline_mode<synchronous>, transform_indices = @transform_2, window_bounds = array<i64: 1, 128>}, {transform_indices = @transform_3, window_bounds = array<i64: 1024, 128>}]} {
    %c0 = arith.constant 0 : index
    %c0_0 = arith.constant 0 : index
    %0 = vector.load %arg1[%c0, %c0_0] : memref<1024x256xbf16, #tpu.memory_space<vmem>>, vector<1024x256xbf16>
    %c0_1 = arith.constant 0 : index
    %c0_2 = arith.constant 0 : index
    %1 = vector.load %arg2[%c0_1, %c0_2] : memref<256x128xbf16, #tpu.memory_space<vmem>>, vector<256x128xbf16>
    %cst = arith.constant dense<0.000000e+00> : vector<1024x128xf32>
    %2 = tpu.matmul %0, %1, %cst {dimension_numbers = #tpu.dot_dimension_numbers<[1], [0], [0], [1], [0, 0, 1, 1], [], []>} : vector<1024x256xbf16>, vector<256x128xbf16>, vector<1024x128xf32> -> vector<1024x128xf32>
    %c0_3 = arith.constant 0 : index
    %c0_4 = arith.constant 0 : index
    %3 = vector.load %arg3[%c0_3, %c0_4] : memref<1x128xf32, #tpu.memory_space<vmem>>, vector<1x128xf32>
    %4 = vector.broadcast %3 : vector<1x128xf32> to vector<1024x128xf32>
    %5 = arith.addf %2, %4 : vector<1024x128xf32>
    %cst_5 = arith.constant 0.000000e+00 : f32
    %6 = vector.broadcast %cst_5 : f32 to vector<1024x128xf32>
    %7 = arith.maximumf %5, %6 : vector<1024x128xf32>
    %8 = arith.truncf %7 : vector<1024x128xf32> to vector<1024x128xbf16>
    %c0_6 = arith.constant 0 : index
    %c0_7 = arith.constant 0 : index
    %9 = vector.load %arg4[%c0_6, %c0_7] : memref<1024x128xbf16, #tpu.memory_space<vmem>>, vector<1024x128xbf16>
    tpu.vector_store %arg4[%c0_6, %c0_7], %8 {strides = array<i32>} : memref<1024x128xbf16, #tpu.memory_space<vmem>>, vector<1024x128xbf16>,
    return
  }
  func.func @transform_0(%arg0: i32) -> (i32, i32) {
    %c0_i32 = arith.constant 0 : i32
    %c0_i32_0 = arith.constant 0 : i32
    return %arg0, %c0_i32 : i32, i32
  }
  func.func @transform_1(%arg0: i32) -> (i32, i32) {
    %c0_i32 = arith.constant 0 : i32
    %c0_i32_0 = arith.constant 0 : i32
    %c0_i32_1 = arith.constant 0 : i32
    return %c0_i32, %c0_i32_0 : i32, i32
  }
  func.func @transform_2(%arg0: i32) -> (i32, i32) {
    %c0_i32 = arith.constant 0 : i32
    %c0_i32_0 = arith.constant 0 : i32
    %c0_i32_1 = arith.constant 0 : i32
    return %c0_i32, %c0_i32_0 : i32, i32
  }
  func.func @transform_3(%arg0: i32) -> (i32, i32) {
    %c0_i32 = arith.constant 0 : i32
    %c0_i32_0 = arith.constant 0 : i32
    return %arg0, %c0_i32 : i32, i32
  }
}

module attributes {stable_mosaic.version = 11 : i64} {
  func.func @_pool_max_kernel(%arg0: i32, %arg1: memref<9x256x128xbf16, #tpu.memory_space<vmem>>, %arg2: memref<256x128xbf16, #tpu.memory_space<vmem>>) attributes {dimension_semantics = [#tpu.dimension_semantics<parallel>], iteration_bounds = array<i64: 2>, scalar_prefetch = 0 : i64, scratch_operands = 0 : i64, tpu.core_type = #tpu.core_type<tc>, window_params = [{transform_indices = @transform_0, window_bounds = array<i64: 9, 256, 128>}, {transform_indices = @transform_1, window_bounds = array<i64: 256, 128>}]} {
    %c0 = arith.constant 0 : index
    %c0_0 = arith.constant 0 : index
    %c0_1 = arith.constant 0 : index
    %0 = vector.load %arg1[%c0, %c0_0, %c0_1] : memref<9x256x128xbf16, #tpu.memory_space<vmem>>, vector<9x256x128xbf16>
    %cst = arith.constant dense<0xFF80> : vector<256x128xbf16>
    %1 = vector.multi_reduction <maximumf>, %0, %cst [0] : vector<9x256x128xbf16> to vector<256x128xbf16>
    %c0_2 = arith.constant 0 : index
    %c0_3 = arith.constant 0 : index
    %2 = vector.load %arg2[%c0_2, %c0_3] : memref<256x128xbf16, #tpu.memory_space<vmem>>, vector<256x128xbf16>
    tpu.vector_store %arg2[%c0_2, %c0_3], %1 {strides = array<i32>} : memref<256x128xbf16, #tpu.memory_space<vmem>>, vector<256x128xbf16>,
    return
  }
  func.func @transform_0(%arg0: i32) -> (i32, i32, i32) {
    %c0_i32 = arith.constant 0 : i32
    %c0_i32_0 = arith.constant 0 : i32
    %c0_i32_1 = arith.constant 0 : i32
    return %c0_i32, %arg0, %c0_i32_0 : i32, i32, i32
  }
  func.func @transform_1(%arg0: i32) -> (i32, i32) {
    %c0_i32 = arith.constant 0 : i32
    %c0_i32_0 = arith.constant 0 : i32
    return %arg0, %c0_i32 : i32, i32
  }
}

module attributes {stable_mosaic.version = 11 : i64} {
  func.func @_conv_kernel(%arg0: i32, %arg1: memref<256x128xbf16, #tpu.memory_space<vmem>>, %arg2: memref<128x128xbf16, #tpu.memory_space<vmem>>, %arg3: memref<1x128xf32, #tpu.memory_space<vmem>>, %arg4: memref<256x128xbf16, #tpu.memory_space<vmem>>) attributes {dimension_semantics = [#tpu.dimension_semantics<parallel>], iteration_bounds = array<i64: 2>, scalar_prefetch = 0 : i64, scratch_operands = 0 : i64, tpu.core_type = #tpu.core_type<tc>, window_params = [{transform_indices = @transform_0, window_bounds = array<i64: 256, 128>}, {pipeline_mode = #tpu.pipeline_mode<synchronous>, transform_indices = @transform_1, window_bounds = array<i64: 128, 128>}, {pipeline_mode = #tpu.pipeline_mode<synchronous>, transform_indices = @transform_2, window_bounds = array<i64: 1, 128>}, {transform_indices = @transform_3, window_bounds = array<i64: 256, 128>}]} {
    %c0 = arith.constant 0 : index
    %c0_0 = arith.constant 0 : index
    %0 = vector.load %arg1[%c0, %c0_0] : memref<256x128xbf16, #tpu.memory_space<vmem>>, vector<256x128xbf16>
    %c0_1 = arith.constant 0 : index
    %c0_2 = arith.constant 0 : index
    %1 = vector.load %arg2[%c0_1, %c0_2] : memref<128x128xbf16, #tpu.memory_space<vmem>>, vector<128x128xbf16>
    %cst = arith.constant dense<0.000000e+00> : vector<256x128xf32>
    %2 = tpu.matmul %0, %1, %cst {dimension_numbers = #tpu.dot_dimension_numbers<[1], [0], [0], [1], [0, 0, 1, 1], [], []>} : vector<256x128xbf16>, vector<128x128xbf16>, vector<256x128xf32> -> vector<256x128xf32>
    %c0_3 = arith.constant 0 : index
    %c0_4 = arith.constant 0 : index
    %3 = vector.load %arg3[%c0_3, %c0_4] : memref<1x128xf32, #tpu.memory_space<vmem>>, vector<1x128xf32>
    %4 = vector.broadcast %3 : vector<1x128xf32> to vector<256x128xf32>
    %5 = arith.addf %2, %4 : vector<256x128xf32>
    %cst_5 = arith.constant 0.000000e+00 : f32
    %6 = vector.broadcast %cst_5 : f32 to vector<256x128xf32>
    %7 = arith.maximumf %5, %6 : vector<256x128xf32>
    %8 = arith.truncf %7 : vector<256x128xf32> to vector<256x128xbf16>
    %c0_6 = arith.constant 0 : index
    %c0_7 = arith.constant 0 : index
    %9 = vector.load %arg4[%c0_6, %c0_7] : memref<256x128xbf16, #tpu.memory_space<vmem>>, vector<256x128xbf16>
    tpu.vector_store %arg4[%c0_6, %c0_7], %8 {strides = array<i32>} : memref<256x128xbf16, #tpu.memory_space<vmem>>, vector<256x128xbf16>,
    return
  }
  func.func @transform_0(%arg0: i32) -> (i32, i32) {
    %c0_i32 = arith.constant 0 : i32
    %c0_i32_0 = arith.constant 0 : i32
    return %arg0, %c0_i32 : i32, i32
  }
  func.func @transform_1(%arg0: i32) -> (i32, i32) {
    %c0_i32 = arith.constant 0 : i32
    %c0_i32_0 = arith.constant 0 : i32
    %c0_i32_1 = arith.constant 0 : i32
    return %c0_i32, %c0_i32_0 : i32, i32
  }
  func.func @transform_2(%arg0: i32) -> (i32, i32) {
    %c0_i32 = arith.constant 0 : i32
    %c0_i32_0 = arith.constant 0 : i32
    %c0_i32_1 = arith.constant 0 : i32
    return %c0_i32, %c0_i32_0 : i32, i32
  }
  func.func @transform_3(%arg0: i32) -> (i32, i32) {
    %c0_i32 = arith.constant 0 : i32
    %c0_i32_0 = arith.constant 0 : i32
    return %arg0, %c0_i32 : i32, i32
  }
}

module attributes {stable_mosaic.version = 11 : i64} {
  func.func @_conv_kernel(%arg0: i32, %arg1: memref<256x128xbf16, #tpu.memory_space<vmem>>, %arg2: memref<128x128xbf16, #tpu.memory_space<vmem>>, %arg3: memref<1x128xf32, #tpu.memory_space<vmem>>, %arg4: memref<256x128xbf16, #tpu.memory_space<vmem>>, %arg5: memref<256x128xbf16, #tpu.memory_space<vmem>>) attributes {dimension_semantics = [#tpu.dimension_semantics<parallel>], iteration_bounds = array<i64: 2>, scalar_prefetch = 0 : i64, scratch_operands = 0 : i64, tpu.core_type = #tpu.core_type<tc>, window_params = [{transform_indices = @transform_0, window_bounds = array<i64: 256, 128>}, {pipeline_mode = #tpu.pipeline_mode<synchronous>, transform_indices = @transform_1, window_bounds = array<i64: 128, 128>}, {pipeline_mode = #tpu.pipeline_mode<synchronous>, transform_indices = @transform_2, window_bounds = array<i64: 1, 128>}, {transform_indices = @transform_3, window_bounds = array<i64: 256, 128>}, {transform_indices = @transform_4, window_bounds = array<i64: 256, 128>}]} {
    %c0 = arith.constant 0 : index
    %c0_0 = arith.constant 0 : index
    %0 = vector.load %arg1[%c0, %c0_0] : memref<256x128xbf16, #tpu.memory_space<vmem>>, vector<256x128xbf16>
    %c0_1 = arith.constant 0 : index
    %c0_2 = arith.constant 0 : index
    %1 = vector.load %arg2[%c0_1, %c0_2] : memref<128x128xbf16, #tpu.memory_space<vmem>>, vector<128x128xbf16>
    %cst = arith.constant dense<0.000000e+00> : vector<256x128xf32>
    %2 = tpu.matmul %0, %1, %cst {dimension_numbers = #tpu.dot_dimension_numbers<[1], [0], [0], [1], [0, 0, 1, 1], [], []>} : vector<256x128xbf16>, vector<128x128xbf16>, vector<256x128xf32> -> vector<256x128xf32>
    %c0_3 = arith.constant 0 : index
    %c0_4 = arith.constant 0 : index
    %3 = vector.load %arg3[%c0_3, %c0_4] : memref<1x128xf32, #tpu.memory_space<vmem>>, vector<1x128xf32>
    %4 = vector.broadcast %3 : vector<1x128xf32> to vector<256x128xf32>
    %5 = arith.addf %2, %4 : vector<256x128xf32>
    %c0_5 = arith.constant 0 : index
    %c0_6 = arith.constant 0 : index
    %6 = vector.load %arg4[%c0_5, %c0_6] : memref<256x128xbf16, #tpu.memory_space<vmem>>, vector<256x128xbf16>
    %7 = arith.extf %6 : vector<256x128xbf16> to vector<256x128xf32>
    %8 = arith.addf %5, %7 : vector<256x128xf32>
    %cst_7 = arith.constant 0.000000e+00 : f32
    %9 = vector.broadcast %cst_7 : f32 to vector<256x128xf32>
    %10 = arith.maximumf %8, %9 : vector<256x128xf32>
    %11 = arith.truncf %10 : vector<256x128xf32> to vector<256x128xbf16>
    %c0_8 = arith.constant 0 : index
    %c0_9 = arith.constant 0 : index
    %12 = vector.load %arg5[%c0_8, %c0_9] : memref<256x128xbf16, #tpu.memory_space<vmem>>, vector<256x128xbf16>
    tpu.vector_store %arg5[%c0_8, %c0_9], %11 {strides = array<i32>} : memref<256x128xbf16, #tpu.memory_space<vmem>>, vector<256x128xbf16>,
    return
  }
  func.func @transform_0(%arg0: i32) -> (i32, i32) {
    %c0_i32 = arith.constant 0 : i32
    %c0_i32_0 = arith.constant 0 : i32
    return %arg0, %c0_i32 : i32, i32
  }
  func.func @transform_1(%arg0: i32) -> (i32, i32) {
    %c0_i32 = arith.constant 0 : i32
    %c0_i32_0 = arith.constant 0 : i32
    %c0_i32_1 = arith.constant 0 : i32
    return %c0_i32, %c0_i32_0 : i32, i32
  }
  func.func @transform_2(%arg0: i32) -> (i32, i32) {
    %c0_i32 = arith.constant 0 : i32
    %c0_i32_0 = arith.constant 0 : i32
    %c0_i32_1 = arith.constant 0 : i32
    return %c0_i32, %c0_i32_0 : i32, i32
  }
  func.func @transform_3(%arg0: i32) -> (i32, i32) {
    %c0_i32 = arith.constant 0 : i32
    %c0_i32_0 = arith.constant 0 : i32
    return %arg0, %c0_i32 : i32, i32
  }
  func.func @transform_4(%arg0: i32) -> (i32, i32) {
    %c0_i32 = arith.constant 0 : i32
    %c0_i32_0 = arith.constant 0 : i32
    return %arg0, %c0_i32 : i32, i32
  }
}

module attributes {stable_mosaic.version = 11 : i64} {
  func.func @_conv_kernel(%arg0: i32, %arg1: memref<64x128xbf16, #tpu.memory_space<vmem>>, %arg2: memref<128x128xbf16, #tpu.memory_space<vmem>>, %arg3: memref<1x128xf32, #tpu.memory_space<vmem>>, %arg4: memref<64x128xbf16, #tpu.memory_space<vmem>>) attributes {dimension_semantics = [#tpu.dimension_semantics<parallel>], iteration_bounds = array<i64: 2>, scalar_prefetch = 0 : i64, scratch_operands = 0 : i64, tpu.core_type = #tpu.core_type<tc>, window_params = [{transform_indices = @transform_0, window_bounds = array<i64: 64, 128>}, {pipeline_mode = #tpu.pipeline_mode<synchronous>, transform_indices = @transform_1, window_bounds = array<i64: 128, 128>}, {pipeline_mode = #tpu.pipeline_mode<synchronous>, transform_indices = @transform_2, window_bounds = array<i64: 1, 128>}, {transform_indices = @transform_3, window_bounds = array<i64: 64, 128>}]} {
    %c0 = arith.constant 0 : index
    %c0_0 = arith.constant 0 : index
    %0 = vector.load %arg1[%c0, %c0_0] : memref<64x128xbf16, #tpu.memory_space<vmem>>, vector<64x128xbf16>
    %c0_1 = arith.constant 0 : index
    %c0_2 = arith.constant 0 : index
    %1 = vector.load %arg2[%c0_1, %c0_2] : memref<128x128xbf16, #tpu.memory_space<vmem>>, vector<128x128xbf16>
    %cst = arith.constant dense<0.000000e+00> : vector<64x128xf32>
    %2 = tpu.matmul %0, %1, %cst {dimension_numbers = #tpu.dot_dimension_numbers<[1], [0], [0], [1], [0, 0, 1, 1], [], []>} : vector<64x128xbf16>, vector<128x128xbf16>, vector<64x128xf32> -> vector<64x128xf32>
    %c0_3 = arith.constant 0 : index
    %c0_4 = arith.constant 0 : index
    %3 = vector.load %arg3[%c0_3, %c0_4] : memref<1x128xf32, #tpu.memory_space<vmem>>, vector<1x128xf32>
    %4 = vector.broadcast %3 : vector<1x128xf32> to vector<64x128xf32>
    %5 = arith.addf %2, %4 : vector<64x128xf32>
    %6 = arith.truncf %5 : vector<64x128xf32> to vector<64x128xbf16>
    %c0_5 = arith.constant 0 : index
    %c0_6 = arith.constant 0 : index
    %7 = vector.load %arg4[%c0_5, %c0_6] : memref<64x128xbf16, #tpu.memory_space<vmem>>, vector<64x128xbf16>
    tpu.vector_store %arg4[%c0_5, %c0_6], %6 {strides = array<i32>} : memref<64x128xbf16, #tpu.memory_space<vmem>>, vector<64x128xbf16>,
    return
  }
  func.func @transform_0(%arg0: i32) -> (i32, i32) {
    %c0_i32 = arith.constant 0 : i32
    %c0_i32_0 = arith.constant 0 : i32
    return %arg0, %c0_i32 : i32, i32
  }
  func.func @transform_1(%arg0: i32) -> (i32, i32) {
    %c0_i32 = arith.constant 0 : i32
    %c0_i32_0 = arith.constant 0 : i32
    %c0_i32_1 = arith.constant 0 : i32
    return %c0_i32, %c0_i32_0 : i32, i32
  }
  func.func @transform_2(%arg0: i32) -> (i32, i32) {
    %c0_i32 = arith.constant 0 : i32
    %c0_i32_0 = arith.constant 0 : i32
    %c0_i32_1 = arith.constant 0 : i32
    return %c0_i32, %c0_i32_0 : i32, i32
  }
  func.func @transform_3(%arg0: i32) -> (i32, i32) {
    %c0_i32 = arith.constant 0 : i32
    %c0_i32_0 = arith.constant 0 : i32
    return %arg0, %c0_i32 : i32, i32
  }
}

module attributes {stable_mosaic.version = 11 : i64} {
  func.func @_conv_kernel(%arg0: i32, %arg1: memref<64x128xbf16, #tpu.memory_space<vmem>>, %arg2: memref<128x128xbf16, #tpu.memory_space<vmem>>, %arg3: memref<1x128xf32, #tpu.memory_space<vmem>>, %arg4: memref<64x128xbf16, #tpu.memory_space<vmem>>) attributes {dimension_semantics = [#tpu.dimension_semantics<parallel>], iteration_bounds = array<i64: 2>, scalar_prefetch = 0 : i64, scratch_operands = 0 : i64, tpu.core_type = #tpu.core_type<tc>, window_params = [{transform_indices = @transform_0, window_bounds = array<i64: 64, 128>}, {pipeline_mode = #tpu.pipeline_mode<synchronous>, transform_indices = @transform_1, window_bounds = array<i64: 128, 128>}, {pipeline_mode = #tpu.pipeline_mode<synchronous>, transform_indices = @transform_2, window_bounds = array<i64: 1, 128>}, {transform_indices = @transform_3, window_bounds = array<i64: 64, 128>}]} {
    %c0 = arith.constant 0 : index
    %c0_0 = arith.constant 0 : index
    %0 = vector.load %arg1[%c0, %c0_0] : memref<64x128xbf16, #tpu.memory_space<vmem>>, vector<64x128xbf16>
    %c0_1 = arith.constant 0 : index
    %c0_2 = arith.constant 0 : index
    %1 = vector.load %arg2[%c0_1, %c0_2] : memref<128x128xbf16, #tpu.memory_space<vmem>>, vector<128x128xbf16>
    %cst = arith.constant dense<0.000000e+00> : vector<64x128xf32>
    %2 = tpu.matmul %0, %1, %cst {dimension_numbers = #tpu.dot_dimension_numbers<[1], [0], [0], [1], [0, 0, 1, 1], [], []>} : vector<64x128xbf16>, vector<128x128xbf16>, vector<64x128xf32> -> vector<64x128xf32>
    %c0_3 = arith.constant 0 : index
    %c0_4 = arith.constant 0 : index
    %3 = vector.load %arg3[%c0_3, %c0_4] : memref<1x128xf32, #tpu.memory_space<vmem>>, vector<1x128xf32>
    %4 = vector.broadcast %3 : vector<1x128xf32> to vector<64x128xf32>
    %5 = arith.addf %2, %4 : vector<64x128xf32>
    %cst_5 = arith.constant 0.000000e+00 : f32
    %6 = vector.broadcast %cst_5 : f32 to vector<64x128xf32>
    %7 = arith.maximumf %5, %6 : vector<64x128xf32>
    %8 = arith.truncf %7 : vector<64x128xf32> to vector<64x128xbf16>
    %c0_6 = arith.constant 0 : index
    %c0_7 = arith.constant 0 : index
    %9 = vector.load %arg4[%c0_6, %c0_7] : memref<64x128xbf16, #tpu.memory_space<vmem>>, vector<64x128xbf16>
    tpu.vector_store %arg4[%c0_6, %c0_7], %8 {strides = array<i32>} : memref<64x128xbf16, #tpu.memory_space<vmem>>, vector<64x128xbf16>,
    return
  }
  func.func @transform_0(%arg0: i32) -> (i32, i32) {
    %c0_i32 = arith.constant 0 : i32
    %c0_i32_0 = arith.constant 0 : i32
    return %arg0, %c0_i32 : i32, i32
  }
  func.func @transform_1(%arg0: i32) -> (i32, i32) {
    %c0_i32 = arith.constant 0 : i32
    %c0_i32_0 = arith.constant 0 : i32
    %c0_i32_1 = arith.constant 0 : i32
    return %c0_i32, %c0_i32_0 : i32, i32
  }
  func.func @transform_2(%arg0: i32) -> (i32, i32) {
    %c0_i32 = arith.constant 0 : i32
    %c0_i32_0 = arith.constant 0 : i32
    %c0_i32_1 = arith.constant 0 : i32
    return %c0_i32, %c0_i32_0 : i32, i32
  }
  func.func @transform_3(%arg0: i32) -> (i32, i32) {
    %c0_i32 = arith.constant 0 : i32
    %c0_i32_0 = arith.constant 0 : i32
    return %arg0, %c0_i32 : i32, i32
  }
}

module attributes {stable_mosaic.version = 11 : i64} {
  func.func @_conv_kernel(%arg0: i32, %arg1: memref<64x256xbf16, #tpu.memory_space<vmem>>, %arg2: memref<256x128xbf16, #tpu.memory_space<vmem>>, %arg3: memref<1x128xf32, #tpu.memory_space<vmem>>, %arg4: memref<64x128xbf16, #tpu.memory_space<vmem>>, %arg5: memref<64x128xbf16, #tpu.memory_space<vmem>>) attributes {dimension_semantics = [#tpu.dimension_semantics<parallel>], iteration_bounds = array<i64: 2>, scalar_prefetch = 0 : i64, scratch_operands = 0 : i64, tpu.core_type = #tpu.core_type<tc>, window_params = [{transform_indices = @transform_0, window_bounds = array<i64: 64, 256>}, {pipeline_mode = #tpu.pipeline_mode<synchronous>, transform_indices = @transform_1, window_bounds = array<i64: 256, 128>}, {pipeline_mode = #tpu.pipeline_mode<synchronous>, transform_indices = @transform_2, window_bounds = array<i64: 1, 128>}, {transform_indices = @transform_3, window_bounds = array<i64: 64, 128>}, {transform_indices = @transform_4, window_bounds = array<i64: 64, 128>}]} {
    %c0 = arith.constant 0 : index
    %c0_0 = arith.constant 0 : index
    %0 = vector.load %arg1[%c0, %c0_0] : memref<64x256xbf16, #tpu.memory_space<vmem>>, vector<64x256xbf16>
    %c0_1 = arith.constant 0 : index
    %c0_2 = arith.constant 0 : index
    %1 = vector.load %arg2[%c0_1, %c0_2] : memref<256x128xbf16, #tpu.memory_space<vmem>>, vector<256x128xbf16>
    %cst = arith.constant dense<0.000000e+00> : vector<64x128xf32>
    %2 = tpu.matmul %0, %1, %cst {dimension_numbers = #tpu.dot_dimension_numbers<[1], [0], [0], [1], [0, 0, 1, 1], [], []>} : vector<64x256xbf16>, vector<256x128xbf16>, vector<64x128xf32> -> vector<64x128xf32>
    %c0_3 = arith.constant 0 : index
    %c0_4 = arith.constant 0 : index
    %3 = vector.load %arg3[%c0_3, %c0_4] : memref<1x128xf32, #tpu.memory_space<vmem>>, vector<1x128xf32>
    %4 = vector.broadcast %3 : vector<1x128xf32> to vector<64x128xf32>
    %5 = arith.addf %2, %4 : vector<64x128xf32>
    %c0_5 = arith.constant 0 : index
    %c0_6 = arith.constant 0 : index
    %6 = vector.load %arg4[%c0_5, %c0_6] : memref<64x128xbf16, #tpu.memory_space<vmem>>, vector<64x128xbf16>
    %7 = arith.extf %6 : vector<64x128xbf16> to vector<64x128xf32>
    %8 = arith.addf %5, %7 : vector<64x128xf32>
    %cst_7 = arith.constant 0.000000e+00 : f32
    %9 = vector.broadcast %cst_7 : f32 to vector<64x128xf32>
    %10 = arith.maximumf %8, %9 : vector<64x128xf32>
    %11 = arith.truncf %10 : vector<64x128xf32> to vector<64x128xbf16>
    %c0_8 = arith.constant 0 : index
    %c0_9 = arith.constant 0 : index
    %12 = vector.load %arg5[%c0_8, %c0_9] : memref<64x128xbf16, #tpu.memory_space<vmem>>, vector<64x128xbf16>
    tpu.vector_store %arg5[%c0_8, %c0_9], %11 {strides = array<i32>} : memref<64x128xbf16, #tpu.memory_space<vmem>>, vector<64x128xbf16>,
    return
  }
  func.func @transform_0(%arg0: i32) -> (i32, i32) {
    %c0_i32 = arith.constant 0 : i32
    %c0_i32_0 = arith.constant 0 : i32
    return %arg0, %c0_i32 : i32, i32
  }
  func.func @transform_1(%arg0: i32) -> (i32, i32) {
    %c0_i32 = arith.constant 0 : i32
    %c0_i32_0 = arith.constant 0 : i32
    %c0_i32_1 = arith.constant 0 : i32
    return %c0_i32, %c0_i32_0 : i32, i32
  }
  func.func @transform_2(%arg0: i32) -> (i32, i32) {
    %c0_i32 = arith.constant 0 : i32
    %c0_i32_0 = arith.constant 0 : i32
    %c0_i32_1 = arith.constant 0 : i32
    return %c0_i32, %c0_i32_0 : i32, i32
  }
  func.func @transform_3(%arg0: i32) -> (i32, i32) {
    %c0_i32 = arith.constant 0 : i32
    %c0_i32_0 = arith.constant 0 : i32
    return %arg0, %c0_i32 : i32, i32
  }
  func.func @transform_4(%arg0: i32) -> (i32, i32) {
    %c0_i32 = arith.constant 0 : i32
    %c0_i32_0 = arith.constant 0 : i32
    return %arg0, %c0_i32 : i32, i32
  }
}

module attributes {stable_mosaic.version = 11 : i64} {
  func.func @_conv_kernel(%arg0: i32, %arg1: memref<64x256xbf16, #tpu.memory_space<vmem>>, %arg2: memref<256x128xbf16, #tpu.memory_space<vmem>>, %arg3: memref<1x128xf32, #tpu.memory_space<vmem>>, %arg4: memref<64x128xbf16, #tpu.memory_space<vmem>>) attributes {dimension_semantics = [#tpu.dimension_semantics<parallel>], iteration_bounds = array<i64: 2>, scalar_prefetch = 0 : i64, scratch_operands = 0 : i64, tpu.core_type = #tpu.core_type<tc>, window_params = [{transform_indices = @transform_0, window_bounds = array<i64: 64, 256>}, {pipeline_mode = #tpu.pipeline_mode<synchronous>, transform_indices = @transform_1, window_bounds = array<i64: 256, 128>}, {pipeline_mode = #tpu.pipeline_mode<synchronous>, transform_indices = @transform_2, window_bounds = array<i64: 1, 128>}, {transform_indices = @transform_3, window_bounds = array<i64: 64, 128>}]} {
    %c0 = arith.constant 0 : index
    %c0_0 = arith.constant 0 : index
    %0 = vector.load %arg1[%c0, %c0_0] : memref<64x256xbf16, #tpu.memory_space<vmem>>, vector<64x256xbf16>
    %c0_1 = arith.constant 0 : index
    %c0_2 = arith.constant 0 : index
    %1 = vector.load %arg2[%c0_1, %c0_2] : memref<256x128xbf16, #tpu.memory_space<vmem>>, vector<256x128xbf16>
    %cst = arith.constant dense<0.000000e+00> : vector<64x128xf32>
    %2 = tpu.matmul %0, %1, %cst {dimension_numbers = #tpu.dot_dimension_numbers<[1], [0], [0], [1], [0, 0, 1, 1], [], []>} : vector<64x256xbf16>, vector<256x128xbf16>, vector<64x128xf32> -> vector<64x128xf32>
    %c0_3 = arith.constant 0 : index
    %c0_4 = arith.constant 0 : index
    %3 = vector.load %arg3[%c0_3, %c0_4] : memref<1x128xf32, #tpu.memory_space<vmem>>, vector<1x128xf32>
    %4 = vector.broadcast %3 : vector<1x128xf32> to vector<64x128xf32>
    %5 = arith.addf %2, %4 : vector<64x128xf32>
    %cst_5 = arith.constant 0.000000e+00 : f32
    %6 = vector.broadcast %cst_5 : f32 to vector<64x128xf32>
    %7 = arith.maximumf %5, %6 : vector<64x128xf32>
    %8 = arith.truncf %7 : vector<64x128xf32> to vector<64x128xbf16>
    %c0_6 = arith.constant 0 : index
    %c0_7 = arith.constant 0 : index
    %9 = vector.load %arg4[%c0_6, %c0_7] : memref<64x128xbf16, #tpu.memory_space<vmem>>, vector<64x128xbf16>
    tpu.vector_store %arg4[%c0_6, %c0_7], %8 {strides = array<i32>} : memref<64x128xbf16, #tpu.memory_space<vmem>>, vector<64x128xbf16>,
    return
  }
  func.func @transform_0(%arg0: i32) -> (i32, i32) {
    %c0_i32 = arith.constant 0 : i32
    %c0_i32_0 = arith.constant 0 : i32
    return %arg0, %c0_i32 : i32, i32
  }
  func.func @transform_1(%arg0: i32) -> (i32, i32) {
    %c0_i32 = arith.constant 0 : i32
    %c0_i32_0 = arith.constant 0 : i32
    %c0_i32_1 = arith.constant 0 : i32
    return %c0_i32, %c0_i32_0 : i32, i32
  }
  func.func @transform_2(%arg0: i32) -> (i32, i32) {
    %c0_i32 = arith.constant 0 : i32
    %c0_i32_0 = arith.constant 0 : i32
    %c0_i32_1 = arith.constant 0 : i32
    return %c0_i32, %c0_i32_0 : i32, i32
  }
  func.func @transform_3(%arg0: i32) -> (i32, i32) {
    %c0_i32 = arith.constant 0 : i32
    %c0_i32_0 = arith.constant 0 : i32
    return %arg0, %c0_i32 : i32, i32
  }
}

module attributes {stable_mosaic.version = 11 : i64} {
  func.func @_conv_kernel(%arg0: i32, %arg1: memref<16x128xbf16, #tpu.memory_space<vmem>>, %arg2: memref<128x128xbf16, #tpu.memory_space<vmem>>, %arg3: memref<1x128xf32, #tpu.memory_space<vmem>>, %arg4: memref<16x128xbf16, #tpu.memory_space<vmem>>) attributes {dimension_semantics = [#tpu.dimension_semantics<parallel>], iteration_bounds = array<i64: 2>, scalar_prefetch = 0 : i64, scratch_operands = 0 : i64, tpu.core_type = #tpu.core_type<tc>, window_params = [{transform_indices = @transform_0, window_bounds = array<i64: 16, 128>}, {pipeline_mode = #tpu.pipeline_mode<synchronous>, transform_indices = @transform_1, window_bounds = array<i64: 128, 128>}, {pipeline_mode = #tpu.pipeline_mode<synchronous>, transform_indices = @transform_2, window_bounds = array<i64: 1, 128>}, {transform_indices = @transform_3, window_bounds = array<i64: 16, 128>}]} {
    %c0 = arith.constant 0 : index
    %c0_0 = arith.constant 0 : index
    %0 = vector.load %arg1[%c0, %c0_0] : memref<16x128xbf16, #tpu.memory_space<vmem>>, vector<16x128xbf16>
    %c0_1 = arith.constant 0 : index
    %c0_2 = arith.constant 0 : index
    %1 = vector.load %arg2[%c0_1, %c0_2] : memref<128x128xbf16, #tpu.memory_space<vmem>>, vector<128x128xbf16>
    %cst = arith.constant dense<0.000000e+00> : vector<16x128xf32>
    %2 = tpu.matmul %0, %1, %cst {dimension_numbers = #tpu.dot_dimension_numbers<[1], [0], [0], [1], [0, 0, 1, 1], [], []>} : vector<16x128xbf16>, vector<128x128xbf16>, vector<16x128xf32> -> vector<16x128xf32>
    %c0_3 = arith.constant 0 : index
    %c0_4 = arith.constant 0 : index
    %3 = vector.load %arg3[%c0_3, %c0_4] : memref<1x128xf32, #tpu.memory_space<vmem>>, vector<1x128xf32>
    %4 = vector.broadcast %3 : vector<1x128xf32> to vector<16x128xf32>
    %5 = arith.addf %2, %4 : vector<16x128xf32>
    %6 = arith.truncf %5 : vector<16x128xf32> to vector<16x128xbf16>
    %c0_5 = arith.constant 0 : index
    %c0_6 = arith.constant 0 : index
    %7 = vector.load %arg4[%c0_5, %c0_6] : memref<16x128xbf16, #tpu.memory_space<vmem>>, vector<16x128xbf16>
    tpu.vector_store %arg4[%c0_5, %c0_6], %6 {strides = array<i32>} : memref<16x128xbf16, #tpu.memory_space<vmem>>, vector<16x128xbf16>,
    return
  }
  func.func @transform_0(%arg0: i32) -> (i32, i32) {
    %c0_i32 = arith.constant 0 : i32
    %c0_i32_0 = arith.constant 0 : i32
    return %arg0, %c0_i32 : i32, i32
  }
  func.func @transform_1(%arg0: i32) -> (i32, i32) {
    %c0_i32 = arith.constant 0 : i32
    %c0_i32_0 = arith.constant 0 : i32
    %c0_i32_1 = arith.constant 0 : i32
    return %c0_i32, %c0_i32_0 : i32, i32
  }
  func.func @transform_2(%arg0: i32) -> (i32, i32) {
    %c0_i32 = arith.constant 0 : i32
    %c0_i32_0 = arith.constant 0 : i32
    %c0_i32_1 = arith.constant 0 : i32
    return %c0_i32, %c0_i32_0 : i32, i32
  }
  func.func @transform_3(%arg0: i32) -> (i32, i32) {
    %c0_i32 = arith.constant 0 : i32
    %c0_i32_0 = arith.constant 0 : i32
    return %arg0, %c0_i32 : i32, i32
  }
}

module attributes {stable_mosaic.version = 11 : i64} {
  func.func @_conv_kernel(%arg0: i32, %arg1: memref<16x256xbf16, #tpu.memory_space<vmem>>, %arg2: memref<256x128xbf16, #tpu.memory_space<vmem>>, %arg3: memref<1x128xf32, #tpu.memory_space<vmem>>, %arg4: memref<16x128xbf16, #tpu.memory_space<vmem>>) attributes {dimension_semantics = [#tpu.dimension_semantics<parallel>], iteration_bounds = array<i64: 2>, scalar_prefetch = 0 : i64, scratch_operands = 0 : i64, tpu.core_type = #tpu.core_type<tc>, window_params = [{transform_indices = @transform_0, window_bounds = array<i64: 16, 256>}, {pipeline_mode = #tpu.pipeline_mode<synchronous>, transform_indices = @transform_1, window_bounds = array<i64: 256, 128>}, {pipeline_mode = #tpu.pipeline_mode<synchronous>, transform_indices = @transform_2, window_bounds = array<i64: 1, 128>}, {transform_indices = @transform_3, window_bounds = array<i64: 16, 128>}]} {
    %c0 = arith.constant 0 : index
    %c0_0 = arith.constant 0 : index
    %0 = vector.load %arg1[%c0, %c0_0] : memref<16x256xbf16, #tpu.memory_space<vmem>>, vector<16x256xbf16>
    %c0_1 = arith.constant 0 : index
    %c0_2 = arith.constant 0 : index
    %1 = vector.load %arg2[%c0_1, %c0_2] : memref<256x128xbf16, #tpu.memory_space<vmem>>, vector<256x128xbf16>
    %cst = arith.constant dense<0.000000e+00> : vector<16x128xf32>
    %2 = tpu.matmul %0, %1, %cst {dimension_numbers = #tpu.dot_dimension_numbers<[1], [0], [0], [1], [0, 0, 1, 1], [], []>} : vector<16x256xbf16>, vector<256x128xbf16>, vector<16x128xf32> -> vector<16x128xf32>
    %c0_3 = arith.constant 0 : index
    %c0_4 = arith.constant 0 : index
    %3 = vector.load %arg3[%c0_3, %c0_4] : memref<1x128xf32, #tpu.memory_space<vmem>>, vector<1x128xf32>
    %4 = vector.broadcast %3 : vector<1x128xf32> to vector<16x128xf32>
    %5 = arith.addf %2, %4 : vector<16x128xf32>
    %cst_5 = arith.constant 0.000000e+00 : f32
    %6 = vector.broadcast %cst_5 : f32 to vector<16x128xf32>
    %7 = arith.maximumf %5, %6 : vector<16x128xf32>
    %8 = arith.truncf %7 : vector<16x128xf32> to vector<16x128xbf16>
    %c0_6 = arith.constant 0 : index
    %c0_7 = arith.constant 0 : index
    %9 = vector.load %arg4[%c0_6, %c0_7] : memref<16x128xbf16, #tpu.memory_space<vmem>>, vector<16x128xbf16>
    tpu.vector_store %arg4[%c0_6, %c0_7], %8 {strides = array<i32>} : memref<16x128xbf16, #tpu.memory_space<vmem>>, vector<16x128xbf16>,
    return
  }
  func.func @transform_0(%arg0: i32) -> (i32, i32) {
    %c0_i32 = arith.constant 0 : i32
    %c0_i32_0 = arith.constant 0 : i32
    return %arg0, %c0_i32 : i32, i32
  }
  func.func @transform_1(%arg0: i32) -> (i32, i32) {
    %c0_i32 = arith.constant 0 : i32
    %c0_i32_0 = arith.constant 0 : i32
    %c0_i32_1 = arith.constant 0 : i32
    return %c0_i32, %c0_i32_0 : i32, i32
  }
  func.func @transform_2(%arg0: i32) -> (i32, i32) {
    %c0_i32 = arith.constant 0 : i32
    %c0_i32_0 = arith.constant 0 : i32
    %c0_i32_1 = arith.constant 0 : i32
    return %c0_i32, %c0_i32_0 : i32, i32
  }
  func.func @transform_3(%arg0: i32) -> (i32, i32) {
    %c0_i32 = arith.constant 0 : i32
    %c0_i32_0 = arith.constant 0 : i32
    return %arg0, %c0_i32 : i32, i32
  }
}

module attributes {stable_mosaic.version = 11 : i64} {
  func.func @_conv_kernel(%arg0: i32, %arg1: memref<16x384xbf16, #tpu.memory_space<vmem>>, %arg2: memref<384x128xbf16, #tpu.memory_space<vmem>>, %arg3: memref<1x128xf32, #tpu.memory_space<vmem>>, %arg4: memref<16x128xbf16, #tpu.memory_space<vmem>>) attributes {dimension_semantics = [#tpu.dimension_semantics<parallel>], iteration_bounds = array<i64: 2>, scalar_prefetch = 0 : i64, scratch_operands = 0 : i64, tpu.core_type = #tpu.core_type<tc>, window_params = [{transform_indices = @transform_0, window_bounds = array<i64: 16, 384>}, {pipeline_mode = #tpu.pipeline_mode<synchronous>, transform_indices = @transform_1, window_bounds = array<i64: 384, 128>}, {pipeline_mode = #tpu.pipeline_mode<synchronous>, transform_indices = @transform_2, window_bounds = array<i64: 1, 128>}, {transform_indices = @transform_3, window_bounds = array<i64: 16, 128>}]} {
    %c0 = arith.constant 0 : index
    %c0_0 = arith.constant 0 : index
    %0 = vector.load %arg1[%c0, %c0_0] : memref<16x384xbf16, #tpu.memory_space<vmem>>, vector<16x384xbf16>
    %c0_1 = arith.constant 0 : index
    %c0_2 = arith.constant 0 : index
    %1 = vector.load %arg2[%c0_1, %c0_2] : memref<384x128xbf16, #tpu.memory_space<vmem>>, vector<384x128xbf16>
    %cst = arith.constant dense<0.000000e+00> : vector<16x128xf32>
    %2 = tpu.matmul %0, %1, %cst {dimension_numbers = #tpu.dot_dimension_numbers<[1], [0], [0], [1], [0, 0, 1, 1], [], []>} : vector<16x384xbf16>, vector<384x128xbf16>, vector<16x128xf32> -> vector<16x128xf32>
    %c0_3 = arith.constant 0 : index
    %c0_4 = arith.constant 0 : index
    %3 = vector.load %arg3[%c0_3, %c0_4] : memref<1x128xf32, #tpu.memory_space<vmem>>, vector<1x128xf32>
    %4 = vector.broadcast %3 : vector<1x128xf32> to vector<16x128xf32>
    %5 = arith.addf %2, %4 : vector<16x128xf32>
    %cst_5 = arith.constant 0.000000e+00 : f32
    %6 = vector.broadcast %cst_5 : f32 to vector<16x128xf32>
    %7 = arith.maximumf %5, %6 : vector<16x128xf32>
    %8 = arith.truncf %7 : vector<16x128xf32> to vector<16x128xbf16>
    %c0_6 = arith.constant 0 : index
    %c0_7 = arith.constant 0 : index
    %9 = vector.load %arg4[%c0_6, %c0_7] : memref<16x128xbf16, #tpu.memory_space<vmem>>, vector<16x128xbf16>
    tpu.vector_store %arg4[%c0_6, %c0_7], %8 {strides = array<i32>} : memref<16x128xbf16, #tpu.memory_space<vmem>>, vector<16x128xbf16>,
    return
  }
  func.func @transform_0(%arg0: i32) -> (i32, i32) {
    %c0_i32 = arith.constant 0 : i32
    %c0_i32_0 = arith.constant 0 : i32
    return %arg0, %c0_i32 : i32, i32
  }
  func.func @transform_1(%arg0: i32) -> (i32, i32) {
    %c0_i32 = arith.constant 0 : i32
    %c0_i32_0 = arith.constant 0 : i32
    %c0_i32_1 = arith.constant 0 : i32
    return %c0_i32, %c0_i32_0 : i32, i32
  }
  func.func @transform_2(%arg0: i32) -> (i32, i32) {
    %c0_i32 = arith.constant 0 : i32
    %c0_i32_0 = arith.constant 0 : i32
    %c0_i32_1 = arith.constant 0 : i32
    return %c0_i32, %c0_i32_0 : i32, i32
  }
  func.func @transform_3(%arg0: i32) -> (i32, i32) {
    %c0_i32 = arith.constant 0 : i32
    %c0_i32_0 = arith.constant 0 : i32
    return %arg0, %c0_i32 : i32, i32
  }
}

module attributes {stable_mosaic.version = 11 : i64} {
  func.func @_conv_kernel(%arg0: i32, %arg1: memref<16x384xbf16, #tpu.memory_space<vmem>>, %arg2: memref<384x128xbf16, #tpu.memory_space<vmem>>, %arg3: memref<1x128xf32, #tpu.memory_space<vmem>>, %arg4: memref<16x128xbf16, #tpu.memory_space<vmem>>, %arg5: memref<16x128xbf16, #tpu.memory_space<vmem>>) attributes {dimension_semantics = [#tpu.dimension_semantics<parallel>], iteration_bounds = array<i64: 2>, scalar_prefetch = 0 : i64, scratch_operands = 0 : i64, tpu.core_type = #tpu.core_type<tc>, window_params = [{transform_indices = @transform_0, window_bounds = array<i64: 16, 384>}, {pipeline_mode = #tpu.pipeline_mode<synchronous>, transform_indices = @transform_1, window_bounds = array<i64: 384, 128>}, {pipeline_mode = #tpu.pipeline_mode<synchronous>, transform_indices = @transform_2, window_bounds = array<i64: 1, 128>}, {transform_indices = @transform_3, window_bounds = array<i64: 16, 128>}, {transform_indices = @transform_4, window_bounds = array<i64: 16, 128>}]} {
    %c0 = arith.constant 0 : index
    %c0_0 = arith.constant 0 : index
    %0 = vector.load %arg1[%c0, %c0_0] : memref<16x384xbf16, #tpu.memory_space<vmem>>, vector<16x384xbf16>
    %c0_1 = arith.constant 0 : index
    %c0_2 = arith.constant 0 : index
    %1 = vector.load %arg2[%c0_1, %c0_2] : memref<384x128xbf16, #tpu.memory_space<vmem>>, vector<384x128xbf16>
    %cst = arith.constant dense<0.000000e+00> : vector<16x128xf32>
    %2 = tpu.matmul %0, %1, %cst {dimension_numbers = #tpu.dot_dimension_numbers<[1], [0], [0], [1], [0, 0, 1, 1], [], []>} : vector<16x384xbf16>, vector<384x128xbf16>, vector<16x128xf32> -> vector<16x128xf32>
    %c0_3 = arith.constant 0 : index
    %c0_4 = arith.constant 0 : index
    %3 = vector.load %arg3[%c0_3, %c0_4] : memref<1x128xf32, #tpu.memory_space<vmem>>, vector<1x128xf32>
    %4 = vector.broadcast %3 : vector<1x128xf32> to vector<16x128xf32>
    %5 = arith.addf %2, %4 : vector<16x128xf32>
    %c0_5 = arith.constant 0 : index
    %c0_6 = arith.constant 0 : index
    %6 = vector.load %arg4[%c0_5, %c0_6] : memref<16x128xbf16, #tpu.memory_space<vmem>>, vector<16x128xbf16>
    %7 = arith.extf %6 : vector<16x128xbf16> to vector<16x128xf32>
    %8 = arith.addf %5, %7 : vector<16x128xf32>
    %cst_7 = arith.constant 0.000000e+00 : f32
    %9 = vector.broadcast %cst_7 : f32 to vector<16x128xf32>
    %10 = arith.maximumf %8, %9 : vector<16x128xf32>
    %11 = arith.truncf %10 : vector<16x128xf32> to vector<16x128xbf16>
    %c0_8 = arith.constant 0 : index
    %c0_9 = arith.constant 0 : index
    %12 = vector.load %arg5[%c0_8, %c0_9] : memref<16x128xbf16, #tpu.memory_space<vmem>>, vector<16x128xbf16>
    tpu.vector_store %arg5[%c0_8, %c0_9], %11 {strides = array<i32>} : memref<16x128xbf16, #tpu.memory_space<vmem>>, vector<16x128xbf16>,
    return
  }
  func.func @transform_0(%arg0: i32) -> (i32, i32) {
    %c0_i32 = arith.constant 0 : i32
    %c0_i32_0 = arith.constant 0 : i32
    return %arg0, %c0_i32 : i32, i32
  }
  func.func @transform_1(%arg0: i32) -> (i32, i32) {
    %c0_i32 = arith.constant 0 : i32
    %c0_i32_0 = arith.constant 0 : i32
    %c0_i32_1 = arith.constant 0 : i32
    return %c0_i32, %c0_i32_0 : i32, i32
  }
  func.func @transform_2(%arg0: i32) -> (i32, i32) {
    %c0_i32 = arith.constant 0 : i32
    %c0_i32_0 = arith.constant 0 : i32
    %c0_i32_1 = arith.constant 0 : i32
    return %c0_i32, %c0_i32_0 : i32, i32
  }
  func.func @transform_3(%arg0: i32) -> (i32, i32) {
    %c0_i32 = arith.constant 0 : i32
    %c0_i32_0 = arith.constant 0 : i32
    return %arg0, %c0_i32 : i32, i32
  }
  func.func @transform_4(%arg0: i32) -> (i32, i32) {
    %c0_i32 = arith.constant 0 : i32
    %c0_i32_0 = arith.constant 0 : i32
    return %arg0, %c0_i32 : i32, i32
  }
}

module attributes {stable_mosaic.version = 11 : i64} {
  func.func @_conv_kernel(%arg0: i32, %arg1: memref<8x128xbf16, #tpu.memory_space<vmem>>, %arg2: memref<128x128xbf16, #tpu.memory_space<vmem>>, %arg3: memref<1x128xf32, #tpu.memory_space<vmem>>, %arg4: memref<8x128xbf16, #tpu.memory_space<vmem>>) attributes {dimension_semantics = [#tpu.dimension_semantics<parallel>], iteration_bounds = array<i64: 1>, scalar_prefetch = 0 : i64, scratch_operands = 0 : i64, tpu.core_type = #tpu.core_type<tc>, window_params = [{transform_indices = @transform_0, window_bounds = array<i64: 8, 128>}, {pipeline_mode = #tpu.pipeline_mode<synchronous>, transform_indices = @transform_1, window_bounds = array<i64: 128, 128>}, {pipeline_mode = #tpu.pipeline_mode<synchronous>, transform_indices = @transform_2, window_bounds = array<i64: 1, 128>}, {transform_indices = @transform_3, window_bounds = array<i64: 8, 128>}]} {
    %c0 = arith.constant 0 : index
    %c0_0 = arith.constant 0 : index
    %0 = vector.load %arg1[%c0, %c0_0] : memref<8x128xbf16, #tpu.memory_space<vmem>>, vector<8x128xbf16>
    %c0_1 = arith.constant 0 : index
    %c0_2 = arith.constant 0 : index
    %1 = vector.load %arg2[%c0_1, %c0_2] : memref<128x128xbf16, #tpu.memory_space<vmem>>, vector<128x128xbf16>
    %cst = arith.constant dense<0.000000e+00> : vector<8x128xf32>
    %2 = tpu.matmul %0, %1, %cst {dimension_numbers = #tpu.dot_dimension_numbers<[1], [0], [0], [1], [0, 0, 1, 1], [], []>} : vector<8x128xbf16>, vector<128x128xbf16>, vector<8x128xf32> -> vector<8x128xf32>
    %c0_3 = arith.constant 0 : index
    %c0_4 = arith.constant 0 : index
    %3 = vector.load %arg3[%c0_3, %c0_4] : memref<1x128xf32, #tpu.memory_space<vmem>>, vector<1x128xf32>
    %4 = vector.broadcast %3 : vector<1x128xf32> to vector<8x128xf32>
    %5 = arith.addf %2, %4 : vector<8x128xf32>
    %6 = arith.truncf %5 : vector<8x128xf32> to vector<8x128xbf16>
    %c0_5 = arith.constant 0 : index
    %c0_6 = arith.constant 0 : index
    %7 = vector.load %arg4[%c0_5, %c0_6] : memref<8x128xbf16, #tpu.memory_space<vmem>>, vector<8x128xbf16>
    tpu.vector_store %arg4[%c0_5, %c0_6], %6 {strides = array<i32>} : memref<8x128xbf16, #tpu.memory_space<vmem>>, vector<8x128xbf16>,
    return
  }
  func.func @transform_0(%arg0: i32) -> (i32, i32) {
    %c0_i32 = arith.constant 0 : i32
    %c0_i32_0 = arith.constant 0 : i32
    return %arg0, %c0_i32 : i32, i32
  }
  func.func @transform_1(%arg0: i32) -> (i32, i32) {
    %c0_i32 = arith.constant 0 : i32
    %c0_i32_0 = arith.constant 0 : i32
    %c0_i32_1 = arith.constant 0 : i32
    return %c0_i32, %c0_i32_0 : i32, i32
  }
  func.func @transform_2(%arg0: i32) -> (i32, i32) {
    %c0_i32 = arith.constant 0 : i32
    %c0_i32_0 = arith.constant 0 : i32
    %c0_i32_1 = arith.constant 0 : i32
    return %c0_i32, %c0_i32_0 : i32, i32
  }
  func.func @transform_3(%arg0: i32) -> (i32, i32) {
    %c0_i32 = arith.constant 0 : i32
    %c0_i32_0 = arith.constant 0 : i32
    return %arg0, %c0_i32 : i32, i32
  }
}

module attributes {stable_mosaic.version = 11 : i64} {
  func.func @_conv_kernel(%arg0: i32, %arg1: memref<8x384xbf16, #tpu.memory_space<vmem>>, %arg2: memref<384x128xbf16, #tpu.memory_space<vmem>>, %arg3: memref<1x128xf32, #tpu.memory_space<vmem>>, %arg4: memref<8x128xbf16, #tpu.memory_space<vmem>>) attributes {dimension_semantics = [#tpu.dimension_semantics<parallel>], iteration_bounds = array<i64: 1>, scalar_prefetch = 0 : i64, scratch_operands = 0 : i64, tpu.core_type = #tpu.core_type<tc>, window_params = [{transform_indices = @transform_0, window_bounds = array<i64: 8, 384>}, {pipeline_mode = #tpu.pipeline_mode<synchronous>, transform_indices = @transform_1, window_bounds = array<i64: 384, 128>}, {pipeline_mode = #tpu.pipeline_mode<synchronous>, transform_indices = @transform_2, window_bounds = array<i64: 1, 128>}, {transform_indices = @transform_3, window_bounds = array<i64: 8, 128>}]} {
    %c0 = arith.constant 0 : index
    %c0_0 = arith.constant 0 : index
    %0 = vector.load %arg1[%c0, %c0_0] : memref<8x384xbf16, #tpu.memory_space<vmem>>, vector<8x384xbf16>
    %c0_1 = arith.constant 0 : index
    %c0_2 = arith.constant 0 : index
    %1 = vector.load %arg2[%c0_1, %c0_2] : memref<384x128xbf16, #tpu.memory_space<vmem>>, vector<384x128xbf16>
    %cst = arith.constant dense<0.000000e+00> : vector<8x128xf32>
    %2 = tpu.matmul %0, %1, %cst {dimension_numbers = #tpu.dot_dimension_numbers<[1], [0], [0], [1], [0, 0, 1, 1], [], []>} : vector<8x384xbf16>, vector<384x128xbf16>, vector<8x128xf32> -> vector<8x128xf32>
    %c0_3 = arith.constant 0 : index
    %c0_4 = arith.constant 0 : index
    %3 = vector.load %arg3[%c0_3, %c0_4] : memref<1x128xf32, #tpu.memory_space<vmem>>, vector<1x128xf32>
    %4 = vector.broadcast %3 : vector<1x128xf32> to vector<8x128xf32>
    %5 = arith.addf %2, %4 : vector<8x128xf32>
    %cst_5 = arith.constant 0.000000e+00 : f32
    %6 = vector.broadcast %cst_5 : f32 to vector<8x128xf32>
    %7 = arith.maximumf %5, %6 : vector<8x128xf32>
    %8 = arith.truncf %7 : vector<8x128xf32> to vector<8x128xbf16>
    %c0_6 = arith.constant 0 : index
    %c0_7 = arith.constant 0 : index
    %9 = vector.load %arg4[%c0_6, %c0_7] : memref<8x128xbf16, #tpu.memory_space<vmem>>, vector<8x128xbf16>
    tpu.vector_store %arg4[%c0_6, %c0_7], %8 {strides = array<i32>} : memref<8x128xbf16, #tpu.memory_space<vmem>>, vector<8x128xbf16>,
    return
  }
  func.func @transform_0(%arg0: i32) -> (i32, i32) {
    %c0_i32 = arith.constant 0 : i32
    %c0_i32_0 = arith.constant 0 : i32
    return %arg0, %c0_i32 : i32, i32
  }
  func.func @transform_1(%arg0: i32) -> (i32, i32) {
    %c0_i32 = arith.constant 0 : i32
    %c0_i32_0 = arith.constant 0 : i32
    %c0_i32_1 = arith.constant 0 : i32
    return %c0_i32, %c0_i32_0 : i32, i32
  }
  func.func @transform_2(%arg0: i32) -> (i32, i32) {
    %c0_i32 = arith.constant 0 : i32
    %c0_i32_0 = arith.constant 0 : i32
    %c0_i32_1 = arith.constant 0 : i32
    return %c0_i32, %c0_i32_0 : i32, i32
  }
  func.func @transform_3(%arg0: i32) -> (i32, i32) {
    %c0_i32 = arith.constant 0 : i32
    %c0_i32_0 = arith.constant 0 : i32
    return %arg0, %c0_i32 : i32, i32
  }
}

module attributes {stable_mosaic.version = 11 : i64} {
  func.func @_conv_kernel(%arg0: i32, %arg1: memref<8x640xbf16, #tpu.memory_space<vmem>>, %arg2: memref<640x128xbf16, #tpu.memory_space<vmem>>, %arg3: memref<1x128xf32, #tpu.memory_space<vmem>>, %arg4: memref<8x128xbf16, #tpu.memory_space<vmem>>) attributes {dimension_semantics = [#tpu.dimension_semantics<parallel>], iteration_bounds = array<i64: 1>, scalar_prefetch = 0 : i64, scratch_operands = 0 : i64, tpu.core_type = #tpu.core_type<tc>, window_params = [{transform_indices = @transform_0, window_bounds = array<i64: 8, 640>}, {pipeline_mode = #tpu.pipeline_mode<synchronous>, transform_indices = @transform_1, window_bounds = array<i64: 640, 128>}, {pipeline_mode = #tpu.pipeline_mode<synchronous>, transform_indices = @transform_2, window_bounds = array<i64: 1, 128>}, {transform_indices = @transform_3, window_bounds = array<i64: 8, 128>}]} {
    %c0 = arith.constant 0 : index
    %c0_0 = arith.constant 0 : index
    %0 = vector.load %arg1[%c0, %c0_0] : memref<8x640xbf16, #tpu.memory_space<vmem>>, vector<8x640xbf16>
    %c0_1 = arith.constant 0 : index
    %c0_2 = arith.constant 0 : index
    %1 = vector.load %arg2[%c0_1, %c0_2] : memref<640x128xbf16, #tpu.memory_space<vmem>>, vector<640x128xbf16>
    %cst = arith.constant dense<0.000000e+00> : vector<8x128xf32>
    %2 = tpu.matmul %0, %1, %cst {dimension_numbers = #tpu.dot_dimension_numbers<[1], [0], [0], [1], [0, 0, 1, 1], [], []>} : vector<8x640xbf16>, vector<640x128xbf16>, vector<8x128xf32> -> vector<8x128xf32>
    %c0_3 = arith.constant 0 : index
    %c0_4 = arith.constant 0 : index
    %3 = vector.load %arg3[%c0_3, %c0_4] : memref<1x128xf32, #tpu.memory_space<vmem>>, vector<1x128xf32>
    %4 = vector.broadcast %3 : vector<1x128xf32> to vector<8x128xf32>
    %5 = arith.addf %2, %4 : vector<8x128xf32>
    %cst_5 = arith.constant 0.000000e+00 : f32
    %6 = vector.broadcast %cst_5 : f32 to vector<8x128xf32>
    %7 = arith.maximumf %5, %6 : vector<8x128xf32>
    %8 = arith.truncf %7 : vector<8x128xf32> to vector<8x128xbf16>
    %c0_6 = arith.constant 0 : index
    %c0_7 = arith.constant 0 : index
    %9 = vector.load %arg4[%c0_6, %c0_7] : memref<8x128xbf16, #tpu.memory_space<vmem>>, vector<8x128xbf16>
    tpu.vector_store %arg4[%c0_6, %c0_7], %8 {strides = array<i32>} : memref<8x128xbf16, #tpu.memory_space<vmem>>, vector<8x128xbf16>,
    return
  }
  func.func @transform_0(%arg0: i32) -> (i32, i32) {
    %c0_i32 = arith.constant 0 : i32
    %c0_i32_0 = arith.constant 0 : i32
    return %arg0, %c0_i32 : i32, i32
  }
  func.func @transform_1(%arg0: i32) -> (i32, i32) {
    %c0_i32 = arith.constant 0 : i32
    %c0_i32_0 = arith.constant 0 : i32
    %c0_i32_1 = arith.constant 0 : i32
    return %c0_i32, %c0_i32_0 : i32, i32
  }
  func.func @transform_2(%arg0: i32) -> (i32, i32) {
    %c0_i32 = arith.constant 0 : i32
    %c0_i32_0 = arith.constant 0 : i32
    %c0_i32_1 = arith.constant 0 : i32
    return %c0_i32, %c0_i32_0 : i32, i32
  }
  func.func @transform_3(%arg0: i32) -> (i32, i32) {
    %c0_i32 = arith.constant 0 : i32
    %c0_i32_0 = arith.constant 0 : i32
    return %arg0, %c0_i32 : i32, i32
  }
}

module attributes {stable_mosaic.version = 11 : i64} {
  func.func @_conv_kernel(%arg0: i32, %arg1: memref<8x640xbf16, #tpu.memory_space<vmem>>, %arg2: memref<640x128xbf16, #tpu.memory_space<vmem>>, %arg3: memref<1x128xf32, #tpu.memory_space<vmem>>, %arg4: memref<8x128xbf16, #tpu.memory_space<vmem>>, %arg5: memref<8x128xbf16, #tpu.memory_space<vmem>>) attributes {dimension_semantics = [#tpu.dimension_semantics<parallel>], iteration_bounds = array<i64: 1>, scalar_prefetch = 0 : i64, scratch_operands = 0 : i64, tpu.core_type = #tpu.core_type<tc>, window_params = [{transform_indices = @transform_0, window_bounds = array<i64: 8, 640>}, {pipeline_mode = #tpu.pipeline_mode<synchronous>, transform_indices = @transform_1, window_bounds = array<i64: 640, 128>}, {pipeline_mode = #tpu.pipeline_mode<synchronous>, transform_indices = @transform_2, window_bounds = array<i64: 1, 128>}, {transform_indices = @transform_3, window_bounds = array<i64: 8, 128>}, {transform_indices = @transform_4, window_bounds = array<i64: 8, 128>}]} {
    %c0 = arith.constant 0 : index
    %c0_0 = arith.constant 0 : index
    %0 = vector.load %arg1[%c0, %c0_0] : memref<8x640xbf16, #tpu.memory_space<vmem>>, vector<8x640xbf16>
    %c0_1 = arith.constant 0 : index
    %c0_2 = arith.constant 0 : index
    %1 = vector.load %arg2[%c0_1, %c0_2] : memref<640x128xbf16, #tpu.memory_space<vmem>>, vector<640x128xbf16>
    %cst = arith.constant dense<0.000000e+00> : vector<8x128xf32>
    %2 = tpu.matmul %0, %1, %cst {dimension_numbers = #tpu.dot_dimension_numbers<[1], [0], [0], [1], [0, 0, 1, 1], [], []>} : vector<8x640xbf16>, vector<640x128xbf16>, vector<8x128xf32> -> vector<8x128xf32>
    %c0_3 = arith.constant 0 : index
    %c0_4 = arith.constant 0 : index
    %3 = vector.load %arg3[%c0_3, %c0_4] : memref<1x128xf32, #tpu.memory_space<vmem>>, vector<1x128xf32>
    %4 = vector.broadcast %3 : vector<1x128xf32> to vector<8x128xf32>
    %5 = arith.addf %2, %4 : vector<8x128xf32>
    %c0_5 = arith.constant 0 : index
    %c0_6 = arith.constant 0 : index
    %6 = vector.load %arg4[%c0_5, %c0_6] : memref<8x128xbf16, #tpu.memory_space<vmem>>, vector<8x128xbf16>
    %7 = arith.extf %6 : vector<8x128xbf16> to vector<8x128xf32>
    %8 = arith.addf %5, %7 : vector<8x128xf32>
    %cst_7 = arith.constant 0.000000e+00 : f32
    %9 = vector.broadcast %cst_7 : f32 to vector<8x128xf32>
    %10 = arith.maximumf %8, %9 : vector<8x128xf32>
    %11 = arith.truncf %10 : vector<8x128xf32> to vector<8x128xbf16>
    %c0_8 = arith.constant 0 : index
    %c0_9 = arith.constant 0 : index
    %12 = vector.load %arg5[%c0_8, %c0_9] : memref<8x128xbf16, #tpu.memory_space<vmem>>, vector<8x128xbf16>
    tpu.vector_store %arg5[%c0_8, %c0_9], %11 {strides = array<i32>} : memref<8x128xbf16, #tpu.memory_space<vmem>>, vector<8x128xbf16>,
    return
  }
  func.func @transform_0(%arg0: i32) -> (i32, i32) {
    %c0_i32 = arith.constant 0 : i32
    %c0_i32_0 = arith.constant 0 : i32
    return %arg0, %c0_i32 : i32, i32
  }
  func.func @transform_1(%arg0: i32) -> (i32, i32) {
    %c0_i32 = arith.constant 0 : i32
    %c0_i32_0 = arith.constant 0 : i32
    %c0_i32_1 = arith.constant 0 : i32
    return %c0_i32, %c0_i32_0 : i32, i32
  }
  func.func @transform_2(%arg0: i32) -> (i32, i32) {
    %c0_i32 = arith.constant 0 : i32
    %c0_i32_0 = arith.constant 0 : i32
    %c0_i32_1 = arith.constant 0 : i32
    return %c0_i32, %c0_i32_0 : i32, i32
  }
  func.func @transform_3(%arg0: i32) -> (i32, i32) {
    %c0_i32 = arith.constant 0 : i32
    %c0_i32_0 = arith.constant 0 : i32
    return %arg0, %c0_i32 : i32, i32
  }
  func.func @transform_4(%arg0: i32) -> (i32, i32) {
    %c0_i32 = arith.constant 0 : i32
    %c0_i32_0 = arith.constant 0 : i32
    return %arg0, %c0_i32 : i32, i32
  }
}

module attributes {stable_mosaic.version = 11 : i64} {
  func.func @_wildcat_head_kernel(%arg0: i32, %arg1: memref<1x4x128xbf16, #tpu.memory_space<vmem>>, %arg2: memref<128x128xbf16, #tpu.memory_space<vmem>>, %arg3: memref<1x128xf32, #tpu.memory_space<vmem>>, %arg4: memref<1x1x128xf32, #tpu.memory_space<vmem>>) attributes {dimension_semantics = [#tpu.dimension_semantics<parallel>], iteration_bounds = array<i64: 2>, scalar_prefetch = 0 : i64, scratch_operands = 0 : i64, tpu.core_type = #tpu.core_type<tc>, window_params = [{transform_indices = @transform_0, window_bounds = array<i64: 1, 4, 128>}, {pipeline_mode = #tpu.pipeline_mode<synchronous>, transform_indices = @transform_1, window_bounds = array<i64: 128, 128>}, {pipeline_mode = #tpu.pipeline_mode<synchronous>, transform_indices = @transform_2, window_bounds = array<i64: 1, 128>}, {transform_indices = @transform_3, window_bounds = array<i64: 1, 1, 128>}]} {
    %c0 = arith.constant 0 : index
    %c0_0 = arith.constant 0 : index
    %c0_1 = arith.constant 0 : index
    %0 = vector.load %arg1[%c0, %c0_0, %c0_1] : memref<1x4x128xbf16, #tpu.memory_space<vmem>>, vector<1x4x128xbf16>
    %1 = vector.shape_cast %0 : vector<1x4x128xbf16> to vector<4x128xbf16>
    %c0_2 = arith.constant 0 : index
    %c0_3 = arith.constant 0 : index
    %2 = vector.load %arg2[%c0_2, %c0_3] : memref<128x128xbf16, #tpu.memory_space<vmem>>, vector<128x128xbf16>
    %cst = arith.constant dense<0.000000e+00> : vector<4x128xf32>
    %3 = tpu.matmul %1, %2, %cst {dimension_numbers = #tpu.dot_dimension_numbers<[1], [0], [0], [1], [0, 0, 1, 1], [], []>} : vector<4x128xbf16>, vector<128x128xbf16>, vector<4x128xf32> -> vector<4x128xf32>
    %c0_4 = arith.constant 0 : index
    %c0_5 = arith.constant 0 : index
    %4 = vector.load %arg3[%c0_4, %c0_5] : memref<1x128xf32, #tpu.memory_space<vmem>>, vector<1x128xf32>
    %5 = vector.broadcast %4 : vector<1x128xf32> to vector<4x128xf32>
    %6 = arith.addf %3, %5 : vector<4x128xf32>
    %cst_6 = arith.constant dense<0xFF800000> : vector<128xf32>
    %7 = vector.multi_reduction <maximumf>, %6, %cst_6 [0] : vector<4x128xf32> to vector<128xf32>
    %8 = vector.shape_cast %7 : vector<128xf32> to vector<1x128xf32>
    %cst_7 = arith.constant dense<0x7F800000> : vector<128xf32>
    %9 = vector.multi_reduction <minimumf>, %6, %cst_7 [0] : vector<4x128xf32> to vector<128xf32>
    %10 = vector.shape_cast %9 : vector<128xf32> to vector<1x128xf32>
    %11 = arith.addf %8, %10 : vector<1x128xf32>
    %cst_8 = arith.constant 5.000000e-01 : f32
    %12 = vector.broadcast %cst_8 : f32 to vector<1x128xf32>
    %13 = arith.mulf %12, %11 : vector<1x128xf32>
    %c0_9 = arith.constant 0 : index
    %c0_10 = arith.constant 0 : index
    %c0_11 = arith.constant 0 : index
    %14 = vector.load %arg4[%c0_9, %c0_10, %c0_11] : memref<1x1x128xf32, #tpu.memory_space<vmem>>, vector<1x1x128xf32>
    %15 = vector.shape_cast %14 : vector<1x1x128xf32> to vector<1x128xf32>
    %16 = vector.shape_cast %13 : vector<1x128xf32> to vector<1x1x128xf32>
    tpu.vector_store %arg4[%c0_9, %c0_10, %c0_11], %16 {strides = array<i32>} : memref<1x1x128xf32, #tpu.memory_space<vmem>>, vector<1x1x128xf32>,
    return
  }
  func.func @transform_0(%arg0: i32) -> (i32, i32, i32) {
    %c0_i32 = arith.constant 0 : i32
    %c0_i32_0 = arith.constant 0 : i32
    %c0_i32_1 = arith.constant 0 : i32
    return %arg0, %c0_i32, %c0_i32_0 : i32, i32, i32
  }
  func.func @transform_1(%arg0: i32) -> (i32, i32) {
    %c0_i32 = arith.constant 0 : i32
    %c0_i32_0 = arith.constant 0 : i32
    %c0_i32_1 = arith.constant 0 : i32
    return %c0_i32, %c0_i32_0 : i32, i32
  }
  func.func @transform_2(%arg0: i32) -> (i32, i32) {
    %c0_i32 = arith.constant 0 : i32
    %c0_i32_0 = arith.constant 0 : i32
    %c0_i32_1 = arith.constant 0 : i32
    return %c0_i32, %c0_i32_0 : i32, i32
  }
  func.func @transform_3(%arg0: i32) -> (i32, i32, i32) {
    %c0_i32 = arith.constant 0 : i32
    %c0_i32_0 = arith.constant 0 : i32
    %c0_i32_1 = arith.constant 0 : i32
    return %arg0, %c0_i32, %c0_i32_0 : i32, i32, i32
  }
}

</mosaic_0001>

<bundles_post_ra>
// kernel: resnet_wsl_forward.22
= control target key start
LH: loop header
LB: loop body
LE: loop exit
PB: predicated region body
PF: predicated region fallthrough
CT: control target
= control target key end

     0   :  { %s3526_s12 = smov 0   ;;  %s3961_s0 = inlined_call_operand.vmem [shape: bf16[2048,256], index: 0, kind: input, shape index: {}]   ;;  %s3962_s1 = inlined_call_operand.vmem [shape: bf16[256,128], index: 1, kind: input, shape index: {}]   ;;  %s3963_s2 = inlined_call_operand.vmem [shape: f32[1,128], index: 2, kind: input, shape index: {}]   ;;  %s3964_s3 = inlined_call_operand.vmem [shape: bf16[2048,128], index: 3, kind: output, shape index: {}]  }
   0x1 LB: > { %s2450_s13 = sadd.s32 4294967295, %s3503_s12   ;;  %p2454_p0 = scmp.ge.s32.totalorder %s3503_s12, 1  ;;  %s3503_s12 = sphi %s3526_s12, %s13_s12  }
   0x2   : > { %p139_p1 = scmp.lt.s32.totalorder %s3503_s12, 3 }
   0x4   : > { %p140_p2 = pnand %p2454_p0, %p139_p1 }
   0x5   : > { %v3288_v0 = vld [vmem:[%s3962_s1] sm:$0xff] (!%p140_p2)   ;;  %v3505_v1 = vmov (!%p140_p2), 0   ;;  %s2455_s16 = sshll.u32 (!%p140_p2), %s2450_s13, 7  ;;  %v3289_v2 = vld [vmem:[%s3962_s1 + $0x8] sm:$0xff] (!%p140_p2)   ;;  %v3290_v3 = vld [vmem:[%s3962_s1 + $0x10] sm:$0xff] (!%p140_p2)  }
   0x6   : > { %143 = sbr.rel (%p140_p2) target bundleno = 539 (0x21b), region = 32  ;;  %1081 = vmatprep.subr.bf16.mxu0 (!%p140_p2), %v3505_v1  ;;  %3247 = vmatprep.subr.bf16.mxu1 (!%p140_p2), %v3505_v1  ;;  %p165_p3 = scmp.lt.s32.totalorder (!%p140_p2), %s2455_s16, 255  ;;  %v3291_v4 = vld [vmem:[%s3962_s1 + $0x18] sm:$0xff] (!%p140_p2)   ;;  %v3292_v5 = vld [vmem:[%s3962_s1 + $0x20] sm:$0xff] (!%p140_p2)   ;;  %v3293_v7 = vld [vmem:[%s3962_s1 + $0x28] sm:$0xff] (!%p140_p2)  }
   0x7   : > { %1082 = vmatpush1.bf16.msra.mxu0 (!%p140_p2), %v3288_v0  ;;  %3263 = vmatpush1.bf16.msra.mxu1 (!%p140_p2), %v3288_v0  ;;  %v3294_v9 = vld [vmem:[%s3962_s1 + $0x30] sm:$0xff] (!%p140_p2)   ;;  %v3295_v10 = vld [vmem:[%s3962_s1 + $0x38] sm:$0xff] (!%p140_p2)   ;;  %v3296_v11 = vld [vmem:[%s3962_s1 + $0x40] sm:$0xff] (!%p140_p2)  }
   0x8   : > { %1083 = vmatprep.subr.bf16.mxu0 (!%p140_p2), %v3505_v1  ;;  %3248 = vmatprep.subr.bf16.mxu1 (!%p140_p2), %v3505_v1  ;;  %v3297_v12 = vld [vmem:[%s3962_s1 + $0x48] sm:$0xff] (!%p140_p2)   ;;  %v3298_v13 = vld [vmem:[%s3962_s1 + $0x50] sm:$0xff] (!%p140_p2)   ;;  %v3299_v14 = vld [vmem:[%s3962_s1 + $0x58] sm:$0xff] (!%p140_p2)  }
   0x9   : > { %v3300_v15 = vld [vmem:[%s3962_s1 + $0x60] sm:$0xff] (!%p140_p2)   ;;  %v3301_v16 = vld [vmem:[%s3962_s1 + $0x68] sm:$0xff] (!%p140_p2)   ;;  %v3302_v17 = vld [vmem:[%s3962_s1 + $0x70] sm:$0xff] (!%p140_p2)  }
   0xa   : > { %v3303_v18 = vld [vmem:[%s3962_s1 + $0x78] sm:$0xff] (!%p140_p2)  }
   0xb   : > { %1084 = vmatpush1.bf16.msra.mxu0 (!%p140_p2), %v3289_v2  ;;  %3264 = vmatpush1.bf16.msra.mxu1 (!%p140_p2), %v3289_v2 }
   0xc   : > { %1085 = vmatprep.subr.bf16.mxu0 (!%p140_p2), %v3505_v1  ;;  %3249 = vmatprep.subr.bf16.mxu1 (!%p140_p2), %v3505_v1 }
   0xd   : > { %s3966_s16 = smov (!%p165_p3, %s2455_s16), 255 }
   0xe   : > { %s2735_s23 = sshll.u32 %s3966_s16, 3  ;;  %s2459_s29 = sshll.u32 %s3966_s16, 2 }
   0xf   : > { %1086 = vmatpush1.bf16.msra.mxu0 %v3290_v3  ;;  %3265 = vmatpush1.bf16.msra.mxu1 %v3290_v3  ;;  %s3563_s28 = scalar_lea.vmem %s3961_s0, %s2735_s23  ;;  %s3749_s5 = scalar_lea.vmem %s3964_s3, %s2459_s29 }
  0x10   : > { %1087 = vmatprep.subr.bf16.mxu0 %v3505_v1  ;;  %3250 = vmatprep.subr.bf16.mxu1 %v3505_v1  ;;  %v3306_v6 = vld [vmem:[%s3563_s28 + $0x4] ss:$8 sps:$4 sm:$0xff]   ;;  %v3304_v19 = vld [vmem:[%s3563_s28] ss:$8 sps:$4 sm:$0xff]   ;;  %v3310_v21 = vld [vmem:[%s3563_s28 + $0x14] ss:$8 sps:$4 sm:$0xff]  }
  0x11   : > { %v3309_v8 = vld [vmem:[%s3563_s28 + $0x204] ss:$8 sps:$4 sm:$0xff]   ;;  %1113 = vmatprep.mubr.bf16.mxu0 %v3306_v6  ;;  %v3307_v20 = vld [vmem:[%s3563_s28 + $0x200] ss:$8 sps:$4 sm:$0xff]   ;;  %v3312_v22 = vld [vmem:[%s3563_s28 + $0x214] ss:$8 sps:$4 sm:$0xff]  }
  0x12   : > { %1369 = vmatprep.mubr.bf16.mxu1 %v3309_v8  ;;  %v3314_v23 = vld [vmem:[%s3563_s28 + $0x10] ss:$8 sps:$4 sm:$0xff]   ;;  %v3316_v25 = vld [vmem:[%s3563_s28 + $0x24] ss:$8 sps:$4 sm:$0xff]   ;;  %v3320_v27 = vld [vmem:[%s3563_s28 + $0x20] ss:$8 sps:$4 sm:$0xff]  }
  0x13   : > { %1088 = vmatpush1.bf16.msra.mxu0 %v3291_v4  ;;  %3266 = vmatpush1.bf16.msra.mxu1 %v3291_v4  ;;  %v3315_v24 = vld [vmem:[%s3563_s28 + $0x210] ss:$8 sps:$4 sm:$0xff]   ;;  %v3318_v26 = vld [vmem:[%s3563_s28 + $0x224] ss:$8 sps:$4 sm:$0xff]   ;;  %v3321_v28 = vld [vmem:[%s3563_s28 + $0x220] ss:$8 sps:$4 sm:$0xff]  }
  0x14   : > { %1089 = vmatprep.subr.bf16.mxu0 %v3505_v1  ;;  %3251 = vmatprep.subr.bf16.mxu1 %v3505_v1  ;;  %v3322_v29 = vld [vmem:[%s3563_s28 + $0x34] ss:$8 sps:$4 sm:$0xff]   ;;  %v3326_v31 = vld [vmem:[%s3563_s28 + $0x30] ss:$8 sps:$4 sm:$0xff]   ;;  %v3328_v33 = vld [vmem:[%s3563_s28 + $0x44] ss:$8 sps:$4 sm:$0xff]  }
  0x15   : > { %v3324_v30 = vld [vmem:[%s3563_s28 + $0x234] ss:$8 sps:$4 sm:$0xff]   ;;  %v3327_v32 = vld [vmem:[%s3563_s28 + $0x230] ss:$8 sps:$4 sm:$0xff]   ;;  %v3330_v34 = vld [vmem:[%s3563_s28 + $0x244] ss:$8 sps:$4 sm:$0xff]  }
  0x16   : > { %v3332_v35 = vld [vmem:[%s3563_s28 + $0x40] ss:$8 sps:$4 sm:$0xff]   ;;  %v3334_v37 = vld [vmem:[%s3563_s28 + $0x54] ss:$8 sps:$4 sm:$0xff]   ;;  %v3338_v39 = vld [vmem:[%s3563_s28 + $0x50] ss:$8 sps:$4 sm:$0xff]  }
  0x17   : > { %1090 = vmatpush1.bf16.msra.mxu0 %v3292_v5  ;;  %3267 = vmatpush1.bf16.msra.mxu1 %v3292_v5  ;;  %v3333_v36 = vld [vmem:[%s3563_s28 + $0x240] ss:$8 sps:$4 sm:$0xff]   ;;  %v3336_v38 = vld [vmem:[%s3563_s28 + $0x254] ss:$8 sps:$4 sm:$0xff]   ;;  %v3339_v40 = vld [vmem:[%s3563_s28 + $0x250] ss:$8 sps:$4 sm:$0xff]  }
  0x18   : > { %1091 = vmatprep.subr.bf16.mxu0 %v3505_v1  ;;  %3252 = vmatprep.subr.bf16.mxu1 %v3505_v1  ;;  %v3340_v41 = vld [vmem:[%s3563_s28 + $0x64] ss:$8 sps:$4 sm:$0xff]   ;;  %v3344_v43 = vld [vmem:[%s3563_s28 + $0x60] ss:$8 sps:$4 sm:$0xff]   ;;  %v3346_v45 = vld [vmem:[%s3563_s28 + $0x74] ss:$8 sps:$4 sm:$0xff]  }
  0x19   : > { %v3342_v42 = vld [vmem:[%s3563_s28 + $0x264] ss:$8 sps:$4 sm:$0xff]   ;;  %v3345_v44 = vld [vmem:[%s3563_s28 + $0x260] ss:$8 sps:$4 sm:$0xff]   ;;  %v3348_v46 = vld [vmem:[%s3563_s28 + $0x274] ss:$8 sps:$4 sm:$0xff]  }
  0x1a   : > { %v3350_v47 = vld [vmem:[%s3563_s28 + $0x70] ss:$8 sps:$4 sm:$0xff]   ;;  %v3352_v49 = vld [vmem:[%s3563_s28 + $0x84] ss:$8 sps:$4 sm:$0xff]   ;;  %v3356_v51 = vld [vmem:[%s3563_s28 + $0x80] ss:$8 sps:$4 sm:$0xff]  }
  0x1b   : > { %1092 = vmatpush1.bf16.msra.mxu0 %v3293_v7  ;;  %3268 = vmatpush1.bf16.msra.mxu1 %v3293_v7  ;;  %v3351_v48 = vld [vmem:[%s3563_s28 + $0x270] ss:$8 sps:$4 sm:$0xff]   ;;  %v3354_v50 = vld [vmem:[%s3563_s28 + $0x284] ss:$8 sps:$4 sm:$0xff]   ;;  %v3357_v52 = vld [vmem:[%s3563_s28 + $0x280] ss:$8 sps:$4 sm:$0xff]  }
  0x1c   : > { %1093 = vmatprep.subr.bf16.mxu0 %v3505_v1  ;;  %3253 = vmatprep.subr.bf16.mxu1 %v3505_v1  ;;  %v3358_v53 = vld [vmem:[%s3563_s28 + $0x94] ss:$8 sps:$4 sm:$0xff]   ;;  %v3362_v55 = vld [vmem:[%s3563_s28 + $0x90] ss:$8 sps:$4 sm:$0xff]   ;;  %v3364_v57 = vld [vmem:[%s3563_s28 + $0xa4] ss:$8 sps:$4 sm:$0xff]  }
  0x1d   : > { %v3360_v54 = vld [vmem:[%s3563_s28 + $0x294] ss:$8 sps:$4 sm:$0xff]   ;;  %v3363_v56 = vld [vmem:[%s3563_s28 + $0x290] ss:$8 sps:$4 sm:$0xff]   ;;  %v3366_v58 = vld [vmem:[%s3563_s28 + $0x2a4] ss:$8 sps:$4 sm:$0xff]  }
  0x1e   : > { %v3368_v59 = vld [vmem:[%s3563_s28 + $0xa0] ss:$8 sps:$4 sm:$0xff]   ;;  %v3370_v61 = vld [vmem:[%s3563_s28 + $0xb4] ss:$8 sps:$4 sm:$0xff]   ;;  %v3374_v63 = vld [vmem:[%s3563_s28 + $0xb0] ss:$8 sps:$4 sm:$0xff]  }
  0x1f   : > { %1094 = vmatpush1.bf16.msra.mxu0 %v3294_v9  ;;  %3269 = vmatpush1.bf16.msra.mxu1 %v3294_v9  ;;  %v3369_v60 = vld [vmem:[%s3563_s28 + $0x2a0] ss:$8 sps:$4 sm:$0xff]   ;;  %v3372_v62 = vld [vmem:[%s3563_s28 + $0x2b4] ss:$8 sps:$4 sm:$0xff]   ;;  %v3375_v0 = vld [vmem:[%s3563_s28 + $0x2b0] ss:$8 sps:$4 sm:$0xff]  }
  0x20   : > { %1095 = vmatprep.subr.bf16.mxu0 %v3505_v1  ;;  %3254 = vmatprep.subr.bf16.mxu1 %v3505_v1  ;;  %v3378_v2 = vld [vmem:[%s3563_s28 + $0x2c4] ss:$8 sps:$4 sm:$0xff]   ;;  %v3380_v3 = vld [vmem:[%s3563_s28 + $0xc0] ss:$8 sps:$4 sm:$0xff]   ;;  %v3382_v5 = vld [vmem:[%s3563_s28 + $0xd4] ss:$8 sps:$4 sm:$0xff]  }
  0x21   : > { %v3381_v4 = vld [vmem:[%s3563_s28 + $0x2c0] ss:$8 sps:$4 sm:$0xff]   ;;  %v3384_v6 = vld [vmem:[%s3563_s28 + $0x2d4] ss:$8 sps:$4 sm:$0xff]   ;;  %v3386_v7 = vld [vmem:[%s3563_s28 + $0xd0] ss:$8 sps:$4 sm:$0xff]  }
  0x22   : > { %v3387_v8 = vld [vmem:[%s3563_s28 + $0x2d0] ss:$8 sps:$4 sm:$0xff]   ;;  %v3388_v9 = vld [vmem:[%s3563_s28 + $0xe4] ss:$8 sps:$4 sm:$0xff]  }
  0x23   : > { %1096 = vmatpush1.bf16.msra.mxu0 %v3295_v10  ;;  %3270 = vmatpush1.bf16.msra.mxu1 %v3295_v10  ;;  %v3390_v10 = vld [vmem:[%s3563_s28 + $0x2e4] ss:$8 sps:$4 sm:$0xff]  }
  0x24   : > { %1097 = vmatprep.subr.bf16.mxu0 %v3505_v1  ;;  %3255 = vmatprep.subr.bf16.mxu1 %v3505_v1 }
  0x27   : > { %1098 = vmatpush1.bf16.msra.mxu0 %v3296_v11  ;;  %3271 = vmatpush1.bf16.msra.mxu1 %v3296_v11  ;;  %v3392_v11 = vld [vmem:[%s3563_s28 + $0xe0] ss:$8 sps:$4 sm:$0xff]  }
  0x28   : > { %1099 = vmatprep.subr.bf16.mxu0 %v3505_v1  ;;  %3256 = vmatprep.subr.bf16.mxu1 %v3505_v1 }
  0x2b   : > { %1100 = vmatpush1.bf16.msra.mxu0 %v3297_v12  ;;  %3272 = vmatpush1.bf16.msra.mxu1 %v3297_v12  ;;  %v3393_v12 = vld [vmem:[%s3563_s28 + $0x2e0] ss:$8 sps:$4 sm:$0xff]  }
  0x2c   : > { %1101 = vmatprep.subr.bf16.mxu0 %v3505_v1  ;;  %3257 = vmatprep.subr.bf16.mxu1 %v3505_v1 }
  0x2f   : > { %1102 = vmatpush1.bf16.msra.mxu0 %v3298_v13  ;;  %3273 = vmatpush1.bf16.msra.mxu1 %v3298_v13  ;;  %v3394_v13 = vld [vmem:[%s3563_s28 + $0xf4] ss:$8 sps:$4 sm:$0xff]  }
  0x30   : > { %1103 = vmatprep.subr.bf16.mxu0 %v3505_v1  ;;  %3258 = vmatprep.subr.bf16.mxu1 %v3505_v1 }
  0x33   : > { %1104 = vmatpush1.bf16.msra.mxu0 %v3299_v14  ;;  %3274 = vmatpush1.bf16.msra.mxu1 %v3299_v14  ;;  %v3396_v14 = vld [vmem:[%s3563_s28 + $0x2f4] ss:$8 sps:$4 sm:$0xff]  }
  0x34   : > { %1105 = vmatprep.subr.bf16.mxu0 %v3505_v1  ;;  %3259 = vmatprep.subr.bf16.mxu1 %v3505_v1 }
  0x37   : > { %1106 = vmatpush1.bf16.msra.mxu0 %v3300_v15  ;;  %3275 = vmatpush1.bf16.msra.mxu1 %v3300_v15  ;;  %v3398_v15 = vld [vmem:[%s3563_s28 + $0xf0] ss:$8 sps:$4 sm:$0xff]  }
  0x38   : > { %1107 = vmatprep.subr.bf16.mxu0 %v3505_v1  ;;  %3260 = vmatprep.subr.bf16.mxu1 %v3505_v1 }
  0x3b   : > { %1108 = vmatpush1.bf16.msra.mxu0 %v3301_v16  ;;  %3276 = vmatpush1.bf16.msra.mxu1 %v3301_v16  ;;  %v3399_v16 = vld [vmem:[%s3563_s28 + $0x2f0] ss:$8 sps:$4 sm:$0xff]  }
  0x3c   : > { %1109 = vmatprep.subr.bf16.mxu0 %v3505_v1  ;;  %3261 = vmatprep.subr.bf16.mxu1 %v3505_v1 }
  0x3f   : > { %1110 = vmatpush1.bf16.msra.mxu0 %v3302_v17  ;;  %3277 = vmatpush1.bf16.msra.mxu1 %v3302_v17  ;;  %v3400_v17 = vld [vmem:[%s3563_s28 + $0x104] ss:$8 sps:$4 sm:$0xff]  }
  0x40   : > { %1111 = vmatprep.subr.bf16.mxu0 %v3505_v1  ;;  %3262 = vmatprep.subr.bf16.mxu1 %v3505_v1  ;;  %v3376_v1 = vld [vmem:[%s3563_s28 + $0xc4] ss:$8 sps:$4 sm:$0xff]  }
  0x43   : > { %1112 = vmatpush1.bf16.msra.mxu0 %v3303_v18  ;;  %3278 = vmatpush1.bf16.msra.mxu1 %v3303_v18  ;;  %v3402_v18 = vld [vmem:[%s3563_s28 + $0x304] ss:$8 sps:$4 sm:$0xff]  }
  0x46   : > { %1114 = vmatmul.mubr.bf16.vlgmr.msra.gmra.mrb[0].mxu0 %v3304_v19  ;;  %1370 = vmatmul.mubr.bf16.vlgmr.msra.gmra.mrb[0].mxu1 %v3307_v20  ;;  %v3404_v19 = vld [vmem:[%s3563_s28 + $0x100] ss:$8 sps:$4 sm:$0xff]  }
  0x47   : > { %1121 = vmatprep.mubr.bf16.mxu0 %v3310_v21  ;;  %1377 = vmatprep.mubr.bf16.mxu1 %v3312_v22  ;;  %v3405_v20 = vld [vmem:[%s3563_s28 + $0x300] ss:$8 sps:$4 sm:$0xff]   ;;  %v3406_v21 = vld [vmem:[%s3563_s28 + $0x114] ss:$8 sps:$4 sm:$0xff]  }
  0x48   : > { %v3408_v22 = vld [vmem:[%s3563_s28 + $0x314] ss:$8 sps:$4 sm:$0xff]  }
  0x4e   : > { %1122 = vmatmul.mubr.bf16.gmra.mrb[4].mxu0 %v3314_v23  ;;  %1378 = vmatmul.mubr.bf16.gmra.mrb[4].mxu1 %v3315_v24  ;;  %v3410_v23 = vld [vmem:[%s3563_s28 + $0x110] ss:$8 sps:$4 sm:$0xff]  }
  0x4f   : > { %1129 = vmatprep.mubr.bf16.mxu0 %v3316_v25  ;;  %1385 = vmatprep.mubr.bf16.mxu1 %v3318_v26  ;;  %v3411_v24 = vld [vmem:[%s3563_s28 + $0x310] ss:$8 sps:$4 sm:$0xff]   ;;  %v3412_v25 = vld [vmem:[%s3563_s28 + $0x124] ss:$8 sps:$4 sm:$0xff]  }
  0x50   : > { %v3414_v26 = vld [vmem:[%s3563_s28 + $0x324] ss:$8 sps:$4 sm:$0xff]  }
  0x56   : > { %1130 = vmatmul.mubr.bf16.gmra.mrb[8].mxu0 %v3320_v27  ;;  %1386 = vmatmul.mubr.bf16.gmra.mrb[8].mxu1 %v3321_v28  ;;  %v3416_v27 = vld [vmem:[%s3563_s28 + $0x120] ss:$8 sps:$4 sm:$0xff]  }
  0x57   : > { %1137 = vmatprep.mubr.bf16.mxu0 %v3322_v29  ;;  %1393 = vmatprep.mubr.bf16.mxu1 %v3324_v30  ;;  %v3417_v28 = vld [vmem:[%s3563_s28 + $0x320] ss:$8 sps:$4 sm:$0xff]   ;;  %v3418_v29 = vld [vmem:[%s3563_s28 + $0x134] ss:$8 sps:$4 sm:$0xff]  }
  0x58   : > { %v3420_v30 = vld [vmem:[%s3563_s28 + $0x334] ss:$8 sps:$4 sm:$0xff]  }
  0x5e   : > { %1138 = vmatmul.mubr.bf16.gmra.mrb[12].mxu0 %v3326_v31  ;;  %1394 = vmatmul.mubr.bf16.gmra.mrb[12].mxu1 %v3327_v32  ;;  %v3422_v31 = vld [vmem:[%s3563_s28 + $0x130] ss:$8 sps:$4 sm:$0xff]  }
  0x5f   : > { %1145 = vmatprep.mubr.bf16.mxu0 %v3328_v33  ;;  %1401 = vmatprep.mubr.bf16.mxu1 %v3330_v34  ;;  %v3423_v32 = vld [vmem:[%s3563_s28 + $0x330] ss:$8 sps:$4 sm:$0xff]   ;;  %v3424_v33 = vld [vmem:[%s3563_s28 + $0x144] ss:$8 sps:$4 sm:$0xff]  }
  0x60   : > { %v3426_v34 = vld [vmem:[%s3563_s28 + $0x344] ss:$8 sps:$4 sm:$0xff]  }
  0x66   : > { %1146 = vmatmul.mubr.bf16.gmra.mrb[16].mxu0 %v3332_v35  ;;  %1402 = vmatmul.mubr.bf16.gmra.mrb[16].mxu1 %v3333_v36  ;;  %v3428_v35 = vld [vmem:[%s3563_s28 + $0x140] ss:$8 sps:$4 sm:$0xff]  }
  0x67   : > { %1153 = vmatprep.mubr.bf16.mxu0 %v3334_v37  ;;  %1409 = vmatprep.mubr.bf16.mxu1 %v3336_v38  ;;  %v3429_v36 = vld [vmem:[%s3563_s28 + $0x340] ss:$8 sps:$4 sm:$0xff]   ;;  %v3430_v37 = vld [vmem:[%s3563_s28 + $0x154] ss:$8 sps:$4 sm:$0xff]  }
  0x68   : > { %v3432_v38 = vld [vmem:[%s3563_s28 + $0x354] ss:$8 sps:$4 sm:$0xff]  }
  0x6e   : > { %1154 = vmatmul.mubr.bf16.gmra.mrb[20].mxu0 %v3338_v39  ;;  %1410 = vmatmul.mubr.bf16.gmra.mrb[20].mxu1 %v3339_v40  ;;  %v3434_v39 = vld [vmem:[%s3563_s28 + $0x150] ss:$8 sps:$4 sm:$0xff]  }
  0x6f   : > { %1161 = vmatprep.mubr.bf16.mxu0 %v3340_v41  ;;  %1417 = vmatprep.mubr.bf16.mxu1 %v3342_v42  ;;  %v3435_v40 = vld [vmem:[%s3563_s28 + $0x350] ss:$8 sps:$4 sm:$0xff]   ;;  %v3436_v41 = vld [vmem:[%s3563_s28 + $0x164] ss:$8 sps:$4 sm:$0xff]  }
  0x70   : > { %v3438_v42 = vld [vmem:[%s3563_s28 + $0x364] ss:$8 sps:$4 sm:$0xff]  }
  0x76   : > { %1162 = vmatmul.mubr.bf16.gmra.mrb[24].mxu0 %v3344_v43  ;;  %1418 = vmatmul.mubr.bf16.gmra.mrb[24].mxu1 %v3345_v44  ;;  %v3440_v43 = vld [vmem:[%s3563_s28 + $0x160] ss:$8 sps:$4 sm:$0xff]  }
  0x77   : > { %1169 = vmatprep.mubr.bf16.mxu0 %v3346_v45  ;;  %1425 = vmatprep.mubr.bf16.mxu1 %v3348_v46  ;;  %v3441_v44 = vld [vmem:[%s3563_s28 + $0x360] ss:$8 sps:$4 sm:$0xff]   ;;  %v3442_v45 = vld [vmem:[%s3563_s28 + $0x174] ss:$8 sps:$4 sm:$0xff]  }
  0x78   : > { %v3444_v46 = vld [vmem:[%s3563_s28 + $0x374] ss:$8 sps:$4 sm:$0xff]  }
  0x7e   : > { %1170 = vmatmul.mubr.bf16.gmra.mrb[28].mxu0 %v3350_v47  ;;  %1426 = vmatmul.mubr.bf16.gmra.mrb[28].mxu1 %v3351_v48  ;;  %v3446_v47 = vld [vmem:[%s3563_s28 + $0x170] ss:$8 sps:$4 sm:$0xff]  }
  0x7f   : > { %1177 = vmatprep.mubr.bf16.mxu0 %v3352_v49  ;;  %1433 = vmatprep.mubr.bf16.mxu1 %v3354_v50  ;;  %v3447_v48 = vld [vmem:[%s3563_s28 + $0x370] ss:$8 sps:$4 sm:$0xff]   ;;  %v3448_v49 = vld [vmem:[%s3563_s28 + $0x184] ss:$8 sps:$4 sm:$0xff]  }
  0x80   : > { %v3450_v50 = vld [vmem:[%s3563_s28 + $0x384] ss:$8 sps:$4 sm:$0xff]  }
  0x86   : > { %1178 = vmatmul.mubr.bf16.gmra.mrb[32].mxu0 %v3356_v51  ;;  %1434 = vmatmul.mubr.bf16.gmra.mrb[32].mxu1 %v3357_v52  ;;  %v3452_v51 = vld [vmem:[%s3563_s28 + $0x180] ss:$8 sps:$4 sm:$0xff]  }
  0x87   : > { %1185 = vmatprep.mubr.bf16.mxu0 %v3358_v53  ;;  %1441 = vmatprep.mubr.bf16.mxu1 %v3360_v54  ;;  %v3453_v52 = vld [vmem:[%s3563_s28 + $0x380] ss:$8 sps:$4 sm:$0xff]   ;;  %v3454_v53 = vld [vmem:[%s3563_s28 + $0x194] ss:$8 sps:$4 sm:$0xff]  }
  0x88   : > { %v3456_v54 = vld [vmem:[%s3563_s28 + $0x394] ss:$8 sps:$4 sm:$0xff]  }
  0x8e   : > { %1186 = vmatmul.mubr.bf16.gmra.mrb[36].mxu0 %v3362_v55  ;;  %1442 = vmatmul.mubr.bf16.gmra.mrb[36].mxu1 %v3363_v56  ;;  %v3458_v55 = vld [vmem:[%s3563_s28 + $0x190] ss:$8 sps:$4 sm:$0xff]  }
  0x8f   : > { %1193 = vmatprep.mubr.bf16.mxu0 %v3364_v57  ;;  %1449 = vmatprep.mubr.bf16.mxu1 %v3366_v58  ;;  %v3459_v56 = vld [vmem:[%s3563_s28 + $0x390] ss:$8 sps:$4 sm:$0xff]   ;;  %v3460_v57 = vld [vmem:[%s3563_s28 + $0x1a4] ss:$8 sps:$4 sm:$0xff]  }
  0x90   : > { %v3462_v58 = vld [vmem:[%s3563_s28 + $0x3a4] ss:$8 sps:$4 sm:$0xff]  }
  0x96   : > { %1194 = vmatmul.mubr.bf16.gmra.mrb[40].mxu0 %v3368_v59  ;;  %1450 = vmatmul.mubr.bf16.gmra.mrb[40].mxu1 %v3369_v60  ;;  %v3464_v59 = vld [vmem:[%s3563_s28 + $0x1a0] ss:$8 sps:$4 sm:$0xff]  }
  0x97   : > { %1201 = vmatprep.mubr.bf16.mxu0 %v3370_v61  ;;  %1457 = vmatprep.mubr.bf16.mxu1 %v3372_v62  ;;  %v3465_v60 = vld [vmem:[%s3563_s28 + $0x3a0] ss:$8 sps:$4 sm:$0xff]   ;;  %v3466_v61 = vld [vmem:[%s3563_s28 + $0x1b4] ss:$8 sps:$4 sm:$0xff]  }
  0x98   : > { %v3468_v62 = vld [vmem:[%s3563_s28 + $0x3b4] ss:$8 sps:$4 sm:$0xff]  }
  0x9e   : > { %1202 = vmatmul.mubr.bf16.gmra.mrb[44].mxu0 %v3374_v63  ;;  %1458 = vmatmul.mubr.bf16.gmra.mrb[44].mxu1 %v3375_v0  ;;  %v3735_v63 = vld [vmem:[%s3963_s2] ss:$0 sm:$0xff] }
  0x9f   : > { %1209 = vmatprep.mubr.bf16.mxu0 %v3376_v1  ;;  %1465 = vmatprep.mubr.bf16.mxu1 %v3378_v2 }
  0xa6   : > { %1210 = vmatmul.mubr.bf16.gmra.mrb[48].mxu0 %v3380_v3  ;;  %1466 = vmatmul.mubr.bf16.gmra.mrb[48].mxu1 %v3381_v4 }
  0xa7   : > { %1217 = vmatprep.mubr.bf16.mxu0 %v3382_v5  ;;  %1473 = vmatprep.mubr.bf16.mxu1 %v3384_v6  ;;  %v3470_v6 = vld [vmem:[%s3563_s28 + $0x1b0] ss:$8 sps:$4 sm:$0xff]  }
  0xae   : > { %1218 = vmatmul.mubr.bf16.gmra.mrb[52].mxu0 %v3386_v7  ;;  %1474 = vmatmul.mubr.bf16.gmra.mrb[52].mxu1 %v3387_v8  ;;  %v3471_v7 = vld [vmem:[%s3563_s28 + $0x3b0] ss:$8 sps:$4 sm:$0xff]  }
  0xaf   : > { %1225 = vmatprep.mubr.bf16.mxu0 %v3388_v9  ;;  %1481 = vmatprep.mubr.bf16.mxu1 %v3390_v10  ;;  %v3472_v10 = vld [vmem:[%s3563_s28 + $0x1c4] ss:$8 sps:$4 sm:$0xff]  }
  0xb6   : > { %1226 = vmatmul.mubr.bf16.gmra.mrb[56].mxu0 %v3392_v11  ;;  %1482 = vmatmul.mubr.bf16.gmra.mrb[56].mxu1 %v3393_v12  ;;  %v3474_v11 = vld [vmem:[%s3563_s28 + $0x3c4] ss:$8 sps:$4 sm:$0xff]  }
  0xb7   : > { %1233 = vmatprep.mubr.bf16.mxu0 %v3394_v13  ;;  %1489 = vmatprep.mubr.bf16.mxu1 %v3396_v14 }
  0xbe   : > { %1234 = vmatmul.mubr.bf16.gmra.mrb[60].mxu0 %v3398_v15  ;;  %1490 = vmatmul.mubr.bf16.gmra.mrb[60].mxu1 %v3399_v16 }
  0xbf   : > { %1241 = vmatprep.mubr.bf16.mxu0 %v3400_v17  ;;  %1497 = vmatprep.mubr.bf16.mxu1 %v3402_v18 }
  0xc6   : > { %1242 = vmatmul.mubr.bf16.gmra.mrb[64].mxu0 %v3404_v19  ;;  %1498 = vmatmul.mubr.bf16.gmra.mrb[64].mxu1 %v3405_v20 }
  0xc7   : > { %1249 = vmatprep.mubr.bf16.mxu0 %v3406_v21  ;;  %1505 = vmatprep.mubr.bf16.mxu1 %v3408_v22 }
  0xce   : > { %1250 = vmatmul.mubr.bf16.gmra.mrb[68].mxu0 %v3410_v23  ;;  %1506 = vmatmul.mubr.bf16.gmra.mrb[68].mxu1 %v3411_v24 }
  0xcf   : > { %1257 = vmatprep.mubr.bf16.mxu0 %v3412_v25  ;;  %1513 = vmatprep.mubr.bf16.mxu1 %v3414_v26 }
  0xd6   : > { %1258 = vmatmul.mubr.bf16.gmra.mrb[72].mxu0 %v3416_v27  ;;  %1514 = vmatmul.mubr.bf16.gmra.mrb[72].mxu1 %v3417_v28  ;;  %v3476_v28 = vld [vmem:[%s3563_s28 + $0x1c0] ss:$8 sps:$4 sm:$0xff]  }
  0xd7   : > { %1265 = vmatprep.mubr.bf16.mxu0 %v3418_v29  ;;  %1521 = vmatprep.mubr.bf16.mxu1 %v3420_v30  ;;  %v3477_v29 = vld [vmem:[%s3563_s28 + $0x3c0] ss:$8 sps:$4 sm:$0xff]  }
  0xde   : > { %1266 = vmatmul.mubr.bf16.gmra.mrb[76].mxu0 %v3422_v31  ;;  %1522 = vmatmul.mubr.bf16.gmra.mrb[76].mxu1 %v3423_v32  ;;  %v3478_v32 = vld [vmem:[%s3563_s28 + $0x1d4] ss:$8 sps:$4 sm:$0xff]  }
  0xdf   : > { %1273 = vmatprep.mubr.bf16.mxu0 %v3424_v33  ;;  %1529 = vmatprep.mubr.bf16.mxu1 %v3426_v34  ;;  %v3480_v33 = vld [vmem:[%s3563_s28 + $0x3d4] ss:$8 sps:$4 sm:$0xff]  }
  0xe6   : > { %1274 = vmatmul.mubr.bf16.gmra.mrb[80].mxu0 %v3428_v35  ;;  %1530 = vmatmul.mubr.bf16.gmra.mrb[80].mxu1 %v3429_v36 }
  0xe7   : > { %1281 = vmatprep.mubr.bf16.mxu0 %v3430_v37  ;;  %1537 = vmatprep.mubr.bf16.mxu1 %v3432_v38 }
  0xee   : > { %1282 = vmatmul.mubr.bf16.gmra.mrb[84].mxu0 %v3434_v39  ;;  %1538 = vmatmul.mubr.bf16.gmra.mrb[84].mxu1 %v3435_v40 }
  0xef   : > { %1289 = vmatprep.mubr.bf16.mxu0 %v3436_v41  ;;  %1545 = vmatprep.mubr.bf16.mxu1 %v3438_v42 }
  0xf6   : > { %1290 = vmatmul.mubr.bf16.gmra.mrb[88].mxu0 %v3440_v43  ;;  %1546 = vmatmul.mubr.bf16.gmra.mrb[88].mxu1 %v3441_v44 }
  0xf7   : > { %1297 = vmatprep.mubr.bf16.mxu0 %v3442_v45  ;;  %1553 = vmatprep.mubr.bf16.mxu1 %v3444_v46 }
  0xfe   : > { %1298 = vmatmul.mubr.bf16.gmra.mrb[92].mxu0 %v3446_v47  ;;  %1554 = vmatmul.mubr.bf16.gmra.mrb[92].mxu1 %v3447_v48 }
  0xff   : > { %1305 = vmatprep.mubr.bf16.mxu0 %v3448_v49  ;;  %1561 = vmatprep.mubr.bf16.mxu1 %v3450_v50  ;;  %v3482_v50 = vld [vmem:[%s3563_s28 + $0x1d0] ss:$8 sps:$4 sm:$0xff]  }
 0x106   : > { %1306 = vmatmul.mubr.bf16.gmra.mrb[96].mxu0 %v3452_v51  ;;  %1562 = vmatmul.mubr.bf16.gmra.mrb[96].mxu1 %v3453_v52  ;;  %v3483_v51 = vld [vmem:[%s3563_s28 + $0x3d0] ss:$8 sps:$4 sm:$0xff]  }
 0x107   : > { %1313 = vmatprep.mubr.bf16.mxu0 %v3454_v53  ;;  %1569 = vmatprep.mubr.bf16.mxu1 %v3456_v54  ;;  %v3484_v54 = vld [vmem:[%s3563_s28 + $0x1e4] ss:$8 sps:$4 sm:$0xff]  }
 0x10e   : > { %1314 = vmatmul.mubr.bf16.gmra.mrb[100].mxu0 %v3458_v55  ;;  %1570 = vmatmul.mubr.bf16.gmra.mrb[100].mxu1 %v3459_v56  ;;  %v3486_v55 = vld [vmem:[%s3563_s28 + $0x3e4] ss:$8 sps:$4 sm:$0xff]  }
 0x10f   : > { %1321 = vmatprep.mubr.bf16.mxu0 %v3460_v57  ;;  %1577 = vmatprep.mubr.bf16.mxu1 %v3462_v58 }
 0x116   : > { %1322 = vmatmul.mubr.bf16.gmra.mrb[104].mxu0 %v3464_v59  ;;  %1578 = vmatmul.mubr.bf16.gmra.mrb[104].mxu1 %v3465_v60 }
 0x117   : > { %1329 = vmatprep.mubr.bf16.mxu0 %v3466_v61  ;;  %1585 = vmatprep.mubr.bf16.mxu1 %v3468_v62 }
 0x119   : > { %v1115_v0 = vpop.f32.mrb[0].mxu0  ;;  %v1371_v1 = vpop.f32.mrb[0].mxu1 }
 0x11a   : > { %v1116_v2 = vadd.f32 %v3735_v63, %v1115_v0  ;;  %v1372_v3 = vadd.f32 %v3735_v63, %v1371_v1  ;;  %v1117_v4 = vpop.f32.mrb[1].mxu0  ;;  %v1373_v5 = vpop.f32.mrb[1].mxu1 }
 0x11b   : > { %v1118_v8 = vpop.f32.mrb[2].mxu0  ;;  %v1374_v9 = vpop.f32.mrb[2].mxu1 }
 0x11c   : > { %v1119_v12 = vadd.f32 %v3735_v63, %v1118_v8  ;;  %v1375_v13 = vadd.f32 %v3735_v63, %v1374_v9  ;;  %v1120_v14 = vpop.f32.mrb[3].mxu0  ;;  %v1376_v15 = vpop.f32.mrb[3].mxu1  ;;  %v1626_v16 = vmax.f32 %v1116_v2, 0.0  ;;  %v1690_v17 = vmax.f32 %v1372_v3, 0.0  ;;  %v3488_v9 = vld [vmem:[%s3563_s28 + $0x1e0] ss:$8 sps:$4 sm:$0xff]  }
 0x11d   : > { %v3492_v14 = vld [vmem:[%s3563_s28 + $0x3f4] ss:$8 sps:$4 sm:$0xff]  }
 0x11e   : > { %v1627_v18 = vmax.f32 %v1119_v12, 0.0  ;;  %v1691_v19 = vmax.f32 %v1375_v13, 0.0  ;;  %1330 = vmatmul.mubr.bf16.gmra.mrb[108].mxu0 %v3470_v6  ;;  %1586 = vmatmul.mubr.bf16.gmra.mrb[108].mxu1 %v3471_v7  ;;  %v3490_v13 = vld [vmem:[%s3563_s28 + $0x1f4] ss:$8 sps:$4 sm:$0xff]  }
 0x11f   : > { %1337 = vmatprep.mubr.bf16.mxu0 %v3472_v10  ;;  %1593 = vmatprep.mubr.bf16.mxu1 %v3474_v11  ;;  %v3489_v10 = vld [vmem:[%s3563_s28 + $0x3e0] ss:$8 sps:$4 sm:$0xff]  }
 0x120   : > { %v2867_v20 = vpack.c.bf16 %v1627_v18, %v1626_v16  ;;  %v3027_v21 = vpack.c.bf16 %v1691_v19, %v1690_v17 }
 0x121   : > { %v1123_v22 = vpop.f32.mrb[4].mxu0  ;;  %v1379_v23 = vpop.f32.mrb[4].mxu1 }
 0x122   : > { %2868 = vst [vmem:[%s3749_s5] sm:$0xff] %v2867_v20   ;;  %3215 = vst [vmem:[%s3749_s5 + $0x100] sm:$0xff] %v3027_v21   ;;  %v1124_v24 = vadd.f32 %v3735_v63, %v1123_v22  ;;  %v1380_v25 = vadd.f32 %v3735_v63, %v1379_v23  ;;  %v1125_v26 = vpop.f32.mrb[5].mxu0  ;;  %v1381_v27 = vpop.f32.mrb[5].mxu1 }
 0x123   : > { %v1126_v30 = vpop.f32.mrb[6].mxu0  ;;  %v1382_v31 = vpop.f32.mrb[6].mxu1 }
 0x124   : > { %v1127_v34 = vadd.f32 %v3735_v63, %v1126_v30  ;;  %v1383_v35 = vadd.f32 %v3735_v63, %v1382_v31  ;;  %v1128_v36 = vpop.f32.mrb[7].mxu0  ;;  %v1384_v37 = vpop.f32.mrb[7].mxu1  ;;  %v1628_v38 = vmax.f32 %v1124_v24, 0.0  ;;  %v1692_v39 = vmax.f32 %v1380_v25, 0.0  ;;  %v3494_v31 = vld [vmem:[%s3563_s28 + $0x1f0] ss:$8 sps:$4 sm:$0xff]  }
 0x126   : > { %v1629_v40 = vmax.f32 %v1127_v34, 0.0  ;;  %v1693_v41 = vmax.f32 %v1383_v35, 0.0  ;;  %1338 = vmatmul.mubr.bf16.gmra.mrb[112].mxu0 %v3476_v28  ;;  %1594 = vmatmul.mubr.bf16.gmra.mrb[112].mxu1 %v3477_v29 }
 0x127   : > { %1345 = vmatprep.mubr.bf16.mxu0 %v3478_v32  ;;  %1601 = vmatprep.mubr.bf16.mxu1 %v3480_v33  ;;  %v3495_v32 = vld [vmem:[%s3563_s28 + $0x3f0] ss:$8 sps:$4 sm:$0xff]  }
 0x128   : > { %v2872_v42 = vpack.c.bf16 %v1629_v40, %v1628_v38  ;;  %v3032_v43 = vpack.c.bf16 %v1693_v41, %v1692_v39 }
 0x129   : > { %v1131_v44 = vpop.f32.mrb[8].mxu0  ;;  %v1387_v45 = vpop.f32.mrb[8].mxu1 }
 0x12a   : > { %3184 = vst [vmem:[%s3749_s5 + $0x8] sm:$0xff] %v2872_v42   ;;  %3216 = vst [vmem:[%s3749_s5 + $0x108] sm:$0xff] %v3032_v43   ;;  %v1132_v46 = vadd.f32 %v3735_v63, %v1131_v44  ;;  %v1388_v47 = vadd.f32 %v3735_v63, %v1387_v45  ;;  %v1133_v48 = vpop.f32.mrb[9].mxu0  ;;  %v1389_v49 = vpop.f32.mrb[9].mxu1 }
 0x12b   : > { %v1134_v52 = vpop.f32.mrb[10].mxu0  ;;  %v1390_v53 = vpop.f32.mrb[10].mxu1 }
 0x12c   : > { %v1135_v56 = vadd.f32 %v3735_v63, %v1134_v52  ;;  %v1391_v57 = vadd.f32 %v3735_v63, %v1390_v53  ;;  %v1136_v58 = vpop.f32.mrb[11].mxu0  ;;  %v1392_v59 = vpop.f32.mrb[11].mxu1  ;;  %v1630_v60 = vmax.f32 %v1132_v46, 0.0  ;;  %v1694_v61 = vmax.f32 %v1388_v47, 0.0 }
 0x12e   : > { %v1631_v62 = vmax.f32 %v1135_v56, 0.0  ;;  %v1695_v0 = vmax.f32 %v1391_v57, 0.0  ;;  %1346 = vmatmul.mubr.bf16.gmra.mrb[116].mxu0 %v3482_v50  ;;  %1602 = vmatmul.mubr.bf16.gmra.mrb[116].mxu1 %v3483_v51 }
 0x12f   : > { %1353 = vmatprep.mubr.bf16.mxu0 %v3484_v54  ;;  %1609 = vmatprep.mubr.bf16.mxu1 %v3486_v55 }
 0x130   : > { %v2877_v1 = vpack.c.bf16 %v1631_v62, %v1630_v60  ;;  %v3037_v2 = vpack.c.bf16 %v1695_v0, %v1694_v61 }
 0x131   : > { %v1139_v3 = vpop.f32.mrb[12].mxu0  ;;  %v1395_v4 = vpop.f32.mrb[12].mxu1 }
 0x132   : > { %3185 = vst [vmem:[%s3749_s5 + $0x10] sm:$0xff] %v2877_v1   ;;  %3217 = vst [vmem:[%s3749_s5 + $0x110] sm:$0xff] %v3037_v2   ;;  %v1140_v5 = vadd.f32 %v3735_v63, %v1139_v3  ;;  %v1396_v6 = vadd.f32 %v3735_v63, %v1395_v4  ;;  %v1141_v7 = vpop.f32.mrb[13].mxu0  ;;  %v1397_v8 = vpop.f32.mrb[13].mxu1 }
 0x133   : > { %v1142_v11 = vpop.f32.mrb[14].mxu0  ;;  %v1398_v12 = vpop.f32.mrb[14].mxu1 }
 0x134   : > { %v1143_v15 = vadd.f32 %v3735_v63, %v1142_v11  ;;  %v1399_v16 = vadd.f32 %v3735_v63, %v1398_v12  ;;  %v1144_v17 = vpop.f32.mrb[15].mxu0  ;;  %v1400_v18 = vpop.f32.mrb[15].mxu1  ;;  %v1632_v19 = vmax.f32 %v1140_v5, 0.0  ;;  %v1696_v20 = vmax.f32 %v1396_v6, 0.0 }
 0x136   : > { %v1633_v21 = vmax.f32 %v1143_v15, 0.0  ;;  %v1697_v22 = vmax.f32 %v1399_v16, 0.0  ;;  %1354 = vmatmul.mubr.bf16.gmra.mrb[120].mxu0 %v3488_v9  ;;  %1610 = vmatmul.mubr.bf16.gmra.mrb[120].mxu1 %v3489_v10 }
 0x137   : > { %1361 = vmatprep.mubr.bf16.mxu0 %v3490_v13  ;;  %1617 = vmatprep.mubr.bf16.mxu1 %v3492_v14 }
 0x138   : > { %v2882_v23 = vpack.c.bf16 %v1633_v21, %v1632_v19  ;;  %v3042_v24 = vpack.c.bf16 %v1697_v22, %v1696_v20 }
 0x139   : > { %v1147_v25 = vpop.f32.mrb[16].mxu0  ;;  %v1403_v26 = vpop.f32.mrb[16].mxu1 }
 0x13a   : > { %3186 = vst [vmem:[%s3749_s5 + $0x18] sm:$0xff] %v2882_v23   ;;  %3218 = vst [vmem:[%s3749_s5 + $0x118] sm:$0xff] %v3042_v24   ;;  %v1148_v27 = vadd.f32 %v3735_v63, %v1147_v25  ;;  %v1404_v28 = vadd.f32 %v3735_v63, %v1403_v26  ;;  %v1149_v29 = vpop.f32.mrb[17].mxu0  ;;  %v1405_v30 = vpop.f32.mrb[17].mxu1 }
 0x13b   : > { %v1150_v33 = vpop.f32.mrb[18].mxu0  ;;  %v1406_v34 = vpop.f32.mrb[18].mxu1 }
 0x13c   : > { %v1151_v35 = vadd.f32 %v3735_v63, %v1150_v33  ;;  %v1407_v36 = vadd.f32 %v3735_v63, %v1406_v34  ;;  %v1152_v37 = vpop.f32.mrb[19].mxu0  ;;  %v1408_v38 = vpop.f32.mrb[19].mxu1  ;;  %v1634_v39 = vmax.f32 %v1148_v27, 0.0  ;;  %v1698_v40 = vmax.f32 %v1404_v28, 0.0 }
 0x13e   : > { %v1635_v41 = vmax.f32 %v1151_v35, 0.0  ;;  %v1699_v42 = vmax.f32 %v1407_v36, 0.0  ;;  %1362 = vmatmul.mubr.bf16.gmra.mrb[124].mxu0 %v3494_v31  ;;  %1618 = vmatmul.mubr.bf16.gmra.mrb[124].mxu1 %v3495_v32 }
 0x140   : > { %v2887_v43 = vpack.c.bf16 %v1635_v41, %v1634_v39  ;;  %v3047_v44 = vpack.c.bf16 %v1699_v42, %v1698_v40 }
 0x141   : > { %v1155_v45 = vpop.f32.mrb[20].mxu0  ;;  %v1411_v46 = vpop.f32.mrb[20].mxu1 }
 0x142   : > { %3187 = vst [vmem:[%s3749_s5 + $0x20] sm:$0xff] %v2887_v43   ;;  %3219 = vst [vmem:[%s3749_s5 + $0x120] sm:$0xff] %v3047_v44   ;;  %v1156_v47 = vadd.f32 %v3735_v63, %v1155_v45  ;;  %v1412_v48 = vadd.f32 %v3735_v63, %v1411_v46  ;;  %v1157_v49 = vpop.f32.mrb[21].mxu0  ;;  %v1413_v50 = vpop.f32.mrb[21].mxu1 }
 0x143   : > { %v1158_v51 = vpop.f32.mrb[22].mxu0  ;;  %v1414_v52 = vpop.f32.mrb[22].mxu1 }
 0x144   : > { %v1159_v53 = vadd.f32 %v3735_v63, %v1158_v51  ;;  %v1415_v54 = vadd.f32 %v3735_v63, %v1414_v52  ;;  %v1160_v55 = vpop.f32.mrb[23].mxu0  ;;  %v1416_v56 = vpop.f32.mrb[23].mxu1  ;;  %v1636_v57 = vmax.f32 %v1156_v47, 0.0  ;;  %v1700_v58 = vmax.f32 %v1412_v48, 0.0 }
 0x146   : > { %v1637_v59 = vmax.f32 %v1159_v53, 0.0  ;;  %v1701_v60 = vmax.f32 %v1415_v54, 0.0 }
 0x148   : > { %v2892_v61 = vpack.c.bf16 %v1637_v59, %v1636_v57  ;;  %v3052_v62 = vpack.c.bf16 %v1701_v60, %v1700_v58 }
 0x149   : > { %v1163_v0 = vpop.f32.mrb[24].mxu0  ;;  %v1419_v1 = vpop.f32.mrb[24].mxu1 }
 0x14a   : > { %3188 = vst [vmem:[%s3749_s5 + $0x28] sm:$0xff] %v2892_v61   ;;  %3220 = vst [vmem:[%s3749_s5 + $0x128] sm:$0xff] %v3052_v62   ;;  %v1164_v2 = vadd.f32 %v3735_v63, %v1163_v0  ;;  %v1420_v3 = vadd.f32 %v3735_v63, %v1419_v1  ;;  %v1165_v4 = vpop.f32.mrb[25].mxu0  ;;  %v1421_v5 = vpop.f32.mrb[25].mxu1 }
 0x14b   : > { %v1166_v6 = vpop.f32.mrb[26].mxu0  ;;  %v1422_v7 = vpop.f32.mrb[26].mxu1 }
 0x14c   : > { %v1167_v8 = vadd.f32 %v3735_v63, %v1166_v6  ;;  %v1423_v9 = vadd.f32 %v3735_v63, %v1422_v7  ;;  %v1168_v10 = vpop.f32.mrb[27].mxu0  ;;  %v1424_v11 = vpop.f32.mrb[27].mxu1  ;;  %v1638_v12 = vmax.f32 %v1164_v2, 0.0  ;;  %v1702_v13 = vmax.f32 %v1420_v3, 0.0 }
 0x14e   : > { %v1639_v14 = vmax.f32 %v1167_v8, 0.0  ;;  %v1703_v15 = vmax.f32 %v1423_v9, 0.0 }
 0x150   : > { %v2897_v16 = vpack.c.bf16 %v1639_v14, %v1638_v12  ;;  %v3057_v17 = vpack.c.bf16 %v1703_v15, %v1702_v13 }
 0x151   : > { %v1171_v18 = vpop.f32.mrb[28].mxu0  ;;  %v1427_v19 = vpop.f32.mrb[28].mxu1 }
 0x152   : > { %3189 = vst [vmem:[%s3749_s5 + $0x30] sm:$0xff] %v2897_v16   ;;  %3221 = vst [vmem:[%s3749_s5 + $0x130] sm:$0xff] %v3057_v17   ;;  %v1172_v20 = vadd.f32 %v3735_v63, %v1171_v18  ;;  %v1428_v21 = vadd.f32 %v3735_v63, %v1427_v19  ;;  %v1173_v22 = vpop.f32.mrb[29].mxu0  ;;  %v1429_v23 = vpop.f32.mrb[29].mxu1 }
 0x153   : > { %v1174_v24 = vpop.f32.mrb[30].mxu0  ;;  %v1430_v25 = vpop.f32.mrb[30].mxu1 }
 0x154   : > { %v1175_v26 = vadd.f32 %v3735_v63, %v1174_v24  ;;  %v1431_v27 = vadd.f32 %v3735_v63, %v1430_v25  ;;  %v1176_v28 = vpop.f32.mrb[31].mxu0  ;;  %v1432_v29 = vpop.f32.mrb[31].mxu1  ;;  %v1640_v30 = vmax.f32 %v1172_v20, 0.0  ;;  %v1704_v31 = vmax.f32 %v1428_v21, 0.0 }
 0x156   : > { %v1641_v32 = vmax.f32 %v1175_v26, 0.0  ;;  %v1705_v33 = vmax.f32 %v1431_v27, 0.0 }
 0x158   : > { %v2902_v34 = vpack.c.bf16 %v1641_v32, %v1640_v30  ;;  %v3062_v35 = vpack.c.bf16 %v1705_v33, %v1704_v31 }
 0x159   : > { %v1179_v36 = vpop.f32.mrb[32].mxu0  ;;  %v1435_v37 = vpop.f32.mrb[32].mxu1 }
 0x15a   : > { %3190 = vst [vmem:[%s3749_s5 + $0x38] sm:$0xff] %v2902_v34   ;;  %3222 = vst [vmem:[%s3749_s5 + $0x138] sm:$0xff] %v3062_v35   ;;  %v1180_v38 = vadd.f32 %v3735_v63, %v1179_v36  ;;  %v1436_v39 = vadd.f32 %v3735_v63, %v1435_v37  ;;  %v1181_v40 = vpop.f32.mrb[33].mxu0  ;;  %v1437_v41 = vpop.f32.mrb[33].mxu1 }
 0x15b   : > { %v1182_v42 = vpop.f32.mrb[34].mxu0  ;;  %v1438_v43 = vpop.f32.mrb[34].mxu1 }
 0x15c   : > { %v1183_v44 = vadd.f32 %v3735_v63, %v1182_v42  ;;  %v1439_v45 = vadd.f32 %v3735_v63, %v1438_v43  ;;  %v1184_v46 = vpop.f32.mrb[35].mxu0  ;;  %v1440_v47 = vpop.f32.mrb[35].mxu1  ;;  %v1642_v48 = vmax.f32 %v1180_v38, 0.0  ;;  %v1706_v49 = vmax.f32 %v1436_v39, 0.0 }
 0x15e   : > { %v1643_v50 = vmax.f32 %v1183_v44, 0.0  ;;  %v1707_v51 = vmax.f32 %v1439_v45, 0.0 }
 0x160   : > { %v2907_v52 = vpack.c.bf16 %v1643_v50, %v1642_v48  ;;  %v3067_v53 = vpack.c.bf16 %v1707_v51, %v1706_v49 }
 0x161   : > { %v1187_v54 = vpop.f32.mrb[36].mxu0  ;;  %v1443_v55 = vpop.f32.mrb[36].mxu1 }
 0x162   : > { %3191 = vst [vmem:[%s3749_s5 + $0x40] sm:$0xff] %v2907_v52   ;;  %3223 = vst [vmem:[%s3749_s5 + $0x140] sm:$0xff] %v3067_v53   ;;  %v1188_v56 = vadd.f32 %v3735_v63, %v1187_v54  ;;  %v1444_v57 = vadd.f32 %v3735_v63, %v1443_v55  ;;  %v1189_v58 = vpop.f32.mrb[37].mxu0  ;;  %v1445_v59 = vpop.f32.mrb[37].mxu1 }
 0x163   : > { %v1190_v60 = vpop.f32.mrb[38].mxu0  ;;  %v1446_v61 = vpop.f32.mrb[38].mxu1 }
 0x164   : > { %v1191_v62 = vadd.f32 %v3735_v63, %v1190_v60  ;;  %v1447_v0 = vadd.f32 %v3735_v63, %v1446_v61  ;;  %v1192_v1 = vpop.f32.mrb[39].mxu0  ;;  %v1448_v2 = vpop.f32.mrb[39].mxu1  ;;  %v1644_v3 = vmax.f32 %v1188_v56, 0.0  ;;  %v1708_v4 = vmax.f32 %v1444_v57, 0.0 }
 0x166   : > { %v1645_v5 = vmax.f32 %v1191_v62, 0.0  ;;  %v1709_v6 = vmax.f32 %v1447_v0, 0.0 }
 0x168   : > { %v2912_v7 = vpack.c.bf16 %v1645_v5, %v1644_v3  ;;  %v3072_v8 = vpack.c.bf16 %v1709_v6, %v1708_v4 }
 0x169   : > { %v1195_v9 = vpop.f32.mrb[40].mxu0  ;;  %v1451_v10 = vpop.f32.mrb[40].mxu1 }
 0x16a   : > { %3192 = vst [vmem:[%s3749_s5 + $0x48] sm:$0xff] %v2912_v7   ;;  %3224 = vst [vmem:[%s3749_s5 + $0x148] sm:$0xff] %v3072_v8   ;;  %v1196_v11 = vadd.f32 %v3735_v63, %v1195_v9  ;;  %v1452_v12 = vadd.f32 %v3735_v63, %v1451_v10  ;;  %v1197_v13 = vpop.f32.mrb[41].mxu0  ;;  %v1453_v14 = vpop.f32.mrb[41].mxu1 }
 0x16b   : > { %v1198_v15 = vpop.f32.mrb[42].mxu0  ;;  %v1454_v16 = vpop.f32.mrb[42].mxu1 }
 0x16c   : > { %v1199_v17 = vadd.f32 %v3735_v63, %v1198_v15  ;;  %v1455_v18 = vadd.f32 %v3735_v63, %v1454_v16  ;;  %v1200_v19 = vpop.f32.mrb[43].mxu0  ;;  %v1456_v20 = vpop.f32.mrb[43].mxu1  ;;  %v1646_v21 = vmax.f32 %v1196_v11, 0.0  ;;  %v1710_v22 = vmax.f32 %v1452_v12, 0.0 }
 0x16e   : > { %v1647_v23 = vmax.f32 %v1199_v17, 0.0  ;;  %v1711_v24 = vmax.f32 %v1455_v18, 0.0 }
 0x170   : > { %v2917_v25 = vpack.c.bf16 %v1647_v23, %v1646_v21  ;;  %v3077_v26 = vpack.c.bf16 %v1711_v24, %v1710_v22 }
 0x171   : > { %v1203_v27 = vpop.f32.mrb[44].mxu0  ;;  %v1459_v28 = vpop.f32.mrb[44].mxu1 }
 0x172   : > { %3193 = vst [vmem:[%s3749_s5 + $0x50] sm:$0xff] %v2917_v25   ;;  %3225 = vst [vmem:[%s3749_s5 + $0x150] sm:$0xff] %v3077_v26   ;;  %v1204_v29 = vadd.f32 %v3735_v63, %v1203_v27  ;;  %v1460_v30 = vadd.f32 %v3735_v63, %v1459_v28  ;;  %v1205_v31 = vpop.f32.mrb[45].mxu0  ;;  %v1461_v32 = vpop.f32.mrb[45].mxu1 }
 0x173   : > { %v1206_v33 = vpop.f32.mrb[46].mxu0  ;;  %v1462_v34 = vpop.f32.mrb[46].mxu1 }
 0x174   : > { %v1207_v35 = vadd.f32 %v3735_v63, %v1206_v33  ;;  %v1463_v36 = vadd.f32 %v3735_v63, %v1462_v34  ;;  %v1208_v37 = vpop.f32.mrb[47].mxu0  ;;  %v1464_v38 = vpop.f32.mrb[47].mxu1  ;;  %v1648_v39 = vmax.f32 %v1204_v29, 0.0  ;;  %v1712_v40 = vmax.f32 %v1460_v30, 0.0 }
 0x176   : > { %v1649_v41 = vmax.f32 %v1207_v35, 0.0  ;;  %v1713_v42 = vmax.f32 %v1463_v36, 0.0 }
 0x178   : > { %v2922_v43 = vpack.c.bf16 %v1649_v41, %v1648_v39  ;;  %v3082_v44 = vpack.c.bf16 %v1713_v42, %v1712_v40 }
 0x179   : > { %v1211_v45 = vpop.f32.mrb[48].mxu0  ;;  %v1467_v46 = vpop.f32.mrb[48].mxu1 }
 0x17a   : > { %3194 = vst [vmem:[%s3749_s5 + $0x58] sm:$0xff] %v2922_v43   ;;  %3226 = vst [vmem:[%s3749_s5 + $0x158] sm:$0xff] %v3082_v44   ;;  %v1212_v47 = vadd.f32 %v3735_v63, %v1211_v45  ;;  %v1468_v48 = vadd.f32 %v3735_v63, %v1467_v46  ;;  %v1213_v49 = vpop.f32.mrb[49].mxu0  ;;  %v1469_v50 = vpop.f32.mrb[49].mxu1 }
 0x17b   : > { %v1214_v51 = vpop.f32.mrb[50].mxu0  ;;  %v1470_v52 = vpop.f32.mrb[50].mxu1 }
 0x17c   : > { %v1215_v53 = vadd.f32 %v3735_v63, %v1214_v51  ;;  %v1471_v54 = vadd.f32 %v3735_v63, %v1470_v52  ;;  %v1216_v55 = vpop.f32.mrb[51].mxu0  ;;  %v1472_v56 = vpop.f32.mrb[51].mxu1  ;;  %v1650_v57 = vmax.f32 %v1212_v47, 0.0  ;;  %v1714_v58 = vmax.f32 %v1468_v48, 0.0 }
 0x17e   : > { %v1651_v59 = vmax.f32 %v1215_v53, 0.0  ;;  %v1715_v60 = vmax.f32 %v1471_v54, 0.0 }
 0x180   : > { %v2927_v61 = vpack.c.bf16 %v1651_v59, %v1650_v57  ;;  %v3087_v62 = vpack.c.bf16 %v1715_v60, %v1714_v58 }
 0x181   : > { %v1219_v0 = vpop.f32.mrb[52].mxu0  ;;  %v1475_v1 = vpop.f32.mrb[52].mxu1 }
 0x182   : > { %3195 = vst [vmem:[%s3749_s5 + $0x60] sm:$0xff] %v2927_v61   ;;  %3227 = vst [vmem:[%s3749_s5 + $0x160] sm:$0xff] %v3087_v62   ;;  %v1220_v2 = vadd.f32 %v3735_v63, %v1219_v0  ;;  %v1476_v3 = vadd.f32 %v3735_v63, %v1475_v1  ;;  %v1221_v4 = vpop.f32.mrb[53].mxu0  ;;  %v1477_v5 = vpop.f32.mrb[53].mxu1 }
 0x183   : > { %v1222_v6 = vpop.f32.mrb[54].mxu0  ;;  %v1478_v7 = vpop.f32.mrb[54].mxu1 }
 0x184   : > { %v1223_v8 = vadd.f32 %v3735_v63, %v1222_v6  ;;  %v1479_v9 = vadd.f32 %v3735_v63, %v1478_v7  ;;  %v1224_v10 = vpop.f32.mrb[55].mxu0  ;;  %v1480_v11 = vpop.f32.mrb[55].mxu1  ;;  %v1652_v12 = vmax.f32 %v1220_v2, 0.0  ;;  %v1716_v13 = vmax.f32 %v1476_v3, 0.0 }
 0x186   : > { %v1653_v14 = vmax.f32 %v1223_v8, 0.0  ;;  %v1717_v15 = vmax.f32 %v1479_v9, 0.0 }
 0x188   : > { %v2932_v16 = vpack.c.bf16 %v1653_v14, %v1652_v12  ;;  %v3092_v17 = vpack.c.bf16 %v1717_v15, %v1716_v13 }
 0x189   : > { %v1227_v18 = vpop.f32.mrb[56].mxu0  ;;  %v1483_v19 = vpop.f32.mrb[56].mxu1 }
 0x18a   : > { %3196 = vst [vmem:[%s3749_s5 + $0x68] sm:$0xff] %v2932_v16   ;;  %3228 = vst [vmem:[%s3749_s5 + $0x168] sm:$0xff] %v3092_v17   ;;  %v1228_v20 = vadd.f32 %v3735_v63, %v1227_v18  ;;  %v1484_v21 = vadd.f32 %v3735_v63, %v1483_v19  ;;  %v1229_v22 = vpop.f32.mrb[57].mxu0  ;;  %v1485_v23 = vpop.f32.mrb[57].mxu1 }
 0x18b   : > { %v1230_v24 = vpop.f32.mrb[58].mxu0  ;;  %v1486_v25 = vpop.f32.mrb[58].mxu1 }
 0x18c   : > { %v1231_v26 = vadd.f32 %v3735_v63, %v1230_v24  ;;  %v1487_v27 = vadd.f32 %v3735_v63, %v1486_v25  ;;  %v1232_v28 = vpop.f32.mrb[59].mxu0  ;;  %v1488_v29 = vpop.f32.mrb[59].mxu1  ;;  %v1654_v30 = vmax.f32 %v1228_v20, 0.0  ;;  %v1718_v31 = vmax.f32 %v1484_v21, 0.0 }
 0x18e   : > { %v1655_v32 = vmax.f32 %v1231_v26, 0.0  ;;  %v1719_v33 = vmax.f32 %v1487_v27, 0.0 }
 0x190   : > { %v2937_v34 = vpack.c.bf16 %v1655_v32, %v1654_v30  ;;  %v3097_v35 = vpack.c.bf16 %v1719_v33, %v1718_v31 }
 0x191   : > { %v1235_v36 = vpop.f32.mrb[60].mxu0  ;;  %v1491_v37 = vpop.f32.mrb[60].mxu1 }
 0x192   : > { %3197 = vst [vmem:[%s3749_s5 + $0x70] sm:$0xff] %v2937_v34   ;;  %3229 = vst [vmem:[%s3749_s5 + $0x170] sm:$0xff] %v3097_v35   ;;  %v1236_v38 = vadd.f32 %v3735_v63, %v1235_v36  ;;  %v1492_v39 = vadd.f32 %v3735_v63, %v1491_v37  ;;  %v1237_v40 = vpop.f32.mrb[61].mxu0  ;;  %v1493_v41 = vpop.f32.mrb[61].mxu1 }
 0x193   : > { %v1238_v42 = vpop.f32.mrb[62].mxu0  ;;  %v1494_v43 = vpop.f32.mrb[62].mxu1 }
 0x194   : > { %v1239_v44 = vadd.f32 %v3735_v63, %v1238_v42  ;;  %v1495_v45 = vadd.f32 %v3735_v63, %v1494_v43  ;;  %v1240_v46 = vpop.f32.mrb[63].mxu0  ;;  %v1496_v47 = vpop.f32.mrb[63].mxu1  ;;  %v1656_v48 = vmax.f32 %v1236_v38, 0.0  ;;  %v1720_v49 = vmax.f32 %v1492_v39, 0.0 }
 0x196   : > { %v1657_v50 = vmax.f32 %v1239_v44, 0.0  ;;  %v1721_v51 = vmax.f32 %v1495_v45, 0.0 }
 0x198   : > { %v2942_v52 = vpack.c.bf16 %v1657_v50, %v1656_v48  ;;  %v3102_v53 = vpack.c.bf16 %v1721_v51, %v1720_v49 }
 0x199   : > { %v1243_v54 = vpop.f32.mrb[64].mxu0  ;;  %v1499_v55 = vpop.f32.mrb[64].mxu1 }
 0x19a   : > { %3198 = vst [vmem:[%s3749_s5 + $0x78] sm:$0xff] %v2942_v52   ;;  %3230 = vst [vmem:[%s3749_s5 + $0x178] sm:$0xff] %v3102_v53   ;;  %v1244_v56 = vadd.f32 %v3735_v63, %v1243_v54  ;;  %v1500_v57 = vadd.f32 %v3735_v63, %v1499_v55  ;;  %v1245_v58 = vpop.f32.mrb[65].mxu0  ;;  %v1501_v59 = vpop.f32.mrb[65].mxu1 }
 0x19b   : > { %v1246_v60 = vpop.f32.mrb[66].mxu0  ;;  %v1502_v61 = vpop.f32.mrb[66].mxu1 }
 0x19c   : > { %v1247_v62 = vadd.f32 %v3735_v63, %v1246_v60  ;;  %v1503_v0 = vadd.f32 %v3735_v63, %v1502_v61  ;;  %v1248_v1 = vpop.f32.mrb[67].mxu0  ;;  %v1504_v2 = vpop.f32.mrb[67].mxu1  ;;  %v1658_v3 = vmax.f32 %v1244_v56, 0.0  ;;  %v1722_v4 = vmax.f32 %v1500_v57, 0.0 }
 0x19e   : > { %v1659_v5 = vmax.f32 %v1247_v62, 0.0  ;;  %v1723_v6 = vmax.f32 %v1503_v0, 0.0 }
 0x1a0   : > { %v2947_v7 = vpack.c.bf16 %v1659_v5, %v1658_v3  ;;  %v3107_v8 = vpack.c.bf16 %v1723_v6, %v1722_v4 }
 0x1a1   : > { %v1251_v9 = vpop.f32.mrb[68].mxu0  ;;  %v1507_v10 = vpop.f32.mrb[68].mxu1 }
 0x1a2   : > { %3199 = vst [vmem:[%s3749_s5 + $0x80] sm:$0xff] %v2947_v7   ;;  %3231 = vst [vmem:[%s3749_s5 + $0x180] sm:$0xff] %v3107_v8   ;;  %v1252_v11 = vadd.f32 %v3735_v63, %v1251_v9  ;;  %v1508_v12 = vadd.f32 %v3735_v63, %v1507_v10  ;;  %v1253_v13 = vpop.f32.mrb[69].mxu0  ;;  %v1509_v14 = vpop.f32.mrb[69].mxu1 }
 0x1a3   : > { %v1254_v15 = vpop.f32.mrb[70].mxu0  ;;  %v1510_v16 = vpop.f32.mrb[70].mxu1 }
 0x1a4   : > { %v1255_v17 = vadd.f32 %v3735_v63, %v1254_v15  ;;  %v1511_v18 = vadd.f32 %v3735_v63, %v1510_v16  ;;  %v1256_v19 = vpop.f32.mrb[71].mxu0  ;;  %v1512_v20 = vpop.f32.mrb[71].mxu1  ;;  %v1660_v21 = vmax.f32 %v1252_v11, 0.0  ;;  %v1724_v22 = vmax.f32 %v1508_v12, 0.0 }
 0x1a6   : > { %v1661_v23 = vmax.f32 %v1255_v17, 0.0  ;;  %v1725_v24 = vmax.f32 %v1511_v18, 0.0 }
 0x1a8   : > { %v2952_v25 = vpack.c.bf16 %v1661_v23, %v1660_v21  ;;  %v3112_v26 = vpack.c.bf16 %v1725_v24, %v1724_v22 }
 0x1a9   : > { %v1259_v27 = vpop.f32.mrb[72].mxu0  ;;  %v1515_v28 = vpop.f32.mrb[72].mxu1 }
 0x1aa   : > { %3200 = vst [vmem:[%s3749_s5 + $0x88] sm:$0xff] %v2952_v25   ;;  %3232 = vst [vmem:[%s3749_s5 + $0x188] sm:$0xff] %v3112_v26   ;;  %v1260_v29 = vadd.f32 %v3735_v63, %v1259_v27  ;;  %v1516_v30 = vadd.f32 %v3735_v63, %v1515_v28  ;;  %v1261_v31 = vpop.f32.mrb[73].mxu0  ;;  %v1517_v32 = vpop.f32.mrb[73].mxu1 }
 0x1ab   : > { %v1262_v33 = vpop.f32.mrb[74].mxu0  ;;  %v1518_v34 = vpop.f32.mrb[74].mxu1 }
 0x1ac   : > { %v1263_v35 = vadd.f32 %v3735_v63, %v1262_v33  ;;  %v1519_v36 = vadd.f32 %v3735_v63, %v1518_v34  ;;  %v1264_v37 = vpop.f32.mrb[75].mxu0  ;;  %v1520_v38 = vpop.f32.mrb[75].mxu1  ;;  %v1662_v39 = vmax.f32 %v1260_v29, 0.0  ;;  %v1726_v40 = vmax.f32 %v1516_v30, 0.0 }
 0x1ae   : > { %v1663_v41 = vmax.f32 %v1263_v35, 0.0  ;;  %v1727_v42 = vmax.f32 %v1519_v36, 0.0 }
 0x1b0   : > { %v2957_v43 = vpack.c.bf16 %v1663_v41, %v1662_v39  ;;  %v3117_v44 = vpack.c.bf16 %v1727_v42, %v1726_v40 }
 0x1b1   : > { %v1267_v45 = vpop.f32.mrb[76].mxu0  ;;  %v1523_v46 = vpop.f32.mrb[76].mxu1 }
 0x1b2   : > { %3201 = vst [vmem:[%s3749_s5 + $0x90] sm:$0xff] %v2957_v43   ;;  %3233 = vst [vmem:[%s3749_s5 + $0x190] sm:$0xff] %v3117_v44   ;;  %v1268_v47 = vadd.f32 %v3735_v63, %v1267_v45  ;;  %v1524_v48 = vadd.f32 %v3735_v63, %v1523_v46  ;;  %v1269_v49 = vpop.f32.mrb[77].mxu0  ;;  %v1525_v50 = vpop.f32.mrb[77].mxu1 }
 0x1b3   : > { %v1270_v51 = vpop.f32.mrb[78].mxu0  ;;  %v1526_v52 = vpop.f32.mrb[78].mxu1 }
 0x1b4   : > { %v1271_v53 = vadd.f32 %v3735_v63, %v1270_v51  ;;  %v1527_v54 = vadd.f32 %v3735_v63, %v1526_v52  ;;  %v1272_v55 = vpop.f32.mrb[79].mxu0  ;;  %v1528_v56 = vpop.f32.mrb[79].mxu1  ;;  %v1664_v57 = vmax.f32 %v1268_v47, 0.0  ;;  %v1728_v58 = vmax.f32 %v1524_v48, 0.0 }
 0x1b6   : > { %v1665_v59 = vmax.f32 %v1271_v53, 0.0  ;;  %v1729_v60 = vmax.f32 %v1527_v54, 0.0 }
 0x1b8   : > { %v2962_v61 = vpack.c.bf16 %v1665_v59, %v1664_v57  ;;  %v3122_v62 = vpack.c.bf16 %v1729_v60, %v1728_v58 }
 0x1b9   : > { %v1275_v0 = vpop.f32.mrb[80].mxu0  ;;  %v1531_v1 = vpop.f32.mrb[80].mxu1 }
 0x1ba   : > { %3202 = vst [vmem:[%s3749_s5 + $0x98] sm:$0xff] %v2962_v61   ;;  %3234 = vst [vmem:[%s3749_s5 + $0x198] sm:$0xff] %v3122_v62   ;;  %v1276_v2 = vadd.f32 %v3735_v63, %v1275_v0  ;;  %v1532_v3 = vadd.f32 %v3735_v63, %v1531_v1  ;;  %v1277_v4 = vpop.f32.mrb[81].mxu0  ;;  %v1533_v5 = vpop.f32.mrb[81].mxu1 }
 0x1bb   : > { %v1278_v6 = vpop.f32.mrb[82].mxu0  ;;  %v1534_v7 = vpop.f32.mrb[82].mxu1 }
 0x1bc   : > { %v1279_v8 = vadd.f32 %v3735_v63, %v1278_v6  ;;  %v1535_v9 = vadd.f32 %v3735_v63, %v1534_v7  ;;  %v1280_v10 = vpop.f32.mrb[83].mxu0  ;;  %v1536_v11 = vpop.f32.mrb[83].mxu1  ;;  %v1666_v12 = vmax.f32 %v1276_v2, 0.0  ;;  %v1730_v13 = vmax.f32 %v1532_v3, 0.0 }
 0x1bd   : > { %v3908_v11 = vld [vmem:[%s3963_s2] ss:$0 sm:$0xff] }
 0x1be   : > { %v1667_v14 = vmax.f32 %v1279_v8, 0.0  ;;  %v1731_v15 = vmax.f32 %v1535_v9, 0.0 }
 0x1c0   : > { %v2967_v16 = vpack.c.bf16 %v1667_v14, %v1666_v12  ;;  %v3127_v17 = vpack.c.bf16 %v1731_v15, %v1730_v13 }
 0x1c1   : > { %v1283_v18 = vpop.f32.mrb[84].mxu0  ;;  %v1539_v19 = vpop.f32.mrb[84].mxu1 }
 0x1c2   : > { %3203 = vst [vmem:[%s3749_s5 + $0xa0] sm:$0xff] %v2967_v16   ;;  %3235 = vst [vmem:[%s3749_s5 + $0x1a0] sm:$0xff] %v3127_v17   ;;  %v1284_v20 = vadd.f32 %v3735_v63, %v1283_v18  ;;  %v1540_v21 = vadd.f32 %v3735_v63, %v1539_v19  ;;  %v1285_v22 = vpop.f32.mrb[85].mxu0  ;;  %v1541_v23 = vpop.f32.mrb[85].mxu1 }
 0x1c3   : > { %v1286_v24 = vpop.f32.mrb[86].mxu0  ;;  %v1542_v25 = vpop.f32.mrb[86].mxu1 }
 0x1c4   : > { %v1287_v26 = vadd.f32 %v3735_v63, %v1286_v24  ;;  %v1543_v27 = vadd.f32 %v3735_v63, %v1542_v25  ;;  %v1288_v28 = vpop.f32.mrb[87].mxu0  ;;  %v1544_v29 = vpop.f32.mrb[87].mxu1  ;;  %v1668_v30 = vmax.f32 %v1284_v20, 0.0  ;;  %v1732_v31 = vmax.f32 %v1540_v21, 0.0 }
 0x1c6   : > { %v1669_v32 = vmax.f32 %v1287_v26, 0.0  ;;  %v1733_v33 = vmax.f32 %v1543_v27, 0.0 }
 0x1c8   : > { %v2972_v34 = vpack.c.bf16 %v1669_v32, %v1668_v30  ;;  %v3132_v35 = vpack.c.bf16 %v1733_v33, %v1732_v31 }
 0x1c9   : > { %v1291_v36 = vpop.f32.mrb[88].mxu0  ;;  %v1547_v37 = vpop.f32.mrb[88].mxu1 }
 0x1ca   : > { %3204 = vst [vmem:[%s3749_s5 + $0xa8] sm:$0xff] %v2972_v34   ;;  %3236 = vst [vmem:[%s3749_s5 + $0x1a8] sm:$0xff] %v3132_v35   ;;  %v1292_v38 = vadd.f32 %v3735_v63, %v1291_v36  ;;  %v1548_v39 = vadd.f32 %v3735_v63, %v1547_v37  ;;  %v1293_v40 = vpop.f32.mrb[89].mxu0  ;;  %v1549_v41 = vpop.f32.mrb[89].mxu1 }
 0x1cb   : > { %v1294_v42 = vpop.f32.mrb[90].mxu0  ;;  %v1550_v43 = vpop.f32.mrb[90].mxu1 }
 0x1cc   : > { %v1295_v44 = vadd.f32 %v3735_v63, %v1294_v42  ;;  %v1551_v45 = vadd.f32 %v3735_v63, %v1550_v43  ;;  %v1296_v46 = vpop.f32.mrb[91].mxu0  ;;  %v1552_v47 = vpop.f32.mrb[91].mxu1  ;;  %v1670_v48 = vmax.f32 %v1292_v38, 0.0  ;;  %v1734_v49 = vmax.f32 %v1548_v39, 0.0 }
 0x1ce   : > { %v1671_v50 = vmax.f32 %v1295_v44, 0.0  ;;  %v1735_v51 = vmax.f32 %v1551_v45, 0.0 }
 0x1d0   : > { %v2977_v52 = vpack.c.bf16 %v1671_v50, %v1670_v48  ;;  %v3137_v53 = vpack.c.bf16 %v1735_v51, %v1734_v49 }
 0x1d1   : > { %v1299_v54 = vpop.f32.mrb[92].mxu0  ;;  %v1555_v55 = vpop.f32.mrb[92].mxu1 }
 0x1d2   : > { %3205 = vst [vmem:[%s3749_s5 + $0xb0] sm:$0xff] %v2977_v52   ;;  %3237 = vst [vmem:[%s3749_s5 + $0x1b0] sm:$0xff] %v3137_v53   ;;  %v1300_v56 = vadd.f32 %v3735_v63, %v1299_v54  ;;  %v1556_v57 = vadd.f32 %v3735_v63, %v1555_v55  ;;  %v1301_v58 = vpop.f32.mrb[93].mxu0  ;;  %v1557_v59 = vpop.f32.mrb[93].mxu1 }
 0x1d3   : > { %v1302_v60 = vpop.f32.mrb[94].mxu0  ;;  %v1558_v61 = vpop.f32.mrb[94].mxu1 }
 0x1d4   : > { %v1303_v62 = vadd.f32 %v3735_v63, %v1302_v60  ;;  %v1559_v0 = vadd.f32 %v3735_v63, %v1558_v61  ;;  %v1304_v1 = vpop.f32.mrb[95].mxu0  ;;  %v1560_v2 = vpop.f32.mrb[95].mxu1  ;;  %v1672_v3 = vmax.f32 %v1300_v56, 0.0  ;;  %v1736_v4 = vmax.f32 %v1556_v57, 0.0 }
 0x1d6   : > { %v1673_v5 = vmax.f32 %v1303_v62, 0.0  ;;  %v1737_v6 = vmax.f32 %v1559_v0, 0.0 }
 0x1d8   : > { %v2982_v7 = vpack.c.bf16 %v1673_v5, %v1672_v3  ;;  %v3142_v8 = vpack.c.bf16 %v1737_v6, %v1736_v4 }
 0x1d9   : > { %v1307_v9 = vpop.f32.mrb[96].mxu0  ;;  %v1563_v10 = vpop.f32.mrb[96].mxu1 }
 0x1da   : > { %3206 = vst [vmem:[%s3749_s5 + $0xb8] sm:$0xff] %v2982_v7   ;;  %3238 = vst [vmem:[%s3749_s5 + $0x1b8] sm:$0xff] %v3142_v8   ;;  %v1308_v12 = vadd.f32 %v3908_v11, %v1307_v9  ;;  %v1564_v63 = vadd.f32 %v3908_v11, %v1563_v10  ;;  %v1309_v13 = vpop.f32.mrb[97].mxu0  ;;  %v1565_v14 = vpop.f32.mrb[97].mxu1 }
 0x1db   : > { %v1310_v15 = vpop.f32.mrb[98].mxu0  ;;  %v1566_v16 = vpop.f32.mrb[98].mxu1 }
 0x1dc   : > { %v1311_v17 = vadd.f32 %v3908_v11, %v1310_v15  ;;  %v1567_v18 = vadd.f32 %v3908_v11, %v1566_v16  ;;  %v1312_v19 = vpop.f32.mrb[99].mxu0  ;;  %v1568_v20 = vpop.f32.mrb[99].mxu1  ;;  %v1674_v21 = vmax.f32 %v1308_v12, 0.0  ;;  %v1738_v22 = vmax.f32 %v1564_v63, 0.0 }
 0x1de   : > { %v1675_v23 = vmax.f32 %v1311_v17, 0.0  ;;  %v1739_v24 = vmax.f32 %v1567_v18, 0.0 }
 0x1e0   : > { %v2987_v25 = vpack.c.bf16 %v1675_v23, %v1674_v21  ;;  %v3147_v26 = vpack.c.bf16 %v1739_v24, %v1738_v22 }
 0x1e1   : > { %v1315_v27 = vpop.f32.mrb[100].mxu0  ;;  %v1571_v28 = vpop.f32.mrb[100].mxu1 }
 0x1e2   : > { %3207 = vst [vmem:[%s3749_s5 + $0xc0] sm:$0xff] %v2987_v25   ;;  %3239 = vst [vmem:[%s3749_s5 + $0x1c0] sm:$0xff] %v3147_v26   ;;  %v1316_v29 = vadd.f32 %v3908_v11, %v1315_v27  ;;  %v1572_v30 = vadd.f32 %v3908_v11, %v1571_v28  ;;  %v1317_v31 = vpop.f32.mrb[101].mxu0  ;;  %v1573_v32 = vpop.f32.mrb[101].mxu1 }
 0x1e3   : > { %v1318_v33 = vpop.f32.mrb[102].mxu0  ;;  %v1574_v34 = vpop.f32.mrb[102].mxu1 }
 0x1e4   : > { %v1319_v35 = vadd.f32 %v3908_v11, %v1318_v33  ;;  %v1575_v36 = vadd.f32 %v3908_v11, %v1574_v34  ;;  %v1320_v37 = vpop.f32.mrb[103].mxu0  ;;  %v1576_v38 = vpop.f32.mrb[103].mxu1  ;;  %v1676_v39 = vmax.f32 %v1316_v29, 0.0  ;;  %v1740_v40 = vmax.f32 %v1572_v30, 0.0 }
 0x1e6   : > { %v1677_v41 = vmax.f32 %v1319_v35, 0.0  ;;  %v1741_v42 = vmax.f32 %v1575_v36, 0.0 }
 0x1e8   : > { %v2992_v43 = vpack.c.bf16 %v1677_v41, %v1676_v39  ;;  %v3152_v44 = vpack.c.bf16 %v1741_v42, %v1740_v40 }
 0x1e9   : > { %v1323_v45 = vpop.f32.mrb[104].mxu0  ;;  %v1579_v46 = vpop.f32.mrb[104].mxu1 }
 0x1ea   : > { %3208 = vst [vmem:[%s3749_s5 + $0xc8] sm:$0xff] %v2992_v43   ;;  %3240 = vst [vmem:[%s3749_s5 + $0x1c8] sm:$0xff] %v3152_v44   ;;  %v1324_v47 = vadd.f32 %v3908_v11, %v1323_v45  ;;  %v1580_v48 = vadd.f32 %v3908_v11, %v1579_v46  ;;  %v1325_v49 = vpop.f32.mrb[105].mxu0  ;;  %v1581_v50 = vpop.f32.mrb[105].mxu1 }
 0x1eb   : > { %v1326_v51 = vpop.f32.mrb[106].mxu0  ;;  %v1582_v52 = vpop.f32.mrb[106].mxu1 }
 0x1ec   : > { %v1327_v53 = vadd.f32 %v3908_v11, %v1326_v51  ;;  %v1583_v54 = vadd.f32 %v3908_v11, %v1582_v52  ;;  %v1328_v55 = vpop.f32.mrb[107].mxu0  ;;  %v1584_v56 = vpop.f32.mrb[107].mxu1  ;;  %v1678_v57 = vmax.f32 %v1324_v47, 0.0  ;;  %v1742_v58 = vmax.f32 %v1580_v48, 0.0 }
 0x1ee   : > { %v1679_v59 = vmax.f32 %v1327_v53, 0.0  ;;  %v1743_v60 = vmax.f32 %v1583_v54, 0.0 }
 0x1f0   : > { %v2997_v61 = vpack.c.bf16 %v1679_v59, %v1678_v57  ;;  %v3157_v62 = vpack.c.bf16 %v1743_v60, %v1742_v58 }
 0x1f1   : > { %v1331_v0 = vpop.f32.mrb[108].mxu0  ;;  %v1587_v1 = vpop.f32.mrb[108].mxu1 }
 0x1f2   : > { %3209 = vst [vmem:[%s3749_s5 + $0xd0] sm:$0xff] %v2997_v61   ;;  %3241 = vst [vmem:[%s3749_s5 + $0x1d0] sm:$0xff] %v3157_v62   ;;  %v1332_v2 = vadd.f32 %v3908_v11, %v1331_v0  ;;  %v1588_v3 = vadd.f32 %v3908_v11, %v1587_v1  ;;  %v1333_v4 = vpop.f32.mrb[109].mxu0  ;;  %v1589_v5 = vpop.f32.mrb[109].mxu1 }
 0x1f3   : > { %v1334_v6 = vpop.f32.mrb[110].mxu0  ;;  %v1590_v7 = vpop.f32.mrb[110].mxu1 }
 0x1f4   : > { %v1335_v8 = vadd.f32 %v3908_v11, %v1334_v6  ;;  %v1591_v9 = vadd.f32 %v3908_v11, %v1590_v7  ;;  %v1336_v10 = vpop.f32.mrb[111].mxu0  ;;  %v1592_v12 = vpop.f32.mrb[111].mxu1  ;;  %v1680_v63 = vmax.f32 %v1332_v2, 0.0  ;;  %v1744_v13 = vmax.f32 %v1588_v3, 0.0 }
 0x1f6   : > { %v1681_v14 = vmax.f32 %v1335_v8, 0.0  ;;  %v1745_v15 = vmax.f32 %v1591_v9, 0.0 }
 0x1f8   : > { %v3002_v16 = vpack.c.bf16 %v1681_v14, %v1680_v63  ;;  %v3162_v17 = vpack.c.bf16 %v1745_v15, %v1744_v13 }
 0x1f9   : > { %v1339_v18 = vpop.f32.mrb[112].mxu0  ;;  %v1595_v19 = vpop.f32.mrb[112].mxu1 }
 0x1fa   : > { %3210 = vst [vmem:[%s3749_s5 + $0xd8] sm:$0xff] %v3002_v16   ;;  %3242 = vst [vmem:[%s3749_s5 + $0x1d8] sm:$0xff] %v3162_v17   ;;  %v1340_v20 = vadd.f32 %v3908_v11, %v1339_v18  ;;  %v1596_v21 = vadd.f32 %v3908_v11, %v1595_v19  ;;  %v1341_v22 = vpop.f32.mrb[113].mxu0  ;;  %v1597_v23 = vpop.f32.mrb[113].mxu1 }
 0x1fb   : > { %v1342_v24 = vpop.f32.mrb[114].mxu0  ;;  %v1598_v25 = vpop.f32.mrb[114].mxu1 }
 0x1fc   : > { %v1343_v26 = vadd.f32 %v3908_v11, %v1342_v24  ;;  %v1599_v27 = vadd.f32 %v3908_v11, %v1598_v25  ;;  %v1344_v28 = vpop.f32.mrb[115].mxu0  ;;  %v1600_v29 = vpop.f32.mrb[115].mxu1  ;;  %v1682_v30 = vmax.f32 %v1340_v20, 0.0  ;;  %v1746_v31 = vmax.f32 %v1596_v21, 0.0 }
 0x1fe   : > { %v1683_v32 = vmax.f32 %v1343_v26, 0.0  ;;  %v1747_v33 = vmax.f32 %v1599_v27, 0.0 }
 0x200   : > { %v3007_v34 = vpack.c.bf16 %v1683_v32, %v1682_v30  ;;  %v3167_v35 = vpack.c.bf16 %v1747_v33, %v1746_v31 }
 0x201   : > { %v1347_v36 = vpop.f32.mrb[116].mxu0  ;;  %v1603_v37 = vpop.f32.mrb[116].mxu1 }
 0x202   : > { %3211 = vst [vmem:[%s3749_s5 + $0xe0] sm:$0xff] %v3007_v34   ;;  %3243 = vst [vmem:[%s3749_s5 + $0x1e0] sm:$0xff] %v3167_v35   ;;  %v1348_v38 = vadd.f32 %v3908_v11, %v1347_v36  ;;  %v1604_v39 = vadd.f32 %v3908_v11, %v1603_v37  ;;  %v1349_v40 = vpop.f32.mrb[117].mxu0  ;;  %v1605_v41 = vpop.f32.mrb[117].mxu1 }
 0x203   : > { %v1350_v42 = vpop.f32.mrb[118].mxu0  ;;  %v1606_v43 = vpop.f32.mrb[118].mxu1 }
 0x204   : > { %v1351_v44 = vadd.f32 %v3908_v11, %v1350_v42  ;;  %v1607_v45 = vadd.f32 %v3908_v11, %v1606_v43  ;;  %v1352_v46 = vpop.f32.mrb[119].mxu0  ;;  %v1608_v47 = vpop.f32.mrb[119].mxu1  ;;  %v1684_v48 = vmax.f32 %v1348_v38, 0.0  ;;  %v1748_v49 = vmax.f32 %v1604_v39, 0.0 }
 0x206   : > { %v1685_v50 = vmax.f32 %v1351_v44, 0.0  ;;  %v1749_v51 = vmax.f32 %v1607_v45, 0.0 }
 0x208   : > { %v3012_v52 = vpack.c.bf16 %v1685_v50, %v1684_v48  ;;  %v3172_v53 = vpack.c.bf16 %v1749_v51, %v1748_v49 }
 0x209   : > { %v1355_v54 = vpop.f32.mrb[120].mxu0  ;;  %v1611_v55 = vpop.f32.mrb[120].mxu1 }
 0x20a   : > { %3212 = vst [vmem:[%s3749_s5 + $0xe8] sm:$0xff] %v3012_v52   ;;  %3244 = vst [vmem:[%s3749_s5 + $0x1e8] sm:$0xff] %v3172_v53   ;;  %v1356_v56 = vadd.f32 %v3908_v11, %v1355_v54  ;;  %v1612_v57 = vadd.f32 %v3908_v11, %v1611_v55  ;;  %v1357_v58 = vpop.f32.mrb[121].mxu0  ;;  %v1613_v59 = vpop.f32.mrb[121].mxu1 }
 0x20b   : > { %v1358_v60 = vpop.f32.mrb[122].mxu0  ;;  %v1614_v61 = vpop.f32.mrb[122].mxu1 }
 0x20c   : > { %v1359_v62 = vadd.f32 %v3908_v11, %v1358_v60  ;;  %v1615_v0 = vadd.f32 %v3908_v11, %v1614_v61  ;;  %v1360_v1 = vpop.f32.mrb[123].mxu0  ;;  %v1616_v2 = vpop.f32.mrb[123].mxu1  ;;  %v1686_v3 = vmax.f32 %v1356_v56, 0.0  ;;  %v1750_v4 = vmax.f32 %v1612_v57, 0.0 }
 0x20e   : > { %v1687_v5 = vmax.f32 %v1359_v62, 0.0  ;;  %v1751_v6 = vmax.f32 %v1615_v0, 0.0 }
 0x210   : > { %v3017_v7 = vpack.c.bf16 %v1687_v5, %v1686_v3  ;;  %v3177_v8 = vpack.c.bf16 %v1751_v6, %v1750_v4 }
 0x211   : > { %v1363_v9 = vpop.f32.mrb[124].mxu0  ;;  %v1619_v10 = vpop.f32.mrb[124].mxu1 }
 0x212   : > { %3213 = vst [vmem:[%s3749_s5 + $0xf0] sm:$0xff] %v3017_v7   ;;  %3245 = vst [vmem:[%s3749_s5 + $0x1f0] sm:$0xff] %v3177_v8   ;;  %v1364_v12 = vadd.f32 %v3908_v11, %v1363_v9  ;;  %v1620_v63 = vadd.f32 %v3908_v11, %v1619_v10  ;;  %v1365_v13 = vpop.f32.mrb[125].mxu0  ;;  %v1621_v14 = vpop.f32.mrb[125].mxu1 }
 0x213   : > { %v1366_v15 = vpop.f32.mrb[126].mxu0  ;;  %v1622_v16 = vpop.f32.mrb[126].mxu1 }
 0x214   : > { %v1367_v17 = vadd.f32 %v3908_v11, %v1366_v15  ;;  %v1623_v18 = vadd.f32 %v3908_v11, %v1622_v16  ;;  %v1368_v19 = vpop.f32.mrb[127].mxu0  ;;  %v1624_v20 = vpop.f32.mrb[127].mxu1  ;;  %v1688_v21 = vmax.f32 %v1364_v12, 0.0  ;;  %v1752_v22 = vmax.f32 %v1620_v63, 0.0 }
 0x216   : > { %v1689_v23 = vmax.f32 %v1367_v17, 0.0  ;;  %v1753_v24 = vmax.f32 %v1623_v18, 0.0 }
 0x218   : > { %v3022_v25 = vpack.c.bf16 %v1689_v23, %v1688_v21  ;;  %v3182_v26 = vpack.c.bf16 %v1753_v24, %v1752_v22 }
 0x21a   : > { %3214 = vst [vmem:[%s3749_s5 + $0xf8] sm:$0xff] %v3022_v25   ;;  %3246 = vst [vmem:[%s3749_s5 + $0x1f8] sm:$0xff] %v3182_v26  }
 0x21b PF: > { %s13_s12 = sadd.s32 1, %s3503_s12  }
 0x21c   : > { %p10_p4 = scmp.ge.s32.totalorder %s13_s12, 4  }
 0x21e   :  { %12 = sbr.rel (!%p10_p4) target bundleno = 1 (0x1), region = 62 }

// kernel: resnet_wsl_forward.23
= control target key start
LH: loop header
LB: loop body
LE: loop exit
PB: predicated region body
PF: predicated region fallthrough
CT: control target
= control target key end

     0   :  { %s2997_s6 = smov 0   ;;  %s2999_s7 = smov 0   ;;  %s3941_s0 = inlined_call_operand.vmem [shape: bf16[9,512,128], index: 0, kind: input, shape index: {}]   ;;  %s3942_s1 = inlined_call_operand.vmem [shape: bf16[512,128], index: 1, kind: output, shape index: {}]  }
   0x1   :  { %s3001_s8 = smov 0  }
   0x2 LB: > { %s2814_s9 = sadd.s32 4294967295, %s2985_s8   ;;  %s3014_s10 = sadd.s32 1, %s2985_s8   ;;  %s2985_s8 = sphi %s3001_s8, %s3945_s8   ;;  %s2981_s7 = sphi %s2999_s7, %s3944_s7   ;;  %s2977_s6 = sphi %s2997_s6, %s3943_s6  }
   0x3   : > { %s15_s11 = ssub.s32 %s2985_s8, %s3014_s10  ;;  %s18_s12 = sadd.s32 1, %s2981_s7 }
   0x4   : > { %p16_p0 = scmp.eq.s32.totalorder %s15_s11, 0  ;;  %p25_p1 = scmp.ne.s32.totalorder %s2981_s7, %s2977_s6 }
   0x5   : > { %p26_p2 = scmp.eq.s32.totalorder %s2985_s8, 0  ;;  %p2817_p4 = scmp.ge.s32.totalorder %s2985_s8, 2 }
   0x6   : > { %s3023_s13 = scalar_select %p16_p0, %s2981_s7, %s18_s12  }
   0x7   : > { %p27_p3 = por %p26_p2, %p25_p1  ;;  %77 = sbr.rel (%p2817_p4) target bundleno = 91 (0x5b), region = 16 }
   0xe   : > { %80 = sbr.rel (!%p27_p3) target bundleno = 91 (0x5b), region = 20  ;;  %s82_s14 = sand.u32 (%p27_p3), 1, %s2981_s7  }
   0xf   : > { %s2825_s15 = sshll.u32 (%p27_p3), %s2985_s8, 7  ;;  %s2937_s16 = smul.u32 (%p27_p3), 1152, %s82_s14 }
  0x10   : > { %s3031_s19 = scalar_lea.vmem (%p27_p3), %s3941_s0, %s2825_s15 }
  0x11   : > { %v103_v0 = vld [vmem:[%s3031_s19] sm:$0xff] (%p27_p3)   ;;  %v107_v1 = vld [vmem:[%s3031_s19 + $0x8] sm:$0xff] (%p27_p3)   ;;  %v111_v2 = vld [vmem:[%s3031_s19 + $0x10] sm:$0xff] (%p27_p3)   ;;  %s3039_s20 = scalar_lea.vmem (%p27_p3), [#allocation2], %s2937_s16 }
  0x12   : > { %v115_v3 = vld [vmem:[%s3031_s19 + $0x18] sm:$0xff] (%p27_p3)   ;;  %v119_v4 = vld [vmem:[%s3031_s19 + $0x20] sm:$0xff] (%p27_p3)   ;;  %v123_v5 = vld [vmem:[%s3031_s19 + $0x28] sm:$0xff] (%p27_p3)   ;;  %104 = vst [vmem:[%s3039_s20] sm:$0xff] (%p27_p3), %v103_v0  }
  0x13   : > { %108 = vst [vmem:[%s3039_s20 + $0x8] sm:$0xff] (%p27_p3), %v107_v1   ;;  %112 = vst [vmem:[%s3039_s20 + $0x10] sm:$0xff] (%p27_p3), %v111_v2   ;;  %v127_v6 = vld [vmem:[%s3031_s19 + $0x30] sm:$0xff] (%p27_p3)   ;;  %v131_v7 = vld [vmem:[%s3031_s19 + $0x38] sm:$0xff] (%p27_p3)  }
  0x14   : > { %116 = vst [vmem:[%s3039_s20 + $0x18] sm:$0xff] (%p27_p3), %v115_v3   ;;  %120 = vst [vmem:[%s3039_s20 + $0x20] sm:$0xff] (%p27_p3), %v119_v4   ;;  %v135_v8 = vld [vmem:[%s3031_s19 + $0x40] sm:$0xff] (%p27_p3)   ;;  %v139_v9 = vld [vmem:[%s3031_s19 + $0x48] sm:$0xff] (%p27_p3)  }
  0x15   : > { %124 = vst [vmem:[%s3039_s20 + $0x28] sm:$0xff] %v123_v5   ;;  %128 = vst [vmem:[%s3039_s20 + $0x30] sm:$0xff] %v127_v6   ;;  %v143_v10 = vld [vmem:[%s3031_s19 + $0x50] sm:$0xff]   ;;  %v147_v11 = vld [vmem:[%s3031_s19 + $0x58] sm:$0xff]  }
  0x16   : > { %132 = vst [vmem:[%s3039_s20 + $0x38] sm:$0xff] %v131_v7   ;;  %136 = vst [vmem:[%s3039_s20 + $0x40] sm:$0xff] %v135_v8   ;;  %v151_v12 = vld [vmem:[%s3031_s19 + $0x60] sm:$0xff]   ;;  %v155_v13 = vld [vmem:[%s3031_s19 + $0x68] sm:$0xff]  }
  0x17   : > { %140 = vst [vmem:[%s3039_s20 + $0x48] sm:$0xff] %v139_v9   ;;  %144 = vst [vmem:[%s3039_s20 + $0x50] sm:$0xff] %v143_v10   ;;  %v159_v14 = vld [vmem:[%s3031_s19 + $0x70] sm:$0xff]   ;;  %v163_v15 = vld [vmem:[%s3031_s19 + $0x78] sm:$0xff]  }
  0x18   : > { %148 = vst [vmem:[%s3039_s20 + $0x58] sm:$0xff] %v147_v11   ;;  %152 = vst [vmem:[%s3039_s20 + $0x60] sm:$0xff] %v151_v12   ;;  %v167_v16 = vld [vmem:[%s3031_s19 + $0x100] sm:$0xff]   ;;  %v171_v17 = vld [vmem:[%s3031_s19 + $0x108] sm:$0xff]  }
  0x19   : > { %156 = vst [vmem:[%s3039_s20 + $0x68] sm:$0xff] %v155_v13   ;;  %160 = vst [vmem:[%s3039_s20 + $0x70] sm:$0xff] %v159_v14   ;;  %v175_v18 = vld [vmem:[%s3031_s19 + $0x110] sm:$0xff]   ;;  %v179_v19 = vld [vmem:[%s3031_s19 + $0x118] sm:$0xff]  }
  0x1a   : > { %164 = vst [vmem:[%s3039_s20 + $0x78] sm:$0xff] %v163_v15   ;;  %168 = vst [vmem:[%s3039_s20 + $0x80] sm:$0xff] %v167_v16   ;;  %v183_v20 = vld [vmem:[%s3031_s19 + $0x120] sm:$0xff]   ;;  %v187_v21 = vld [vmem:[%s3031_s19 + $0x128] sm:$0xff]  }
  0x1b   : > { %172 = vst [vmem:[%s3039_s20 + $0x88] sm:$0xff] %v171_v17   ;;  %176 = vst [vmem:[%s3039_s20 + $0x90] sm:$0xff] %v175_v18   ;;  %v191_v22 = vld [vmem:[%s3031_s19 + $0x130] sm:$0xff]   ;;  %v195_v23 = vld [vmem:[%s3031_s19 + $0x138] sm:$0xff]  }
  0x1c   : > { %180 = vst [vmem:[%s3039_s20 + $0x98] sm:$0xff] %v179_v19   ;;  %184 = vst [vmem:[%s3039_s20 + $0xa0] sm:$0xff] %v183_v20   ;;  %v199_v24 = vld [vmem:[%s3031_s19 + $0x140] sm:$0xff]   ;;  %v203_v25 = vld [vmem:[%s3031_s19 + $0x148] sm:$0xff]  }
  0x1d   : > { %188 = vst [vmem:[%s3039_s20 + $0xa8] sm:$0xff] %v187_v21   ;;  %192 = vst [vmem:[%s3039_s20 + $0xb0] sm:$0xff] %v191_v22   ;;  %v207_v26 = vld [vmem:[%s3031_s19 + $0x150] sm:$0xff]   ;;  %v211_v27 = vld [vmem:[%s3031_s19 + $0x158] sm:$0xff]  }
  0x1e   : > { %196 = vst [vmem:[%s3039_s20 + $0xb8] sm:$0xff] %v195_v23   ;;  %200 = vst [vmem:[%s3039_s20 + $0xc0] sm:$0xff] %v199_v24   ;;  %v215_v28 = vld [vmem:[%s3031_s19 + $0x160] sm:$0xff]   ;;  %v219_v29 = vld [vmem:[%s3031_s19 + $0x168] sm:$0xff]  }
  0x1f   : > { %204 = vst [vmem:[%s3039_s20 + $0xc8] sm:$0xff] %v203_v25   ;;  %208 = vst [vmem:[%s3039_s20 + $0xd0] sm:$0xff] %v207_v26   ;;  %v223_v30 = vld [vmem:[%s3031_s19 + $0x170] sm:$0xff]   ;;  %v227_v31 = vld [vmem:[%s3031_s19 + $0x178] sm:$0xff]  }
  0x20   : > { %212 = vst [vmem:[%s3039_s20 + $0xd8] sm:$0xff] %v211_v27   ;;  %216 = vst [vmem:[%s3039_s20 + $0xe0] sm:$0xff] %v215_v28   ;;  %v231_v32 = vld [vmem:[%s3031_s19 + $0x200] sm:$0xff]   ;;  %v235_v33 = vld [vmem:[%s3031_s19 + $0x208] sm:$0xff]  }
  0x21   : > { %220 = vst [vmem:[%s3039_s20 + $0xe8] sm:$0xff] %v219_v29   ;;  %224 = vst [vmem:[%s3039_s20 + $0xf0] sm:$0xff] %v223_v30   ;;  %v239_v34 = vld [vmem:[%s3031_s19 + $0x210] sm:$0xff]   ;;  %v243_v35 = vld [vmem:[%s3031_s19 + $0x218] sm:$0xff]  }
  0x22   : > { %228 = vst [vmem:[%s3039_s20 + $0xf8] sm:$0xff] %v227_v31   ;;  %232 = vst [vmem:[%s3039_s20 + $0x100] sm:$0xff] %v231_v32   ;;  %v247_v36 = vld [vmem:[%s3031_s19 + $0x220] sm:$0xff]   ;;  %v251_v37 = vld [vmem:[%s3031_s19 + $0x228] sm:$0xff]  }
  0x23   : > { %236 = vst [vmem:[%s3039_s20 + $0x108] sm:$0xff] %v235_v33   ;;  %240 = vst [vmem:[%s3039_s20 + $0x110] sm:$0xff] %v239_v34   ;;  %v255_v38 = vld [vmem:[%s3031_s19 + $0x230] sm:$0xff]   ;;  %v259_v39 = vld [vmem:[%s3031_s19 + $0x238] sm:$0xff]  }
  0x24   : > { %244 = vst [vmem:[%s3039_s20 + $0x118] sm:$0xff] %v243_v35   ;;  %248 = vst [vmem:[%s3039_s20 + $0x120] sm:$0xff] %v247_v36   ;;  %v263_v40 = vld [vmem:[%s3031_s19 + $0x240] sm:$0xff]   ;;  %v267_v41 = vld [vmem:[%s3031_s19 + $0x248] sm:$0xff]  }
  0x25   : > { %252 = vst [vmem:[%s3039_s20 + $0x128] sm:$0xff] %v251_v37   ;;  %256 = vst [vmem:[%s3039_s20 + $0x130] sm:$0xff] %v255_v38   ;;  %v271_v42 = vld [vmem:[%s3031_s19 + $0x250] sm:$0xff]   ;;  %v275_v43 = vld [vmem:[%s3031_s19 + $0x258] sm:$0xff]  }
  0x26   : > { %260 = vst [vmem:[%s3039_s20 + $0x138] sm:$0xff] %v259_v39   ;;  %264 = vst [vmem:[%s3039_s20 + $0x140] sm:$0xff] %v263_v40   ;;  %v279_v44 = vld [vmem:[%s3031_s19 + $0x260] sm:$0xff]   ;;  %v283_v45 = vld [vmem:[%s3031_s19 + $0x268] sm:$0xff]  }
  0x27   : > { %268 = vst [vmem:[%s3039_s20 + $0x148] sm:$0xff] %v267_v41   ;;  %272 = vst [vmem:[%s3039_s20 + $0x150] sm:$0xff] %v271_v42   ;;  %v287_v46 = vld [vmem:[%s3031_s19 + $0x270] sm:$0xff]   ;;  %v291_v47 = vld [vmem:[%s3031_s19 + $0x278] sm:$0xff]  }
  0x28   : > { %276 = vst [vmem:[%s3039_s20 + $0x158] sm:$0xff] %v275_v43   ;;  %280 = vst [vmem:[%s3039_s20 + $0x160] sm:$0xff] %v279_v44   ;;  %v295_v48 = vld [vmem:[%s3031_s19 + $0x300] sm:$0xff]   ;;  %v299_v49 = vld [vmem:[%s3031_s19 + $0x308] sm:$0xff]  }
  0x29   : > { %284 = vst [vmem:[%s3039_s20 + $0x168] sm:$0xff] %v283_v45   ;;  %288 = vst [vmem:[%s3039_s20 + $0x170] sm:$0xff] %v287_v46   ;;  %v303_v50 = vld [vmem:[%s3031_s19 + $0x310] sm:$0xff]   ;;  %v307_v51 = vld [vmem:[%s3031_s19 + $0x318] sm:$0xff]  }
  0x2a   : > { %292 = vst [vmem:[%s3039_s20 + $0x178] sm:$0xff] %v291_v47   ;;  %296 = vst [vmem:[%s3039_s20 + $0x180] sm:$0xff] %v295_v48   ;;  %v311_v52 = vld [vmem:[%s3031_s19 + $0x320] sm:$0xff]   ;;  %v315_v53 = vld [vmem:[%s3031_s19 + $0x328] sm:$0xff]  }
  0x2b   : > { %300 = vst [vmem:[%s3039_s20 + $0x188] sm:$0xff] %v299_v49   ;;  %304 = vst [vmem:[%s3039_s20 + $0x190] sm:$0xff] %v303_v50   ;;  %v319_v54 = vld [vmem:[%s3031_s19 + $0x330] sm:$0xff]   ;;  %v323_v55 = vld [vmem:[%s3031_s19 + $0x338] sm:$0xff]  }
  0x2c   : > { %308 = vst [vmem:[%s3039_s20 + $0x198] sm:$0xff] %v307_v51   ;;  %312 = vst [vmem:[%s3039_s20 + $0x1a0] sm:$0xff] %v311_v52   ;;  %v327_v56 = vld [vmem:[%s3031_s19 + $0x340] sm:$0xff]   ;;  %v331_v57 = vld [vmem:[%s3031_s19 + $0x348] sm:$0xff]  }
  0x2d   : > { %316 = vst [vmem:[%s3039_s20 + $0x1a8] sm:$0xff] %v315_v53   ;;  %320 = vst [vmem:[%s3039_s20 + $0x1b0] sm:$0xff] %v319_v54   ;;  %v335_v58 = vld [vmem:[%s3031_s19 + $0x350] sm:$0xff]   ;;  %v339_v59 = vld [vmem:[%s3031_s19 + $0x358] sm:$0xff]  }
  0x2e   : > { %324 = vst [vmem:[%s3039_s20 + $0x1b8] sm:$0xff] %v323_v55   ;;  %328 = vst [vmem:[%s3039_s20 + $0x1c0] sm:$0xff] %v327_v56   ;;  %v343_v60 = vld [vmem:[%s3031_s19 + $0x360] sm:$0xff]   ;;  %v347_v61 = vld [vmem:[%s3031_s19 + $0x368] sm:$0xff]  }
  0x2f   : > { %332 = vst [vmem:[%s3039_s20 + $0x1c8] sm:$0xff] %v331_v57   ;;  %336 = vst [vmem:[%s3039_s20 + $0x1d0] sm:$0xff] %v335_v58   ;;  %v351_v62 = vld [vmem:[%s3031_s19 + $0x370] sm:$0xff]   ;;  %v355_v63 = vld [vmem:[%s3031_s19 + $0x378] sm:$0xff]  }
  0x30   : > { %340 = vst [vmem:[%s3039_s20 + $0x1d8] sm:$0xff] %v339_v59   ;;  %344 = vst [vmem:[%s3039_s20 + $0x1e0] sm:$0xff] %v343_v60   ;;  %v359_v0 = vld [vmem:[%s3031_s19 + $0x400] sm:$0xff]   ;;  %v363_v1 = vld [vmem:[%s3031_s19 + $0x408] sm:$0xff]  }
  0x31   : > { %348 = vst [vmem:[%s3039_s20 + $0x1e8] sm:$0xff] %v347_v61   ;;  %352 = vst [vmem:[%s3039_s20 + $0x1f0] sm:$0xff] %v351_v62   ;;  %v367_v2 = vld [vmem:[%s3031_s19 + $0x410] sm:$0xff]   ;;  %v371_v3 = vld [vmem:[%s3031_s19 + $0x418] sm:$0xff]  }
  0x32   : > { %356 = vst [vmem:[%s3039_s20 + $0x1f8] sm:$0xff] %v355_v63   ;;  %360 = vst [vmem:[%s3039_s20 + $0x200] sm:$0xff] %v359_v0   ;;  %v375_v4 = vld [vmem:[%s3031_s19 + $0x420] sm:$0xff]   ;;  %v379_v5 = vld [vmem:[%s3031_s19 + $0x428] sm:$0xff]  }
  0x33   : > { %364 = vst [vmem:[%s3039_s20 + $0x208] sm:$0xff] %v363_v1   ;;  %368 = vst [vmem:[%s3039_s20 + $0x210] sm:$0xff] %v367_v2   ;;  %v383_v6 = vld [vmem:[%s3031_s19 + $0x430] sm:$0xff]   ;;  %v387_v7 = vld [vmem:[%s3031_s19 + $0x438] sm:$0xff]  }
  0x34   : > { %372 = vst [vmem:[%s3039_s20 + $0x218] sm:$0xff] %v371_v3   ;;  %376 = vst [vmem:[%s3039_s20 + $0x220] sm:$0xff] %v375_v4   ;;  %v391_v8 = vld [vmem:[%s3031_s19 + $0x440] sm:$0xff]   ;;  %v395_v9 = vld [vmem:[%s3031_s19 + $0x448] sm:$0xff]  }
  0x35   : > { %380 = vst [vmem:[%s3039_s20 + $0x228] sm:$0xff] %v379_v5   ;;  %384 = vst [vmem:[%s3039_s20 + $0x230] sm:$0xff] %v383_v6   ;;  %v399_v10 = vld [vmem:[%s3031_s19 + $0x450] sm:$0xff]   ;;  %v403_v11 = vld [vmem:[%s3031_s19 + $0x458] sm:$0xff]  }
  0x36   : > { %388 = vst [vmem:[%s3039_s20 + $0x238] sm:$0xff] %v387_v7   ;;  %392 = vst [vmem:[%s3039_s20 + $0x240] sm:$0xff] %v391_v8   ;;  %v407_v12 = vld [vmem:[%s3031_s19 + $0x460] sm:$0xff]   ;;  %v411_v13 = vld [vmem:[%s3031_s19 + $0x468] sm:$0xff]  }
  0x37   : > { %396 = vst [vmem:[%s3039_s20 + $0x248] sm:$0xff] %v395_v9   ;;  %400 = vst [vmem:[%s3039_s20 + $0x250] sm:$0xff] %v399_v10   ;;  %v415_v14 = vld [vmem:[%s3031_s19 + $0x470] sm:$0xff]   ;;  %v419_v15 = vld [vmem:[%s3031_s19 + $0x478] sm:$0xff]  }
  0x38   : > { %404 = vst [vmem:[%s3039_s20 + $0x258] sm:$0xff] %v403_v11   ;;  %408 = vst [vmem:[%s3039_s20 + $0x260] sm:$0xff] %v407_v12   ;;  %v423_v16 = vld [vmem:[%s3031_s19 + $0x500] sm:$0xff]   ;;  %v427_v17 = vld [vmem:[%s3031_s19 + $0x508] sm:$0xff]  }
  0x39   : > { %412 = vst [vmem:[%s3039_s20 + $0x268] sm:$0xff] %v411_v13   ;;  %416 = vst [vmem:[%s3039_s20 + $0x270] sm:$0xff] %v415_v14   ;;  %v431_v18 = vld [vmem:[%s3031_s19 + $0x510] sm:$0xff]   ;;  %v435_v19 = vld [vmem:[%s3031_s19 + $0x518] sm:$0xff]  }
  0x3a   : > { %420 = vst [vmem:[%s3039_s20 + $0x278] sm:$0xff] %v419_v15   ;;  %424 = vst [vmem:[%s3039_s20 + $0x280] sm:$0xff] %v423_v16   ;;  %v439_v20 = vld [vmem:[%s3031_s19 + $0x520] sm:$0xff]   ;;  %v443_v21 = vld [vmem:[%s3031_s19 + $0x528] sm:$0xff]  }
  0x3b   : > { %428 = vst [vmem:[%s3039_s20 + $0x288] sm:$0xff] %v427_v17   ;;  %432 = vst [vmem:[%s3039_s20 + $0x290] sm:$0xff] %v431_v18   ;;  %v447_v22 = vld [vmem:[%s3031_s19 + $0x530] sm:$0xff]   ;;  %v451_v23 = vld [vmem:[%s3031_s19 + $0x538] sm:$0xff]  }
  0x3c   : > { %436 = vst [vmem:[%s3039_s20 + $0x298] sm:$0xff] %v435_v19   ;;  %440 = vst [vmem:[%s3039_s20 + $0x2a0] sm:$0xff] %v439_v20   ;;  %v455_v24 = vld [vmem:[%s3031_s19 + $0x540] sm:$0xff]   ;;  %v459_v25 = vld [vmem:[%s3031_s19 + $0x548] sm:$0xff]  }
  0x3d   : > { %444 = vst [vmem:[%s3039_s20 + $0x2a8] sm:$0xff] %v443_v21   ;;  %448 = vst [vmem:[%s3039_s20 + $0x2b0] sm:$0xff] %v447_v22   ;;  %v463_v26 = vld [vmem:[%s3031_s19 + $0x550] sm:$0xff]   ;;  %v467_v27 = vld [vmem:[%s3031_s19 + $0x558] sm:$0xff]  }
  0x3e   : > { %452 = vst [vmem:[%s3039_s20 + $0x2b8] sm:$0xff] %v451_v23   ;;  %456 = vst [vmem:[%s3039_s20 + $0x2c0] sm:$0xff] %v455_v24   ;;  %v471_v28 = vld [vmem:[%s3031_s19 + $0x560] sm:$0xff]   ;;  %v475_v29 = vld [vmem:[%s3031_s19 + $0x568] sm:$0xff]  }
  0x3f   : > { %460 = vst [vmem:[%s3039_s20 + $0x2c8] sm:$0xff] %v459_v25   ;;  %464 = vst [vmem:[%s3039_s20 + $0x2d0] sm:$0xff] %v463_v26   ;;  %v479_v30 = vld [vmem:[%s3031_s19 + $0x570] sm:$0xff]   ;;  %v483_v31 = vld [vmem:[%s3031_s19 + $0x578] sm:$0xff]  }
  0x40   : > { %468 = vst [vmem:[%s3039_s20 + $0x2d8] sm:$0xff] %v467_v27   ;;  %472 = vst [vmem:[%s3039_s20 + $0x2e0] sm:$0xff] %v471_v28   ;;  %v487_v32 = vld [vmem:[%s3031_s19 + $0x600] sm:$0xff]   ;;  %v491_v33 = vld [vmem:[%s3031_s19 + $0x608] sm:$0xff]  }
  0x41   : > { %476 = vst [vmem:[%s3039_s20 + $0x2e8] sm:$0xff] %v475_v29   ;;  %480 = vst [vmem:[%s3039_s20 + $0x2f0] sm:$0xff] %v479_v30   ;;  %v495_v34 = vld [vmem:[%s3031_s19 + $0x610] sm:$0xff]   ;;  %v499_v35 = vld [vmem:[%s3031_s19 + $0x618] sm:$0xff]  }
  0x42   : > { %484 = vst [vmem:[%s3039_s20 + $0x2f8] sm:$0xff] %v483_v31   ;;  %488 = vst [vmem:[%s3039_s20 + $0x300] sm:$0xff] %v487_v32   ;;  %v503_v36 = vld [vmem:[%s3031_s19 + $0x620] sm:$0xff]   ;;  %v507_v37 = vld [vmem:[%s3031_s19 + $0x628] sm:$0xff]  }
  0x43   : > { %492 = vst [vmem:[%s3039_s20 + $0x308] sm:$0xff] %v491_v33   ;;  %496 = vst [vmem:[%s3039_s20 + $0x310] sm:$0xff] %v495_v34   ;;  %v511_v38 = vld [vmem:[%s3031_s19 + $0x630] sm:$0xff]   ;;  %v515_v39 = vld [vmem:[%s3031_s19 + $0x638] sm:$0xff]  }
  0x44   : > { %500 = vst [vmem:[%s3039_s20 + $0x318] sm:$0xff] %v499_v35   ;;  %504 = vst [vmem:[%s3039_s20 + $0x320] sm:$0xff] %v503_v36   ;;  %v519_v40 = vld [vmem:[%s3031_s19 + $0x640] sm:$0xff]   ;;  %v523_v41 = vld [vmem:[%s3031_s19 + $0x648] sm:$0xff]  }
  0x45   : > { %508 = vst [vmem:[%s3039_s20 + $0x328] sm:$0xff] %v507_v37   ;;  %512 = vst [vmem:[%s3039_s20 + $0x330] sm:$0xff] %v511_v38   ;;  %v527_v42 = vld [vmem:[%s3031_s19 + $0x650] sm:$0xff]   ;;  %v531_v43 = vld [vmem:[%s3031_s19 + $0x658] sm:$0xff]  }
  0x46   : > { %516 = vst [vmem:[%s3039_s20 + $0x338] sm:$0xff] %v515_v39   ;;  %520 = vst [vmem:[%s3039_s20 + $0x340] sm:$0xff] %v519_v40   ;;  %v535_v44 = vld [vmem:[%s3031_s19 + $0x660] sm:$0xff]   ;;  %v539_v45 = vld [vmem:[%s3031_s19 + $0x668] sm:$0xff]  }
  0x47   : > { %524 = vst [vmem:[%s3039_s20 + $0x348] sm:$0xff] %v523_v41   ;;  %528 = vst [vmem:[%s3039_s20 + $0x350] sm:$0xff] %v527_v42   ;;  %v543_v46 = vld [vmem:[%s3031_s19 + $0x670] sm:$0xff]   ;;  %v547_v47 = vld [vmem:[%s3031_s19 + $0x678] sm:$0xff]  }
  0x48   : > { %532 = vst [vmem:[%s3039_s20 + $0x358] sm:$0xff] %v531_v43   ;;  %536 = vst [vmem:[%s3039_s20 + $0x360] sm:$0xff] %v535_v44   ;;  %v551_v48 = vld [vmem:[%s3031_s19 + $0x700] sm:$0xff]   ;;  %v555_v49 = vld [vmem:[%s3031_s19 + $0x708] sm:$0xff]  }
  0x49   : > { %540 = vst [vmem:[%s3039_s20 + $0x368] sm:$0xff] %v539_v45   ;;  %544 = vst [vmem:[%s3039_s20 + $0x370] sm:$0xff] %v543_v46   ;;  %v559_v50 = vld [vmem:[%s3031_s19 + $0x710] sm:$0xff]   ;;  %v563_v51 = vld [vmem:[%s3031_s19 + $0x718] sm:$0xff]  }
  0x4a   : > { %548 = vst [vmem:[%s3039_s20 + $0x378] sm:$0xff] %v547_v47   ;;  %552 = vst [vmem:[%s3039_s20 + $0x380] sm:$0xff] %v551_v48   ;;  %v567_v52 = vld [vmem:[%s3031_s19 + $0x720] sm:$0xff]   ;;  %v571_v53 = vld [vmem:[%s3031_s19 + $0x728] sm:$0xff]  }
  0x4b   : > { %556 = vst [vmem:[%s3039_s20 + $0x388] sm:$0xff] %v555_v49   ;;  %560 = vst [vmem:[%s3039_s20 + $0x390] sm:$0xff] %v559_v50   ;;  %v575_v54 = vld [vmem:[%s3031_s19 + $0x730] sm:$0xff]   ;;  %v579_v55 = vld [vmem:[%s3031_s19 + $0x738] sm:$0xff]  }
  0x4c   : > { %564 = vst [vmem:[%s3039_s20 + $0x398] sm:$0xff] %v563_v51   ;;  %568 = vst [vmem:[%s3039_s20 + $0x3a0] sm:$0xff] %v567_v52   ;;  %v583_v56 = vld [vmem:[%s3031_s19 + $0x740] sm:$0xff]   ;;  %v587_v57 = vld [vmem:[%s3031_s19 + $0x748] sm:$0xff]  }
  0x4d   : > { %572 = vst [vmem:[%s3039_s20 + $0x3a8] sm:$0xff] %v571_v53   ;;  %576 = vst [vmem:[%s3039_s20 + $0x3b0] sm:$0xff] %v575_v54   ;;  %v591_v58 = vld [vmem:[%s3031_s19 + $0x750] sm:$0xff]   ;;  %v595_v59 = vld [vmem:[%s3031_s19 + $0x758] sm:$0xff]  }
  0x4e   : > { %580 = vst [vmem:[%s3039_s20 + $0x3b8] sm:$0xff] %v579_v55   ;;  %584 = vst [vmem:[%s3039_s20 + $0x3c0] sm:$0xff] %v583_v56   ;;  %v599_v60 = vld [vmem:[%s3031_s19 + $0x760] sm:$0xff]   ;;  %v603_v61 = vld [vmem:[%s3031_s19 + $0x768] sm:$0xff]  }
  0x4f   : > { %588 = vst [vmem:[%s3039_s20 + $0x3c8] sm:$0xff] %v587_v57   ;;  %592 = vst [vmem:[%s3039_s20 + $0x3d0] sm:$0xff] %v591_v58   ;;  %v607_v62 = vld [vmem:[%s3031_s19 + $0x770] sm:$0xff]   ;;  %v611_v63 = vld [vmem:[%s3031_s19 + $0x778] sm:$0xff]  }
  0x50   : > { %596 = vst [vmem:[%s3039_s20 + $0x3d8] sm:$0xff] %v595_v59   ;;  %600 = vst [vmem:[%s3039_s20 + $0x3e0] sm:$0xff] %v599_v60   ;;  %v615_v0 = vld [vmem:[%s3031_s19 + $0x800] sm:$0xff]   ;;  %v619_v1 = vld [vmem:[%s3031_s19 + $0x808] sm:$0xff]  }
  0x51   : > { %604 = vst [vmem:[%s3039_s20 + $0x3e8] sm:$0xff] %v603_v61   ;;  %608 = vst [vmem:[%s3039_s20 + $0x3f0] sm:$0xff] %v607_v62   ;;  %v623_v2 = vld [vmem:[%s3031_s19 + $0x810] sm:$0xff]   ;;  %v627_v3 = vld [vmem:[%s3031_s19 + $0x818] sm:$0xff]  }
  0x52   : > { %612 = vst [vmem:[%s3039_s20 + $0x3f8] sm:$0xff] %v611_v63   ;;  %616 = vst [vmem:[%s3039_s20 + $0x400] sm:$0xff] %v615_v0   ;;  %v631_v4 = vld [vmem:[%s3031_s19 + $0x820] sm:$0xff]   ;;  %v635_v5 = vld [vmem:[%s3031_s19 + $0x828] sm:$0xff]  }
  0x53   : > { %620 = vst [vmem:[%s3039_s20 + $0x408] sm:$0xff] %v619_v1   ;;  %624 = vst [vmem:[%s3039_s20 + $0x410] sm:$0xff] %v623_v2   ;;  %v639_v6 = vld [vmem:[%s3031_s19 + $0x830] sm:$0xff]   ;;  %v643_v7 = vld [vmem:[%s3031_s19 + $0x838] sm:$0xff]  }
  0x54   : > { %628 = vst [vmem:[%s3039_s20 + $0x418] sm:$0xff] %v627_v3   ;;  %632 = vst [vmem:[%s3039_s20 + $0x420] sm:$0xff] %v631_v4   ;;  %v647_v8 = vld [vmem:[%s3031_s19 + $0x840] sm:$0xff]   ;;  %v651_v9 = vld [vmem:[%s3031_s19 + $0x848] sm:$0xff]  }
  0x55   : > { %636 = vst [vmem:[%s3039_s20 + $0x428] sm:$0xff] %v635_v5   ;;  %640 = vst [vmem:[%s3039_s20 + $0x430] sm:$0xff] %v639_v6   ;;  %v655_v10 = vld [vmem:[%s3031_s19 + $0x850] sm:$0xff]   ;;  %v659_v11 = vld [vmem:[%s3031_s19 + $0x858] sm:$0xff]  }
  0x56   : > { %644 = vst [vmem:[%s3039_s20 + $0x438] sm:$0xff] %v643_v7   ;;  %648 = vst [vmem:[%s3039_s20 + $0x440] sm:$0xff] %v647_v8   ;;  %v663_v12 = vld [vmem:[%s3031_s19 + $0x860] sm:$0xff]   ;;  %v667_v13 = vld [vmem:[%s3031_s19 + $0x868] sm:$0xff]  }
  0x57   : > { %652 = vst [vmem:[%s3039_s20 + $0x448] sm:$0xff] %v651_v9   ;;  %656 = vst [vmem:[%s3039_s20 + $0x450] sm:$0xff] %v655_v10   ;;  %v671_v14 = vld [vmem:[%s3031_s19 + $0x870] sm:$0xff]   ;;  %v675_v15 = vld [vmem:[%s3031_s19 + $0x878] sm:$0xff]  }
  0x58   : > { %660 = vst [vmem:[%s3039_s20 + $0x458] sm:$0xff] %v659_v11   ;;  %664 = vst [vmem:[%s3039_s20 + $0x460] sm:$0xff] %v663_v12  }
  0x59   : > { %668 = vst [vmem:[%s3039_s20 + $0x468] sm:$0xff] %v667_v13   ;;  %672 = vst [vmem:[%s3039_s20 + $0x470] sm:$0xff] %v671_v14  }
  0x5a   : > { %676 = vst [vmem:[%s3039_s20 + $0x478] sm:$0xff] %v675_v15  }
  0x5b PF: > { %p2820_p5 = scmp.ge.s32.totalorder %s2985_s8, 1  ;;  %p1276_p6 = scmp.lt.s32.totalorder %s2985_s8, 3 }
  0x5d   : > { %p1277_p7 = pnand %p2820_p5, %p1276_p6 }
  0x5e   : > { %s1283_s21 = sand.u32 (!%p1277_p7), 1, %s2977_s6   ;;  %vm1598_vm0 = vcmask (!%p1277_p7), 1043456   ;;  %s2821_s24 = sshll.u32 (!%p1277_p7), %s2814_s9, 5 }
  0x5f   : > { %1280 = sbr.rel (%p1277_p7) target bundleno = 309 (0x135), region = 61  ;;  %p1304_p8 = scmp.lt.s32.totalorder (!%p1277_p7), %s2821_s24, 63 }
  0x60   : > { %s2938_s22 = smul.u32 (!%p1277_p7), 1152, %s1283_s21 }
  0x62   : > { %s3326_s23 = scalar_lea.vmem (!%p1277_p7), [#allocation2], %s2938_s22 }
  0x63   : > { %v1310_v16 = vld [vmem:[%s3326_s23] sm:$0xf] (!%p1277_p7)  ;;  %v1311_v19 = vld [vmem:[%s3326_s23 + $0x4] sm:$0xf] (!%p1277_p7)  ;;  %v1312_v54 = vld [vmem:[%s3326_s23 + $0x8] sm:$0xf] (!%p1277_p7) }
  0x64   : > { %v1342_v17 = vld [vmem:[%s3326_s23 + $0x80] sm:$0xf] (!%p1277_p7)  ;;  %v1343_v20 = vld [vmem:[%s3326_s23 + $0x84] sm:$0xf] (!%p1277_p7)  ;;  %v1601_v22 = vsel (!%p1277_p7), %vm1598_vm0, %v1310_v16, 4286644096 }
  0x65   : > { %v1374_v18 = vld [vmem:[%s3326_s23 + $0x100] sm:$0xf] (!%p1277_p7)  ;;  %v1375_v23 = vld [vmem:[%s3326_s23 + $0x104] sm:$0xf] (!%p1277_p7)  ;;  %v1604_v24 = vsel (!%p1277_p7), %vm1598_vm0, %v1342_v17, 4286644096 }
  0x66   : > { %v1406_v21 = vld [vmem:[%s3326_s23 + $0x180] sm:$0xf]  ;;  %v1608_v25 = vsel %vm1598_vm0, %v1374_v18, 4286644096  ;;  %v1606_v27 = vmax.bf16 %v1604_v24, %v1601_v22  ;;  %v1407_v28 = vld [vmem:[%s3326_s23 + $0x184] sm:$0xf] }
  0x67   : > { %v1438_v26 = vld [vmem:[%s3326_s23 + $0x200] sm:$0xf]  ;;  %v1612_v29 = vsel %vm1598_vm0, %v1406_v21, 4286644096  ;;  %v1636_v30 = vsel %vm1598_vm0, %v1311_v19, 4286644096 }
  0x68   : > { %v1470_v31 = vld [vmem:[%s3326_s23 + $0x280] sm:$0xf]  ;;  %v1610_v32 = vmax.bf16 %v1608_v25, %v1606_v27  ;;  %v1639_v33 = vsel %vm1598_vm0, %v1343_v20, 4286644096  ;;  %v1643_v34 = vsel %vm1598_vm0, %v1375_v23, 4286644096 }
  0x69   : > { %v1439_v35 = vld [vmem:[%s3326_s23 + $0x204] sm:$0xf]  ;;  %v1616_v36 = vsel %vm1598_vm0, %v1438_v26, 4286644096  ;;  %v1641_v37 = vmax.bf16 %v1639_v33, %v1636_v30  ;;  %v1502_v38 = vld [vmem:[%s3326_s23 + $0x300] sm:$0xf] }
  0x6a   : > { %v1534_v39 = vld [vmem:[%s3326_s23 + $0x380] sm:$0xf]  ;;  %v1614_v40 = vmax.bf16 %v1612_v29, %v1610_v32  ;;  %v1647_v41 = vsel %vm1598_vm0, %v1407_v28, 4286644096  ;;  %s3947_s24 = smov (!%p1304_p8, %s2821_s24), 63 }
  0x6b   : > { %v1471_v42 = vld [vmem:[%s3326_s23 + $0x284] sm:$0xf]  ;;  %v1620_v43 = vsel %vm1598_vm0, %v1470_v31, 4286644096  ;;  %v1645_v44 = vmax.bf16 %v1643_v34, %v1641_v37  ;;  %v1566_v46 = vld [vmem:[%s3326_s23 + $0x400] sm:$0xf] }
  0x6c   : > { %v1503_v45 = vld [vmem:[%s3326_s23 + $0x304] sm:$0xf]  ;;  %v1618_v47 = vmax.bf16 %v1616_v36, %v1614_v40  ;;  %v1651_v48 = vsel %vm1598_vm0, %v1439_v35, 4286644096  ;;  %v1624_v51 = vsel %vm1598_vm0, %v1502_v38, 4286644096 }
  0x6d   : > { %v1535_v49 = vld [vmem:[%s3326_s23 + $0x384] sm:$0xf]  ;;  %v1628_v52 = vsel %vm1598_vm0, %v1534_v39, 4286644096  ;;  %v1649_v53 = vmax.bf16 %v1647_v41, %v1645_v44  ;;  %v1655_v56 = vsel %vm1598_vm0, %v1471_v42, 4286644096 }
  0x6e   : > { %v1567_v50 = vld [vmem:[%s3326_s23 + $0x404] sm:$0xf]  ;;  %v1622_v55 = vmax.bf16 %v1620_v43, %v1618_v47  ;;  %v1344_v57 = vld [vmem:[%s3326_s23 + $0x88] sm:$0xf]  ;;  %v1632_v59 = vsel %vm1598_vm0, %v1566_v46, 4286644096 }
  0x6f   : > { %v1376_v58 = vld [vmem:[%s3326_s23 + $0x108] sm:$0xf]  ;;  %v1653_v60 = vmax.bf16 %v1651_v48, %v1649_v53  ;;  %v1659_v61 = vsel %vm1598_vm0, %v1503_v45, 4286644096  ;;  %v1313_v62 = vld [vmem:[%s3326_s23 + $0xc] sm:$0xf] }
  0x70   : > { %v1626_v63 = vmax.bf16 %v1624_v51, %v1622_v55  ;;  %v1345_v0 = vld [vmem:[%s3326_s23 + $0x8c] sm:$0xf]  ;;  %v1408_v1 = vld [vmem:[%s3326_s23 + $0x188] sm:$0xf]  ;;  %v1671_v2 = vsel %vm1598_vm0, %v1312_v54, 4286644096 }
  0x71   : > { %v1657_v3 = vmax.bf16 %v1655_v56, %v1653_v60  ;;  %v1440_v4 = vld [vmem:[%s3326_s23 + $0x208] sm:$0xf]  ;;  %v1674_v5 = vsel %vm1598_vm0, %v1344_v57, 4286644096  ;;  %v1678_v6 = vsel %vm1598_vm0, %v1376_v58, 4286644096 }
  0x72   : > { %v1630_v7 = vmax.bf16 %v1628_v52, %v1626_v63  ;;  %v1663_v8 = vsel %vm1598_vm0, %v1535_v49, 4286644096  ;;  %v1667_v9 = vsel %vm1598_vm0, %v1567_v50, 4286644096  ;;  %v1377_v10 = vld [vmem:[%s3326_s23 + $0x10c] sm:$0xf]  ;;  %v1676_v11 = vmax.bf16 %v1674_v5, %v1671_v2 }
  0x73   : > { %v1661_v12 = vmax.bf16 %v1659_v61, %v1657_v3  ;;  %v1409_v13 = vld [vmem:[%s3326_s23 + $0x18c] sm:$0xf]  ;;  %v1472_v14 = vld [vmem:[%s3326_s23 + $0x288] sm:$0xf]  ;;  %v1682_v15 = vsel %vm1598_vm0, %v1408_v1, 4286644096 }
  0x74   : > { %v1680_v16 = vmax.bf16 %v1678_v6, %v1676_v11  ;;  %v1686_v17 = vsel %vm1598_vm0, %v1440_v4, 4286644096  ;;  %v1706_v18 = vsel %vm1598_vm0, %v1313_v62, 4286644096  ;;  %v1709_v19 = vsel %vm1598_vm0, %v1345_v0, 4286644096 }
  0x75   : > { %s2822_s25 = sshll.u32 %s3947_s24, 2  ;;  %v1634_v20 = vmax.bf16 %v1632_v59, %v1630_v7  ;;  %v1665_v21 = vmax.bf16 %v1663_v8, %v1661_v12  ;;  %v1441_v22 = vld [vmem:[%s3326_s23 + $0x20c] sm:$0xf]  ;;  %v1711_v23 = vmax.bf16 %v1709_v19, %v1706_v18  ;;  %v1713_v24 = vsel %vm1598_vm0, %v1377_v10, 4286644096 }
  0x76   : > { %v1504_v25 = vld [vmem:[%s3326_s23 + $0x308] sm:$0xf]  ;;  %v1684_v27 = vmax.bf16 %v1682_v15, %v1680_v16  ;;  %v1717_v28 = vsel %vm1598_vm0, %v1409_v13, 4286644096  ;;  %v1473_v30 = vld [vmem:[%s3326_s23 + $0x28c] sm:$0xf]  ;;  %s3397_s28 = scalar_lea.vmem %s3942_s1, %s2822_s25 }
  0x77   : > { %v1536_v26 = vld [vmem:[%s3326_s23 + $0x388] sm:$0xf]  ;;  %v1669_v29 = vmax.bf16 %v1667_v9, %v1665_v21  ;;  %v1690_v31 = vsel %vm1598_vm0, %v1472_v14, 4286644096  ;;  %v1715_v32 = vmax.bf16 %v1713_v24, %v1711_v23  ;;  %v1505_v33 = vld [vmem:[%s3326_s23 + $0x30c] sm:$0xf] }
  0x78   : > { %v1568_v34 = vld [vmem:[%s3326_s23 + $0x408] sm:$0xf]  ;;  %v1688_v35 = vmax.bf16 %v1686_v17, %v1684_v27  ;;  %v1721_v36 = vsel %vm1598_vm0, %v1441_v22, 4286644096  ;;  %v1537_v38 = vld [vmem:[%s3326_s23 + $0x38c] sm:$0xf] }
  0x79   : > { %v2906_v37 = vcombine.low %v1634_v20, %v1669_v29  ;;  %v1569_v39 = vld [vmem:[%s3326_s23 + $0x40c] sm:$0xf]  ;;  %v1694_v40 = vsel %vm1598_vm0, %v1504_v25, 4286644096  ;;  %v1698_v41 = vsel %vm1598_vm0, %v1536_v26, 4286644096  ;;  %v1719_v42 = vmax.bf16 %v1717_v28, %v1715_v32 }
  0x7a   : > { %v1314_v43 = vld [vmem:[%s3326_s23 + $0x10] sm:$0xf]  ;;  %v1692_v44 = vmax.bf16 %v1690_v31, %v1688_v35  ;;  %v1725_v45 = vsel %vm1598_vm0, %v1473_v30, 4286644096  ;;  %v1702_v48 = vsel %vm1598_vm0, %v1568_v34, 4286644096 }
  0x7b   : > { %v1346_v46 = vld [vmem:[%s3326_s23 + $0x90] sm:$0xf]  ;;  %2830 = vst [vmem:[%s3397_s28] sm:$0xff] %v2906_v37   ;;  %v1723_v49 = vmax.bf16 %v1721_v36, %v1719_v42  ;;  %v1729_v50 = vsel %vm1598_vm0, %v1505_v33, 4286644096  ;;  %v1315_v51 = vld [vmem:[%s3326_s23 + $0x14] sm:$0xf] }
  0x7c   : > { %v1378_v47 = vld [vmem:[%s3326_s23 + $0x110] sm:$0xf]  ;;  %v1696_v52 = vmax.bf16 %v1694_v40, %v1692_v44  ;;  %v1347_v53 = vld [vmem:[%s3326_s23 + $0x94] sm:$0xf]  ;;  %v1741_v55 = vsel %vm1598_vm0, %v1314_v43, 4286644096 }
  0x7d   : > { %v1410_v54 = vld [vmem:[%s3326_s23 + $0x190] sm:$0xf]  ;;  %v1727_v56 = vmax.bf16 %v1725_v45, %v1723_v49  ;;  %v1744_v58 = vsel %vm1598_vm0, %v1346_v46, 4286644096  ;;  %v1748_v59 = vsel %vm1598_vm0, %v1378_v47, 4286644096 }
  0x7e   : > { %v1442_v57 = vld [vmem:[%s3326_s23 + $0x210] sm:$0xf]  ;;  %v1700_v60 = vmax.bf16 %v1698_v41, %v1696_v52  ;;  %v1733_v61 = vsel %vm1598_vm0, %v1537_v38, 4286644096  ;;  %v1737_v62 = vsel %vm1598_vm0, %v1569_v39, 4286644096  ;;  %v1746_v0 = vmax.bf16 %v1744_v58, %v1741_v55 }
  0x7f   : > { %v1379_v63 = vld [vmem:[%s3326_s23 + $0x114] sm:$0xf]  ;;  %v1731_v1 = vmax.bf16 %v1729_v50, %v1727_v56  ;;  %v1474_v3 = vld [vmem:[%s3326_s23 + $0x290] sm:$0xf]  ;;  %v1752_v4 = vsel %vm1598_vm0, %v1410_v54, 4286644096 }
  0x80   : > { %v1411_v2 = vld [vmem:[%s3326_s23 + $0x194] sm:$0xf]  ;;  %v1750_v5 = vmax.bf16 %v1748_v59, %v1746_v0  ;;  %v1756_v6 = vsel %vm1598_vm0, %v1442_v57, 4286644096  ;;  %v1776_v7 = vsel %vm1598_vm0, %v1315_v51, 4286644096  ;;  %v1704_v9 = vmax.bf16 %v1702_v48, %v1700_v60 }
  0x81   : > { %v1779_v8 = vsel %vm1598_vm0, %v1347_v53, 4286644096  ;;  %v1735_v10 = vmax.bf16 %v1733_v61, %v1731_v1  ;;  %v1443_v11 = vld [vmem:[%s3326_s23 + $0x214] sm:$0xf]  ;;  %v1783_v13 = vsel %vm1598_vm0, %v1379_v63, 4286644096 }
  0x82   : > { %v1781_v12 = vmax.bf16 %v1779_v8, %v1776_v7  ;;  %v1506_v14 = vld [vmem:[%s3326_s23 + $0x310] sm:$0xf]  ;;  %v1754_v16 = vmax.bf16 %v1752_v4, %v1750_v5  ;;  %v1787_v17 = vsel %vm1598_vm0, %v1411_v2, 4286644096  ;;  %v1475_v19 = vld [vmem:[%s3326_s23 + $0x294] sm:$0xf] }
  0x83   : > { %v1538_v15 = vld [vmem:[%s3326_s23 + $0x390] sm:$0xf]  ;;  %v1739_v18 = vmax.bf16 %v1737_v62, %v1735_v10  ;;  %v1760_v20 = vsel %vm1598_vm0, %v1474_v3, 4286644096  ;;  %v1507_v22 = vld [vmem:[%s3326_s23 + $0x314] sm:$0xf] }
  0x84   : > { %v1785_v21 = vmax.bf16 %v1783_v13, %v1781_v12  ;;  %v1570_v23 = vld [vmem:[%s3326_s23 + $0x410] sm:$0xf]  ;;  %v1758_v24 = vmax.bf16 %v1756_v6, %v1754_v16  ;;  %v1791_v25 = vsel %vm1598_vm0, %v1443_v11, 4286644096  ;;  %v1539_v27 = vld [vmem:[%s3326_s23 + $0x394] sm:$0xf] }
  0x85   : > { %v2907_v26 = vcombine.low %v1704_v9, %v1739_v18  ;;  %v1571_v28 = vld [vmem:[%s3326_s23 + $0x414] sm:$0xf]  ;;  %v1764_v29 = vsel %vm1598_vm0, %v1506_v14, 4286644096  ;;  %v1768_v30 = vsel %vm1598_vm0, %v1538_v15, 4286644096 }
  0x86   : > { %v1789_v31 = vmax.bf16 %v1787_v17, %v1785_v21  ;;  %v1316_v32 = vld [vmem:[%s3326_s23 + $0x18] sm:$0xf]  ;;  %v1762_v33 = vmax.bf16 %v1760_v20, %v1758_v24  ;;  %v1795_v34 = vsel %vm1598_vm0, %v1475_v19, 4286644096  ;;  %v1772_v37 = vsel %vm1598_vm0, %v1570_v23, 4286644096 }
  0x87   : > { %v1348_v35 = vld [vmem:[%s3326_s23 + $0x98] sm:$0xf]  ;;  %2908 = vst [vmem:[%s3397_s28 + $0x8] sm:$0xff] %v2907_v26   ;;  %v1799_v39 = vsel %vm1598_vm0, %v1507_v22, 4286644096 }
  0x88   : > { %v1380_v36 = vld [vmem:[%s3326_s23 + $0x118] sm:$0xf]  ;;  %v1793_v38 = vmax.bf16 %v1791_v25, %v1789_v31  ;;  %v1317_v40 = vld [vmem:[%s3326_s23 + $0x1c] sm:$0xf]  ;;  %v1766_v41 = vmax.bf16 %v1764_v29, %v1762_v33  ;;  %v1811_v44 = vsel %vm1598_vm0, %v1316_v32, 4286644096 }
  0x89   : > { %v1349_v42 = vld [vmem:[%s3326_s23 + $0x9c] sm:$0xf]  ;;  %v1412_v43 = vld [vmem:[%s3326_s23 + $0x198] sm:$0xf]  ;;  %v1814_v47 = vsel %vm1598_vm0, %v1348_v35, 4286644096 }
  0x8a   : > { %v1797_v45 = vmax.bf16 %v1795_v34, %v1793_v38  ;;  %v1444_v46 = vld [vmem:[%s3326_s23 + $0x218] sm:$0xf]  ;;  %v1818_v48 = vsel %vm1598_vm0, %v1380_v36, 4286644096  ;;  %v1770_v49 = vmax.bf16 %v1768_v30, %v1766_v41  ;;  %v1803_v50 = vsel %vm1598_vm0, %v1539_v27, 4286644096 }
  0x8b   : > { %v1807_v51 = vsel %vm1598_vm0, %v1571_v28, 4286644096  ;;  %v1381_v52 = vld [vmem:[%s3326_s23 + $0x11c] sm:$0xf]  ;;  %v1816_v53 = vmax.bf16 %v1814_v47, %v1811_v44  ;;  %v1476_v56 = vld [vmem:[%s3326_s23 + $0x298] sm:$0xf] }
  0x8c   : > { %v1801_v54 = vmax.bf16 %v1799_v39, %v1797_v45  ;;  %v1413_v55 = vld [vmem:[%s3326_s23 + $0x19c] sm:$0xf]  ;;  %v1822_v57 = vsel %vm1598_vm0, %v1412_v43, 4286644096  ;;  %v1826_v59 = vsel %vm1598_vm0, %v1444_v46, 4286644096  ;;  %v1774_v62 = vmax.bf16 %v1772_v37, %v1770_v49 }
  0x8d   : > { %v1820_v58 = vmax.bf16 %v1818_v48, %v1816_v53  ;;  %v1846_v60 = vsel %vm1598_vm0, %v1317_v40, 4286644096  ;;  %v1849_v61 = vsel %vm1598_vm0, %v1349_v42, 4286644096  ;;  %v1445_v0 = vld [vmem:[%s3326_s23 + $0x21c] sm:$0xf] }
  0x8e   : > { %v1805_v63 = vmax.bf16 %v1803_v50, %v1801_v54  ;;  %v1851_v1 = vmax.bf16 %v1849_v61, %v1846_v60  ;;  %v1853_v2 = vsel %vm1598_vm0, %v1381_v52, 4286644096  ;;  %v1508_v3 = vld [vmem:[%s3326_s23 + $0x318] sm:$0xf]  ;;  %v1857_v6 = vsel %vm1598_vm0, %v1413_v55, 4286644096 }
  0x8f   : > { %v1540_v4 = vld [vmem:[%s3326_s23 + $0x398] sm:$0xf]  ;;  %v1824_v5 = vmax.bf16 %v1822_v57, %v1820_v58  ;;  %v1477_v8 = vld [vmem:[%s3326_s23 + $0x29c] sm:$0xf]  ;;  %v1830_v9 = vsel %vm1598_vm0, %v1476_v56, 4286644096 }
  0x90   : > { %v1809_v7 = vmax.bf16 %v1807_v51, %v1805_v63  ;;  %v1855_v10 = vmax.bf16 %v1853_v2, %v1851_v1  ;;  %v1509_v11 = vld [vmem:[%s3326_s23 + $0x31c] sm:$0xf]  ;;  %v1572_v12 = vld [vmem:[%s3326_s23 + $0x418] sm:$0xf]  ;;  %v1861_v14 = vsel %vm1598_vm0, %v1445_v0, 4286644096 }
  0x91   : > { %v1828_v13 = vmax.bf16 %v1826_v59, %v1824_v5  ;;  %v1541_v16 = vld [vmem:[%s3326_s23 + $0x39c] sm:$0xf]  ;;  %v1834_v18 = vsel %vm1598_vm0, %v1508_v3, 4286644096  ;;  %v1838_v19 = vsel %vm1598_vm0, %v1540_v4, 4286644096 }
  0x92   : > { %v2909_v15 = vcombine.low %v1774_v62, %v1809_v7  ;;  %v1573_v17 = vld [vmem:[%s3326_s23 + $0x41c] sm:$0xf]  ;;  %v1859_v20 = vmax.bf16 %v1857_v6, %v1855_v10  ;;  %v1318_v21 = vld [vmem:[%s3326_s23 + $0x20] sm:$0xf]  ;;  %v1865_v23 = vsel %vm1598_vm0, %v1477_v8, 4286644096 }
  0x93   : > { %v1832_v22 = vmax.bf16 %v1830_v9, %v1828_v13  ;;  %v1350_v24 = vld [vmem:[%s3326_s23 + $0xa0] sm:$0xf]  ;;  %v1842_v26 = vsel %vm1598_vm0, %v1572_v12, 4286644096  ;;  %v1869_v28 = vsel %vm1598_vm0, %v1509_v11, 4286644096 }
  0x94   : > { %v1382_v25 = vld [vmem:[%s3326_s23 + $0x120] sm:$0xf]  ;;  %2910 = vst [vmem:[%s3397_s28 + $0x10] sm:$0xff] %v2909_v15   ;;  %v1863_v27 = vmax.bf16 %v1861_v14, %v1859_v20  ;;  %v1319_v29 = vld [vmem:[%s3326_s23 + $0x24] sm:$0xf] }
  0x95   : > { %v1836_v30 = vmax.bf16 %v1834_v18, %v1832_v22  ;;  %v1351_v31 = vld [vmem:[%s3326_s23 + $0xa4] sm:$0xf]  ;;  %v1414_v32 = vld [vmem:[%s3326_s23 + $0x1a0] sm:$0xf]  ;;  %v1881_v33 = vsel %vm1598_vm0, %v1318_v21, 4286644096 }
  0x96   : > { %v1867_v34 = vmax.bf16 %v1865_v23, %v1863_v27  ;;  %v1446_v35 = vld [vmem:[%s3326_s23 + $0x220] sm:$0xf]  ;;  %v1884_v36 = vsel %vm1598_vm0, %v1350_v24, 4286644096  ;;  %v1888_v37 = vsel %vm1598_vm0, %v1382_v25, 4286644096 }
  0x97   : > { %v1840_v38 = vmax.bf16 %v1838_v19, %v1836_v30  ;;  %v1873_v39 = vsel %vm1598_vm0, %v1541_v16, 4286644096  ;;  %v1877_v40 = vsel %vm1598_vm0, %v1573_v17, 4286644096  ;;  %v1383_v41 = vld [vmem:[%s3326_s23 + $0x124] sm:$0xf]  ;;  %v1886_v42 = vmax.bf16 %v1884_v36, %v1881_v33 }
  0x98   : > { %v1871_v43 = vmax.bf16 %v1869_v28, %v1867_v34  ;;  %v1415_v44 = vld [vmem:[%s3326_s23 + $0x1a4] sm:$0xf]  ;;  %v1478_v45 = vld [vmem:[%s3326_s23 + $0x2a0] sm:$0xf]  ;;  %v1892_v46 = vsel %vm1598_vm0, %v1414_v32, 4286644096 }
  0x99   : > { %v1890_v47 = vmax.bf16 %v1888_v37, %v1886_v42  ;;  %v1896_v48 = vsel %vm1598_vm0, %v1446_v35, 4286644096  ;;  %v1916_v49 = vsel %vm1598_vm0, %v1319_v29, 4286644096  ;;  %v1919_v50 = vsel %vm1598_vm0, %v1351_v31, 4286644096 }
  0x9a   : > { %v1844_v51 = vmax.bf16 %v1842_v26, %v1840_v38  ;;  %v1875_v52 = vmax.bf16 %v1873_v39, %v1871_v43  ;;  %v1447_v53 = vld [vmem:[%s3326_s23 + $0x224] sm:$0xf]  ;;  %v1921_v54 = vmax.bf16 %v1919_v50, %v1916_v49  ;;  %v1923_v55 = vsel %vm1598_vm0, %v1383_v41, 4286644096  ;;  %v1510_v56 = vld [vmem:[%s3326_s23 + $0x320] sm:$0xf] }
  0x9b   : > { %v1542_v57 = vld [vmem:[%s3326_s23 + $0x3a0] sm:$0xf]  ;;  %v1894_v58 = vmax.bf16 %v1892_v46, %v1890_v47  ;;  %v1927_v59 = vsel %vm1598_vm0, %v1415_v44, 4286644096  ;;  %v1479_v61 = vld [vmem:[%s3326_s23 + $0x2a4] sm:$0xf] }
  0x9c   : > { %v1879_v60 = vmax.bf16 %v1877_v40, %v1875_v52  ;;  %v1900_v62 = vsel %vm1598_vm0, %v1478_v45, 4286644096  ;;  %v1925_v63 = vmax.bf16 %v1923_v55, %v1921_v54  ;;  %v1511_v0 = vld [vmem:[%s3326_s23 + $0x324] sm:$0xf]  ;;  %v1574_v1 = vld [vmem:[%s3326_s23 + $0x420] sm:$0xf] }
  0x9d   : > { %v1898_v2 = vmax.bf16 %v1896_v48, %v1894_v58  ;;  %v1931_v3 = vsel %vm1598_vm0, %v1447_v53, 4286644096  ;;  %v1543_v5 = vld [vmem:[%s3326_s23 + $0x3a4] sm:$0xf]  ;;  %v1904_v7 = vsel %vm1598_vm0, %v1510_v56, 4286644096 }
  0x9e   : > { %v2911_v4 = vcombine.low %v1844_v51, %v1879_v60  ;;  %v1575_v6 = vld [vmem:[%s3326_s23 + $0x424] sm:$0xf]  ;;  %v1908_v8 = vsel %vm1598_vm0, %v1542_v57, 4286644096  ;;  %v1929_v9 = vmax.bf16 %v1927_v59, %v1925_v63  ;;  %v1320_v10 = vld [vmem:[%s3326_s23 + $0x28] sm:$0xf] }
  0x9f   : > { %v1902_v11 = vmax.bf16 %v1900_v62, %v1898_v2  ;;  %v1935_v12 = vsel %vm1598_vm0, %v1479_v61, 4286644096  ;;  %v1352_v13 = vld [vmem:[%s3326_s23 + $0xa8] sm:$0xf]  ;;  %v1912_v15 = vsel %vm1598_vm0, %v1574_v1, 4286644096 }
  0xa0   : > { %v1384_v14 = vld [vmem:[%s3326_s23 + $0x128] sm:$0xf]  ;;  %2912 = vst [vmem:[%s3397_s28 + $0x18] sm:$0xff] %v2911_v4   ;;  %v1933_v16 = vmax.bf16 %v1931_v3, %v1929_v9  ;;  %v1939_v17 = vsel %vm1598_vm0, %v1511_v0, 4286644096 }
  0xa1   : > { %v1321_v18 = vld [vmem:[%s3326_s23 + $0x2c] sm:$0xf]  ;;  %v1906_v19 = vmax.bf16 %v1904_v7, %v1902_v11  ;;  %v1416_v21 = vld [vmem:[%s3326_s23 + $0x1a8] sm:$0xf]  ;;  %v1951_v22 = vsel %vm1598_vm0, %v1320_v10, 4286644096 }
  0xa2   : > { %v1353_v20 = vld [vmem:[%s3326_s23 + $0xac] sm:$0xf]  ;;  %v1937_v23 = vmax.bf16 %v1935_v12, %v1933_v16  ;;  %v1448_v24 = vld [vmem:[%s3326_s23 + $0x228] sm:$0xf]  ;;  %v1954_v25 = vsel %vm1598_vm0, %v1352_v13, 4286644096 }
  0xa3   : > { %v1958_v26 = vsel %vm1598_vm0, %v1384_v14, 4286644096  ;;  %v1910_v27 = vmax.bf16 %v1908_v8, %v1906_v19  ;;  %v1943_v28 = vsel %vm1598_vm0, %v1543_v5, 4286644096  ;;  %v1947_v29 = vsel %vm1598_vm0, %v1575_v6, 4286644096 }
  0xa4   : > { %v1385_v30 = vld [vmem:[%s3326_s23 + $0x12c] sm:$0xf]  ;;  %v1956_v31 = vmax.bf16 %v1954_v25, %v1951_v22  ;;  %v1941_v32 = vmax.bf16 %v1939_v17, %v1937_v23  ;;  %v1480_v34 = vld [vmem:[%s3326_s23 + $0x2a8] sm:$0xf]  ;;  %v1962_v35 = vsel %vm1598_vm0, %v1416_v21, 4286644096 }
  0xa5   : > { %v1417_v33 = vld [vmem:[%s3326_s23 + $0x1ac] sm:$0xf]  ;;  %v1966_v37 = vsel %vm1598_vm0, %v1448_v24, 4286644096  ;;  %v1986_v38 = vsel %vm1598_vm0, %v1321_v18, 4286644096  ;;  %v1914_v40 = vmax.bf16 %v1912_v15, %v1910_v27 }
  0xa6   : > { %v1960_v36 = vmax.bf16 %v1958_v26, %v1956_v31  ;;  %v1989_v39 = vsel %vm1598_vm0, %v1353_v20, 4286644096  ;;  %v1945_v41 = vmax.bf16 %v1943_v28, %v1941_v32  ;;  %v1449_v42 = vld [vmem:[%s3326_s23 + $0x22c] sm:$0xf]  ;;  %v1993_v44 = vsel %vm1598_vm0, %v1385_v30, 4286644096 }
  0xa7   : > { %v1991_v43 = vmax.bf16 %v1989_v39, %v1986_v38  ;;  %v1512_v45 = vld [vmem:[%s3326_s23 + $0x328] sm:$0xf]  ;;  %v1997_v48 = vsel %vm1598_vm0, %v1417_v33, 4286644096  ;;  %v1481_v50 = vld [vmem:[%s3326_s23 + $0x2ac] sm:$0xf] }
  0xa8   : > { %v1544_v46 = vld [vmem:[%s3326_s23 + $0x3a8] sm:$0xf]  ;;  %v1964_v47 = vmax.bf16 %v1962_v35, %v1960_v36  ;;  %v1949_v49 = vmax.bf16 %v1947_v29, %v1945_v41  ;;  %v1970_v51 = vsel %vm1598_vm0, %v1480_v34, 4286644096  ;;  %v1513_v53 = vld [vmem:[%s3326_s23 + $0x32c] sm:$0xf] }
  0xa9   : > { %v1995_v52 = vmax.bf16 %v1993_v44, %v1991_v43  ;;  %v1576_v54 = vld [vmem:[%s3326_s23 + $0x428] sm:$0xf]  ;;  %v2001_v56 = vsel %vm1598_vm0, %v1449_v42, 4286644096  ;;  %v1545_v58 = vld [vmem:[%s3326_s23 + $0x3ac] sm:$0xf] }
  0xaa   : > { %v1968_v55 = vmax.bf16 %v1966_v37, %v1964_v47  ;;  %v2913_v57 = vcombine.low %v1914_v40, %v1949_v49  ;;  %v1577_v59 = vld [vmem:[%s3326_s23 + $0x42c] sm:$0xf]  ;;  %v1974_v60 = vsel %vm1598_vm0, %v1512_v45, 4286644096  ;;  %v1978_v61 = vsel %vm1598_vm0, %v1544_v46, 4286644096 }
  0xab   : > { %v1999_v62 = vmax.bf16 %v1997_v48, %v1995_v52  ;;  %v1322_v63 = vld [vmem:[%s3326_s23 + $0x30] sm:$0xf]  ;;  %v2005_v1 = vsel %vm1598_vm0, %v1481_v50, 4286644096  ;;  %v1982_v4 = vsel %vm1598_vm0, %v1576_v54, 4286644096 }
  0xac   : > { %v1972_v0 = vmax.bf16 %v1970_v51, %v1968_v55  ;;  %v1354_v2 = vld [vmem:[%s3326_s23 + $0xb0] sm:$0xf]  ;;  %2914 = vst [vmem:[%s3397_s28 + $0x20] sm:$0xff] %v2913_v57   ;;  %v2009_v6 = vsel %vm1598_vm0, %v1513_v53, 4286644096 }
  0xad   : > { %v1386_v3 = vld [vmem:[%s3326_s23 + $0x130] sm:$0xf]  ;;  %v2003_v5 = vmax.bf16 %v2001_v56, %v1999_v62  ;;  %v1323_v7 = vld [vmem:[%s3326_s23 + $0x34] sm:$0xf]  ;;  %v2021_v11 = vsel %vm1598_vm0, %v1322_v63, 4286644096 }
  0xae   : > { %v1976_v8 = vmax.bf16 %v1974_v60, %v1972_v0  ;;  %v1355_v9 = vld [vmem:[%s3326_s23 + $0xb4] sm:$0xf]  ;;  %v1418_v10 = vld [vmem:[%s3326_s23 + $0x1b0] sm:$0xf]  ;;  %v2024_v14 = vsel %vm1598_vm0, %v1354_v2, 4286644096 }
  0xaf   : > { %v2007_v12 = vmax.bf16 %v2005_v1, %v2003_v5  ;;  %v1450_v13 = vld [vmem:[%s3326_s23 + $0x230] sm:$0xf]  ;;  %v2028_v15 = vsel %vm1598_vm0, %v1386_v3, 4286644096  ;;  %v2013_v17 = vsel %vm1598_vm0, %v1545_v58, 4286644096  ;;  %v2026_v20 = vmax.bf16 %v2024_v14, %v2021_v11 }
  0xb0   : > { %v1980_v16 = vmax.bf16 %v1978_v61, %v1976_v8  ;;  %v2017_v18 = vsel %vm1598_vm0, %v1577_v59, 4286644096  ;;  %v1387_v19 = vld [vmem:[%s3326_s23 + $0x134] sm:$0xf]  ;;  %v1482_v23 = vld [vmem:[%s3326_s23 + $0x2b0] sm:$0xf] }
  0xb1   : > { %v2011_v21 = vmax.bf16 %v2009_v6, %v2007_v12  ;;  %v1419_v22 = vld [vmem:[%s3326_s23 + $0x1b4] sm:$0xf]  ;;  %v2032_v24 = vsel %vm1598_vm0, %v1418_v10, 4286644096  ;;  %v2030_v25 = vmax.bf16 %v2028_v15, %v2026_v20  ;;  %v2036_v26 = vsel %vm1598_vm0, %v1450_v13, 4286644096 }
  0xb2   : > { %v2056_v27 = vsel %vm1598_vm0, %v1323_v7, 4286644096  ;;  %v2059_v28 = vsel %vm1598_vm0, %v1355_v9, 4286644096  ;;  %v1984_v29 = vmax.bf16 %v1982_v4, %v1980_v16  ;;  %v1451_v31 = vld [vmem:[%s3326_s23 + $0x234] sm:$0xf] }
  0xb3   : > { %v2015_v30 = vmax.bf16 %v2013_v17, %v2011_v21  ;;  %v2061_v32 = vmax.bf16 %v2059_v28, %v2056_v27  ;;  %v2063_v33 = vsel %vm1598_vm0, %v1387_v19, 4286644096  ;;  %v1514_v34 = vld [vmem:[%s3326_s23 + $0x330] sm:$0xf]  ;;  %v2034_v36 = vmax.bf16 %v2032_v24, %v2030_v25  ;;  %v1483_v39 = vld [vmem:[%s3326_s23 + $0x2b4] sm:$0xf] }
  0xb4   : > { %v1546_v35 = vld [vmem:[%s3326_s23 + $0x3b0] sm:$0xf]  ;;  %v2067_v37 = vsel %vm1598_vm0, %v1419_v22, 4286644096  ;;  %v2040_v40 = vsel %vm1598_vm0, %v1482_v23, 4286644096 }
  0xb5   : > { %v2019_v38 = vmax.bf16 %v2017_v18, %v2015_v30  ;;  %v2065_v41 = vmax.bf16 %v2063_v33, %v2061_v32  ;;  %v1515_v42 = vld [vmem:[%s3326_s23 + $0x334] sm:$0xf]  ;;  %v1578_v43 = vld [vmem:[%s3326_s23 + $0x430] sm:$0xf]  ;;  %v2038_v44 = vmax.bf16 %v2036_v26, %v2034_v36  ;;  %v2071_v45 = vsel %vm1598_vm0, %v1451_v31, 4286644096 }
  0xb6   : > { %v1547_v47 = vld [vmem:[%s3326_s23 + $0x3b4] sm:$0xf]  ;;  %v2044_v49 = vsel %vm1598_vm0, %v1514_v34, 4286644096  ;;  %v2048_v50 = vsel %vm1598_vm0, %v1546_v35, 4286644096 }
  0xb7   : > { %v2915_v46 = vcombine.low %v1984_v29, %v2019_v38  ;;  %v1579_v48 = vld [vmem:[%s3326_s23 + $0x434] sm:$0xf]  ;;  %v2069_v51 = vmax.bf16 %v2067_v37, %v2065_v41  ;;  %v1324_v52 = vld [vmem:[%s3326_s23 + $0x38] sm:$0xf]  ;;  %v2042_v53 = vmax.bf16 %v2040_v40, %v2038_v44  ;;  %v2075_v54 = vsel %vm1598_vm0, %v1483_v39, 4286644096 }
  0xb8   : > { %v1356_v55 = vld [vmem:[%s3326_s23 + $0xb8] sm:$0xf]  ;;  %v2052_v57 = vsel %vm1598_vm0, %v1578_v43, 4286644096  ;;  %v2079_v59 = vsel %vm1598_vm0, %v1515_v42, 4286644096 }
  0xb9   : > { %v1388_v56 = vld [vmem:[%s3326_s23 + $0x138] sm:$0xf]  ;;  %2916 = vst [vmem:[%s3397_s28 + $0x28] sm:$0xff] %v2915_v46   ;;  %v2073_v58 = vmax.bf16 %v2071_v45, %v2069_v51  ;;  %v1325_v60 = vld [vmem:[%s3326_s23 + $0x3c] sm:$0xf]  ;;  %v2046_v61 = vmax.bf16 %v2044_v49, %v2042_v53 }
  0xba   : > { %v1357_v62 = vld [vmem:[%s3326_s23 + $0xbc] sm:$0xf]  ;;  %v1420_v63 = vld [vmem:[%s3326_s23 + $0x1b8] sm:$0xf]  ;;  %v2091_v0 = vsel %vm1598_vm0, %v1324_v52, 4286644096 }
  0xbb   : > { %v2077_v1 = vmax.bf16 %v2075_v54, %v2073_v58  ;;  %v1452_v2 = vld [vmem:[%s3326_s23 + $0x238] sm:$0xf]  ;;  %v2094_v3 = vsel %vm1598_vm0, %v1356_v55, 4286644096  ;;  %v2098_v4 = vsel %vm1598_vm0, %v1388_v56, 4286644096  ;;  %v2050_v5 = vmax.bf16 %v2048_v50, %v2046_v61 }
  0xbc   : > { %v2083_v6 = vsel %vm1598_vm0, %v1547_v47, 4286644096  ;;  %v2087_v7 = vsel %vm1598_vm0, %v1579_v48, 4286644096  ;;  %v1389_v8 = vld [vmem:[%s3326_s23 + $0x13c] sm:$0xf]  ;;  %v2096_v9 = vmax.bf16 %v2094_v3, %v2091_v0 }
  0xbd   : > { %v2081_v10 = vmax.bf16 %v2079_v59, %v2077_v1  ;;  %v1421_v11 = vld [vmem:[%s3326_s23 + $0x1bc] sm:$0xf]  ;;  %v1484_v12 = vld [vmem:[%s3326_s23 + $0x2b8] sm:$0xf]  ;;  %v2102_v13 = vsel %vm1598_vm0, %v1420_v63, 4286644096  ;;  %v2054_v18 = vmax.bf16 %v2052_v57, %v2050_v5 }
  0xbe   : > { %v2100_v14 = vmax.bf16 %v2098_v4, %v2096_v9  ;;  %v2106_v15 = vsel %vm1598_vm0, %v1452_v2, 4286644096  ;;  %v2126_v16 = vsel %vm1598_vm0, %v1325_v60, 4286644096  ;;  %v2129_v17 = vsel %vm1598_vm0, %v1357_v62, 4286644096 }
  0xbf   : > { %v2085_v19 = vmax.bf16 %v2083_v6, %v2081_v10  ;;  %v1453_v20 = vld [vmem:[%s3326_s23 + $0x23c] sm:$0xf]  ;;  %v2131_v21 = vmax.bf16 %v2129_v17, %v2126_v16  ;;  %v2133_v22 = vsel %vm1598_vm0, %v1389_v8, 4286644096  ;;  %v1516_v23 = vld [vmem:[%s3326_s23 + $0x338] sm:$0xf] }
  0xc0   : > { %v1548_v24 = vld [vmem:[%s3326_s23 + $0x3b8] sm:$0xf]  ;;  %v2104_v25 = vmax.bf16 %v2102_v13, %v2100_v14  ;;  %v2137_v26 = vsel %vm1598_vm0, %v1421_v11, 4286644096  ;;  %v1485_v28 = vld [vmem:[%s3326_s23 + $0x2bc] sm:$0xf] }
  0xc1   : > { %v2089_v27 = vmax.bf16 %v2087_v7, %v2085_v19  ;;  %v2110_v29 = vsel %vm1598_vm0, %v1484_v12, 4286644096  ;;  %v2135_v30 = vmax.bf16 %v2133_v22, %v2131_v21  ;;  %v1517_v31 = vld [vmem:[%s3326_s23 + $0x33c] sm:$0xf]  ;;  %v1580_v32 = vld [vmem:[%s3326_s23 + $0x438] sm:$0xf] }
  0xc2   : > { %v2108_v33 = vmax.bf16 %v2106_v15, %v2104_v25  ;;  %v2141_v34 = vsel %vm1598_vm0, %v1453_v20, 4286644096  ;;  %v1549_v36 = vld [vmem:[%s3326_s23 + $0x3bc] sm:$0xf]  ;;  %v2114_v38 = vsel %vm1598_vm0, %v1516_v23, 4286644096 }
  0xc3   : > { %v2917_v35 = vcombine.low %v2054_v18, %v2089_v27  ;;  %v1581_v37 = vld [vmem:[%s3326_s23 + $0x43c] sm:$0xf]  ;;  %v2118_v39 = vsel %vm1598_vm0, %v1548_v24, 4286644096  ;;  %v2139_v40 = vmax.bf16 %v2137_v26, %v2135_v30  ;;  %v1326_v41 = vld [vmem:[%s3326_s23 + $0x40] sm:$0xf] }
  0xc4   : > { %v2112_v42 = vmax.bf16 %v2110_v29, %v2108_v33  ;;  %v2145_v43 = vsel %vm1598_vm0, %v1485_v28, 4286644096  ;;  %v1358_v44 = vld [vmem:[%s3326_s23 + $0xc0] sm:$0xf]  ;;  %v2122_v46 = vsel %vm1598_vm0, %v1580_v32, 4286644096 }
  0xc5   : > { %v1390_v45 = vld [vmem:[%s3326_s23 + $0x140] sm:$0xf]  ;;  %2918 = vst [vmem:[%s3397_s28 + $0x30] sm:$0xff] %v2917_v35   ;;  %v2143_v47 = vmax.bf16 %v2141_v34, %v2139_v40  ;;  %v2149_v48 = vsel %vm1598_vm0, %v1517_v31, 4286644096 }
  0xc6   : > { %v1327_v49 = vld [vmem:[%s3326_s23 + $0x44] sm:$0xf]  ;;  %v2116_v50 = vmax.bf16 %v2114_v38, %v2112_v42  ;;  %v1422_v52 = vld [vmem:[%s3326_s23 + $0x1c0] sm:$0xf]  ;;  %v2161_v53 = vsel %vm1598_vm0, %v1326_v41, 4286644096 }
  0xc7   : > { %v1359_v51 = vld [vmem:[%s3326_s23 + $0xc4] sm:$0xf]  ;;  %v2147_v54 = vmax.bf16 %v2145_v43, %v2143_v47  ;;  %v1454_v55 = vld [vmem:[%s3326_s23 + $0x240] sm:$0xf]  ;;  %v2164_v56 = vsel %vm1598_vm0, %v1358_v44, 4286644096 }
  0xc8   : > { %v2168_v57 = vsel %vm1598_vm0, %v1390_v45, 4286644096  ;;  %v2120_v58 = vmax.bf16 %v2118_v39, %v2116_v50  ;;  %v2153_v59 = vsel %vm1598_vm0, %v1549_v36, 4286644096  ;;  %v2157_v60 = vsel %vm1598_vm0, %v1581_v37, 4286644096 }
  0xc9   : > { %v1391_v61 = vld [vmem:[%s3326_s23 + $0x144] sm:$0xf]  ;;  %v2166_v62 = vmax.bf16 %v2164_v56, %v2161_v53  ;;  %v2151_v63 = vmax.bf16 %v2149_v48, %v2147_v54  ;;  %v1486_v1 = vld [vmem:[%s3326_s23 + $0x2c0] sm:$0xf]  ;;  %v2172_v2 = vsel %vm1598_vm0, %v1422_v52, 4286644096 }
  0xca   : > { %v1423_v0 = vld [vmem:[%s3326_s23 + $0x1c4] sm:$0xf]  ;;  %v2176_v4 = vsel %vm1598_vm0, %v1454_v55, 4286644096  ;;  %v2196_v5 = vsel %vm1598_vm0, %v1327_v49, 4286644096  ;;  %v2124_v7 = vmax.bf16 %v2122_v46, %v2120_v58 }
  0xcb   : > { %v2170_v3 = vmax.bf16 %v2168_v57, %v2166_v62  ;;  %v2199_v6 = vsel %vm1598_vm0, %v1359_v51, 4286644096  ;;  %v2155_v8 = vmax.bf16 %v2153_v59, %v2151_v63  ;;  %v1455_v9 = vld [vmem:[%s3326_s23 + $0x244] sm:$0xf]  ;;  %v2203_v11 = vsel %vm1598_vm0, %v1391_v61, 4286644096 }
  0xcc   : > { %v2201_v10 = vmax.bf16 %v2199_v6, %v2196_v5  ;;  %v1518_v12 = vld [vmem:[%s3326_s23 + $0x340] sm:$0xf]  ;;  %v2207_v15 = vsel %vm1598_vm0, %v1423_v0, 4286644096  ;;  %v1487_v17 = vld [vmem:[%s3326_s23 + $0x2c4] sm:$0xf] }
  0xcd   : > { %v1550_v13 = vld [vmem:[%s3326_s23 + $0x3c0] sm:$0xf]  ;;  %v2174_v14 = vmax.bf16 %v2172_v2, %v2170_v3  ;;  %v2159_v16 = vmax.bf16 %v2157_v60, %v2155_v8  ;;  %v2180_v18 = vsel %vm1598_vm0, %v1486_v1, 4286644096  ;;  %v1519_v20 = vld [vmem:[%s3326_s23 + $0x344] sm:$0xf] }
  0xce   : > { %v2205_v19 = vmax.bf16 %v2203_v11, %v2201_v10  ;;  %v1582_v21 = vld [vmem:[%s3326_s23 + $0x440] sm:$0xf]  ;;  %v2211_v23 = vsel %vm1598_vm0, %v1455_v9, 4286644096  ;;  %v1551_v25 = vld [vmem:[%s3326_s23 + $0x3c4] sm:$0xf] }
  0xcf   : > { %v2178_v22 = vmax.bf16 %v2176_v4, %v2174_v14  ;;  %v2919_v24 = vcombine.low %v2124_v7, %v2159_v16  ;;  %v1583_v26 = vld [vmem:[%s3326_s23 + $0x444] sm:$0xf]  ;;  %v2184_v27 = vsel %vm1598_vm0, %v1518_v12, 4286644096  ;;  %v2188_v28 = vsel %vm1598_vm0, %v1550_v13, 4286644096 }
  0xd0   : > { %v2209_v29 = vmax.bf16 %v2207_v15, %v2205_v19  ;;  %v1328_v30 = vld [vmem:[%s3326_s23 + $0x48] sm:$0xf]  ;;  %v2215_v32 = vsel %vm1598_vm0, %v1487_v17, 4286644096  ;;  %v2192_v35 = vsel %vm1598_vm0, %v1582_v21, 4286644096 }
  0xd1   : > { %v2182_v31 = vmax.bf16 %v2180_v18, %v2178_v22  ;;  %v1360_v33 = vld [vmem:[%s3326_s23 + $0xc8] sm:$0xf]  ;;  %2920 = vst [vmem:[%s3397_s28 + $0x38] sm:$0xff] %v2919_v24   ;;  %v2219_v37 = vsel %vm1598_vm0, %v1519_v20, 4286644096 }
  0xd2   : > { %v1392_v34 = vld [vmem:[%s3326_s23 + $0x148] sm:$0xf]  ;;  %v2213_v36 = vmax.bf16 %v2211_v23, %v2209_v29  ;;  %v1329_v38 = vld [vmem:[%s3326_s23 + $0x4c] sm:$0xf]  ;;  %v2231_v42 = vsel %vm1598_vm0, %v1328_v30, 4286644096 }
  0xd3   : > { %v2186_v39 = vmax.bf16 %v2184_v27, %v2182_v31  ;;  %v1361_v40 = vld [vmem:[%s3326_s23 + $0xcc] sm:$0xf]  ;;  %v1424_v41 = vld [vmem:[%s3326_s23 + $0x1c8] sm:$0xf]  ;;  %v2234_v45 = vsel %vm1598_vm0, %v1360_v33, 4286644096 }
  0xd4   : > { %v2217_v43 = vmax.bf16 %v2215_v32, %v2213_v36  ;;  %v1456_v44 = vld [vmem:[%s3326_s23 + $0x248] sm:$0xf]  ;;  %v2238_v46 = vsel %vm1598_vm0, %v1392_v34, 4286644096  ;;  %v2223_v48 = vsel %vm1598_vm0, %v1551_v25, 4286644096  ;;  %v2236_v51 = vmax.bf16 %v2234_v45, %v2231_v42 }
  0xd5   : > { %v2190_v47 = vmax.bf16 %v2188_v28, %v2186_v39  ;;  %v2227_v49 = vsel %vm1598_vm0, %v1583_v26, 4286644096  ;;  %v1393_v50 = vld [vmem:[%s3326_s23 + $0x14c] sm:$0xf]  ;;  %v1488_v54 = vld [vmem:[%s3326_s23 + $0x2c8] sm:$0xf] }
  0xd6   : > { %v2221_v52 = vmax.bf16 %v2219_v37, %v2217_v43  ;;  %v1425_v53 = vld [vmem:[%s3326_s23 + $0x1cc] sm:$0xf]  ;;  %v2242_v55 = vsel %vm1598_vm0, %v1424_v41, 4286644096  ;;  %v2240_v56 = vmax.bf16 %v2238_v46, %v2236_v51  ;;  %v2246_v57 = vsel %vm1598_vm0, %v1456_v44, 4286644096 }
  0xd7   : > { %v2266_v58 = vsel %vm1598_vm0, %v1329_v38, 4286644096  ;;  %v2269_v59 = vsel %vm1598_vm0, %v1361_v40, 4286644096  ;;  %v2194_v60 = vmax.bf16 %v2192_v35, %v2190_v47  ;;  %v1457_v62 = vld [vmem:[%s3326_s23 + $0x24c] sm:$0xf] }
  0xd8   : > { %v2225_v61 = vmax.bf16 %v2223_v48, %v2221_v52  ;;  %v2271_v63 = vmax.bf16 %v2269_v59, %v2266_v58  ;;  %v2273_v0 = vsel %vm1598_vm0, %v1393_v50, 4286644096  ;;  %v1520_v1 = vld [vmem:[%s3326_s23 + $0x348] sm:$0xf]  ;;  %v2244_v3 = vmax.bf16 %v2242_v55, %v2240_v56  ;;  %v1489_v6 = vld [vmem:[%s3326_s23 + $0x2cc] sm:$0xf] }
  0xd9   : > { %v1552_v2 = vld [vmem:[%s3326_s23 + $0x3c8] sm:$0xf]  ;;  %v2277_v4 = vsel %vm1598_vm0, %v1425_v53, 4286644096  ;;  %v2250_v7 = vsel %vm1598_vm0, %v1488_v54, 4286644096 }
  0xda   : > { %v2229_v5 = vmax.bf16 %v2227_v49, %v2225_v61  ;;  %v2275_v8 = vmax.bf16 %v2273_v0, %v2271_v63  ;;  %v1521_v9 = vld [vmem:[%s3326_s23 + $0x34c] sm:$0xf]  ;;  %v1584_v10 = vld [vmem:[%s3326_s23 + $0x448] sm:$0xf]  ;;  %v2248_v11 = vmax.bf16 %v2246_v57, %v2244_v3  ;;  %v2281_v12 = vsel %vm1598_vm0, %v1457_v62, 4286644096 }
  0xdb   : > { %v1553_v14 = vld [vmem:[%s3326_s23 + $0x3cc] sm:$0xf]  ;;  %v2254_v16 = vsel %vm1598_vm0, %v1520_v1, 4286644096  ;;  %v2258_v17 = vsel %vm1598_vm0, %v1552_v2, 4286644096 }
  0xdc   : > { %v2921_v13 = vcombine.low %v2194_v60, %v2229_v5  ;;  %v1585_v15 = vld [vmem:[%s3326_s23 + $0x44c] sm:$0xf]  ;;  %v2279_v18 = vmax.bf16 %v2277_v4, %v2275_v8  ;;  %v1330_v19 = vld [vmem:[%s3326_s23 + $0x50] sm:$0xf]  ;;  %v2252_v20 = vmax.bf16 %v2250_v7, %v2248_v11  ;;  %v2285_v21 = vsel %vm1598_vm0, %v1489_v6, 4286644096 }
  0xdd   : > { %v1362_v22 = vld [vmem:[%s3326_s23 + $0xd0] sm:$0xf]  ;;  %v2262_v24 = vsel %vm1598_vm0, %v1584_v10, 4286644096  ;;  %v2289_v26 = vsel %vm1598_vm0, %v1521_v9, 4286644096 }
  0xde   : > { %v1394_v23 = vld [vmem:[%s3326_s23 + $0x150] sm:$0xf]  ;;  %2922 = vst [vmem:[%s3397_s28 + $0x40] sm:$0xff] %v2921_v13   ;;  %v2283_v25 = vmax.bf16 %v2281_v12, %v2279_v18  ;;  %v1331_v27 = vld [vmem:[%s3326_s23 + $0x54] sm:$0xf]  ;;  %v2256_v28 = vmax.bf16 %v2254_v16, %v2252_v20 }
  0xdf   : > { %v1363_v29 = vld [vmem:[%s3326_s23 + $0xd4] sm:$0xf]  ;;  %v1426_v30 = vld [vmem:[%s3326_s23 + $0x1d0] sm:$0xf]  ;;  %v2301_v31 = vsel %vm1598_vm0, %v1330_v19, 4286644096 }
  0xe0   : > { %v2287_v32 = vmax.bf16 %v2285_v21, %v2283_v25  ;;  %v1458_v33 = vld [vmem:[%s3326_s23 + $0x250] sm:$0xf]  ;;  %v2304_v34 = vsel %vm1598_vm0, %v1362_v22, 4286644096  ;;  %v2308_v35 = vsel %vm1598_vm0, %v1394_v23, 4286644096  ;;  %v2260_v36 = vmax.bf16 %v2258_v17, %v2256_v28 }
  0xe1   : > { %v2293_v37 = vsel %vm1598_vm0, %v1553_v14, 4286644096  ;;  %v2297_v38 = vsel %vm1598_vm0, %v1585_v15, 4286644096  ;;  %v1395_v39 = vld [vmem:[%s3326_s23 + $0x154] sm:$0xf]  ;;  %v2306_v40 = vmax.bf16 %v2304_v34, %v2301_v31 }
  0xe2   : > { %v2291_v41 = vmax.bf16 %v2289_v26, %v2287_v32  ;;  %v1427_v42 = vld [vmem:[%s3326_s23 + $0x1d4] sm:$0xf]  ;;  %v1490_v43 = vld [vmem:[%s3326_s23 + $0x2d0] sm:$0xf]  ;;  %v2312_v44 = vsel %vm1598_vm0, %v1426_v30, 4286644096  ;;  %v2264_v49 = vmax.bf16 %v2262_v24, %v2260_v36 }
  0xe3   : > { %v2310_v45 = vmax.bf16 %v2308_v35, %v2306_v40  ;;  %v2316_v46 = vsel %vm1598_vm0, %v1458_v33, 4286644096  ;;  %v2336_v47 = vsel %vm1598_vm0, %v1331_v27, 4286644096  ;;  %v2339_v48 = vsel %vm1598_vm0, %v1363_v29, 4286644096 }
  0xe4   : > { %v2295_v50 = vmax.bf16 %v2293_v37, %v2291_v41  ;;  %v1459_v51 = vld [vmem:[%s3326_s23 + $0x254] sm:$0xf]  ;;  %v2341_v52 = vmax.bf16 %v2339_v48, %v2336_v47  ;;  %v2343_v53 = vsel %vm1598_vm0, %v1395_v39, 4286644096  ;;  %v1522_v54 = vld [vmem:[%s3326_s23 + $0x350] sm:$0xf] }
  0xe5   : > { %v1554_v55 = vld [vmem:[%s3326_s23 + $0x3d0] sm:$0xf]  ;;  %v2314_v56 = vmax.bf16 %v2312_v44, %v2310_v45  ;;  %v2347_v57 = vsel %vm1598_vm0, %v1427_v42, 4286644096  ;;  %v1491_v59 = vld [vmem:[%s3326_s23 + $0x2d4] sm:$0xf] }
  0xe6   : > { %v2299_v58 = vmax.bf16 %v2297_v38, %v2295_v50  ;;  %v2320_v60 = vsel %vm1598_vm0, %v1490_v43, 4286644096  ;;  %v2345_v61 = vmax.bf16 %v2343_v53, %v2341_v52  ;;  %v1523_v62 = vld [vmem:[%s3326_s23 + $0x354] sm:$0xf]  ;;  %v1586_v63 = vld [vmem:[%s3326_s23 + $0x450] sm:$0xf] }
  0xe7   : > { %v2318_v0 = vmax.bf16 %v2316_v46, %v2314_v56  ;;  %v2351_v1 = vsel %vm1598_vm0, %v1459_v51, 4286644096  ;;  %v1555_v3 = vld [vmem:[%s3326_s23 + $0x3d4] sm:$0xf]  ;;  %v2324_v5 = vsel %vm1598_vm0, %v1522_v54, 4286644096 }
  0xe8   : > { %v2923_v2 = vcombine.low %v2264_v49, %v2299_v58  ;;  %v1587_v4 = vld [vmem:[%s3326_s23 + $0x454] sm:$0xf]  ;;  %v2328_v6 = vsel %vm1598_vm0, %v1554_v55, 4286644096  ;;  %v2349_v7 = vmax.bf16 %v2347_v57, %v2345_v61  ;;  %v1332_v8 = vld [vmem:[%s3326_s23 + $0x58] sm:$0xf] }
  0xe9   : > { %v2322_v9 = vmax.bf16 %v2320_v60, %v2318_v0  ;;  %v2355_v10 = vsel %vm1598_vm0, %v1491_v59, 4286644096  ;;  %v1364_v11 = vld [vmem:[%s3326_s23 + $0xd8] sm:$0xf]  ;;  %v2332_v13 = vsel %vm1598_vm0, %v1586_v63, 4286644096 }
  0xea   : > { %v1396_v12 = vld [vmem:[%s3326_s23 + $0x158] sm:$0xf]  ;;  %2924 = vst [vmem:[%s3397_s28 + $0x48] sm:$0xff] %v2923_v2   ;;  %v2353_v14 = vmax.bf16 %v2351_v1, %v2349_v7  ;;  %v2359_v15 = vsel %vm1598_vm0, %v1523_v62, 4286644096 }
  0xeb   : > { %v1333_v16 = vld [vmem:[%s3326_s23 + $0x5c] sm:$0xf]  ;;  %v2326_v17 = vmax.bf16 %v2324_v5, %v2322_v9  ;;  %v1428_v19 = vld [vmem:[%s3326_s23 + $0x1d8] sm:$0xf]  ;;  %v2371_v20 = vsel %vm1598_vm0, %v1332_v8, 4286644096 }
  0xec   : > { %v1365_v18 = vld [vmem:[%s3326_s23 + $0xdc] sm:$0xf]  ;;  %v2357_v21 = vmax.bf16 %v2355_v10, %v2353_v14  ;;  %v1460_v22 = vld [vmem:[%s3326_s23 + $0x258] sm:$0xf]  ;;  %v2374_v23 = vsel %vm1598_vm0, %v1364_v11, 4286644096 }
  0xed   : > { %v2378_v24 = vsel %vm1598_vm0, %v1396_v12, 4286644096  ;;  %v2330_v25 = vmax.bf16 %v2328_v6, %v2326_v17  ;;  %v2363_v26 = vsel %vm1598_vm0, %v1555_v3, 4286644096  ;;  %v2367_v27 = vsel %vm1598_vm0, %v1587_v4, 4286644096 }
  0xee   : > { %v1397_v28 = vld [vmem:[%s3326_s23 + $0x15c] sm:$0xf]  ;;  %v2376_v29 = vmax.bf16 %v2374_v23, %v2371_v20  ;;  %v2361_v30 = vmax.bf16 %v2359_v15, %v2357_v21  ;;  %v1492_v32 = vld [vmem:[%s3326_s23 + $0x2d8] sm:$0xf]  ;;  %v2382_v33 = vsel %vm1598_vm0, %v1428_v19, 4286644096 }
  0xef   : > { %v1429_v31 = vld [vmem:[%s3326_s23 + $0x1dc] sm:$0xf]  ;;  %v2386_v35 = vsel %vm1598_vm0, %v1460_v22, 4286644096  ;;  %v2406_v36 = vsel %vm1598_vm0, %v1333_v16, 4286644096  ;;  %v2334_v38 = vmax.bf16 %v2332_v13, %v2330_v25 }
  0xf0   : > { %v2380_v34 = vmax.bf16 %v2378_v24, %v2376_v29  ;;  %v2409_v37 = vsel %vm1598_vm0, %v1365_v18, 4286644096  ;;  %v2365_v39 = vmax.bf16 %v2363_v26, %v2361_v30  ;;  %v1461_v40 = vld [vmem:[%s3326_s23 + $0x25c] sm:$0xf]  ;;  %v2413_v42 = vsel %vm1598_vm0, %v1397_v28, 4286644096 }
  0xf1   : > { %v2411_v41 = vmax.bf16 %v2409_v37, %v2406_v36  ;;  %v1524_v43 = vld [vmem:[%s3326_s23 + $0x358] sm:$0xf]  ;;  %v2417_v46 = vsel %vm1598_vm0, %v1429_v31, 4286644096  ;;  %v1493_v48 = vld [vmem:[%s3326_s23 + $0x2dc] sm:$0xf] }
  0xf2   : > { %v1556_v44 = vld [vmem:[%s3326_s23 + $0x3d8] sm:$0xf]  ;;  %v2384_v45 = vmax.bf16 %v2382_v33, %v2380_v34  ;;  %v2369_v47 = vmax.bf16 %v2367_v27, %v2365_v39  ;;  %v2390_v49 = vsel %vm1598_vm0, %v1492_v32, 4286644096  ;;  %v1525_v51 = vld [vmem:[%s3326_s23 + $0x35c] sm:$0xf] }
  0xf3   : > { %v2415_v50 = vmax.bf16 %v2413_v42, %v2411_v41  ;;  %v1588_v52 = vld [vmem:[%s3326_s23 + $0x458] sm:$0xf]  ;;  %v2421_v54 = vsel %vm1598_vm0, %v1461_v40, 4286644096  ;;  %v1557_v56 = vld [vmem:[%s3326_s23 + $0x3dc] sm:$0xf] }
  0xf4   : > { %v2388_v53 = vmax.bf16 %v2386_v35, %v2384_v45  ;;  %v2925_v55 = vcombine.low %v2334_v38, %v2369_v47  ;;  %v1589_v57 = vld [vmem:[%s3326_s23 + $0x45c] sm:$0xf]  ;;  %v2394_v58 = vsel %vm1598_vm0, %v1524_v43, 4286644096  ;;  %v2398_v59 = vsel %vm1598_vm0, %v1556_v44, 4286644096 }
  0xf5   : > { %v2419_v60 = vmax.bf16 %v2417_v46, %v2415_v50  ;;  %v1334_v61 = vld [vmem:[%s3326_s23 + $0x60] sm:$0xf]  ;;  %v2425_v63 = vsel %vm1598_vm0, %v1493_v48, 4286644096  ;;  %v2402_v2 = vsel %vm1598_vm0, %v1588_v52, 4286644096 }
  0xf6   : > { %v2392_v62 = vmax.bf16 %v2390_v49, %v2388_v53  ;;  %v1366_v0 = vld [vmem:[%s3326_s23 + $0xe0] sm:$0xf]  ;;  %2926 = vst [vmem:[%s3397_s28 + $0x50] sm:$0xff] %v2925_v55   ;;  %v2429_v4 = vsel %vm1598_vm0, %v1525_v51, 4286644096 }
  0xf7   : > { %v1398_v1 = vld [vmem:[%s3326_s23 + $0x160] sm:$0xf]  ;;  %v2423_v3 = vmax.bf16 %v2421_v54, %v2419_v60  ;;  %v1335_v5 = vld [vmem:[%s3326_s23 + $0x64] sm:$0xf]  ;;  %v2441_v9 = vsel %vm1598_vm0, %v1334_v61, 4286644096 }
  0xf8   : > { %v2396_v6 = vmax.bf16 %v2394_v58, %v2392_v62  ;;  %v1367_v7 = vld [vmem:[%s3326_s23 + $0xe4] sm:$0xf]  ;;  %v1430_v8 = vld [vmem:[%s3326_s23 + $0x1e0] sm:$0xf]  ;;  %v2444_v12 = vsel %vm1598_vm0, %v1366_v0, 4286644096 }
  0xf9   : > { %v2427_v10 = vmax.bf16 %v2425_v63, %v2423_v3  ;;  %v1462_v11 = vld [vmem:[%s3326_s23 + $0x260] sm:$0xf]  ;;  %v2448_v13 = vsel %vm1598_vm0, %v1398_v1, 4286644096  ;;  %v2433_v15 = vsel %vm1598_vm0, %v1557_v56, 4286644096  ;;  %v2446_v18 = vmax.bf16 %v2444_v12, %v2441_v9 }
  0xfa   : > { %v2400_v14 = vmax.bf16 %v2398_v59, %v2396_v6  ;;  %v2437_v16 = vsel %vm1598_vm0, %v1589_v57, 4286644096  ;;  %v1399_v17 = vld [vmem:[%s3326_s23 + $0x164] sm:$0xf]  ;;  %v1494_v21 = vld [vmem:[%s3326_s23 + $0x2e0] sm:$0xf] }
  0xfb   : > { %v2431_v19 = vmax.bf16 %v2429_v4, %v2427_v10  ;;  %v1431_v20 = vld [vmem:[%s3326_s23 + $0x1e4] sm:$0xf]  ;;  %v2452_v22 = vsel %vm1598_vm0, %v1430_v8, 4286644096  ;;  %v2450_v23 = vmax.bf16 %v2448_v13, %v2446_v18  ;;  %v2456_v24 = vsel %vm1598_vm0, %v1462_v11, 4286644096 }
  0xfc   : > { %v2476_v25 = vsel %vm1598_vm0, %v1335_v5, 4286644096  ;;  %v2479_v26 = vsel %vm1598_vm0, %v1367_v7, 4286644096  ;;  %v2404_v27 = vmax.bf16 %v2402_v2, %v2400_v14  ;;  %v1463_v29 = vld [vmem:[%s3326_s23 + $0x264] sm:$0xf] }
  0xfd   : > { %v2435_v28 = vmax.bf16 %v2433_v15, %v2431_v19  ;;  %v2481_v30 = vmax.bf16 %v2479_v26, %v2476_v25  ;;  %v2483_v31 = vsel %vm1598_vm0, %v1399_v17, 4286644096  ;;  %v1526_v32 = vld [vmem:[%s3326_s23 + $0x360] sm:$0xf]  ;;  %v2454_v34 = vmax.bf16 %v2452_v22, %v2450_v23  ;;  %v1495_v37 = vld [vmem:[%s3326_s23 + $0x2e4] sm:$0xf] }
  0xfe   : > { %v1558_v33 = vld [vmem:[%s3326_s23 + $0x3e0] sm:$0xf]  ;;  %v2487_v35 = vsel %vm1598_vm0, %v1431_v20, 4286644096  ;;  %v2460_v38 = vsel %vm1598_vm0, %v1494_v21, 4286644096 }
  0xff   : > { %v2439_v36 = vmax.bf16 %v2437_v16, %v2435_v28  ;;  %v2485_v39 = vmax.bf16 %v2483_v31, %v2481_v30  ;;  %v1527_v40 = vld [vmem:[%s3326_s23 + $0x364] sm:$0xf]  ;;  %v1590_v41 = vld [vmem:[%s3326_s23 + $0x460] sm:$0xf]  ;;  %v2458_v42 = vmax.bf16 %v2456_v24, %v2454_v34  ;;  %v2491_v43 = vsel %vm1598_vm0, %v1463_v29, 4286644096 }
 0x100   : > { %v1559_v45 = vld [vmem:[%s3326_s23 + $0x3e4] sm:$0xf]  ;;  %v2464_v47 = vsel %vm1598_vm0, %v1526_v32, 4286644096  ;;  %v2468_v48 = vsel %vm1598_vm0, %v1558_v33, 4286644096 }
 0x101   : > { %v2927_v44 = vcombine.low %v2404_v27, %v2439_v36  ;;  %v1591_v46 = vld [vmem:[%s3326_s23 + $0x464] sm:$0xf]  ;;  %v2489_v49 = vmax.bf16 %v2487_v35, %v2485_v39  ;;  %v1336_v50 = vld [vmem:[%s3326_s23 + $0x68] sm:$0xf]  ;;  %v2462_v51 = vmax.bf16 %v2460_v38, %v2458_v42  ;;  %v2495_v52 = vsel %vm1598_vm0, %v1495_v37, 4286644096 }
 0x102   : > { %v1368_v53 = vld [vmem:[%s3326_s23 + $0xe8] sm:$0xf]  ;;  %v2472_v55 = vsel %vm1598_vm0, %v1590_v41, 4286644096  ;;  %v2499_v57 = vsel %vm1598_vm0, %v1527_v40, 4286644096 }
 0x103   : > { %v1400_v54 = vld [vmem:[%s3326_s23 + $0x168] sm:$0xf]  ;;  %2928 = vst [vmem:[%s3397_s28 + $0x58] sm:$0xff] %v2927_v44   ;;  %v2493_v56 = vmax.bf16 %v2491_v43, %v2489_v49  ;;  %v1337_v58 = vld [vmem:[%s3326_s23 + $0x6c] sm:$0xf]  ;;  %v2466_v59 = vmax.bf16 %v2464_v47, %v2462_v51 }
 0x104   : > { %v1369_v60 = vld [vmem:[%s3326_s23 + $0xec] sm:$0xf]  ;;  %v1432_v61 = vld [vmem:[%s3326_s23 + $0x1e8] sm:$0xf]  ;;  %v2511_v62 = vsel %vm1598_vm0, %v1336_v50, 4286644096 }
 0x105   : > { %v2497_v63 = vmax.bf16 %v2495_v52, %v2493_v56  ;;  %v1464_v0 = vld [vmem:[%s3326_s23 + $0x268] sm:$0xf]  ;;  %v2514_v1 = vsel %vm1598_vm0, %v1368_v53, 4286644096  ;;  %v2518_v2 = vsel %vm1598_vm0, %v1400_v54, 4286644096  ;;  %v2470_v3 = vmax.bf16 %v2468_v48, %v2466_v59 }
 0x106   : > { %v2503_v4 = vsel %vm1598_vm0, %v1559_v45, 4286644096  ;;  %v2507_v5 = vsel %vm1598_vm0, %v1591_v46, 4286644096  ;;  %v1401_v6 = vld [vmem:[%s3326_s23 + $0x16c] sm:$0xf]  ;;  %v2516_v7 = vmax.bf16 %v2514_v1, %v2511_v62 }
 0x107   : > { %v2501_v8 = vmax.bf16 %v2499_v57, %v2497_v63  ;;  %v1433_v9 = vld [vmem:[%s3326_s23 + $0x1ec] sm:$0xf]  ;;  %v1496_v10 = vld [vmem:[%s3326_s23 + $0x2e8] sm:$0xf]  ;;  %v2522_v11 = vsel %vm1598_vm0, %v1432_v61, 4286644096  ;;  %v2474_v16 = vmax.bf16 %v2472_v55, %v2470_v3 }
 0x108   : > { %v2520_v12 = vmax.bf16 %v2518_v2, %v2516_v7  ;;  %v2526_v13 = vsel %vm1598_vm0, %v1464_v0, 4286644096  ;;  %v2546_v14 = vsel %vm1598_vm0, %v1337_v58, 4286644096  ;;  %v2549_v15 = vsel %vm1598_vm0, %v1369_v60, 4286644096 }
 0x109   : > { %v2505_v17 = vmax.bf16 %v2503_v4, %v2501_v8  ;;  %v1465_v18 = vld [vmem:[%s3326_s23 + $0x26c] sm:$0xf]  ;;  %v2551_v19 = vmax.bf16 %v2549_v15, %v2546_v14  ;;  %v2553_v20 = vsel %vm1598_vm0, %v1401_v6, 4286644096  ;;  %v1528_v21 = vld [vmem:[%s3326_s23 + $0x368] sm:$0xf] }
 0x10a   : > { %v1560_v22 = vld [vmem:[%s3326_s23 + $0x3e8] sm:$0xf]  ;;  %v2524_v23 = vmax.bf16 %v2522_v11, %v2520_v12  ;;  %v2557_v24 = vsel %vm1598_vm0, %v1433_v9, 4286644096  ;;  %v1497_v26 = vld [vmem:[%s3326_s23 + $0x2ec] sm:$0xf] }
 0x10b   : > { %v2509_v25 = vmax.bf16 %v2507_v5, %v2505_v17  ;;  %v2530_v27 = vsel %vm1598_vm0, %v1496_v10, 4286644096  ;;  %v2555_v28 = vmax.bf16 %v2553_v20, %v2551_v19  ;;  %v1529_v29 = vld [vmem:[%s3326_s23 + $0x36c] sm:$0xf]  ;;  %v1592_v30 = vld [vmem:[%s3326_s23 + $0x468] sm:$0xf] }
 0x10c   : > { %v2528_v31 = vmax.bf16 %v2526_v13, %v2524_v23  ;;  %v2561_v32 = vsel %vm1598_vm0, %v1465_v18, 4286644096  ;;  %v1561_v34 = vld [vmem:[%s3326_s23 + $0x3ec] sm:$0xf]  ;;  %v2534_v36 = vsel %vm1598_vm0, %v1528_v21, 4286644096 }
 0x10d   : > { %v2929_v33 = vcombine.low %v2474_v16, %v2509_v25  ;;  %v1593_v35 = vld [vmem:[%s3326_s23 + $0x46c] sm:$0xf]  ;;  %v2538_v37 = vsel %vm1598_vm0, %v1560_v22, 4286644096  ;;  %v2559_v38 = vmax.bf16 %v2557_v24, %v2555_v28  ;;  %v1338_v39 = vld [vmem:[%s3326_s23 + $0x70] sm:$0xf] }
 0x10e   : > { %v2532_v40 = vmax.bf16 %v2530_v27, %v2528_v31  ;;  %v2565_v41 = vsel %vm1598_vm0, %v1497_v26, 4286644096  ;;  %v1370_v42 = vld [vmem:[%s3326_s23 + $0xf0] sm:$0xf]  ;;  %v2542_v44 = vsel %vm1598_vm0, %v1592_v30, 4286644096 }
 0x10f   : > { %v1402_v43 = vld [vmem:[%s3326_s23 + $0x170] sm:$0xf]  ;;  %2930 = vst [vmem:[%s3397_s28 + $0x60] sm:$0xff] %v2929_v33   ;;  %v2563_v45 = vmax.bf16 %v2561_v32, %v2559_v38  ;;  %v2569_v46 = vsel %vm1598_vm0, %v1529_v29, 4286644096 }
 0x110   : > { %v1339_v47 = vld [vmem:[%s3326_s23 + $0x74] sm:$0xf]  ;;  %v2536_v48 = vmax.bf16 %v2534_v36, %v2532_v40  ;;  %v1434_v50 = vld [vmem:[%s3326_s23 + $0x1f0] sm:$0xf]  ;;  %v2581_v51 = vsel %vm1598_vm0, %v1338_v39, 4286644096 }
 0x111   : > { %v1371_v49 = vld [vmem:[%s3326_s23 + $0xf4] sm:$0xf]  ;;  %v2567_v52 = vmax.bf16 %v2565_v41, %v2563_v45  ;;  %v1466_v53 = vld [vmem:[%s3326_s23 + $0x270] sm:$0xf]  ;;  %v2584_v54 = vsel %vm1598_vm0, %v1370_v42, 4286644096 }
 0x112   : > { %v2588_v55 = vsel %vm1598_vm0, %v1402_v43, 4286644096  ;;  %v2540_v56 = vmax.bf16 %v2538_v37, %v2536_v48  ;;  %v2573_v57 = vsel %vm1598_vm0, %v1561_v34, 4286644096  ;;  %v2577_v58 = vsel %vm1598_vm0, %v1593_v35, 4286644096 }
 0x113   : > { %v1403_v59 = vld [vmem:[%s3326_s23 + $0x174] sm:$0xf]  ;;  %v2586_v60 = vmax.bf16 %v2584_v54, %v2581_v51  ;;  %v2571_v61 = vmax.bf16 %v2569_v46, %v2567_v52  ;;  %v1498_v63 = vld [vmem:[%s3326_s23 + $0x2f0] sm:$0xf]  ;;  %v2592_v0 = vsel %vm1598_vm0, %v1434_v50, 4286644096 }
 0x114   : > { %v1435_v62 = vld [vmem:[%s3326_s23 + $0x1f4] sm:$0xf]  ;;  %v2596_v2 = vsel %vm1598_vm0, %v1466_v53, 4286644096  ;;  %v2616_v3 = vsel %vm1598_vm0, %v1339_v47, 4286644096  ;;  %v2544_v5 = vmax.bf16 %v2542_v44, %v2540_v56 }
 0x115   : > { %v2590_v1 = vmax.bf16 %v2588_v55, %v2586_v60  ;;  %v2619_v4 = vsel %vm1598_vm0, %v1371_v49, 4286644096  ;;  %v2575_v6 = vmax.bf16 %v2573_v57, %v2571_v61  ;;  %v1467_v7 = vld [vmem:[%s3326_s23 + $0x274] sm:$0xf]  ;;  %v2623_v9 = vsel %vm1598_vm0, %v1403_v59, 4286644096 }
 0x116   : > { %v2621_v8 = vmax.bf16 %v2619_v4, %v2616_v3  ;;  %v1530_v10 = vld [vmem:[%s3326_s23 + $0x370] sm:$0xf]  ;;  %v2627_v13 = vsel %vm1598_vm0, %v1435_v62, 4286644096  ;;  %v1499_v15 = vld [vmem:[%s3326_s23 + $0x2f4] sm:$0xf] }
 0x117   : > { %v1562_v11 = vld [vmem:[%s3326_s23 + $0x3f0] sm:$0xf]  ;;  %v2594_v12 = vmax.bf16 %v2592_v0, %v2590_v1  ;;  %v2579_v14 = vmax.bf16 %v2577_v58, %v2575_v6  ;;  %v2600_v16 = vsel %vm1598_vm0, %v1498_v63, 4286644096  ;;  %v1531_v18 = vld [vmem:[%s3326_s23 + $0x374] sm:$0xf] }
 0x118   : > { %v2625_v17 = vmax.bf16 %v2623_v9, %v2621_v8  ;;  %v1594_v19 = vld [vmem:[%s3326_s23 + $0x470] sm:$0xf]  ;;  %v2631_v21 = vsel %vm1598_vm0, %v1467_v7, 4286644096  ;;  %v1563_v23 = vld [vmem:[%s3326_s23 + $0x3f4] sm:$0xf] }
 0x119   : > { %v2598_v20 = vmax.bf16 %v2596_v2, %v2594_v12  ;;  %v2931_v22 = vcombine.low %v2544_v5, %v2579_v14  ;;  %v1595_v24 = vld [vmem:[%s3326_s23 + $0x474] sm:$0xf]  ;;  %v2604_v25 = vsel %vm1598_vm0, %v1530_v10, 4286644096  ;;  %v2608_v26 = vsel %vm1598_vm0, %v1562_v11, 4286644096 }
 0x11a   : > { %v2629_v27 = vmax.bf16 %v2627_v13, %v2625_v17  ;;  %v1340_v28 = vld [vmem:[%s3326_s23 + $0x78] sm:$0xf]  ;;  %v2635_v30 = vsel %vm1598_vm0, %v1499_v15, 4286644096  ;;  %v2612_v33 = vsel %vm1598_vm0, %v1594_v19, 4286644096 }
 0x11b   : > { %v2602_v29 = vmax.bf16 %v2600_v16, %v2598_v20  ;;  %v1372_v31 = vld [vmem:[%s3326_s23 + $0xf8] sm:$0xf]  ;;  %2932 = vst [vmem:[%s3397_s28 + $0x68] sm:$0xff] %v2931_v22   ;;  %v2639_v35 = vsel %vm1598_vm0, %v1531_v18, 4286644096 }
 0x11c   : > { %v1404_v32 = vld [vmem:[%s3326_s23 + $0x178] sm:$0xf]  ;;  %v2633_v34 = vmax.bf16 %v2631_v21, %v2629_v27  ;;  %v1341_v36 = vld [vmem:[%s3326_s23 + $0x7c] sm:$0xf]  ;;  %v2651_v40 = vsel %vm1598_vm0, %v1340_v28, 4286644096 }
 0x11d   : > { %v2606_v37 = vmax.bf16 %v2604_v25, %v2602_v29  ;;  %v1373_v38 = vld [vmem:[%s3326_s23 + $0xfc] sm:$0xf]  ;;  %v1436_v39 = vld [vmem:[%s3326_s23 + $0x1f8] sm:$0xf]  ;;  %v2654_v43 = vsel %vm1598_vm0, %v1372_v31, 4286644096 }
 0x11e   : > { %v2637_v41 = vmax.bf16 %v2635_v30, %v2633_v34  ;;  %v1468_v42 = vld [vmem:[%s3326_s23 + $0x278] sm:$0xf]  ;;  %v2658_v44 = vsel %vm1598_vm0, %v1404_v32, 4286644096  ;;  %v2643_v46 = vsel %vm1598_vm0, %v1563_v23, 4286644096  ;;  %v2656_v49 = vmax.bf16 %v2654_v43, %v2651_v40 }
 0x11f   : > { %v2610_v45 = vmax.bf16 %v2608_v26, %v2606_v37  ;;  %v2647_v47 = vsel %vm1598_vm0, %v1595_v24, 4286644096  ;;  %v1405_v48 = vld [vmem:[%s3326_s23 + $0x17c] sm:$0xf]  ;;  %v1500_v52 = vld [vmem:[%s3326_s23 + $0x2f8] sm:$0xf] }
 0x120   : > { %v2641_v50 = vmax.bf16 %v2639_v35, %v2637_v41  ;;  %v1437_v51 = vld [vmem:[%s3326_s23 + $0x1fc] sm:$0xf]  ;;  %v2662_v53 = vsel %vm1598_vm0, %v1436_v39, 4286644096  ;;  %v2660_v54 = vmax.bf16 %v2658_v44, %v2656_v49  ;;  %v2666_v55 = vsel %vm1598_vm0, %v1468_v42, 4286644096 }
 0x121   : > { %v2686_v56 = vsel %vm1598_vm0, %v1341_v36, 4286644096  ;;  %v2689_v57 = vsel %vm1598_vm0, %v1373_v38, 4286644096  ;;  %v2614_v58 = vmax.bf16 %v2612_v33, %v2610_v45  ;;  %v1469_v60 = vld [vmem:[%s3326_s23 + $0x27c] sm:$0xf] }
 0x122   : > { %v2645_v59 = vmax.bf16 %v2643_v46, %v2641_v50  ;;  %v2691_v61 = vmax.bf16 %v2689_v57, %v2686_v56  ;;  %v2693_v62 = vsel %vm1598_vm0, %v1405_v48, 4286644096  ;;  %v1532_v63 = vld [vmem:[%s3326_s23 + $0x378] sm:$0xf]  ;;  %v2664_v0 = vmax.bf16 %v2662_v53, %v2660_v54  ;;  %v1501_v3 = vld [vmem:[%s3326_s23 + $0x2fc] sm:$0xf] }
 0x123   : > { %v2697_v1 = vsel %vm1598_vm0, %v1437_v51, 4286644096  ;;  %v2670_v4 = vsel %vm1598_vm0, %v1500_v52, 4286644096  ;;  %v1564_v6 = vld [vmem:[%s3326_s23 + $0x3f8] sm:$0xf] }
 0x124   : > { %v2649_v2 = vmax.bf16 %v2647_v47, %v2645_v59  ;;  %v2695_v5 = vmax.bf16 %v2693_v62, %v2691_v61  ;;  %v2668_v7 = vmax.bf16 %v2666_v55, %v2664_v0  ;;  %v2701_v8 = vsel %vm1598_vm0, %v1469_v60, 4286644096  ;;  %v1533_v10 = vld [vmem:[%s3326_s23 + $0x37c] sm:$0xf]  ;;  %v1596_v16 = vld [vmem:[%s3326_s23 + $0x478] sm:$0xf] }
 0x125   : > { %v2674_v11 = vsel %vm1598_vm0, %v1532_v63, 4286644096  ;;  %v2705_v14 = vsel %vm1598_vm0, %v1501_v3, 4286644096  ;;  %v1565_v15 = vld [vmem:[%s3326_s23 + $0x3fc] sm:$0xf] }
 0x126   : > { %v2933_v9 = vcombine.low %v2614_v58, %v2649_v2  ;;  %v2699_v12 = vmax.bf16 %v2697_v1, %v2695_v5  ;;  %v2672_v13 = vmax.bf16 %v2670_v4, %v2668_v7  ;;  %v2678_v17 = vsel %vm1598_vm0, %v1564_v6, 4286644096  ;;  %v1597_v21 = vld [vmem:[%s3326_s23 + $0x47c] sm:$0xf] }
 0x127   : > { %v2709_v20 = vsel %vm1598_vm0, %v1533_v10, 4286644096  ;;  %v2682_v24 = vsel %vm1598_vm0, %v1596_v16, 4286644096  ;;  %v2713_v25 = vsel %vm1598_vm0, %v1565_v15, 4286644096 }
 0x128   : > { %2934 = vst [vmem:[%s3397_s28 + $0x70] sm:$0xff] %v2933_v9   ;;  %v2703_v18 = vmax.bf16 %v2701_v8, %v2699_v12  ;;  %v2676_v19 = vmax.bf16 %v2674_v11, %v2672_v13  ;;  %v2717_v27 = vsel %vm1598_vm0, %v1597_v21, 4286644096 }
 0x12a   : > { %v2707_v22 = vmax.bf16 %v2705_v14, %v2703_v18  ;;  %v2680_v23 = vmax.bf16 %v2678_v17, %v2676_v19 }
 0x12c   : > { %v2711_v26 = vmax.bf16 %v2709_v20, %v2707_v22  ;;  %v2684_v28 = vmax.bf16 %v2682_v24, %v2680_v23 }
 0x12e   : > { %v2715_v29 = vmax.bf16 %v2713_v25, %v2711_v26 }
 0x130   : > { %v2719_v30 = vmax.bf16 %v2717_v27, %v2715_v29 }
 0x132   : > { %v2935_v31 = vcombine.low %v2684_v28, %v2719_v30 }
 0x134   : > { %2936 = vst [vmem:[%s3397_s28 + $0x78] sm:$0xff] %v2935_v31  }
 0x135 PF: > { %p8_p9 = scmp.ge.s32.totalorder %s3014_s10, 4   ;;  %s3943_s6 = smov %s2981_s7 }
 0x136   : > { %s3944_s7 = smov %s3023_s13  ;;  %s3945_s8 = smov %s3014_s10 }
 0x137   :  { %10 = sbr.rel (!%p8_p9) target bundleno = 2 (0x2), region = 100 }

// kernel: resnet_wsl_forward.24
= control target key start
LH: loop header
LB: loop body
LE: loop exit
PB: predicated region body
PF: predicated region fallthrough
CT: control target
= control target key end

     0   :  { %s1126_s12 = smov 0   ;;  %s1247_s0 = inlined_call_operand.vmem [shape: bf16[512,128], index: 0, kind: input, shape index: {}]   ;;  %s1248_s1 = inlined_call_operand.vmem [shape: bf16[128,128], index: 1, kind: input, shape index: {}]   ;;  %s1249_s2 = inlined_call_operand.vmem [shape: f32[1,128], index: 2, kind: input, shape index: {}]   ;;  %s1250_s3 = inlined_call_operand.vmem [shape: bf16[512,128], index: 3, kind: output, shape index: {}]  }
   0x1 LB: > { %s783_s13 = sadd.s32 4294967295, %s1104_s12   ;;  %p787_p0 = scmp.ge.s32.totalorder %s1104_s12, 1  ;;  %s1104_s12 = sphi %s1126_s12, %s13_s12  }
   0x2   : > { %p138_p1 = scmp.lt.s32.totalorder %s1104_s12, 3 }
   0x4   : > { %p139_p2 = pnand %p787_p0, %p138_p1 }
   0x5   : > { %v1074_v0 = vld [vmem:[%s1248_s1] sm:$0xff] (!%p139_p2)   ;;  %s788_s16 = sshll.u32 (!%p139_p2), %s783_s13, 5  ;;  %v1075_v1 = vld [vmem:[%s1248_s1 + $0x8] sm:$0xff] (!%p139_p2)   ;;  %v1076_v2 = vld [vmem:[%s1248_s1 + $0x10] sm:$0xff] (!%p139_p2)  }
   0x6   : > { %142 = sbr.rel (%p139_p2) target bundleno = 284 (0x11c), region = 32  ;;  %p163_p3 = scmp.lt.s32.totalorder (!%p139_p2), %s788_s16, 63  ;;  %1002 = vmatprep.subr.bf16.mxu0 (!%p139_p2), %v1074_v0  ;;  %1050 = vmatprep.subr.bf16.mxu1 (!%p139_p2), %v1074_v0  ;;  %v1077_v3 = vld [vmem:[%s1248_s1 + $0x18] sm:$0xff] (!%p139_p2)   ;;  %v1078_v6 = vld [vmem:[%s1248_s1 + $0x20] sm:$0xff] (!%p139_p2)   ;;  %v1079_v7 = vld [vmem:[%s1248_s1 + $0x28] sm:$0xff] (!%p139_p2)  }
   0x7   : > { %1003 = vmatpush3.bf16.msra.mxu0 (!%p139_p2), %v1074_v0  ;;  %1058 = vmatpush3.bf16.msra.mxu1 (!%p139_p2), %v1074_v0  ;;  %v1080_v8 = vld [vmem:[%s1248_s1 + $0x30] sm:$0xff] (!%p139_p2)   ;;  %v1081_v9 = vld [vmem:[%s1248_s1 + $0x38] sm:$0xff] (!%p139_p2)   ;;  %v1187_v24 = vld [vmem:[%s1249_s2] ss:$0 sm:$0xff] (!%p139_p2) }
   0x8   : > { %1004 = vmatprep.subr.bf16.mxu0 (!%p139_p2), %v1075_v1  ;;  %1051 = vmatprep.subr.bf16.mxu1 (!%p139_p2), %v1075_v1 }
   0xb   : > { %1005 = vmatpush3.bf16.msra.mxu0 (!%p139_p2), %v1075_v1  ;;  %1059 = vmatpush3.bf16.msra.mxu1 (!%p139_p2), %v1075_v1 }
   0xc   : > { %1006 = vmatprep.subr.bf16.mxu0 (!%p139_p2), %v1076_v2  ;;  %1052 = vmatprep.subr.bf16.mxu1 (!%p139_p2), %v1076_v2 }
   0xd   : > { %s1252_s16 = smov (!%p163_p3, %s788_s16), 63 }
   0xe   : > { %s789_s21 = sshll.u32 %s1252_s16, 2 }
   0xf   : > { %s1151_s24 = scalar_lea.vmem %s1247_s0, %s789_s21  ;;  %1007 = vmatpush3.bf16.msra.mxu0 %v1076_v2  ;;  %1060 = vmatpush3.bf16.msra.mxu1 %v1076_v2  ;;  %s1202_s13 = scalar_lea.vmem %s1250_s3, %s789_s21 }
  0x10   : > { %v1082_v4 = vld [vmem:[%s1151_s24] sm:$0xff]   ;;  %1008 = vmatprep.subr.bf16.mxu0 %v1077_v3  ;;  %1053 = vmatprep.subr.bf16.mxu1 %v1077_v3  ;;  %v1084_v10 = vld [vmem:[%s1151_s24 + $0x8] sm:$0xff]   ;;  %v1086_v12 = vld [vmem:[%s1151_s24 + $0x10] sm:$0xff]  }
  0x11   : > { %v1083_v5 = vld [vmem:[%s1151_s24 + $0x40] sm:$0xff]   ;;  %1018 = vmatprep.mubr.bf16.mxu0 %v1082_v4  ;;  %v1085_v11 = vld [vmem:[%s1151_s24 + $0x48] sm:$0xff]   ;;  %v1087_v13 = vld [vmem:[%s1151_s24 + $0x50] sm:$0xff]  }
  0x12   : > { %1034 = vmatprep.mubr.bf16.mxu1 %v1083_v5  ;;  %v1088_v14 = vld [vmem:[%s1151_s24 + $0x18] sm:$0xff]   ;;  %v1090_v16 = vld [vmem:[%s1151_s24 + $0x20] sm:$0xff]   ;;  %v1092_v18 = vld [vmem:[%s1151_s24 + $0x28] sm:$0xff]  }
  0x13   : > { %1009 = vmatpush3.bf16.msra.mxu0 %v1077_v3  ;;  %1061 = vmatpush3.bf16.msra.mxu1 %v1077_v3  ;;  %v1089_v15 = vld [vmem:[%s1151_s24 + $0x58] sm:$0xff]   ;;  %v1091_v17 = vld [vmem:[%s1151_s24 + $0x60] sm:$0xff]   ;;  %v1093_v19 = vld [vmem:[%s1151_s24 + $0x68] sm:$0xff]  }
  0x14   : > { %1010 = vmatprep.subr.bf16.mxu0 %v1078_v6  ;;  %1054 = vmatprep.subr.bf16.mxu1 %v1078_v6  ;;  %v1094_v20 = vld [vmem:[%s1151_s24 + $0x30] sm:$0xff]   ;;  %v1096_v22 = vld [vmem:[%s1151_s24 + $0x38] sm:$0xff]  }
  0x15   : > { %v1095_v21 = vld [vmem:[%s1151_s24 + $0x70] sm:$0xff]   ;;  %v1097_v23 = vld [vmem:[%s1151_s24 + $0x78] sm:$0xff]  }
  0x17   : > { %1011 = vmatpush3.bf16.msra.mxu0 %v1078_v6  ;;  %1062 = vmatpush3.bf16.msra.mxu1 %v1078_v6 }
  0x18   : > { %1012 = vmatprep.subr.bf16.mxu0 %v1079_v7  ;;  %1055 = vmatprep.subr.bf16.mxu1 %v1079_v7 }
  0x1b   : > { %1013 = vmatpush3.bf16.msra.mxu0 %v1079_v7  ;;  %1063 = vmatpush3.bf16.msra.mxu1 %v1079_v7 }
  0x1c   : > { %1014 = vmatprep.subr.bf16.mxu0 %v1080_v8  ;;  %1056 = vmatprep.subr.bf16.mxu1 %v1080_v8 }
  0x1f   : > { %1015 = vmatpush3.bf16.msra.mxu0 %v1080_v8  ;;  %1064 = vmatpush3.bf16.msra.mxu1 %v1080_v8 }
  0x20   : > { %1016 = vmatprep.subr.bf16.mxu0 %v1081_v9  ;;  %1057 = vmatprep.subr.bf16.mxu1 %v1081_v9 }
  0x23   : > { %1017 = vmatpush3.bf16.msra.mxu0 %v1081_v9  ;;  %1065 = vmatpush3.bf16.msra.mxu1 %v1081_v9 }
  0x26   : > { %1019 = vmatmul.mubr.bf16.vlgmr.msra.gmra.mrb[0].mxu0 %v1084_v10  ;;  %1035 = vmatmul.mubr.bf16.vlgmr.msra.gmra.mrb[0].mxu1 %v1085_v11 }
  0x27   : > { %1022 = vmatprep.mubr.bf16.mxu0 %v1086_v12  ;;  %1038 = vmatprep.mubr.bf16.mxu1 %v1087_v13 }
  0x2e   : > { %1023 = vmatmul.mubr.bf16.gmra.mrb[4].mxu0 %v1088_v14  ;;  %1039 = vmatmul.mubr.bf16.gmra.mrb[4].mxu1 %v1089_v15 }
  0x2f   : > { %1026 = vmatprep.mubr.bf16.mxu0 %v1090_v16  ;;  %1042 = vmatprep.mubr.bf16.mxu1 %v1091_v17 }
  0x36   : > { %1027 = vmatmul.mubr.bf16.gmra.mrb[8].mxu0 %v1092_v18  ;;  %1043 = vmatmul.mubr.bf16.gmra.mrb[8].mxu1 %v1093_v19 }
  0x37   : > { %1030 = vmatprep.mubr.bf16.mxu0 %v1094_v20  ;;  %1046 = vmatprep.mubr.bf16.mxu1 %v1095_v21 }
  0x3e   : > { %1031 = vmatmul.mubr.bf16.gmra.mrb[12].mxu0 %v1096_v22  ;;  %1047 = vmatmul.mubr.bf16.gmra.mrb[12].mxu1 %v1097_v23 }
  0xf9   : > { %v1020_v25 = vpop.f32.mrb[0].mxu0  ;;  %v1036_v26 = vpop.f32.mrb[0].mxu1 }
  0xfa   : > { %v417_v27 = vadd.f32 %v1020_v25, %v1187_v24  ;;  %v481_v28 = vadd.f32 %v1036_v26, %v1187_v24  ;;  %v408_v29 = vpop.f32.mrb[1].mxu0  ;;  %v472_v30 = vpop.f32.mrb[1].mxu1 }
  0xfb   : > { %v409_v31 = vadd.f32 %v1187_v24, %v408_v29  ;;  %v473_v32 = vadd.f32 %v1187_v24, %v472_v30  ;;  %v1021_v33 = vpop.f32.mrb[2].mxu0  ;;  %v1037_v34 = vpop.f32.mrb[2].mxu1 }
  0xfc   : > { %v420_v35 = vadd.f32 %v1021_v33, %v1187_v24  ;;  %v484_v36 = vadd.f32 %v1037_v34, %v1187_v24  ;;  %v411_v37 = vpop.f32.mrb[3].mxu0  ;;  %v475_v38 = vpop.f32.mrb[3].mxu1  ;;  %v537_v41 = vmax.f32 %v417_v27, 0.0  ;;  %v553_v42 = vmax.f32 %v481_v28, 0.0 }
  0xfd   : > { %v412_v39 = vadd.f32 %v1187_v24, %v411_v37  ;;  %v476_v40 = vadd.f32 %v1187_v24, %v475_v38  ;;  %v535_v45 = vmax.f32 %v409_v31, 0.0  ;;  %v551_v46 = vmax.f32 %v473_v32, 0.0 }
  0xfe   : > { %v538_v43 = vmax.f32 %v420_v35, 0.0  ;;  %v554_v44 = vmax.f32 %v484_v36, 0.0 }
  0xff   : > { %v536_v47 = vmax.f32 %v412_v39, 0.0  ;;  %v552_v48 = vmax.f32 %v476_v40, 0.0 }
 0x100   : > { %v891_v49 = vpack.c.bf16 %v538_v43, %v537_v41  ;;  %v931_v50 = vpack.c.bf16 %v554_v44, %v553_v42 }
 0x101   : > { %v886_v51 = vpack.c.bf16 %v536_v47, %v535_v45  ;;  %v926_v52 = vpack.c.bf16 %v552_v48, %v551_v46  ;;  %v1024_v53 = vpop.f32.mrb[4].mxu0  ;;  %v1040_v54 = vpop.f32.mrb[4].mxu1 }
 0x102   : > { %963 = vst [vmem:[%s1202_s13 + $0x8] sm:$0xff] %v891_v49   ;;  %971 = vst [vmem:[%s1202_s13 + $0x48] sm:$0xff] %v931_v50   ;;  %v433_v55 = vadd.f32 %v1024_v53, %v1187_v24  ;;  %v497_v56 = vadd.f32 %v1040_v54, %v1187_v24  ;;  %v424_v57 = vpop.f32.mrb[5].mxu0  ;;  %v488_v58 = vpop.f32.mrb[5].mxu1 }
 0x103   : > { %887 = vst [vmem:[%s1202_s13] sm:$0xff] %v886_v51   ;;  %970 = vst [vmem:[%s1202_s13 + $0x40] sm:$0xff] %v926_v52   ;;  %v425_v59 = vadd.f32 %v1187_v24, %v424_v57  ;;  %v489_v60 = vadd.f32 %v1187_v24, %v488_v58  ;;  %v1025_v61 = vpop.f32.mrb[6].mxu0  ;;  %v1041_v62 = vpop.f32.mrb[6].mxu1 }
 0x104   : > { %v436_v63 = vadd.f32 %v1025_v61, %v1187_v24  ;;  %v500_v0 = vadd.f32 %v1041_v62, %v1187_v24  ;;  %v427_v1 = vpop.f32.mrb[7].mxu0  ;;  %v491_v2 = vpop.f32.mrb[7].mxu1  ;;  %v541_v5 = vmax.f32 %v433_v55, 0.0  ;;  %v557_v6 = vmax.f32 %v497_v56, 0.0 }
 0x105   : > { %v428_v3 = vadd.f32 %v1187_v24, %v427_v1  ;;  %v492_v4 = vadd.f32 %v1187_v24, %v491_v2  ;;  %v539_v9 = vmax.f32 %v425_v59, 0.0  ;;  %v555_v10 = vmax.f32 %v489_v60, 0.0 }
 0x106   : > { %v542_v7 = vmax.f32 %v436_v63, 0.0  ;;  %v558_v8 = vmax.f32 %v500_v0, 0.0 }
 0x107   : > { %v540_v11 = vmax.f32 %v428_v3, 0.0  ;;  %v556_v12 = vmax.f32 %v492_v4, 0.0 }
 0x108   : > { %v901_v13 = vpack.c.bf16 %v542_v7, %v541_v5  ;;  %v941_v14 = vpack.c.bf16 %v558_v8, %v557_v6 }
 0x109   : > { %v896_v15 = vpack.c.bf16 %v540_v11, %v539_v9  ;;  %v936_v16 = vpack.c.bf16 %v556_v12, %v555_v10  ;;  %v1028_v17 = vpop.f32.mrb[8].mxu0  ;;  %v1044_v18 = vpop.f32.mrb[8].mxu1 }
 0x10a   : > { %965 = vst [vmem:[%s1202_s13 + $0x18] sm:$0xff] %v901_v13   ;;  %973 = vst [vmem:[%s1202_s13 + $0x58] sm:$0xff] %v941_v14   ;;  %v449_v19 = vadd.f32 %v1028_v17, %v1187_v24  ;;  %v513_v20 = vadd.f32 %v1044_v18, %v1187_v24  ;;  %v440_v21 = vpop.f32.mrb[9].mxu0  ;;  %v504_v22 = vpop.f32.mrb[9].mxu1 }
 0x10b   : > { %964 = vst [vmem:[%s1202_s13 + $0x10] sm:$0xff] %v896_v15   ;;  %972 = vst [vmem:[%s1202_s13 + $0x50] sm:$0xff] %v936_v16   ;;  %v441_v23 = vadd.f32 %v1187_v24, %v440_v21  ;;  %v505_v25 = vadd.f32 %v1187_v24, %v504_v22  ;;  %v1029_v26 = vpop.f32.mrb[10].mxu0  ;;  %v1045_v27 = vpop.f32.mrb[10].mxu1 }
 0x10c   : > { %v452_v28 = vadd.f32 %v1029_v26, %v1187_v24  ;;  %v516_v29 = vadd.f32 %v1045_v27, %v1187_v24  ;;  %v443_v30 = vpop.f32.mrb[11].mxu0  ;;  %v507_v31 = vpop.f32.mrb[11].mxu1  ;;  %v545_v34 = vmax.f32 %v449_v19, 0.0  ;;  %v561_v35 = vmax.f32 %v513_v20, 0.0 }
 0x10d   : > { %v444_v32 = vadd.f32 %v1187_v24, %v443_v30  ;;  %v508_v33 = vadd.f32 %v1187_v24, %v507_v31  ;;  %v543_v38 = vmax.f32 %v441_v23, 0.0  ;;  %v559_v39 = vmax.f32 %v505_v25, 0.0 }
 0x10e   : > { %v546_v36 = vmax.f32 %v452_v28, 0.0  ;;  %v562_v37 = vmax.f32 %v516_v29, 0.0 }
 0x10f   : > { %v544_v40 = vmax.f32 %v444_v32, 0.0  ;;  %v560_v41 = vmax.f32 %v508_v33, 0.0 }
 0x110   : > { %v911_v42 = vpack.c.bf16 %v546_v36, %v545_v34  ;;  %v951_v43 = vpack.c.bf16 %v562_v37, %v561_v35 }
 0x111   : > { %v906_v44 = vpack.c.bf16 %v544_v40, %v543_v38  ;;  %v946_v45 = vpack.c.bf16 %v560_v41, %v559_v39  ;;  %v1032_v46 = vpop.f32.mrb[12].mxu0  ;;  %v1048_v47 = vpop.f32.mrb[12].mxu1 }
 0x112   : > { %967 = vst [vmem:[%s1202_s13 + $0x28] sm:$0xff] %v911_v42   ;;  %975 = vst [vmem:[%s1202_s13 + $0x68] sm:$0xff] %v951_v43   ;;  %v465_v48 = vadd.f32 %v1032_v46, %v1187_v24  ;;  %v529_v49 = vadd.f32 %v1048_v47, %v1187_v24  ;;  %v456_v50 = vpop.f32.mrb[13].mxu0  ;;  %v520_v51 = vpop.f32.mrb[13].mxu1 }
 0x113   : > { %966 = vst [vmem:[%s1202_s13 + $0x20] sm:$0xff] %v906_v44   ;;  %974 = vst [vmem:[%s1202_s13 + $0x60] sm:$0xff] %v946_v45   ;;  %v457_v52 = vadd.f32 %v1187_v24, %v456_v50  ;;  %v521_v53 = vadd.f32 %v1187_v24, %v520_v51  ;;  %v1033_v54 = vpop.f32.mrb[14].mxu0  ;;  %v1049_v55 = vpop.f32.mrb[14].mxu1 }
 0x114   : > { %v468_v56 = vadd.f32 %v1033_v54, %v1187_v24  ;;  %v532_v57 = vadd.f32 %v1049_v55, %v1187_v24  ;;  %v459_v58 = vpop.f32.mrb[15].mxu0  ;;  %v523_v59 = vpop.f32.mrb[15].mxu1  ;;  %v549_v62 = vmax.f32 %v465_v48, 0.0  ;;  %v565_v63 = vmax.f32 %v529_v49, 0.0 }
 0x115   : > { %v460_v60 = vadd.f32 %v1187_v24, %v459_v58  ;;  %v524_v61 = vadd.f32 %v1187_v24, %v523_v59  ;;  %v547_v2 = vmax.f32 %v457_v52, 0.0  ;;  %v563_v3 = vmax.f32 %v521_v53, 0.0 }
 0x116   : > { %v550_v0 = vmax.f32 %v468_v56, 0.0  ;;  %v566_v1 = vmax.f32 %v532_v57, 0.0 }
 0x117   : > { %v548_v4 = vmax.f32 %v460_v60, 0.0  ;;  %v564_v5 = vmax.f32 %v524_v61, 0.0 }
 0x118   : > { %v921_v6 = vpack.c.bf16 %v550_v0, %v549_v62  ;;  %v961_v7 = vpack.c.bf16 %v566_v1, %v565_v63 }
 0x119   : > { %v916_v8 = vpack.c.bf16 %v548_v4, %v547_v2  ;;  %v956_v9 = vpack.c.bf16 %v564_v5, %v563_v3 }
 0x11a   : > { %969 = vst [vmem:[%s1202_s13 + $0x38] sm:$0xff] %v921_v6   ;;  %977 = vst [vmem:[%s1202_s13 + $0x78] sm:$0xff] %v961_v7  }
 0x11b   : > { %968 = vst [vmem:[%s1202_s13 + $0x30] sm:$0xff] %v916_v8   ;;  %976 = vst [vmem:[%s1202_s13 + $0x70] sm:$0xff] %v956_v9  }
 0x11c PF: > { %s13_s12 = sadd.s32 1, %s1104_s12  }
 0x11d   : > { %p10_p4 = scmp.ge.s32.totalorder %s13_s12, 4  }
 0x11f   :  { %12 = sbr.rel (!%p10_p4) target bundleno = 1 (0x1), region = 62 }

// kernel: resnet_wsl_forward.25
= control target key start
LH: loop header
LB: loop body
LE: loop exit
PB: predicated region body
PF: predicated region fallthrough
CT: control target
= control target key end

     0   :  { %s1369_s15 = smov 0   ;;  %s1597_s0 = inlined_call_operand.vmem [shape: bf16[512,128], index: 0, kind: input, shape index: {}]   ;;  %s1598_s1 = inlined_call_operand.vmem [shape: bf16[128,128], index: 1, kind: input, shape index: {}]   ;;  %s1599_s2 = inlined_call_operand.vmem [shape: f32[1,128], index: 2, kind: input, shape index: {}]   ;;  %s1600_s3 = inlined_call_operand.vmem [shape: bf16[512,128], index: 3, kind: input, shape index: {}]   ;;  %s1601_s4 = inlined_call_operand.vmem [shape: bf16[512,128], index: 4, kind: output, shape index: {}]  }
   0x1 LB: > { %s940_s16 = sadd.s32 4294967295, %s1342_s15   ;;  %p944_p0 = scmp.ge.s32.totalorder %s1342_s15, 1  ;;  %s1342_s15 = sphi %s1369_s15, %s14_s15  }
   0x2   : > { %p174_p1 = scmp.lt.s32.totalorder %s1342_s15, 3 }
   0x4   : > { %p175_p2 = pnand %p944_p0, %p174_p1 }
   0x5   : > { %v1312_v0 = vld [vmem:[%s1598_s1] sm:$0xff] (!%p175_p2)   ;;  %s945_s19 = sshll.u32 (!%p175_p2), %s940_s16, 5  ;;  %v1313_v1 = vld [vmem:[%s1598_s1 + $0x8] sm:$0xff] (!%p175_p2)   ;;  %v1314_v2 = vld [vmem:[%s1598_s1 + $0x10] sm:$0xff] (!%p175_p2)  }
   0x6   : > { %178 = sbr.rel (%p175_p2) target bundleno = 287 (0x11f), region = 36  ;;  %p206_p3 = scmp.lt.s32.totalorder (!%p175_p2), %s945_s19, 63  ;;  %1240 = vmatprep.subr.bf16.mxu0 (!%p175_p2), %v1312_v0  ;;  %1288 = vmatprep.subr.bf16.mxu1 (!%p175_p2), %v1312_v0  ;;  %v1315_v3 = vld [vmem:[%s1598_s1 + $0x18] sm:$0xff] (!%p175_p2)   ;;  %v1316_v6 = vld [vmem:[%s1598_s1 + $0x20] sm:$0xff] (!%p175_p2)   ;;  %v1317_v7 = vld [vmem:[%s1598_s1 + $0x28] sm:$0xff] (!%p175_p2)  }
   0x7   : > { %1241 = vmatpush3.bf16.msra.mxu0 (!%p175_p2), %v1312_v0  ;;  %1296 = vmatpush3.bf16.msra.mxu1 (!%p175_p2), %v1312_v0  ;;  %v1318_v8 = vld [vmem:[%s1598_s1 + $0x30] sm:$0xff] (!%p175_p2)   ;;  %v1319_v9 = vld [vmem:[%s1598_s1 + $0x38] sm:$0xff] (!%p175_p2)   ;;  %v1450_v36 = vld [vmem:[%s1599_s2] ss:$0 sm:$0xff] (!%p175_p2) }
   0x8   : > { %1242 = vmatprep.subr.bf16.mxu0 (!%p175_p2), %v1313_v1  ;;  %1289 = vmatprep.subr.bf16.mxu1 (!%p175_p2), %v1313_v1 }
   0xb   : > { %1243 = vmatpush3.bf16.msra.mxu0 (!%p175_p2), %v1313_v1  ;;  %1297 = vmatpush3.bf16.msra.mxu1 (!%p175_p2), %v1313_v1 }
   0xc   : > { %1244 = vmatprep.subr.bf16.mxu0 (!%p175_p2), %v1314_v2  ;;  %1290 = vmatprep.subr.bf16.mxu1 (!%p175_p2), %v1314_v2 }
   0xd   : > { %s1603_s19 = smov (!%p206_p3, %s945_s19), 63 }
   0xe   : > { %s1386_s24 = sshll.u32 %s1603_s19, 2 }
   0xf   : > { %s1392_s27 = scalar_lea.vmem %s1597_s0, %s1386_s24  ;;  %1245 = vmatpush3.bf16.msra.mxu0 %v1314_v2  ;;  %1298 = vmatpush3.bf16.msra.mxu1 %v1314_v2  ;;  %s1429_s14 = scalar_lea.vmem %s1600_s3, %s1386_s24 }
  0x10   : > { %v1320_v4 = vld [vmem:[%s1392_s27] sm:$0xff]   ;;  %1246 = vmatprep.subr.bf16.mxu0 %v1315_v3  ;;  %1291 = vmatprep.subr.bf16.mxu1 %v1315_v3  ;;  %v1322_v10 = vld [vmem:[%s1392_s27 + $0x8] sm:$0xff]   ;;  %v1324_v12 = vld [vmem:[%s1392_s27 + $0x10] sm:$0xff]   ;;  %s1492_s20 = scalar_lea.vmem %s1601_s4, %s1386_s24 }
  0x11   : > { %v1321_v5 = vld [vmem:[%s1392_s27 + $0x40] sm:$0xff]   ;;  %1256 = vmatprep.mubr.bf16.mxu0 %v1320_v4  ;;  %v1323_v11 = vld [vmem:[%s1392_s27 + $0x48] sm:$0xff]   ;;  %v1325_v13 = vld [vmem:[%s1392_s27 + $0x50] sm:$0xff]  }
  0x12   : > { %1272 = vmatprep.mubr.bf16.mxu1 %v1321_v5  ;;  %v1326_v14 = vld [vmem:[%s1392_s27 + $0x18] sm:$0xff]   ;;  %v1328_v16 = vld [vmem:[%s1392_s27 + $0x20] sm:$0xff]   ;;  %v1330_v18 = vld [vmem:[%s1392_s27 + $0x28] sm:$0xff]  }
  0x13   : > { %1247 = vmatpush3.bf16.msra.mxu0 %v1315_v3  ;;  %1299 = vmatpush3.bf16.msra.mxu1 %v1315_v3  ;;  %v1327_v15 = vld [vmem:[%s1392_s27 + $0x58] sm:$0xff]   ;;  %v1329_v17 = vld [vmem:[%s1392_s27 + $0x60] sm:$0xff]   ;;  %v1331_v19 = vld [vmem:[%s1392_s27 + $0x68] sm:$0xff]  }
  0x14   : > { %1248 = vmatprep.subr.bf16.mxu0 %v1316_v6  ;;  %1292 = vmatprep.subr.bf16.mxu1 %v1316_v6  ;;  %v1332_v20 = vld [vmem:[%s1392_s27 + $0x30] sm:$0xff]   ;;  %v1334_v22 = vld [vmem:[%s1392_s27 + $0x38] sm:$0xff]   ;;  %v1186_v24 = vld [vmem:[%s1429_s14 + $0x8] sm:$0xff]  }
  0x15   : > { %v1333_v21 = vld [vmem:[%s1392_s27 + $0x70] sm:$0xff]   ;;  %v1335_v23 = vld [vmem:[%s1392_s27 + $0x78] sm:$0xff]   ;;  %v1194_v25 = vld [vmem:[%s1429_s14 + $0x48] sm:$0xff]   ;;  %v1048_v32 = vunpack.c.l.bf16 %v1186_v24  ;;  %v1049_v37 = vunpack.c.h.bf16 %v1186_v24 }
  0x16   : > { %v1043_v26 = vld [vmem:[%s1429_s14] sm:$0xff]   ;;  %v1436_v28 = vld [vmem:[%s1429_s14 + $0x18] sm:$0xff]   ;;  %v1442_v30 = vld [vmem:[%s1429_s14 + $0x10] sm:$0xff]   ;;  %v1080_v33 = vunpack.c.l.bf16 %v1194_v25  ;;  %v1081_v38 = vunpack.c.h.bf16 %v1194_v25 }
  0x17   : > { %1249 = vmatpush3.bf16.msra.mxu0 %v1316_v6  ;;  %1300 = vmatpush3.bf16.msra.mxu1 %v1316_v6  ;;  %v1193_v27 = vld [vmem:[%s1429_s14 + $0x40] sm:$0xff]   ;;  %v1439_v29 = vld [vmem:[%s1429_s14 + $0x58] sm:$0xff]   ;;  %v1445_v31 = vld [vmem:[%s1429_s14 + $0x50] sm:$0xff]   ;;  %v1044_v34 = vunpack.c.l.bf16 %v1043_v26  ;;  %v1045_v39 = vunpack.c.h.bf16 %v1043_v26  ;;  %v1056_v43 = vunpack.c.l.bf16 %v1436_v28  ;;  %v1052_v45 = vunpack.c.l.bf16 %v1442_v30 }
  0x18   : > { %1250 = vmatprep.subr.bf16.mxu0 %v1317_v7  ;;  %1293 = vmatprep.subr.bf16.mxu1 %v1317_v7  ;;  %v1076_v35 = vunpack.c.l.bf16 %v1193_v27  ;;  %v1077_v40 = vunpack.c.h.bf16 %v1193_v27  ;;  %v1453_v41 = vld [vmem:[%s1429_s14 + $0x28] sm:$0xff]   ;;  %v1088_v44 = vunpack.c.l.bf16 %v1439_v29  ;;  %v1084_v46 = vunpack.c.l.bf16 %v1445_v31  ;;  %v1463_v47 = vld [vmem:[%s1429_s14 + $0x20] sm:$0xff]  }
  0x19   : > { %v1456_v42 = vld [vmem:[%s1429_s14 + $0x68] sm:$0xff]   ;;  %v1466_v48 = vld [vmem:[%s1429_s14 + $0x60] sm:$0xff]   ;;  %v1057_v51 = vunpack.c.h.bf16 %v1436_v28  ;;  %v1089_v52 = vunpack.c.h.bf16 %v1439_v29  ;;  %v1053_v53 = vunpack.c.h.bf16 %v1442_v30  ;;  %v1085_v54 = vunpack.c.h.bf16 %v1445_v31 }
  0x1a   : > { %v1064_v59 = vunpack.c.l.bf16 %v1453_v41  ;;  %v1096_v60 = vunpack.c.l.bf16 %v1456_v42  ;;  %v1060_v1 = vunpack.c.l.bf16 %v1463_v47  ;;  %v1092_v2 = vunpack.c.l.bf16 %v1466_v48 }
  0x1b   : > { %1251 = vmatpush3.bf16.msra.mxu0 %v1317_v7  ;;  %1301 = vmatpush3.bf16.msra.mxu1 %v1317_v7 }
  0x1c   : > { %1252 = vmatprep.subr.bf16.mxu0 %v1318_v8  ;;  %1294 = vmatprep.subr.bf16.mxu1 %v1318_v8 }
  0x1f   : > { %1253 = vmatpush3.bf16.msra.mxu0 %v1318_v8  ;;  %1302 = vmatpush3.bf16.msra.mxu1 %v1318_v8 }
  0x20   : > { %1254 = vmatprep.subr.bf16.mxu0 %v1319_v9  ;;  %1295 = vmatprep.subr.bf16.mxu1 %v1319_v9 }
  0x23   : > { %1255 = vmatpush3.bf16.msra.mxu0 %v1319_v9  ;;  %1303 = vmatpush3.bf16.msra.mxu1 %v1319_v9 }
  0x26   : > { %1257 = vmatmul.mubr.bf16.vlgmr.msra.gmra.mrb[0].mxu0 %v1322_v10  ;;  %1273 = vmatmul.mubr.bf16.vlgmr.msra.gmra.mrb[0].mxu1 %v1323_v11 }
  0x27   : > { %1260 = vmatprep.mubr.bf16.mxu0 %v1324_v12  ;;  %1276 = vmatprep.mubr.bf16.mxu1 %v1325_v13 }
  0x2e   : > { %1261 = vmatmul.mubr.bf16.gmra.mrb[4].mxu0 %v1326_v14  ;;  %1277 = vmatmul.mubr.bf16.gmra.mrb[4].mxu1 %v1327_v15  ;;  %v1065_v15 = vunpack.c.h.bf16 %v1453_v41 }
  0x2f   : > { %1264 = vmatprep.mubr.bf16.mxu0 %v1328_v16  ;;  %1280 = vmatprep.mubr.bf16.mxu1 %v1329_v17  ;;  %v1097_v16 = vunpack.c.h.bf16 %v1456_v42 }
  0x36   : > { %1265 = vmatmul.mubr.bf16.gmra.mrb[8].mxu0 %v1330_v18  ;;  %1281 = vmatmul.mubr.bf16.gmra.mrb[8].mxu1 %v1331_v19  ;;  %v1061_v19 = vunpack.c.h.bf16 %v1463_v47 }
  0x37   : > { %1268 = vmatprep.mubr.bf16.mxu0 %v1332_v20  ;;  %1284 = vmatprep.mubr.bf16.mxu1 %v1333_v21  ;;  %v1093_v20 = vunpack.c.h.bf16 %v1466_v48 }
  0x3e   : > { %1269 = vmatmul.mubr.bf16.gmra.mrb[12].mxu0 %v1334_v22  ;;  %1285 = vmatmul.mubr.bf16.gmra.mrb[12].mxu1 %v1335_v23 }
  0xf9   : > { %v1258_v49 = vpop.f32.mrb[0].mxu0  ;;  %v1274_v50 = vpop.f32.mrb[0].mxu1 }
  0xfa   : > { %v466_v55 = vadd.f32 %v1258_v49, %v1450_v36  ;;  %v530_v56 = vadd.f32 %v1274_v50, %v1450_v36  ;;  %v457_v57 = vpop.f32.mrb[1].mxu0  ;;  %v521_v58 = vpop.f32.mrb[1].mxu1 }
  0xfb   : > { %v458_v61 = vadd.f32 %v1450_v36, %v457_v57  ;;  %v522_v62 = vadd.f32 %v1450_v36, %v521_v58  ;;  %v1259_v63 = vpop.f32.mrb[2].mxu0  ;;  %v1275_v0 = vpop.f32.mrb[2].mxu1 }
  0xfc   : > { %v650_v3 = vadd.f32 %v1048_v32, %v466_v55  ;;  %v666_v4 = vadd.f32 %v1080_v33, %v530_v56  ;;  %v469_v5 = vadd.f32 %v1259_v63, %v1450_v36  ;;  %v533_v6 = vadd.f32 %v1275_v0, %v1450_v36  ;;  %v460_v7 = vpop.f32.mrb[3].mxu0  ;;  %v524_v8 = vpop.f32.mrb[3].mxu1  ;;  %v1502_v63 = vld [vmem:[%s1429_s14 + $0x78] sm:$0xff]  }
  0xfd   : > { %v648_v9 = vadd.f32 %v1044_v34, %v458_v61  ;;  %v664_v10 = vadd.f32 %v1076_v35, %v522_v62  ;;  %v461_v11 = vadd.f32 %v1450_v36, %v460_v7  ;;  %v525_v12 = vadd.f32 %v1450_v36, %v524_v8  ;;  %v1499_v62 = vld [vmem:[%s1429_s14 + $0x38] sm:$0xff]   ;;  %v1513_v8 = vld [vmem:[%s1429_s14 + $0x30] sm:$0xff]  }
  0xfe   : > { %v651_v13 = vadd.f32 %v1049_v37, %v469_v5  ;;  %v667_v14 = vadd.f32 %v1081_v38, %v533_v6  ;;  %v682_v21 = vmax.f32 %v650_v3, 0.0  ;;  %v698_v22 = vmax.f32 %v666_v4, 0.0 }
  0xff   : > { %v649_v17 = vadd.f32 %v1045_v39, %v461_v11  ;;  %v665_v18 = vadd.f32 %v1077_v40, %v525_v12  ;;  %v680_v25 = vmax.f32 %v648_v9, 0.0  ;;  %v696_v26 = vmax.f32 %v664_v10, 0.0  ;;  %v1516_v9 = vld [vmem:[%s1429_s14 + $0x70] sm:$0xff]  }
 0x100   : > { %v683_v23 = vmax.f32 %v651_v13, 0.0  ;;  %v699_v24 = vmax.f32 %v667_v14, 0.0  ;;  %v1072_v14 = vunpack.c.l.bf16 %v1499_v62 }
 0x101   : > { %v681_v27 = vmax.f32 %v649_v17, 0.0  ;;  %v697_v32 = vmax.f32 %v665_v18, 0.0  ;;  %v1262_v33 = vpop.f32.mrb[4].mxu0  ;;  %v1278_v34 = vpop.f32.mrb[4].mxu1  ;;  %v1104_v17 = vunpack.c.l.bf16 %v1502_v63  ;;  %v1068_v18 = vunpack.c.l.bf16 %v1513_v8 }
 0x102   : > { %v1114_v35 = vpack.c.bf16 %v683_v23, %v682_v21  ;;  %v1154_v37 = vpack.c.bf16 %v699_v24, %v698_v22  ;;  %v482_v38 = vadd.f32 %v1262_v33, %v1450_v36  ;;  %v546_v39 = vadd.f32 %v1278_v34, %v1450_v36  ;;  %v473_v40 = vpop.f32.mrb[5].mxu0  ;;  %v537_v49 = vpop.f32.mrb[5].mxu1 }
 0x103   : > { %v1109_v50 = vpack.c.bf16 %v681_v27, %v680_v25  ;;  %v1149_v55 = vpack.c.bf16 %v697_v32, %v696_v26  ;;  %v474_v56 = vadd.f32 %v1450_v36, %v473_v40  ;;  %v538_v57 = vadd.f32 %v1450_v36, %v537_v49  ;;  %v1263_v58 = vpop.f32.mrb[6].mxu0  ;;  %v1279_v61 = vpop.f32.mrb[6].mxu1 }
 0x104   : > { %1201 = vst [vmem:[%s1492_s20 + $0x8] sm:$0xff] %v1114_v35   ;;  %1209 = vst [vmem:[%s1492_s20 + $0x48] sm:$0xff] %v1154_v37   ;;  %v654_v0 = vadd.f32 %v1056_v43, %v482_v38  ;;  %v670_v3 = vadd.f32 %v1088_v44, %v546_v39  ;;  %v485_v4 = vadd.f32 %v1263_v58, %v1450_v36  ;;  %v476_v6 = vpop.f32.mrb[7].mxu0  ;;  %v540_v7 = vpop.f32.mrb[7].mxu1  ;;  %v1100_v21 = vunpack.c.l.bf16 %v1516_v9 }
 0x105   : > { %v549_v5 = vadd.f32 %v1279_v61, %v1450_v36  ;;  %1110 = vst [vmem:[%s1492_s20] sm:$0xff] %v1109_v50   ;;  %1208 = vst [vmem:[%s1492_s20 + $0x40] sm:$0xff] %v1149_v55   ;;  %v652_v10 = vadd.f32 %v1052_v45, %v474_v56  ;;  %v668_v43 = vadd.f32 %v1084_v46, %v538_v57 }
 0x106   : > { %v477_v44 = vadd.f32 %v1450_v36, %v476_v6  ;;  %v541_v11 = vadd.f32 %v1450_v36, %v540_v7  ;;  %v655_v12 = vadd.f32 %v1057_v51, %v485_v4  ;;  %v686_v22 = vmax.f32 %v654_v0, 0.0 }
 0x107   : > { %v671_v13 = vadd.f32 %v1089_v52, %v549_v5  ;;  %v702_v28 = vmax.f32 %v670_v3, 0.0  ;;  %v684_v29 = vmax.f32 %v652_v10, 0.0  ;;  %v700_v52 = vmax.f32 %v668_v43, 0.0 }
 0x108   : > { %v653_v45 = vadd.f32 %v1053_v53, %v477_v44  ;;  %v669_v46 = vadd.f32 %v1085_v54, %v541_v11  ;;  %v687_v51 = vmax.f32 %v655_v12, 0.0  ;;  %v1073_v5 = vunpack.c.h.bf16 %v1499_v62 }
 0x109   : > { %v703_v23 = vmax.f32 %v671_v13, 0.0  ;;  %v1266_v26 = vpop.f32.mrb[8].mxu0  ;;  %v1282_v30 = vpop.f32.mrb[8].mxu1  ;;  %v1105_v6 = vunpack.c.h.bf16 %v1502_v63  ;;  %v1069_v7 = vunpack.c.h.bf16 %v1513_v8  ;;  %v1101_v10 = vunpack.c.h.bf16 %v1516_v9 }
 0x10a   : > { %v685_v24 = vmax.f32 %v653_v45, 0.0  ;;  %v701_v25 = vmax.f32 %v669_v46, 0.0  ;;  %v1124_v53 = vpack.c.bf16 %v687_v51, %v686_v22  ;;  %v498_v31 = vadd.f32 %v1266_v26, %v1450_v36  ;;  %v489_v32 = vpop.f32.mrb[9].mxu0  ;;  %v553_v33 = vpop.f32.mrb[9].mxu1 }
 0x10b   : > { %v1164_v27 = vpack.c.bf16 %v703_v23, %v702_v28  ;;  %v562_v54 = vadd.f32 %v1282_v30, %v1450_v36  ;;  %v490_v37 = vadd.f32 %v1450_v36, %v489_v32  ;;  %v554_v38 = vadd.f32 %v1450_v36, %v553_v33  ;;  %v1267_v39 = vpop.f32.mrb[10].mxu0  ;;  %v1283_v40 = vpop.f32.mrb[10].mxu1 }
 0x10c   : > { %v1119_v34 = vpack.c.bf16 %v685_v24, %v684_v29  ;;  %v1159_v35 = vpack.c.bf16 %v701_v25, %v700_v52  ;;  %1203 = vst [vmem:[%s1492_s20 + $0x18] sm:$0xff] %v1124_v53   ;;  %v658_v49 = vadd.f32 %v1064_v59, %v498_v31  ;;  %v501_v55 = vadd.f32 %v1267_v39, %v1450_v36  ;;  %v492_v57 = vpop.f32.mrb[11].mxu0  ;;  %v556_v58 = vpop.f32.mrb[11].mxu1 }
 0x10d   : > { %1211 = vst [vmem:[%s1492_s20 + $0x58] sm:$0xff] %v1164_v27   ;;  %v674_v50 = vadd.f32 %v1096_v60, %v562_v54  ;;  %v565_v56 = vadd.f32 %v1283_v40, %v1450_v36  ;;  %v656_v61 = vadd.f32 %v1060_v1, %v490_v37  ;;  %v672_v0 = vadd.f32 %v1092_v2, %v554_v38 }
 0x10e   : > { %1202 = vst [vmem:[%s1492_s20 + $0x10] sm:$0xff] %v1119_v34   ;;  %1210 = vst [vmem:[%s1492_s20 + $0x50] sm:$0xff] %v1159_v35   ;;  %v493_v3 = vadd.f32 %v1450_v36, %v492_v57  ;;  %v557_v59 = vadd.f32 %v1450_v36, %v556_v58  ;;  %v659_v60 = vadd.f32 %v1065_v15, %v501_v55  ;;  %v690_v43 = vmax.f32 %v658_v49, 0.0 }
 0x10f   : > { %v675_v4 = vadd.f32 %v1097_v16, %v565_v56  ;;  %v706_v41 = vmax.f32 %v674_v50, 0.0  ;;  %v688_v42 = vmax.f32 %v656_v61, 0.0  ;;  %v704_v16 = vmax.f32 %v672_v0, 0.0 }
 0x110   : > { %v657_v1 = vadd.f32 %v1061_v19, %v493_v3  ;;  %v673_v2 = vadd.f32 %v1093_v20, %v557_v59  ;;  %v691_v15 = vmax.f32 %v659_v60, 0.0 }
 0x111   : > { %v707_v44 = vmax.f32 %v675_v4, 0.0  ;;  %v1270_v13 = vpop.f32.mrb[12].mxu0  ;;  %v1286_v47 = vpop.f32.mrb[12].mxu1 }
 0x112   : > { %v689_v11 = vmax.f32 %v657_v1, 0.0  ;;  %v705_v12 = vmax.f32 %v673_v2, 0.0  ;;  %v1134_v19 = vpack.c.bf16 %v691_v15, %v690_v43  ;;  %v514_v48 = vadd.f32 %v1270_v13, %v1450_v36  ;;  %v505_v46 = vpop.f32.mrb[13].mxu0  ;;  %v569_v22 = vpop.f32.mrb[13].mxu1 }
 0x113   : > { %v1174_v45 = vpack.c.bf16 %v707_v44, %v706_v41  ;;  %v578_v20 = vadd.f32 %v1286_v47, %v1450_v36  ;;  %v506_v23 = vadd.f32 %v1450_v36, %v505_v46  ;;  %v570_v29 = vadd.f32 %v1450_v36, %v569_v22  ;;  %v1271_v52 = vpop.f32.mrb[14].mxu0  ;;  %v1287_v24 = vpop.f32.mrb[14].mxu1 }
 0x114   : > { %v1129_v28 = vpack.c.bf16 %v689_v11, %v688_v42  ;;  %v1169_v51 = vpack.c.bf16 %v705_v12, %v704_v16  ;;  %1205 = vst [vmem:[%s1492_s20 + $0x28] sm:$0xff] %v1134_v19   ;;  %v662_v25 = vadd.f32 %v1072_v14, %v514_v48  ;;  %v517_v30 = vadd.f32 %v1271_v52, %v1450_v36  ;;  %v508_v27 = vpop.f32.mrb[15].mxu0  ;;  %v572_v31 = vpop.f32.mrb[15].mxu1 }
 0x115   : > { %1213 = vst [vmem:[%s1492_s20 + $0x68] sm:$0xff] %v1174_v45   ;;  %v678_v26 = vadd.f32 %v1104_v17, %v578_v20  ;;  %v581_v53 = vadd.f32 %v1287_v24, %v1450_v36  ;;  %v660_v54 = vadd.f32 %v1068_v18, %v506_v23  ;;  %v676_v32 = vadd.f32 %v1100_v21, %v570_v29 }
 0x116   : > { %1204 = vst [vmem:[%s1492_s20 + $0x20] sm:$0xff] %v1129_v28   ;;  %1212 = vst [vmem:[%s1492_s20 + $0x60] sm:$0xff] %v1169_v51   ;;  %v509_v62 = vadd.f32 %v1450_v36, %v508_v27  ;;  %v573_v14 = vadd.f32 %v1450_v36, %v572_v31  ;;  %v663_v63 = vadd.f32 %v1073_v5, %v517_v30  ;;  %v694_v35 = vmax.f32 %v662_v25, 0.0 }
 0x117   : > { %v679_v17 = vadd.f32 %v1105_v6, %v581_v53  ;;  %v710_v37 = vmax.f32 %v678_v26, 0.0  ;;  %v692_v18 = vmax.f32 %v660_v54, 0.0  ;;  %v708_v39 = vmax.f32 %v676_v32, 0.0 }
 0x118   : > { %v661_v33 = vadd.f32 %v1069_v7, %v509_v62  ;;  %v677_v34 = vadd.f32 %v1101_v10, %v573_v14  ;;  %v695_v38 = vmax.f32 %v663_v63, 0.0 }
 0x119   : > { %v711_v8 = vmax.f32 %v679_v17, 0.0 }
 0x11a   : > { %v693_v9 = vmax.f32 %v661_v33, 0.0  ;;  %v709_v21 = vmax.f32 %v677_v34, 0.0  ;;  %v1144_v40 = vpack.c.bf16 %v695_v38, %v694_v35 }
 0x11b   : > { %v1184_v49 = vpack.c.bf16 %v711_v8, %v710_v37 }
 0x11c   : > { %v1139_v50 = vpack.c.bf16 %v693_v9, %v692_v18  ;;  %v1179_v36 = vpack.c.bf16 %v709_v21, %v708_v39  ;;  %1207 = vst [vmem:[%s1492_s20 + $0x38] sm:$0xff] %v1144_v40  }
 0x11d   : > { %1215 = vst [vmem:[%s1492_s20 + $0x78] sm:$0xff] %v1184_v49  }
 0x11e   : > { %1206 = vst [vmem:[%s1492_s20 + $0x30] sm:$0xff] %v1139_v50   ;;  %1214 = vst [vmem:[%s1492_s20 + $0x70] sm:$0xff] %v1179_v36  }
 0x11f PF: > { %s14_s15 = sadd.s32 1, %s1342_s15  }
 0x120   : > { %p11_p4 = scmp.ge.s32.totalorder %s14_s15, 4  }
 0x122   :  { %13 = sbr.rel (!%p11_p4) target bundleno = 1 (0x1), region = 69 }

// kernel: resnet_wsl_forward.28
= control target key start
LH: loop header
LB: loop body
LE: loop exit
PB: predicated region body
PF: predicated region fallthrough
CT: control target
= control target key end

     0   :  { %s602_s12 = smov 0   ;;  %s659_s0 = inlined_call_operand.vmem [shape: bf16[128,128], index: 0, kind: input, shape index: {}]   ;;  %s660_s1 = inlined_call_operand.vmem [shape: bf16[128,128], index: 1, kind: input, shape index: {}]   ;;  %s661_s2 = inlined_call_operand.vmem [shape: f32[1,128], index: 2, kind: input, shape index: {}]   ;;  %s662_s3 = inlined_call_operand.vmem [shape: bf16[128,128], index: 3, kind: output, shape index: {}]  }
   0x1 LB: > { %s439_s13 = sadd.s32 4294967295, %s580_s12   ;;  %p443_p0 = scmp.ge.s32.totalorder %s580_s12, 1  ;;  %s580_s12 = sphi %s602_s12, %s13_s12  }
   0x2   : > { %p138_p1 = scmp.lt.s32.totalorder %s580_s12, 3 }
   0x4   : > { %p139_p2 = pnand %p443_p0, %p138_p1 }
   0x5   : > { %v562_v0 = vld [vmem:[%s660_s1] sm:$0xff] (!%p139_p2)   ;;  %s444_s16 = sshll.u32 (!%p139_p2), %s439_s13, 3  ;;  %v563_v1 = vld [vmem:[%s660_s1 + $0x8] sm:$0xff] (!%p139_p2)   ;;  %v564_v2 = vld [vmem:[%s660_s1 + $0x10] sm:$0xff] (!%p139_p2)  }
   0x6   : > { %142 = sbr.rel (%p139_p2) target bundleno = 258 (0x102), region = 32  ;;  %p163_p3 = scmp.lt.s32.totalorder (!%p139_p2), %s444_s16, 15  ;;  %514 = vmatprep.subr.bf16.mxu0 (!%p139_p2), %v562_v0  ;;  %538 = vmatprep.subr.bf16.mxu1 (!%p139_p2), %v562_v0  ;;  %v565_v3 = vld [vmem:[%s660_s1 + $0x18] sm:$0xff] (!%p139_p2)   ;;  %v566_v6 = vld [vmem:[%s660_s1 + $0x20] sm:$0xff] (!%p139_p2)   ;;  %v567_v7 = vld [vmem:[%s660_s1 + $0x28] sm:$0xff] (!%p139_p2)  }
   0x7   : > { %515 = vmatpush3.bf16.msra.mxu0 (!%p139_p2), %v562_v0  ;;  %546 = vmatpush3.bf16.msra.mxu1 (!%p139_p2), %v562_v0  ;;  %v568_v8 = vld [vmem:[%s660_s1 + $0x30] sm:$0xff] (!%p139_p2)   ;;  %v569_v9 = vld [vmem:[%s660_s1 + $0x38] sm:$0xff] (!%p139_p2)   ;;  %v448_v13 = vld [vmem:[%s661_s2] ss:$0 sm:$0xff] (!%p139_p2) }
   0x8   : > { %516 = vmatprep.subr.bf16.mxu0 (!%p139_p2), %v563_v1  ;;  %539 = vmatprep.subr.bf16.mxu1 (!%p139_p2), %v563_v1 }
   0xb   : > { %517 = vmatpush3.bf16.msra.mxu0 (!%p139_p2), %v563_v1  ;;  %547 = vmatpush3.bf16.msra.mxu1 (!%p139_p2), %v563_v1 }
   0xc   : > { %518 = vmatprep.subr.bf16.mxu0 (!%p139_p2), %v564_v2  ;;  %540 = vmatprep.subr.bf16.mxu1 (!%p139_p2), %v564_v2 }
   0xd   : > { %s664_s16 = smov (!%p163_p3, %s444_s16), 15 }
   0xe   : > { %s445_s21 = sshll.u32 %s664_s16, 2 }
   0xf   : > { %s627_s24 = scalar_lea.vmem %s659_s0, %s445_s21  ;;  %519 = vmatpush3.bf16.msra.mxu0 %v564_v2  ;;  %548 = vmatpush3.bf16.msra.mxu1 %v564_v2  ;;  %s172_s13 = scalar_lea.vmem %s662_s3, %s445_s21 }
  0x10   : > { %v570_v4 = vld [vmem:[%s627_s24] sm:$0xff]   ;;  %v571_v5 = vld [vmem:[%s627_s24 + $0x10] sm:$0xff]   ;;  %520 = vmatprep.subr.bf16.mxu0 %v565_v3  ;;  %541 = vmatprep.subr.bf16.mxu1 %v565_v3  ;;  %v572_v10 = vld [vmem:[%s627_s24 + $0x8] sm:$0xff]  }
  0x11   : > { %530 = vmatprep.mubr.bf16.mxu0 %v570_v4  ;;  %534 = vmatprep.mubr.bf16.mxu1 %v571_v5  ;;  %v573_v11 = vld [vmem:[%s627_s24 + $0x18] sm:$0xff]  }
  0x13   : > { %521 = vmatpush3.bf16.msra.mxu0 %v565_v3  ;;  %549 = vmatpush3.bf16.msra.mxu1 %v565_v3 }
  0x14   : > { %522 = vmatprep.subr.bf16.mxu0 %v566_v6  ;;  %542 = vmatprep.subr.bf16.mxu1 %v566_v6 }
  0x17   : > { %523 = vmatpush3.bf16.msra.mxu0 %v566_v6  ;;  %550 = vmatpush3.bf16.msra.mxu1 %v566_v6 }
  0x18   : > { %524 = vmatprep.subr.bf16.mxu0 %v567_v7  ;;  %543 = vmatprep.subr.bf16.mxu1 %v567_v7 }
  0x1b   : > { %525 = vmatpush3.bf16.msra.mxu0 %v567_v7  ;;  %551 = vmatpush3.bf16.msra.mxu1 %v567_v7 }
  0x1c   : > { %526 = vmatprep.subr.bf16.mxu0 %v568_v8  ;;  %544 = vmatprep.subr.bf16.mxu1 %v568_v8 }
  0x1f   : > { %527 = vmatpush3.bf16.msra.mxu0 %v568_v8  ;;  %552 = vmatpush3.bf16.msra.mxu1 %v568_v8 }
  0x20   : > { %528 = vmatprep.subr.bf16.mxu0 %v569_v9  ;;  %545 = vmatprep.subr.bf16.mxu1 %v569_v9 }
  0x23   : > { %529 = vmatpush3.bf16.msra.mxu0 %v569_v9  ;;  %553 = vmatpush3.bf16.msra.mxu1 %v569_v9 }
  0x26   : > { %531 = vmatmul.mubr.bf16.vlgmr.msra.gmra.mrb[0].mxu0 %v572_v10  ;;  %535 = vmatmul.mubr.bf16.vlgmr.msra.gmra.mrb[0].mxu1 %v573_v11 }
  0xf9   : > { %v532_v12 = vpop.f32.mrb[0].mxu0  ;;  %v536_v14 = vpop.f32.mrb[0].mxu1 }
  0xfa   : > { %v312_v15 = vpop.f32.mrb[1].mxu0  ;;  %v328_v16 = vpop.f32.mrb[1].mxu1  ;;  %v321_v19 = vadd.f32 %v532_v12, %v448_v13  ;;  %v337_v20 = vadd.f32 %v536_v14, %v448_v13 }
  0xfb   : > { %v533_v17 = vpop.f32.mrb[2].mxu0  ;;  %v537_v18 = vpop.f32.mrb[2].mxu1  ;;  %v313_v25 = vadd.f32 %v448_v13, %v312_v15  ;;  %v329_v26 = vadd.f32 %v448_v13, %v328_v16 }
  0xfc   : > { %v324_v21 = vadd.f32 %v533_v17, %v448_v13  ;;  %v340_v22 = vadd.f32 %v537_v18, %v448_v13  ;;  %v315_v23 = vpop.f32.mrb[3].mxu0  ;;  %v331_v24 = vpop.f32.mrb[3].mxu1 }
  0xfd   : > { %v316_v27 = vadd.f32 %v448_v13, %v315_v23  ;;  %v332_v28 = vadd.f32 %v448_v13, %v331_v24 }
  0xfe   : > { %v487_v29 = vpack.c.bf16 %v324_v21, %v321_v19  ;;  %v497_v30 = vpack.c.bf16 %v340_v22, %v337_v20 }
  0xff   : > { %v482_v31 = vpack.c.bf16 %v316_v27, %v313_v25  ;;  %v492_v32 = vpack.c.bf16 %v332_v28, %v329_v26 }
 0x100   : > { %499 = vst [vmem:[%s172_s13 + $0x8] sm:$0xff] %v487_v29   ;;  %501 = vst [vmem:[%s172_s13 + $0x18] sm:$0xff] %v497_v30  }
 0x101   : > { %483 = vst [vmem:[%s172_s13] sm:$0xff] %v482_v31   ;;  %500 = vst [vmem:[%s172_s13 + $0x10] sm:$0xff] %v492_v32  }
 0x102 PF: > { %s13_s12 = sadd.s32 1, %s580_s12  }
 0x103   : > { %p10_p4 = scmp.ge.s32.totalorder %s13_s12, 4  }
 0x105   :  { %12 = sbr.rel (!%p10_p4) target bundleno = 1 (0x1), region = 62 }

// kernel: resnet_wsl_forward.29
= control target key start
LH: loop header
LB: loop body
LE: loop exit
PB: predicated region body
PF: predicated region fallthrough
CT: control target
= control target key end

     0   :  { %s610_s12 = smov 0   ;;  %s667_s0 = inlined_call_operand.vmem [shape: bf16[128,128], index: 0, kind: input, shape index: {}]   ;;  %s668_s1 = inlined_call_operand.vmem [shape: bf16[128,128], index: 1, kind: input, shape index: {}]   ;;  %s669_s2 = inlined_call_operand.vmem [shape: f32[1,128], index: 2, kind: input, shape index: {}]   ;;  %s670_s3 = inlined_call_operand.vmem [shape: bf16[128,128], index: 3, kind: output, shape index: {}]  }
   0x1 LB: > { %s447_s13 = sadd.s32 4294967295, %s588_s12   ;;  %p451_p0 = scmp.ge.s32.totalorder %s588_s12, 1  ;;  %s588_s12 = sphi %s610_s12, %s13_s12  }
   0x2   : > { %p138_p1 = scmp.lt.s32.totalorder %s588_s12, 3 }
   0x4   : > { %p139_p2 = pnand %p451_p0, %p138_p1 }
   0x5   : > { %v570_v0 = vld [vmem:[%s668_s1] sm:$0xff] (!%p139_p2)   ;;  %s452_s16 = sshll.u32 (!%p139_p2), %s447_s13, 3  ;;  %v571_v1 = vld [vmem:[%s668_s1 + $0x8] sm:$0xff] (!%p139_p2)   ;;  %v572_v2 = vld [vmem:[%s668_s1 + $0x10] sm:$0xff] (!%p139_p2)  }
   0x6   : > { %142 = sbr.rel (%p139_p2) target bundleno = 260 (0x104), region = 32  ;;  %p163_p3 = scmp.lt.s32.totalorder (!%p139_p2), %s452_s16, 15  ;;  %522 = vmatprep.subr.bf16.mxu0 (!%p139_p2), %v570_v0  ;;  %546 = vmatprep.subr.bf16.mxu1 (!%p139_p2), %v570_v0  ;;  %v573_v3 = vld [vmem:[%s668_s1 + $0x18] sm:$0xff] (!%p139_p2)   ;;  %v574_v6 = vld [vmem:[%s668_s1 + $0x20] sm:$0xff] (!%p139_p2)   ;;  %v575_v7 = vld [vmem:[%s668_s1 + $0x28] sm:$0xff] (!%p139_p2)  }
   0x7   : > { %523 = vmatpush3.bf16.msra.mxu0 (!%p139_p2), %v570_v0  ;;  %554 = vmatpush3.bf16.msra.mxu1 (!%p139_p2), %v570_v0  ;;  %v576_v8 = vld [vmem:[%s668_s1 + $0x30] sm:$0xff] (!%p139_p2)   ;;  %v577_v9 = vld [vmem:[%s668_s1 + $0x38] sm:$0xff] (!%p139_p2)   ;;  %v456_v12 = vld [vmem:[%s669_s2] ss:$0 sm:$0xff] (!%p139_p2) }
   0x8   : > { %524 = vmatprep.subr.bf16.mxu0 (!%p139_p2), %v571_v1  ;;  %547 = vmatprep.subr.bf16.mxu1 (!%p139_p2), %v571_v1 }
   0xb   : > { %525 = vmatpush3.bf16.msra.mxu0 (!%p139_p2), %v571_v1  ;;  %555 = vmatpush3.bf16.msra.mxu1 (!%p139_p2), %v571_v1 }
   0xc   : > { %526 = vmatprep.subr.bf16.mxu0 (!%p139_p2), %v572_v2  ;;  %548 = vmatprep.subr.bf16.mxu1 (!%p139_p2), %v572_v2 }
   0xd   : > { %s672_s16 = smov (!%p163_p3, %s452_s16), 15 }
   0xe   : > { %s453_s21 = sshll.u32 %s672_s16, 2 }
   0xf   : > { %s635_s24 = scalar_lea.vmem %s667_s0, %s453_s21  ;;  %527 = vmatpush3.bf16.msra.mxu0 %v572_v2  ;;  %556 = vmatpush3.bf16.msra.mxu1 %v572_v2  ;;  %s172_s13 = scalar_lea.vmem %s670_s3, %s453_s21 }
  0x10   : > { %v578_v4 = vld [vmem:[%s635_s24] sm:$0xff]   ;;  %v579_v5 = vld [vmem:[%s635_s24 + $0x10] sm:$0xff]   ;;  %528 = vmatprep.subr.bf16.mxu0 %v573_v3  ;;  %549 = vmatprep.subr.bf16.mxu1 %v573_v3  ;;  %v580_v10 = vld [vmem:[%s635_s24 + $0x8] sm:$0xff]  }
  0x11   : > { %538 = vmatprep.mubr.bf16.mxu0 %v578_v4  ;;  %542 = vmatprep.mubr.bf16.mxu1 %v579_v5  ;;  %v581_v11 = vld [vmem:[%s635_s24 + $0x18] sm:$0xff]  }
  0x13   : > { %529 = vmatpush3.bf16.msra.mxu0 %v573_v3  ;;  %557 = vmatpush3.bf16.msra.mxu1 %v573_v3 }
  0x14   : > { %530 = vmatprep.subr.bf16.mxu0 %v574_v6  ;;  %550 = vmatprep.subr.bf16.mxu1 %v574_v6 }
  0x17   : > { %531 = vmatpush3.bf16.msra.mxu0 %v574_v6  ;;  %558 = vmatpush3.bf16.msra.mxu1 %v574_v6 }
  0x18   : > { %532 = vmatprep.subr.bf16.mxu0 %v575_v7  ;;  %551 = vmatprep.subr.bf16.mxu1 %v575_v7 }
  0x1b   : > { %533 = vmatpush3.bf16.msra.mxu0 %v575_v7  ;;  %559 = vmatpush3.bf16.msra.mxu1 %v575_v7 }
  0x1c   : > { %534 = vmatprep.subr.bf16.mxu0 %v576_v8  ;;  %552 = vmatprep.subr.bf16.mxu1 %v576_v8 }
  0x1f   : > { %535 = vmatpush3.bf16.msra.mxu0 %v576_v8  ;;  %560 = vmatpush3.bf16.msra.mxu1 %v576_v8 }
  0x20   : > { %536 = vmatprep.subr.bf16.mxu0 %v577_v9  ;;  %553 = vmatprep.subr.bf16.mxu1 %v577_v9 }
  0x23   : > { %537 = vmatpush3.bf16.msra.mxu0 %v577_v9  ;;  %561 = vmatpush3.bf16.msra.mxu1 %v577_v9 }
  0x26   : > { %539 = vmatmul.mubr.bf16.vlgmr.msra.gmra.mrb[0].mxu0 %v580_v10  ;;  %543 = vmatmul.mubr.bf16.vlgmr.msra.gmra.mrb[0].mxu1 %v581_v11 }
  0xf9   : > { %v540_v13 = vpop.f32.mrb[0].mxu0  ;;  %v544_v14 = vpop.f32.mrb[0].mxu1 }
  0xfa   : > { %v321_v15 = vadd.f32 %v540_v13, %v456_v12  ;;  %v337_v16 = vadd.f32 %v544_v14, %v456_v12  ;;  %v312_v17 = vpop.f32.mrb[1].mxu0  ;;  %v328_v18 = vpop.f32.mrb[1].mxu1 }
  0xfb   : > { %v313_v19 = vadd.f32 %v456_v12, %v312_v17  ;;  %v329_v20 = vadd.f32 %v456_v12, %v328_v18  ;;  %v541_v21 = vpop.f32.mrb[2].mxu0  ;;  %v545_v22 = vpop.f32.mrb[2].mxu1 }
  0xfc   : > { %v324_v23 = vadd.f32 %v541_v21, %v456_v12  ;;  %v340_v24 = vadd.f32 %v545_v22, %v456_v12  ;;  %v315_v25 = vpop.f32.mrb[3].mxu0  ;;  %v331_v26 = vpop.f32.mrb[3].mxu1  ;;  %v345_v29 = vmax.f32 %v321_v15, 0.0  ;;  %v349_v30 = vmax.f32 %v337_v16, 0.0 }
  0xfd   : > { %v316_v27 = vadd.f32 %v456_v12, %v315_v25  ;;  %v332_v28 = vadd.f32 %v456_v12, %v331_v26  ;;  %v343_v33 = vmax.f32 %v313_v19, 0.0  ;;  %v347_v34 = vmax.f32 %v329_v20, 0.0 }
  0xfe   : > { %v346_v31 = vmax.f32 %v324_v23, 0.0  ;;  %v350_v32 = vmax.f32 %v340_v24, 0.0 }
  0xff   : > { %v344_v35 = vmax.f32 %v316_v27, 0.0  ;;  %v348_v36 = vmax.f32 %v332_v28, 0.0 }
 0x100   : > { %v495_v37 = vpack.c.bf16 %v346_v31, %v345_v29  ;;  %v505_v38 = vpack.c.bf16 %v350_v32, %v349_v30 }
 0x101   : > { %v490_v39 = vpack.c.bf16 %v344_v35, %v343_v33  ;;  %v500_v40 = vpack.c.bf16 %v348_v36, %v347_v34 }
 0x102   : > { %507 = vst [vmem:[%s172_s13 + $0x8] sm:$0xff] %v495_v37   ;;  %509 = vst [vmem:[%s172_s13 + $0x18] sm:$0xff] %v505_v38  }
 0x103   : > { %491 = vst [vmem:[%s172_s13] sm:$0xff] %v490_v39   ;;  %508 = vst [vmem:[%s172_s13 + $0x10] sm:$0xff] %v500_v40  }
 0x104 PF: > { %s13_s12 = sadd.s32 1, %s588_s12  }
 0x105   : > { %p10_p4 = scmp.ge.s32.totalorder %s13_s12, 4  }
 0x107   :  { %12 = sbr.rel (!%p10_p4) target bundleno = 1 (0x1), region = 62 }

// kernel: resnet_wsl_forward.30
= control target key start
LH: loop header
LB: loop body
LE: loop exit
PB: predicated region body
PF: predicated region fallthrough
CT: control target
= control target key end

     0   :  { %s838_s15 = smov 0   ;;  %s933_s0 = inlined_call_operand.vmem [shape: bf16[128,256], index: 0, kind: input, shape index: {}]   ;;  %s934_s1 = inlined_call_operand.vmem [shape: bf16[256,128], index: 1, kind: input, shape index: {}]   ;;  %s935_s2 = inlined_call_operand.vmem [shape: f32[1,128], index: 2, kind: input, shape index: {}]   ;;  %s936_s3 = inlined_call_operand.vmem [shape: bf16[128,128], index: 3, kind: input, shape index: {}]   ;;  %s937_s4 = inlined_call_operand.vmem [shape: bf16[128,128], index: 4, kind: output, shape index: {}]  }
   0x1 LB: > { %s615_s16 = sadd.s32 4294967295, %s811_s15   ;;  %p619_p0 = scmp.ge.s32.totalorder %s811_s15, 1  ;;  %s811_s15 = sphi %s838_s15, %s14_s15  }
   0x2   : > { %p175_p1 = scmp.lt.s32.totalorder %s811_s15, 3 }
   0x4   : > { %p176_p2 = pnand %p619_p0, %p175_p1 }
   0x5   : > { %v777_v0 = vld [vmem:[%s934_s1 + $0x40] sm:$0xff] (!%p176_p2)   ;;  %s620_s19 = sshll.u32 (!%p176_p2), %s615_s16, 3  ;;  %v779_v2 = vld [vmem:[%s934_s1 + $0x48] sm:$0xff] (!%p176_p2)   ;;  %v781_v4 = vld [vmem:[%s934_s1 + $0x50] sm:$0xff] (!%p176_p2)  }
   0x6   : > { %179 = sbr.rel (%p176_p2) target bundleno = 273 (0x111), region = 36  ;;  %v778_v1 = vld [vmem:[%s934_s1] sm:$0xff] (!%p176_p2)   ;;  %713 = vmatprep.subr.bf16.mxu0 (!%p176_p2), %v777_v0  ;;  %753 = vmatprep.subr.bf16.mxu1 (!%p176_p2), %v777_v0  ;;  %v780_v3 = vld [vmem:[%s934_s1 + $0x8] sm:$0xff] (!%p176_p2)   ;;  %p208_p3 = scmp.lt.s32.totalorder (!%p176_p2), %s620_s19, 15  ;;  %v782_v5 = vld [vmem:[%s934_s1 + $0x10] sm:$0xff] (!%p176_p2)  }
   0x7   : > { %714 = vmatpush3.bf16.msra.mxu0 (!%p176_p2), %v778_v1  ;;  %761 = vmatpush3.bf16.msra.mxu1 (!%p176_p2), %v778_v1  ;;  %v783_v6 = vld [vmem:[%s934_s1 + $0x58] sm:$0xff] (!%p176_p2)   ;;  %v785_v8 = vld [vmem:[%s934_s1 + $0x60] sm:$0xff] (!%p176_p2)   ;;  %v787_v10 = vld [vmem:[%s934_s1 + $0x68] sm:$0xff] (!%p176_p2)  }
   0x8   : > { %715 = vmatprep.subr.bf16.mxu0 (!%p176_p2), %v779_v2  ;;  %754 = vmatprep.subr.bf16.mxu1 (!%p176_p2), %v779_v2  ;;  %v784_v7 = vld [vmem:[%s934_s1 + $0x18] sm:$0xff] (!%p176_p2)   ;;  %v786_v9 = vld [vmem:[%s934_s1 + $0x20] sm:$0xff] (!%p176_p2)   ;;  %v788_v13 = vld [vmem:[%s934_s1 + $0x28] sm:$0xff] (!%p176_p2)  }
   0x9   : > { %v789_v14 = vld [vmem:[%s934_s1 + $0x70] sm:$0xff] (!%p176_p2)   ;;  %v791_v16 = vld [vmem:[%s934_s1 + $0x78] sm:$0xff] (!%p176_p2)   ;;  %v627_v28 = vld [vmem:[%s935_s2] ss:$0 sm:$0xff] (!%p176_p2) }
   0xa   : > { %v790_v15 = vld [vmem:[%s934_s1 + $0x30] sm:$0xff] (!%p176_p2)   ;;  %v792_v17 = vld [vmem:[%s934_s1 + $0x38] sm:$0xff] (!%p176_p2)  }
   0xb   : > { %716 = vmatpush3.bf16.msra.mxu0 (!%p176_p2), %v780_v3  ;;  %762 = vmatpush3.bf16.msra.mxu1 (!%p176_p2), %v780_v3 }
   0xc   : > { %717 = vmatprep.subr.bf16.mxu0 (!%p176_p2), %v781_v4  ;;  %755 = vmatprep.subr.bf16.mxu1 (!%p176_p2), %v781_v4 }
   0xd   : > { %s939_s19 = smov (!%p208_p3, %s620_s19), 15 }
   0xe   : > { %s662_s8 = sshll.u32 %s939_s19, 3  ;;  %s624_s30 = sshll.u32 %s939_s19, 2 }
   0xf   : > { %718 = vmatpush3.bf16.msra.mxu0 %v782_v5  ;;  %763 = vmatpush3.bf16.msra.mxu1 %v782_v5  ;;  %s879_s13 = scalar_lea.vmem %s933_s0, %s662_s8  ;;  %s916_s7 = scalar_lea.vmem %s936_s3, %s624_s30 }
  0x10   : > { %719 = vmatprep.subr.bf16.mxu0 %v783_v6  ;;  %756 = vmatprep.subr.bf16.mxu1 %v783_v6  ;;  %v795_v11 = vld [vmem:[%s879_s13 + $0x4] ss:$8 sps:$4 sm:$0xff]   ;;  %v793_v18 = vld [vmem:[%s879_s13] ss:$8 sps:$4 sm:$0xff]   ;;  %v799_v20 = vld [vmem:[%s879_s13 + $0x14] ss:$8 sps:$4 sm:$0xff]   ;;  %s224_s12 = scalar_lea.vmem %s937_s4, %s624_s30 }
  0x11   : > { %v798_v12 = vld [vmem:[%s879_s13 + $0x24] ss:$8 sps:$4 sm:$0xff]   ;;  %442 = vmatprep.mubr.bf16.mxu0 %v795_v11  ;;  %v796_v19 = vld [vmem:[%s879_s13 + $0x20] ss:$8 sps:$4 sm:$0xff]   ;;  %v801_v21 = vld [vmem:[%s879_s13 + $0x34] ss:$8 sps:$4 sm:$0xff]  }
  0x12   : > { %458 = vmatprep.mubr.bf16.mxu1 %v798_v12  ;;  %v803_v22 = vld [vmem:[%s879_s13 + $0x10] ss:$8 sps:$4 sm:$0xff]   ;;  %v672_v24 = vld [vmem:[%s916_s7] sm:$0xff]   ;;  %v707_v53 = vld [vmem:[%s916_s7 + $0x8] sm:$0xff]  }
  0x13   : > { %720 = vmatpush3.bf16.msra.mxu0 %v784_v7  ;;  %764 = vmatpush3.bf16.msra.mxu1 %v784_v7  ;;  %v804_v23 = vld [vmem:[%s879_s13 + $0x30] ss:$8 sps:$4 sm:$0xff]   ;;  %v673_v32 = vunpack.c.l.bf16 %v672_v24  ;;  %v674_v38 = vunpack.c.h.bf16 %v672_v24  ;;  %v677_v1 = vunpack.c.l.bf16 %v707_v53 }
  0x14   : > { %721 = vmatprep.subr.bf16.mxu0 %v785_v8  ;;  %757 = vmatprep.subr.bf16.mxu1 %v785_v8  ;;  %v708_v25 = vld [vmem:[%s916_s7 + $0x10] sm:$0xff]   ;;  %v709_v54 = vld [vmem:[%s916_s7 + $0x18] sm:$0xff]  }
  0x15   : > { %v681_v34 = vunpack.c.l.bf16 %v708_v25  ;;  %v682_v40 = vunpack.c.h.bf16 %v708_v25  ;;  %v685_v2 = vunpack.c.l.bf16 %v709_v54  ;;  %v686_v12 = vunpack.c.h.bf16 %v709_v54 }
  0x17   : > { %722 = vmatpush3.bf16.msra.mxu0 %v786_v9  ;;  %765 = vmatpush3.bf16.msra.mxu1 %v786_v9 }
  0x18   : > { %723 = vmatprep.subr.bf16.mxu0 %v787_v10  ;;  %758 = vmatprep.subr.bf16.mxu1 %v787_v10  ;;  %v678_v10 = vunpack.c.h.bf16 %v707_v53 }
  0x1b   : > { %724 = vmatpush3.bf16.msra.mxu0 %v788_v13  ;;  %766 = vmatpush3.bf16.msra.mxu1 %v788_v13 }
  0x1c   : > { %725 = vmatprep.subr.bf16.mxu0 %v789_v14  ;;  %759 = vmatprep.subr.bf16.mxu1 %v789_v14 }
  0x1f   : > { %726 = vmatpush3.bf16.msra.mxu0 %v790_v15  ;;  %767 = vmatpush3.bf16.msra.mxu1 %v790_v15 }
  0x20   : > { %727 = vmatprep.subr.bf16.mxu0 %v791_v16  ;;  %760 = vmatprep.subr.bf16.mxu1 %v791_v16 }
  0x23   : > { %728 = vmatpush3.bf16.msra.mxu0 %v792_v17  ;;  %768 = vmatpush3.bf16.msra.mxu1 %v792_v17 }
  0x26   : > { %443 = vmatmul.mubr.bf16.vlgmr.msra.gmra.mrb[0].mxu0 %v793_v18  ;;  %459 = vmatmul.mubr.bf16.vlgmr.msra.gmra.mrb[0].mxu1 %v796_v19 }
  0x27   : > { %450 = vmatprep.mubr.bf16.mxu0 %v799_v20  ;;  %466 = vmatprep.mubr.bf16.mxu1 %v801_v21 }
  0x2e   : > { %451 = vmatmul.mubr.bf16.gmra.mrb[4].mxu0 %v803_v22  ;;  %467 = vmatmul.mubr.bf16.gmra.mrb[4].mxu1 %v804_v23 }
  0xf9   : > { %v729_v26 = vpop.f32.mrb[0].mxu0  ;;  %v741_v27 = vpop.f32.mrb[0].mxu1 }
  0xfa   : > { %v730_v29 = vpop.f32.mrb[1].mxu0  ;;  %v742_v30 = vpop.f32.mrb[1].mxu1 }
  0xfb   : > { %v731_v31 = vadd.f32 %v730_v29, %v729_v26  ;;  %v743_v33 = vadd.f32 %v742_v30, %v741_v27  ;;  %v732_v35 = vpop.f32.mrb[2].mxu0  ;;  %v744_v36 = vpop.f32.mrb[2].mxu1 }
  0xfc   : > { %v733_v37 = vpop.f32.mrb[3].mxu0  ;;  %v745_v39 = vpop.f32.mrb[3].mxu1 }
  0xfd   : > { %v445_v41 = vadd.f32 %v731_v31, %v627_v28  ;;  %v461_v42 = vadd.f32 %v743_v33, %v627_v28  ;;  %v734_v43 = vadd.f32 %v733_v37, %v732_v35  ;;  %v746_v44 = vadd.f32 %v745_v39, %v744_v36 }
  0xff   : > { %v491_v45 = vadd.f32 %v673_v32, %v445_v41  ;;  %v495_v46 = vadd.f32 %v681_v34, %v461_v42  ;;  %v448_v47 = vadd.f32 %v734_v43, %v627_v28  ;;  %v464_v48 = vadd.f32 %v746_v44, %v627_v28 }
 0x101   : > { %v492_v49 = vadd.f32 %v674_v38, %v448_v47  ;;  %v496_v50 = vadd.f32 %v682_v40, %v464_v48  ;;  %v735_v51 = vpop.f32.mrb[4].mxu0  ;;  %v747_v52 = vpop.f32.mrb[4].mxu1  ;;  %v499_v55 = vmax.f32 %v491_v45, 0.0  ;;  %v503_v56 = vmax.f32 %v495_v46, 0.0 }
 0x102   : > { %v736_v57 = vpop.f32.mrb[5].mxu0  ;;  %v748_v58 = vpop.f32.mrb[5].mxu1 }
 0x103   : > { %v500_v59 = vmax.f32 %v492_v49, 0.0  ;;  %v504_v60 = vmax.f32 %v496_v50, 0.0  ;;  %v737_v61 = vadd.f32 %v736_v57, %v735_v51  ;;  %v749_v62 = vadd.f32 %v748_v58, %v747_v52  ;;  %v738_v63 = vpop.f32.mrb[6].mxu0  ;;  %v750_v0 = vpop.f32.mrb[6].mxu1 }
 0x104   : > { %v739_v3 = vpop.f32.mrb[7].mxu0  ;;  %v751_v4 = vpop.f32.mrb[7].mxu1 }
 0x105   : > { %v690_v5 = vpack.c.bf16 %v500_v59, %v499_v55  ;;  %v700_v6 = vpack.c.bf16 %v504_v60, %v503_v56  ;;  %v453_v7 = vadd.f32 %v737_v61, %v627_v28  ;;  %v469_v8 = vadd.f32 %v749_v62, %v627_v28 }
 0x106   : > { %v740_v9 = vadd.f32 %v739_v3, %v738_v63  ;;  %v752_v11 = vadd.f32 %v751_v4, %v750_v0 }
 0x107   : > { %691 = vst [vmem:[%s224_s12] sm:$0xff] %v690_v5   ;;  %711 = vst [vmem:[%s224_s12 + $0x10] sm:$0xff] %v700_v6   ;;  %v493_v13 = vadd.f32 %v677_v1, %v453_v7  ;;  %v497_v14 = vadd.f32 %v685_v2, %v469_v8 }
 0x108   : > { %v456_v15 = vadd.f32 %v740_v9, %v627_v28  ;;  %v472_v16 = vadd.f32 %v752_v11, %v627_v28 }
 0x109   : > { %v501_v19 = vmax.f32 %v493_v13, 0.0  ;;  %v505_v20 = vmax.f32 %v497_v14, 0.0 }
 0x10a   : > { %v494_v17 = vadd.f32 %v678_v10, %v456_v15  ;;  %v498_v18 = vadd.f32 %v686_v12, %v472_v16 }
 0x10c   : > { %v502_v21 = vmax.f32 %v494_v17, 0.0  ;;  %v506_v22 = vmax.f32 %v498_v18, 0.0 }
 0x10e   : > { %v695_v23 = vpack.c.bf16 %v502_v21, %v501_v19  ;;  %v705_v24 = vpack.c.bf16 %v506_v22, %v505_v20 }
 0x110   : > { %710 = vst [vmem:[%s224_s12 + $0x8] sm:$0xff] %v695_v23   ;;  %712 = vst [vmem:[%s224_s12 + $0x18] sm:$0xff] %v705_v24  }
 0x111 PF: > { %s14_s15 = sadd.s32 1, %s811_s15  }
 0x112   : > { %p11_p4 = scmp.ge.s32.totalorder %s14_s15, 4  }
 0x114   :  { %13 = sbr.rel (!%p11_p4) target bundleno = 1 (0x1), region = 69 }

// kernel: resnet_wsl_forward.31
= control target key start
LH: loop header
LB: loop body
LE: loop exit
PB: predicated region body
PF: predicated region fallthrough
CT: control target
= control target key end

     0   :  { %s727_s12 = smov 0   ;;  %s809_s0 = inlined_call_operand.vmem [shape: bf16[128,256], index: 0, kind: input, shape index: {}]   ;;  %s810_s1 = inlined_call_operand.vmem [shape: bf16[256,128], index: 1, kind: input, shape index: {}]   ;;  %s811_s2 = inlined_call_operand.vmem [shape: f32[1,128], index: 2, kind: input, shape index: {}]   ;;  %s812_s3 = inlined_call_operand.vmem [shape: bf16[128,128], index: 3, kind: output, shape index: {}]  }
   0x1 LB: > { %s530_s13 = sadd.s32 4294967295, %s705_s12   ;;  %p534_p0 = scmp.ge.s32.totalorder %s705_s12, 1  ;;  %s705_s12 = sphi %s727_s12, %s13_s12  }
   0x2   : > { %p139_p1 = scmp.lt.s32.totalorder %s705_s12, 3 }
   0x4   : > { %p140_p2 = pnand %p534_p0, %p139_p1 }
   0x5   : > { %v671_v0 = vld [vmem:[%s810_s1 + $0x40] sm:$0xff] (!%p140_p2)   ;;  %s535_s16 = sshll.u32 (!%p140_p2), %s530_s13, 3  ;;  %v673_v2 = vld [vmem:[%s810_s1 + $0x48] sm:$0xff] (!%p140_p2)   ;;  %v675_v4 = vld [vmem:[%s810_s1 + $0x50] sm:$0xff] (!%p140_p2)  }
   0x6   : > { %143 = sbr.rel (%p140_p2) target bundleno = 271 (0x10f), region = 32  ;;  %v672_v1 = vld [vmem:[%s810_s1] sm:$0xff] (!%p140_p2)   ;;  %607 = vmatprep.subr.bf16.mxu0 (!%p140_p2), %v671_v0  ;;  %647 = vmatprep.subr.bf16.mxu1 (!%p140_p2), %v671_v0  ;;  %v674_v3 = vld [vmem:[%s810_s1 + $0x8] sm:$0xff] (!%p140_p2)   ;;  %p165_p3 = scmp.lt.s32.totalorder (!%p140_p2), %s535_s16, 15  ;;  %v676_v5 = vld [vmem:[%s810_s1 + $0x10] sm:$0xff] (!%p140_p2)  }
   0x7   : > { %608 = vmatpush3.bf16.msra.mxu0 (!%p140_p2), %v672_v1  ;;  %655 = vmatpush3.bf16.msra.mxu1 (!%p140_p2), %v672_v1  ;;  %v677_v6 = vld [vmem:[%s810_s1 + $0x58] sm:$0xff] (!%p140_p2)   ;;  %v679_v8 = vld [vmem:[%s810_s1 + $0x60] sm:$0xff] (!%p140_p2)   ;;  %v681_v10 = vld [vmem:[%s810_s1 + $0x68] sm:$0xff] (!%p140_p2)  }
   0x8   : > { %609 = vmatprep.subr.bf16.mxu0 (!%p140_p2), %v673_v2  ;;  %648 = vmatprep.subr.bf16.mxu1 (!%p140_p2), %v673_v2  ;;  %v678_v7 = vld [vmem:[%s810_s1 + $0x18] sm:$0xff] (!%p140_p2)   ;;  %v680_v9 = vld [vmem:[%s810_s1 + $0x20] sm:$0xff] (!%p140_p2)   ;;  %v682_v13 = vld [vmem:[%s810_s1 + $0x28] sm:$0xff] (!%p140_p2)  }
   0x9   : > { %v683_v14 = vld [vmem:[%s810_s1 + $0x70] sm:$0xff] (!%p140_p2)   ;;  %v685_v16 = vld [vmem:[%s810_s1 + $0x78] sm:$0xff] (!%p140_p2)   ;;  %v540_v26 = vld [vmem:[%s811_s2] ss:$0 sm:$0xff] (!%p140_p2) }
   0xa   : > { %v684_v15 = vld [vmem:[%s810_s1 + $0x30] sm:$0xff] (!%p140_p2)   ;;  %v686_v17 = vld [vmem:[%s810_s1 + $0x38] sm:$0xff] (!%p140_p2)  }
   0xb   : > { %610 = vmatpush3.bf16.msra.mxu0 (!%p140_p2), %v674_v3  ;;  %656 = vmatpush3.bf16.msra.mxu1 (!%p140_p2), %v674_v3 }
   0xc   : > { %611 = vmatprep.subr.bf16.mxu0 (!%p140_p2), %v675_v4  ;;  %649 = vmatprep.subr.bf16.mxu1 (!%p140_p2), %v675_v4 }
   0xd   : > { %s814_s16 = smov (!%p165_p3, %s535_s16), 15 }
   0xe   : > { %s575_s4 = sshll.u32 %s814_s16, 3  ;;  %s539_s28 = sshll.u32 %s814_s16, 2 }
   0xf   : > { %612 = vmatpush3.bf16.msra.mxu0 %v676_v5  ;;  %657 = vmatpush3.bf16.msra.mxu1 %v676_v5  ;;  %s768_s9 = scalar_lea.vmem %s809_s0, %s575_s4  ;;  %s175_s4 = scalar_lea.vmem %s812_s3, %s539_s28 }
  0x10   : > { %613 = vmatprep.subr.bf16.mxu0 %v677_v6  ;;  %650 = vmatprep.subr.bf16.mxu1 %v677_v6  ;;  %v689_v11 = vld [vmem:[%s768_s9 + $0x4] ss:$8 sps:$4 sm:$0xff]   ;;  %v687_v18 = vld [vmem:[%s768_s9] ss:$8 sps:$4 sm:$0xff]   ;;  %v693_v20 = vld [vmem:[%s768_s9 + $0x14] ss:$8 sps:$4 sm:$0xff]  }
  0x11   : > { %v692_v12 = vld [vmem:[%s768_s9 + $0x24] ss:$8 sps:$4 sm:$0xff]   ;;  %393 = vmatprep.mubr.bf16.mxu0 %v689_v11  ;;  %v690_v19 = vld [vmem:[%s768_s9 + $0x20] ss:$8 sps:$4 sm:$0xff]   ;;  %v695_v21 = vld [vmem:[%s768_s9 + $0x34] ss:$8 sps:$4 sm:$0xff]  }
  0x12   : > { %409 = vmatprep.mubr.bf16.mxu1 %v692_v12  ;;  %v697_v22 = vld [vmem:[%s768_s9 + $0x10] ss:$8 sps:$4 sm:$0xff]  }
  0x13   : > { %614 = vmatpush3.bf16.msra.mxu0 %v678_v7  ;;  %658 = vmatpush3.bf16.msra.mxu1 %v678_v7  ;;  %v698_v23 = vld [vmem:[%s768_s9 + $0x30] ss:$8 sps:$4 sm:$0xff]  }
  0x14   : > { %615 = vmatprep.subr.bf16.mxu0 %v679_v8  ;;  %651 = vmatprep.subr.bf16.mxu1 %v679_v8 }
  0x17   : > { %616 = vmatpush3.bf16.msra.mxu0 %v680_v9  ;;  %659 = vmatpush3.bf16.msra.mxu1 %v680_v9 }
  0x18   : > { %617 = vmatprep.subr.bf16.mxu0 %v681_v10  ;;  %652 = vmatprep.subr.bf16.mxu1 %v681_v10 }
  0x1b   : > { %618 = vmatpush3.bf16.msra.mxu0 %v682_v13  ;;  %660 = vmatpush3.bf16.msra.mxu1 %v682_v13 }
  0x1c   : > { %619 = vmatprep.subr.bf16.mxu0 %v683_v14  ;;  %653 = vmatprep.subr.bf16.mxu1 %v683_v14 }
  0x1f   : > { %620 = vmatpush3.bf16.msra.mxu0 %v684_v15  ;;  %661 = vmatpush3.bf16.msra.mxu1 %v684_v15 }
  0x20   : > { %621 = vmatprep.subr.bf16.mxu0 %v685_v16  ;;  %654 = vmatprep.subr.bf16.mxu1 %v685_v16 }
  0x23   : > { %622 = vmatpush3.bf16.msra.mxu0 %v686_v17  ;;  %662 = vmatpush3.bf16.msra.mxu1 %v686_v17 }
  0x26   : > { %394 = vmatmul.mubr.bf16.vlgmr.msra.gmra.mrb[0].mxu0 %v687_v18  ;;  %410 = vmatmul.mubr.bf16.vlgmr.msra.gmra.mrb[0].mxu1 %v690_v19 }
  0x27   : > { %401 = vmatprep.mubr.bf16.mxu0 %v693_v20  ;;  %417 = vmatprep.mubr.bf16.mxu1 %v695_v21 }
  0x2e   : > { %402 = vmatmul.mubr.bf16.gmra.mrb[4].mxu0 %v697_v22  ;;  %418 = vmatmul.mubr.bf16.gmra.mrb[4].mxu1 %v698_v23 }
  0xf9   : > { %v623_v24 = vpop.f32.mrb[0].mxu0  ;;  %v635_v25 = vpop.f32.mrb[0].mxu1 }
  0xfa   : > { %v624_v27 = vpop.f32.mrb[1].mxu0  ;;  %v636_v28 = vpop.f32.mrb[1].mxu1 }
  0xfb   : > { %v625_v29 = vadd.f32 %v624_v27, %v623_v24  ;;  %v637_v30 = vadd.f32 %v636_v28, %v635_v25  ;;  %v626_v31 = vpop.f32.mrb[2].mxu0  ;;  %v638_v32 = vpop.f32.mrb[2].mxu1 }
  0xfc   : > { %v627_v33 = vpop.f32.mrb[3].mxu0  ;;  %v639_v34 = vpop.f32.mrb[3].mxu1 }
  0xfd   : > { %v396_v35 = vadd.f32 %v625_v29, %v540_v26  ;;  %v412_v36 = vadd.f32 %v637_v30, %v540_v26  ;;  %v628_v37 = vadd.f32 %v627_v33, %v626_v31  ;;  %v640_v38 = vadd.f32 %v639_v34, %v638_v32 }
  0xff   : > { %v399_v39 = vadd.f32 %v628_v37, %v540_v26  ;;  %v415_v40 = vadd.f32 %v640_v38, %v540_v26  ;;  %v426_v41 = vmax.f32 %v396_v35, 0.0  ;;  %v430_v42 = vmax.f32 %v412_v36, 0.0 }
 0x101   : > { %v427_v43 = vmax.f32 %v399_v39, 0.0  ;;  %v431_v44 = vmax.f32 %v415_v40, 0.0  ;;  %v629_v45 = vpop.f32.mrb[4].mxu0  ;;  %v641_v46 = vpop.f32.mrb[4].mxu1 }
 0x102   : > { %v630_v47 = vpop.f32.mrb[5].mxu0  ;;  %v642_v48 = vpop.f32.mrb[5].mxu1 }
 0x103   : > { %v587_v49 = vpack.c.bf16 %v427_v43, %v426_v41  ;;  %v597_v50 = vpack.c.bf16 %v431_v44, %v430_v42  ;;  %v631_v51 = vadd.f32 %v630_v47, %v629_v45  ;;  %v643_v52 = vadd.f32 %v642_v48, %v641_v46  ;;  %v632_v53 = vpop.f32.mrb[6].mxu0  ;;  %v644_v54 = vpop.f32.mrb[6].mxu1 }
 0x104   : > { %v633_v55 = vpop.f32.mrb[7].mxu0  ;;  %v645_v56 = vpop.f32.mrb[7].mxu1 }
 0x105   : > { %588 = vst [vmem:[%s175_s4] sm:$0xff] %v587_v49   ;;  %605 = vst [vmem:[%s175_s4 + $0x10] sm:$0xff] %v597_v50   ;;  %v404_v57 = vadd.f32 %v631_v51, %v540_v26  ;;  %v420_v58 = vadd.f32 %v643_v52, %v540_v26  ;;  %v634_v59 = vadd.f32 %v633_v55, %v632_v53 }
 0x106   : > { %v646_v60 = vadd.f32 %v645_v56, %v644_v54 }
 0x107   : > { %v407_v61 = vadd.f32 %v634_v59, %v540_v26  ;;  %v428_v63 = vmax.f32 %v404_v57, 0.0  ;;  %v432_v0 = vmax.f32 %v420_v58, 0.0 }
 0x108   : > { %v423_v62 = vadd.f32 %v646_v60, %v540_v26 }
 0x109   : > { %v429_v1 = vmax.f32 %v407_v61, 0.0 }
 0x10a   : > { %v433_v2 = vmax.f32 %v423_v62, 0.0 }
 0x10b   : > { %v592_v3 = vpack.c.bf16 %v429_v1, %v428_v63 }
 0x10c   : > { %v602_v4 = vpack.c.bf16 %v433_v2, %v432_v0 }
 0x10d   : > { %604 = vst [vmem:[%s175_s4 + $0x8] sm:$0xff] %v592_v3  }
 0x10e   : > { %606 = vst [vmem:[%s175_s4 + $0x18] sm:$0xff] %v602_v4  }
 0x10f PF: > { %s13_s12 = sadd.s32 1, %s705_s12  }
 0x110   : > { %p10_p4 = scmp.ge.s32.totalorder %s13_s12, 4  }
 0x112   :  { %12 = sbr.rel (!%p10_p4) target bundleno = 1 (0x1), region = 62 }

// kernel: resnet_wsl_forward.33
= control target key start
LH: loop header
LB: loop body
LE: loop exit
PB: predicated region body
PF: predicated region fallthrough
CT: control target
= control target key end

     0   :  { %s469_s12 = smov 0   ;;  %s516_s0 = inlined_call_operand.vmem [shape: bf16[32,128], index: 0, kind: input, shape index: {}]   ;;  %s517_s1 = inlined_call_operand.vmem [shape: bf16[128,128], index: 1, kind: input, shape index: {}]   ;;  %s518_s2 = inlined_call_operand.vmem [shape: f32[1,128], index: 2, kind: input, shape index: {}]   ;;  %s519_s3 = inlined_call_operand.vmem [shape: bf16[32,128], index: 3, kind: output, shape index: {}]  }
   0x1 LB: > { %s361_s13 = sadd.s32 4294967295, %s445_s12   ;;  %p365_p0 = scmp.ge.s32.totalorder %s445_s12, 1  ;;  %s445_s12 = sphi %s469_s12, %s13_s12  }
   0x2   : > { %p138_p1 = scmp.lt.s32.totalorder %s445_s12, 3 }
   0x4   : > { %p139_p2 = pnand %p365_p0, %p138_p1 }
   0x5   : > { %v430_v0 = vld [vmem:[%s517_s1] sm:$0xff] (!%p139_p2)   ;;  %v447_v1 = vmov (!%p139_p2), 0.0   ;;  %v431_v2 = vld [vmem:[%s517_s1 + $0x8] sm:$0xff] (!%p139_p2)   ;;  %vm448_vm0 = vmmov (!%p139_p2), 0   ;;  %s366_s18 = sshll.u32 (!%p139_p2), %s361_s13, 1  ;;  %v432_v3 = vld [vmem:[%s517_s1 + $0x10] sm:$0xff] (!%p139_p2)  }
   0x6   : > { %142 = sbr.rel (%p139_p2) target bundleno = 257 (0x101), region = 32  ;;  %400 = vmatprep.subr.bf16.mxu0 (!%p139_p2), %v447_v1  ;;  %416 = vmatprep.mubr.msk.bf16.mxu0 (!%p139_p2), %vm448_vm0, %v447_v1  ;;  %p163_p3 = scmp.lt.s32.totalorder (!%p139_p2), %s366_s18, 3  ;;  %v433_v4 = vld [vmem:[%s517_s1 + $0x18] sm:$0xff] (!%p139_p2)   ;;  %v434_v5 = vld [vmem:[%s517_s1 + $0x20] sm:$0xff] (!%p139_p2)   ;;  %v435_v6 = vld [vmem:[%s517_s1 + $0x28] sm:$0xff] (!%p139_p2)  }
   0x7   : > { %401 = vmatpush3.bf16.msra.mxu0 (!%p139_p2), %v430_v0  ;;  %v436_v7 = vld [vmem:[%s517_s1 + $0x30] sm:$0xff] (!%p139_p2)   ;;  %v437_v8 = vld [vmem:[%s517_s1 + $0x38] sm:$0xff] (!%p139_p2)   ;;  %v370_v10 = vld [vmem:[%s518_s2] ss:$0 sm:$0xff] (!%p139_p2) }
   0x8   : > { %402 = vmatprep.subr.bf16.mxu0 (!%p139_p2), %v447_v1 }
   0xb   : > { %403 = vmatpush3.bf16.msra.mxu0 (!%p139_p2), %v431_v2 }
   0xc   : > { %404 = vmatprep.subr.bf16.mxu0 (!%p139_p2), %v447_v1 }
   0xd   : > { %s521_s18 = smov (!%p163_p3, %s366_s18), 3 }
   0xe   : > { %s367_s21 = sshll.u32 %s521_s18, 2 }
   0xf   : > { %s166_s24 = scalar_lea.vmem %s516_s0, %s367_s21  ;;  %405 = vmatpush3.bf16.msra.mxu0 %v432_v3  ;;  %s172_s13 = scalar_lea.vmem %s519_s3, %s367_s21 }
  0x10   : > { %406 = vmatprep.subr.bf16.mxu0 %v447_v1  ;;  %v438_v9 = vld [vmem:[%s166_s24] sm:$0xff]  }
  0x13   : > { %407 = vmatpush3.bf16.msra.mxu0 %v433_v4 }
  0x14   : > { %408 = vmatprep.subr.bf16.mxu0 %v447_v1 }
  0x17   : > { %409 = vmatpush3.bf16.msra.mxu0 %v434_v5 }
  0x18   : > { %410 = vmatprep.subr.bf16.mxu0 %v447_v1 }
  0x1b   : > { %411 = vmatpush3.bf16.msra.mxu0 %v435_v6 }
  0x1c   : > { %412 = vmatprep.subr.bf16.mxu0 %v447_v1 }
  0x1f   : > { %413 = vmatpush3.bf16.msra.mxu0 %v436_v7 }
  0x20   : > { %414 = vmatprep.subr.bf16.mxu0 %v447_v1 }
  0x23   : > { %415 = vmatpush3.bf16.msra.mxu0 %v437_v8 }
  0x26   : > { %417 = vmatmul.mubr.bf16.vlgmr.msra.gmra.mrb[0].mxu0 %v438_v9 }
  0xf9   : > { %v288_v11 = vpop.f32.mrb[0].mxu0 }
  0xfa   : > { %v418_v12 = vpop.f32.mrb[1].mxu0  ;;  %v289_v14 = vadd.f32 %v370_v10, %v288_v11 }
  0xfb   : > { %v291_v13 = vpop.f32.mrb[2].mxu0 }
  0xfc   : > { %v292_v15 = vadd.f32 %v370_v10, %v291_v13  ;;  %v419_v16 = vpop.f32.mrb[3].mxu0 }
  0xfe   : > { %v389_v17 = vpack.c.bf16 %v292_v15, %v289_v14 }
 0x100   : > { %390 = vst [vmem:[%s172_s13] sm:$0xff] %v389_v17  }
 0x101 PF: > { %s13_s12 = sadd.s32 1, %s445_s12  }
 0x102   : > { %p10_p4 = scmp.ge.s32.totalorder %s13_s12, 4  }
 0x104   :  { %12 = sbr.rel (!%p10_p4) target bundleno = 1 (0x1), region = 62 }

// kernel: resnet_wsl_forward.34
= control target key start
LH: loop header
LB: loop body
LE: loop exit
PB: predicated region body
PF: predicated region fallthrough
CT: control target
= control target key end

     0   :  { %s552_s12 = smov 0   ;;  %s624_s0 = inlined_call_operand.vmem [shape: bf16[32,256], index: 0, kind: input, shape index: {}]   ;;  %s625_s1 = inlined_call_operand.vmem [shape: bf16[256,128], index: 1, kind: input, shape index: {}]   ;;  %s626_s2 = inlined_call_operand.vmem [shape: f32[1,128], index: 2, kind: input, shape index: {}]   ;;  %s627_s3 = inlined_call_operand.vmem [shape: bf16[32,128], index: 3, kind: output, shape index: {}]  }
   0x1 LB: > { %s434_s13 = sadd.s32 4294967295, %s530_s12   ;;  %p438_p0 = scmp.ge.s32.totalorder %s530_s12, 1  ;;  %s530_s12 = sphi %s552_s12, %s13_s12  }
   0x2   : > { %p139_p1 = scmp.lt.s32.totalorder %s530_s12, 3 }
   0x4   : > { %p140_p2 = pnand %p438_p0, %p139_p1 }
   0x5   : > { %v505_v0 = vld [vmem:[%s625_s1 + $0x40] sm:$0xff] (!%p140_p2)   ;;  %s439_s16 = sshll.u32 (!%p140_p2), %s434_s13, 1  ;;  %v507_v2 = vld [vmem:[%s625_s1 + $0x48] sm:$0xff] (!%p140_p2)   ;;  %v509_v4 = vld [vmem:[%s625_s1 + $0x50] sm:$0xff] (!%p140_p2)  }
   0x6   : > { %143 = sbr.rel (%p140_p2) target bundleno = 262 (0x106), region = 32  ;;  %v506_v1 = vld [vmem:[%s625_s1] sm:$0xff] (!%p140_p2)   ;;  %475 = vmatprep.subr.bf16.mxu0 (!%p140_p2), %v505_v0  ;;  %v508_v3 = vld [vmem:[%s625_s1 + $0x8] sm:$0xff] (!%p140_p2)   ;;  %p165_p3 = scmp.lt.s32.totalorder (!%p140_p2), %s439_s16, 3  ;;  %v510_v5 = vld [vmem:[%s625_s1 + $0x10] sm:$0xff] (!%p140_p2)  }
   0x7   : > { %476 = vmatpush3.bf16.msra.mxu0 (!%p140_p2), %v506_v1  ;;  %v511_v6 = vld [vmem:[%s625_s1 + $0x58] sm:$0xff] (!%p140_p2)   ;;  %v513_v8 = vld [vmem:[%s625_s1 + $0x60] sm:$0xff] (!%p140_p2)   ;;  %v515_v10 = vld [vmem:[%s625_s1 + $0x68] sm:$0xff] (!%p140_p2)  }
   0x8   : > { %477 = vmatprep.subr.bf16.mxu0 (!%p140_p2), %v507_v2  ;;  %v512_v7 = vld [vmem:[%s625_s1 + $0x18] sm:$0xff] (!%p140_p2)   ;;  %v514_v9 = vld [vmem:[%s625_s1 + $0x20] sm:$0xff] (!%p140_p2)   ;;  %v516_v12 = vld [vmem:[%s625_s1 + $0x28] sm:$0xff] (!%p140_p2)  }
   0x9   : > { %v517_v13 = vld [vmem:[%s625_s1 + $0x70] sm:$0xff] (!%p140_p2)   ;;  %v519_v15 = vld [vmem:[%s625_s1 + $0x78] sm:$0xff] (!%p140_p2)   ;;  %v444_v19 = vld [vmem:[%s626_s2] ss:$0 sm:$0xff] (!%p140_p2) }
   0xa   : > { %v518_v14 = vld [vmem:[%s625_s1 + $0x30] sm:$0xff] (!%p140_p2)   ;;  %v520_v16 = vld [vmem:[%s625_s1 + $0x38] sm:$0xff] (!%p140_p2)  }
   0xb   : > { %478 = vmatpush3.bf16.msra.mxu0 (!%p140_p2), %v508_v3 }
   0xc   : > { %479 = vmatprep.subr.bf16.mxu0 (!%p140_p2), %v509_v4 }
   0xd   : > { %s629_s16 = smov (!%p165_p3, %s439_s16), 3 }
   0xe   : > { %s467_s4 = sshll.u32 %s629_s16, 3  ;;  %s443_s28 = sshll.u32 %s629_s16, 2 }
   0xf   : > { %480 = vmatpush3.bf16.msra.mxu0 %v510_v5  ;;  %s169_s9 = scalar_lea.vmem %s624_s0, %s467_s4  ;;  %s175_s4 = scalar_lea.vmem %s627_s3, %s443_s28 }
  0x10   : > { %481 = vmatprep.subr.bf16.mxu0 %v511_v6  ;;  %v523_v11 = vld [vmem:[%s169_s9 + $0x4] ss:$8 sps:$4 sm:$0xff]   ;;  %v521_v17 = vld [vmem:[%s169_s9] ss:$8 sps:$4 sm:$0xff]  }
  0x11   : > { %357 = vmatprep.mubr.bf16.mxu0 %v523_v11 }
  0x13   : > { %482 = vmatpush3.bf16.msra.mxu0 %v512_v7 }
  0x14   : > { %483 = vmatprep.subr.bf16.mxu0 %v513_v8 }
  0x17   : > { %484 = vmatpush3.bf16.msra.mxu0 %v514_v9 }
  0x18   : > { %485 = vmatprep.subr.bf16.mxu0 %v515_v10 }
  0x1b   : > { %486 = vmatpush3.bf16.msra.mxu0 %v516_v12 }
  0x1c   : > { %487 = vmatprep.subr.bf16.mxu0 %v517_v13 }
  0x1f   : > { %488 = vmatpush3.bf16.msra.mxu0 %v518_v14 }
  0x20   : > { %489 = vmatprep.subr.bf16.mxu0 %v519_v15 }
  0x23   : > { %490 = vmatpush3.bf16.msra.mxu0 %v520_v16 }
  0x26   : > { %358 = vmatmul.mubr.bf16.vlgmr.msra.gmra.mrb[0].mxu0 %v521_v17 }
  0xf9   : > { %v491_v18 = vpop.f32.mrb[0].mxu0 }
  0xfa   : > { %v492_v20 = vpop.f32.mrb[1].mxu0 }
  0xfb   : > { %v493_v21 = vadd.f32 %v492_v20, %v491_v18  ;;  %v494_v22 = vpop.f32.mrb[2].mxu0 }
  0xfc   : > { %v495_v23 = vpop.f32.mrb[3].mxu0 }
  0xfd   : > { %v360_v24 = vadd.f32 %v493_v21, %v444_v19  ;;  %v496_v25 = vadd.f32 %v495_v23, %v494_v22 }
  0xff   : > { %v363_v26 = vadd.f32 %v496_v25, %v444_v19  ;;  %v366_v27 = vmax.f32 %v360_v24, 0.0 }
 0x101   : > { %v367_v28 = vmax.f32 %v363_v26, 0.0 }
 0x103   : > { %v473_v29 = vpack.c.bf16 %v367_v28, %v366_v27 }
 0x105   : > { %474 = vst [vmem:[%s175_s4] sm:$0xff] %v473_v29  }
 0x106 PF: > { %s13_s12 = sadd.s32 1, %s530_s12  }
 0x107   : > { %p10_p4 = scmp.ge.s32.totalorder %s13_s12, 4  }
 0x109   :  { %12 = sbr.rel (!%p10_p4) target bundleno = 1 (0x1), region = 62 }

// kernel: resnet_wsl_forward.36
= control target key start
LH: loop header
LB: loop body
LE: loop exit
PB: predicated region body
PF: predicated region fallthrough
CT: control target
= control target key end

     0   :  { %s715_s12 = smov 0   ;;  %s811_s0 = inlined_call_operand.vmem [shape: bf16[32,384], index: 0, kind: input, shape index: {}]   ;;  %s812_s1 = inlined_call_operand.vmem [shape: bf16[384,128], index: 1, kind: input, shape index: {}]   ;;  %s813_s2 = inlined_call_operand.vmem [shape: f32[1,128], index: 2, kind: input, shape index: {}]   ;;  %s814_s3 = inlined_call_operand.vmem [shape: bf16[32,128], index: 3, kind: output, shape index: {}]  }
   0x1 LB: > { %s547_s13 = sadd.s32 4294967295, %s691_s12   ;;  %p551_p0 = scmp.ge.s32.totalorder %s691_s12, 1  ;;  %s691_s12 = sphi %s715_s12, %s13_s12  }
   0x2   : > { %p139_p1 = scmp.lt.s32.totalorder %s691_s12, 3 }
   0x4   : > { %p140_p2 = pnand %p551_p0, %p139_p1 }
   0x5   : > { %v657_v0 = vld [vmem:[%s812_s1 + $0x40] sm:$0xff] (!%p140_p2)   ;;  %v693_v2 = vmov (!%p140_p2), 0.0   ;;  %v660_v4 = vld [vmem:[%s812_s1 + $0x48] sm:$0xff] (!%p140_p2)   ;;  %vm694_vm0 = vmmov (!%p140_p2), 0   ;;  %v663_v7 = vld [vmem:[%s812_s1 + $0x50] sm:$0xff] (!%p140_p2)   ;;  %s552_s28 = sshll.u32 (!%p140_p2), %s547_s13, 1 }
   0x6   : > { %143 = sbr.rel (%p140_p2) target bundleno = 264 (0x108), region = 32  ;;  %v658_v1 = vld [vmem:[%s812_s1] sm:$0xff] (!%p140_p2)   ;;  %626 = vmatprep.subr.bf16.mxu1 (!%p140_p2), %v693_v2  ;;  %595 = vmatprep.subr.bf16.mxu0 (!%p140_p2), %v657_v0  ;;  %v661_v5 = vld [vmem:[%s812_s1 + $0x8] sm:$0xff] (!%p140_p2)   ;;  %v664_v8 = vld [vmem:[%s812_s1 + $0x10] sm:$0xff] (!%p140_p2)   ;;  %p165_p3 = scmp.lt.s32.totalorder (!%p140_p2), %s552_s28, 3 }
   0x7   : > { %v659_v3 = vld [vmem:[%s812_s1 + $0x80] sm:$0xff] (!%p140_p2)   ;;  %596 = vmatpush3.bf16.msra.mxu0 (!%p140_p2), %v658_v1  ;;  %642 = vmatprep.mubr.msk.bf16.mxu1 (!%p140_p2), %vm694_vm0, %v693_v2  ;;  %v662_v6 = vld [vmem:[%s812_s1 + $0x88] sm:$0xff] (!%p140_p2)   ;;  %v665_v9 = vld [vmem:[%s812_s1 + $0x90] sm:$0xff] (!%p140_p2)  }
   0x8   : > { %627 = vmatpush3.bf16.msra.mxu1 (!%p140_p2), %v659_v3  ;;  %597 = vmatprep.subr.bf16.mxu0 (!%p140_p2), %v660_v4  ;;  %v666_v10 = vld [vmem:[%s812_s1 + $0x58] sm:$0xff] (!%p140_p2)   ;;  %v669_v13 = vld [vmem:[%s812_s1 + $0x60] sm:$0xff] (!%p140_p2)   ;;  %v672_v16 = vld [vmem:[%s812_s1 + $0x68] sm:$0xff] (!%p140_p2)  }
   0x9   : > { %628 = vmatprep.subr.bf16.mxu1 (!%p140_p2), %v693_v2  ;;  %v667_v11 = vld [vmem:[%s812_s1 + $0x18] sm:$0xff] (!%p140_p2)   ;;  %v670_v14 = vld [vmem:[%s812_s1 + $0x20] sm:$0xff] (!%p140_p2)   ;;  %v673_v17 = vld [vmem:[%s812_s1 + $0x28] sm:$0xff] (!%p140_p2)  }
   0xa   : > { %v668_v12 = vld [vmem:[%s812_s1 + $0x98] sm:$0xff] (!%p140_p2)   ;;  %v671_v15 = vld [vmem:[%s812_s1 + $0xa0] sm:$0xff] (!%p140_p2)   ;;  %v674_v18 = vld [vmem:[%s812_s1 + $0xa8] sm:$0xff] (!%p140_p2)  }
   0xb   : > { %598 = vmatpush3.bf16.msra.mxu0 (!%p140_p2), %v661_v5  ;;  %v675_v19 = vld [vmem:[%s812_s1 + $0x70] sm:$0xff] (!%p140_p2)   ;;  %v678_v22 = vld [vmem:[%s812_s1 + $0x78] sm:$0xff] (!%p140_p2)   ;;  %v556_v30 = vld [vmem:[%s813_s2] ss:$0 sm:$0xff] (!%p140_p2) }
   0xc   : > { %629 = vmatpush3.bf16.msra.mxu1 (!%p140_p2), %v662_v6  ;;  %599 = vmatprep.subr.bf16.mxu0 (!%p140_p2), %v663_v7  ;;  %v676_v20 = vld [vmem:[%s812_s1 + $0x30] sm:$0xff] (!%p140_p2)   ;;  %v679_v24 = vld [vmem:[%s812_s1 + $0x38] sm:$0xff] (!%p140_p2)  }
   0xd   : > { %630 = vmatprep.subr.bf16.mxu1 %v693_v2  ;;  %s816_s28 = smov (!%p165_p3, %s552_s28), 3  ;;  %v677_v21 = vld [vmem:[%s812_s1 + $0xb0] sm:$0xff]   ;;  %v683_v25 = vld [vmem:[%s812_s1 + $0xb8] sm:$0xff]  }
   0xe   : > { %s646_s21 = smul.u32 12, %s816_s28  ;;  %s555_s18 = sshll.u32 %s816_s28, 2 }
   0xf   : > { %600 = vmatpush3.bf16.msra.mxu0 %v664_v8 }
  0x10   : > { %631 = vmatpush3.bf16.msra.mxu1 %v665_v9  ;;  %601 = vmatprep.subr.bf16.mxu0 %v666_v10  ;;  %s169_s6 = scalar_lea.vmem %s811_s0, %s646_s21  ;;  %s175_s21 = scalar_lea.vmem %s814_s3, %s555_s18 }
  0x11   : > { %632 = vmatprep.subr.bf16.mxu1 %v693_v2  ;;  %v682_v23 = vld [vmem:[%s169_s6 + $0x4] ss:$12 sps:$4 sm:$0xff]   ;;  %v680_v26 = vld [vmem:[%s169_s6] ss:$12 sps:$4 sm:$0xff]   ;;  %v684_v27 = vld [vmem:[%s169_s6 + $0x8] ss:$12 sps:$4 sm:$0xff]  }
  0x12   : > { %429 = vmatprep.mubr.bf16.mxu0 %v682_v23 }
  0x13   : > { %602 = vmatpush3.bf16.msra.mxu0 %v667_v11 }
  0x14   : > { %633 = vmatpush3.bf16.msra.mxu1 %v668_v12  ;;  %603 = vmatprep.subr.bf16.mxu0 %v669_v13 }
  0x15   : > { %634 = vmatprep.subr.bf16.mxu1 %v693_v2 }
  0x17   : > { %604 = vmatpush3.bf16.msra.mxu0 %v670_v14 }
  0x18   : > { %635 = vmatpush3.bf16.msra.mxu1 %v671_v15  ;;  %605 = vmatprep.subr.bf16.mxu0 %v672_v16 }
  0x19   : > { %636 = vmatprep.subr.bf16.mxu1 %v693_v2 }
  0x1b   : > { %606 = vmatpush3.bf16.msra.mxu0 %v673_v17 }
  0x1c   : > { %637 = vmatpush3.bf16.msra.mxu1 %v674_v18  ;;  %607 = vmatprep.subr.bf16.mxu0 %v675_v19 }
  0x1d   : > { %638 = vmatprep.subr.bf16.mxu1 %v693_v2 }
  0x1f   : > { %608 = vmatpush3.bf16.msra.mxu0 %v676_v20 }
  0x20   : > { %639 = vmatpush3.bf16.msra.mxu1 %v677_v21  ;;  %609 = vmatprep.subr.bf16.mxu0 %v678_v22 }
  0x21   : > { %640 = vmatprep.subr.bf16.mxu1 %v693_v2 }
  0x23   : > { %610 = vmatpush3.bf16.msra.mxu0 %v679_v24 }
  0x24   : > { %641 = vmatpush3.bf16.msra.mxu1 %v683_v25 }
  0x26   : > { %430 = vmatmul.mubr.bf16.vlgmr.msra.gmra.mrb[0].mxu0 %v680_v26 }
  0x27   : > { %643 = vmatmul.mubr.bf16.vlgmr.msra.gmra.mrb[0].mxu1 %v684_v27 }
  0xf9   : > { %v611_v28 = vpop.f32.mrb[0].mxu0 }
  0xfa   : > { %v612_v29 = vpop.f32.mrb[1].mxu0  ;;  %v472_v31 = vpop.f32.mrb[0].mxu1 }
  0xfb   : > { %v613_v32 = vadd.f32 %v612_v29, %v611_v28  ;;  %v614_v33 = vpop.f32.mrb[2].mxu0  ;;  %v644_v34 = vpop.f32.mrb[1].mxu1 }
  0xfc   : > { %v615_v35 = vpop.f32.mrb[3].mxu0  ;;  %v475_v36 = vpop.f32.mrb[2].mxu1 }
  0xfd   : > { %v432_v37 = vadd.f32 %v613_v32, %v556_v30  ;;  %v616_v38 = vadd.f32 %v615_v35, %v614_v33  ;;  %v645_v39 = vpop.f32.mrb[3].mxu1 }
  0xff   : > { %v473_v40 = vadd.f32 %v472_v31, %v432_v37  ;;  %v435_v41 = vadd.f32 %v616_v38, %v556_v30 }
 0x101   : > { %v476_v42 = vadd.f32 %v475_v36, %v435_v41  ;;  %v479_v43 = vmax.f32 %v473_v40, 0.0 }
 0x103   : > { %v480_v44 = vmax.f32 %v476_v42, 0.0 }
 0x105   : > { %v593_v45 = vpack.c.bf16 %v480_v44, %v479_v43 }
 0x107   : > { %594 = vst [vmem:[%s175_s21] sm:$0xff] %v593_v45  }
 0x108 PF: > { %s13_s12 = sadd.s32 1, %s691_s12  }
 0x109   : > { %p10_p4 = scmp.ge.s32.totalorder %s13_s12, 4  }
 0x10b   :  { %12 = sbr.rel (!%p10_p4) target bundleno = 1 (0x1), region = 62 }

// kernel: resnet_wsl_forward.38
= control target key start
LH: loop header
LB: loop body
LE: loop exit
PB: predicated region body
PF: predicated region fallthrough
CT: control target
= control target key end

     0   :  { %v181_v0 = vmov 0.0   ;;  %vm182_vm0 = vmmov 0   ;;  %s236_s1 = inlined_call_operand.vmem [shape: bf16[128,128], index: 1, kind: input, shape index: {}]   ;;  %s237_s0 = inlined_call_operand.vmem [shape: bf16[8,128], index: 0, kind: input, shape index: {}]   ;;  %s238_s2 = inlined_call_operand.vmem [shape: f32[1,128], index: 2, kind: input, shape index: {}]   ;;  %s239_s3 = inlined_call_operand.vmem [shape: bf16[8,128], index: 3, kind: output, shape index: {}]  }
   0x1   :  { %151 = vmatprep.subr.bf16.mxu0 %v181_v0  ;;  %v173_v1 = vld [vmem:[%s236_s1] sm:$0xff]   ;;  %167 = vmatprep.mubr.msk.bf16.mxu0 %vm182_vm0, %v181_v0  ;;  %v174_v2 = vld [vmem:[%s236_s1 + $0x8] sm:$0xff]   ;;  %v175_v3 = vld [vmem:[%s236_s1 + $0x10] sm:$0xff]  }
   0x2   :  { %152 = vmatpush3.bf16.msra.mxu0 %v173_v1  ;;  %v176_v4 = vld [vmem:[%s236_s1 + $0x18] sm:$0xff]   ;;  %v177_v5 = vld [vmem:[%s236_s1 + $0x20] sm:$0xff]   ;;  %v178_v6 = vld [vmem:[%s236_s1 + $0x28] sm:$0xff]  }
   0x3   :  { %153 = vmatprep.subr.bf16.mxu0 %v181_v0  ;;  %v179_v7 = vld [vmem:[%s236_s1 + $0x30] sm:$0xff]   ;;  %v180_v8 = vld [vmem:[%s236_s1 + $0x38] sm:$0xff]   ;;  %v15_v9 = vld [vmem:[%s237_s0] sm:$0xf] }
   0x4   :  { %v133_v10 = vld [vmem:[%s238_s2] ss:$0 sm:$0xff] }
   0x6   :  { %154 = vmatpush3.bf16.msra.mxu0 %v174_v2 }
   0x7   :  { %155 = vmatprep.subr.bf16.mxu0 %v181_v0 }
   0xa   :  { %156 = vmatpush3.bf16.msra.mxu0 %v175_v3 }
   0xb   :  { %157 = vmatprep.subr.bf16.mxu0 %v181_v0 }
   0xe   :  { %158 = vmatpush3.bf16.msra.mxu0 %v176_v4 }
   0xf   :  { %159 = vmatprep.subr.bf16.mxu0 %v181_v0 }
  0x12   :  { %160 = vmatpush3.bf16.msra.mxu0 %v177_v5 }
  0x13   :  { %161 = vmatprep.subr.bf16.mxu0 %v181_v0 }
  0x16   :  { %162 = vmatpush3.bf16.msra.mxu0 %v178_v6 }
  0x17   :  { %163 = vmatprep.subr.bf16.mxu0 %v181_v0 }
  0x1a   :  { %164 = vmatpush3.bf16.msra.mxu0 %v179_v7 }
  0x1b   :  { %165 = vmatprep.subr.bf16.mxu0 %v181_v0 }
  0x1e   :  { %166 = vmatpush3.bf16.msra.mxu0 %v180_v8 }
  0x21   :  { %168 = vmatmul.mubr.bf16.vlgmr.msra.gmra.mrb[0].mxu0 %v15_v9 }
  0xf4   :  { %v121_v11 = vpop.f32.mrb[0].mxu0 }
  0xf5   :  { %v122_v12 = vadd.f32 %v133_v10, %v121_v11  ;;  %v169_v13 = vpop.f32.mrb[1].mxu0 }
  0xf6   :  { %v124_v14 = vpop.f32.mrb[2].mxu0 }
  0xf7   :  { %v127_v15 = vpack.c.bf16 %v122_v12, %v122_v12  ;;  %v170_v16 = vpop.f32.mrb[3].mxu0 }
  0xf9   :  { %128 = vst [vmem:[%s239_s3] sm:$0xf] %v127_v15 }

// kernel: resnet_wsl_forward.35
= control target key start
LH: loop header
LB: loop body
LE: loop exit
PB: predicated region body
PF: predicated region fallthrough
CT: control target
= control target key end

     0   :  { %s793_s15 = smov 0   ;;  %s892_s0 = inlined_call_operand.vmem [shape: bf16[32,384], index: 0, kind: input, shape index: {}]   ;;  %s893_s1 = inlined_call_operand.vmem [shape: bf16[384,128], index: 1, kind: input, shape index: {}]   ;;  %s894_s2 = inlined_call_operand.vmem [shape: f32[1,128], index: 2, kind: input, shape index: {}]   ;;  %s895_s3 = inlined_call_operand.vmem [shape: bf16[32,128], index: 3, kind: input, shape index: {}]   ;;  %s896_s4 = inlined_call_operand.vmem [shape: bf16[32,128], index: 4, kind: output, shape index: {}]  }
   0x1 LB: > { %s614_s16 = sadd.s32 4294967295, %s764_s15   ;;  %p618_p0 = scmp.ge.s32.totalorder %s764_s15, 1  ;;  %s764_s15 = sphi %s793_s15, %s14_s15  }
   0x2   : > { %p175_p1 = scmp.lt.s32.totalorder %s764_s15, 3 }
   0x4   : > { %p176_p2 = pnand %p618_p0, %p175_p1 }
   0x5   : > { %v730_v0 = vld [vmem:[%s893_s1 + $0x40] sm:$0xff] (!%p176_p2)   ;;  %v766_v2 = vmov (!%p176_p2), 0.0   ;;  %v733_v4 = vld [vmem:[%s893_s1 + $0x48] sm:$0xff] (!%p176_p2)   ;;  %vm767_vm0 = vmmov (!%p176_p2), 0   ;;  %v736_v7 = vld [vmem:[%s893_s1 + $0x50] sm:$0xff] (!%p176_p2)   ;;  %s619_s5 = sshll.u32 (!%p176_p2), %s614_s16, 1 }
   0x6   : > { %179 = sbr.rel (%p176_p2) target bundleno = 266 (0x10a), region = 36  ;;  %v731_v1 = vld [vmem:[%s893_s1] sm:$0xff] (!%p176_p2)   ;;  %699 = vmatprep.subr.bf16.mxu1 (!%p176_p2), %v766_v2  ;;  %668 = vmatprep.subr.bf16.mxu0 (!%p176_p2), %v730_v0  ;;  %v734_v5 = vld [vmem:[%s893_s1 + $0x8] sm:$0xff] (!%p176_p2)   ;;  %v737_v8 = vld [vmem:[%s893_s1 + $0x10] sm:$0xff] (!%p176_p2)   ;;  %p208_p3 = scmp.lt.s32.totalorder (!%p176_p2), %s619_s5, 3 }
   0x7   : > { %v732_v3 = vld [vmem:[%s893_s1 + $0x80] sm:$0xff] (!%p176_p2)   ;;  %669 = vmatpush3.bf16.msra.mxu0 (!%p176_p2), %v731_v1  ;;  %715 = vmatprep.mubr.msk.bf16.mxu1 (!%p176_p2), %vm767_vm0, %v766_v2  ;;  %v735_v6 = vld [vmem:[%s893_s1 + $0x88] sm:$0xff] (!%p176_p2)   ;;  %v738_v9 = vld [vmem:[%s893_s1 + $0x90] sm:$0xff] (!%p176_p2)  }
   0x8   : > { %700 = vmatpush3.bf16.msra.mxu1 (!%p176_p2), %v732_v3  ;;  %670 = vmatprep.subr.bf16.mxu0 (!%p176_p2), %v733_v4  ;;  %v739_v10 = vld [vmem:[%s893_s1 + $0x58] sm:$0xff] (!%p176_p2)   ;;  %v742_v13 = vld [vmem:[%s893_s1 + $0x60] sm:$0xff] (!%p176_p2)   ;;  %v745_v16 = vld [vmem:[%s893_s1 + $0x68] sm:$0xff] (!%p176_p2)  }
   0x9   : > { %701 = vmatprep.subr.bf16.mxu1 (!%p176_p2), %v766_v2  ;;  %v740_v11 = vld [vmem:[%s893_s1 + $0x18] sm:$0xff] (!%p176_p2)   ;;  %v743_v14 = vld [vmem:[%s893_s1 + $0x20] sm:$0xff] (!%p176_p2)   ;;  %v746_v17 = vld [vmem:[%s893_s1 + $0x28] sm:$0xff] (!%p176_p2)  }
   0xa   : > { %v741_v12 = vld [vmem:[%s893_s1 + $0x98] sm:$0xff] (!%p176_p2)   ;;  %v744_v15 = vld [vmem:[%s893_s1 + $0xa0] sm:$0xff] (!%p176_p2)   ;;  %v747_v18 = vld [vmem:[%s893_s1 + $0xa8] sm:$0xff] (!%p176_p2)  }
   0xb   : > { %671 = vmatpush3.bf16.msra.mxu0 (!%p176_p2), %v734_v5  ;;  %v748_v19 = vld [vmem:[%s893_s1 + $0x70] sm:$0xff] (!%p176_p2)   ;;  %v751_v22 = vld [vmem:[%s893_s1 + $0x78] sm:$0xff] (!%p176_p2)   ;;  %v625_v30 = vld [vmem:[%s894_s2] ss:$0 sm:$0xff] (!%p176_p2) }
   0xc   : > { %702 = vmatpush3.bf16.msra.mxu1 (!%p176_p2), %v735_v6  ;;  %672 = vmatprep.subr.bf16.mxu0 (!%p176_p2), %v736_v7  ;;  %v749_v20 = vld [vmem:[%s893_s1 + $0x30] sm:$0xff] (!%p176_p2)   ;;  %v752_v24 = vld [vmem:[%s893_s1 + $0x38] sm:$0xff] (!%p176_p2)  }
   0xd   : > { %703 = vmatprep.subr.bf16.mxu1 %v766_v2  ;;  %s898_s5 = smov (!%p208_p3, %s619_s5), 3  ;;  %v750_v21 = vld [vmem:[%s893_s1 + $0xb0] sm:$0xff]   ;;  %v756_v25 = vld [vmem:[%s893_s1 + $0xb8] sm:$0xff]  }
   0xe   : > { %s719_s25 = smul.u32 12, %s898_s5  ;;  %s622_s21 = sshll.u32 %s898_s5, 2 }
   0xf   : > { %673 = vmatpush3.bf16.msra.mxu0 %v737_v8  ;;  %s218_s24 = scalar_lea.vmem %s895_s3, %s622_s21  ;;  %s224_s28 = scalar_lea.vmem %s896_s4, %s622_s21 }
  0x10   : > { %704 = vmatpush3.bf16.msra.mxu1 %v738_v9  ;;  %674 = vmatprep.subr.bf16.mxu0 %v739_v10  ;;  %s212_s11 = scalar_lea.vmem %s892_s0, %s719_s25  ;;  %v660_v32 = vld [vmem:[%s218_s24] sm:$0xff]  }
  0x11   : > { %705 = vmatprep.subr.bf16.mxu1 %v766_v2  ;;  %v755_v23 = vld [vmem:[%s212_s11 + $0x4] ss:$12 sps:$4 sm:$0xff]   ;;  %v753_v26 = vld [vmem:[%s212_s11] ss:$12 sps:$4 sm:$0xff]   ;;  %v757_v27 = vld [vmem:[%s212_s11 + $0x8] ss:$12 sps:$4 sm:$0xff]   ;;  %v661_v39 = vunpack.c.l.bf16 %v660_v32  ;;  %v662_v44 = vunpack.c.h.bf16 %v660_v32 }
  0x12   : > { %478 = vmatprep.mubr.bf16.mxu0 %v755_v23 }
  0x13   : > { %675 = vmatpush3.bf16.msra.mxu0 %v740_v11 }
  0x14   : > { %706 = vmatpush3.bf16.msra.mxu1 %v741_v12  ;;  %676 = vmatprep.subr.bf16.mxu0 %v742_v13 }
  0x15   : > { %707 = vmatprep.subr.bf16.mxu1 %v766_v2 }
  0x17   : > { %677 = vmatpush3.bf16.msra.mxu0 %v743_v14 }
  0x18   : > { %708 = vmatpush3.bf16.msra.mxu1 %v744_v15  ;;  %678 = vmatprep.subr.bf16.mxu0 %v745_v16 }
  0x19   : > { %709 = vmatprep.subr.bf16.mxu1 %v766_v2 }
  0x1b   : > { %679 = vmatpush3.bf16.msra.mxu0 %v746_v17 }
  0x1c   : > { %710 = vmatpush3.bf16.msra.mxu1 %v747_v18  ;;  %680 = vmatprep.subr.bf16.mxu0 %v748_v19 }
  0x1d   : > { %711 = vmatprep.subr.bf16.mxu1 %v766_v2 }
  0x1f   : > { %681 = vmatpush3.bf16.msra.mxu0 %v749_v20 }
  0x20   : > { %712 = vmatpush3.bf16.msra.mxu1 %v750_v21  ;;  %682 = vmatprep.subr.bf16.mxu0 %v751_v22 }
  0x21   : > { %713 = vmatprep.subr.bf16.mxu1 %v766_v2 }
  0x23   : > { %683 = vmatpush3.bf16.msra.mxu0 %v752_v24 }
  0x24   : > { %714 = vmatpush3.bf16.msra.mxu1 %v756_v25 }
  0x26   : > { %479 = vmatmul.mubr.bf16.vlgmr.msra.gmra.mrb[0].mxu0 %v753_v26 }
  0x27   : > { %716 = vmatmul.mubr.bf16.vlgmr.msra.gmra.mrb[0].mxu1 %v757_v27 }
  0xf9   : > { %v684_v28 = vpop.f32.mrb[0].mxu0 }
  0xfa   : > { %v685_v29 = vpop.f32.mrb[1].mxu0  ;;  %v521_v31 = vpop.f32.mrb[0].mxu1 }
  0xfb   : > { %v686_v33 = vadd.f32 %v685_v29, %v684_v28  ;;  %v687_v34 = vpop.f32.mrb[2].mxu0  ;;  %v717_v35 = vpop.f32.mrb[1].mxu1 }
  0xfc   : > { %v688_v36 = vpop.f32.mrb[3].mxu0  ;;  %v524_v37 = vpop.f32.mrb[2].mxu1 }
  0xfd   : > { %v481_v38 = vadd.f32 %v686_v33, %v625_v30  ;;  %v689_v40 = vadd.f32 %v688_v36, %v687_v34  ;;  %v718_v41 = vpop.f32.mrb[3].mxu1 }
  0xff   : > { %v522_v42 = vadd.f32 %v521_v31, %v481_v38  ;;  %v484_v43 = vadd.f32 %v689_v40, %v625_v30 }
 0x101   : > { %v532_v45 = vadd.f32 %v661_v39, %v522_v42  ;;  %v525_v46 = vadd.f32 %v524_v37, %v484_v43 }
 0x103   : > { %v533_v47 = vadd.f32 %v662_v44, %v525_v46  ;;  %v534_v48 = vmax.f32 %v532_v45, 0.0 }
 0x105   : > { %v535_v49 = vmax.f32 %v533_v47, 0.0 }
 0x107   : > { %v666_v50 = vpack.c.bf16 %v535_v49, %v534_v48 }
 0x109   : > { %667 = vst [vmem:[%s224_s28] sm:$0xff] %v666_v50  }
 0x10a PF: > { %s14_s15 = sadd.s32 1, %s764_s15  }
 0x10b   : > { %p11_p4 = scmp.ge.s32.totalorder %s14_s15, 4  }
 0x10d   :  { %13 = sbr.rel (!%p11_p4) target bundleno = 1 (0x1), region = 69 }

// kernel: resnet_wsl_forward.39
= control target key start
LH: loop header
LB: loop body
LE: loop exit
PB: predicated region body
PF: predicated region fallthrough
CT: control target
= control target key end

     0   :  { %v422_v1 = vmov 0.0   ;;  %vm423_vm0 = vmmov 0   ;;  %s528_s1 = inlined_call_operand.vmem [shape: bf16[384,128], index: 1, kind: input, shape index: {}]   ;;  %s529_s0 = inlined_call_operand.vmem [shape: bf16[8,384], index: 0, kind: input, shape index: {}]   ;;  %s530_s2 = inlined_call_operand.vmem [shape: f32[1,128], index: 2, kind: input, shape index: {}]   ;;  %s531_s3 = inlined_call_operand.vmem [shape: bf16[8,128], index: 3, kind: output, shape index: {}]  }
   0x1   :  { %v395_v0 = vld [vmem:[%s528_s1 + $0x40] sm:$0xff]   ;;  %373 = vmatprep.subr.bf16.mxu1 %v422_v1  ;;  %389 = vmatprep.mubr.msk.bf16.mxu1 %vm423_vm0, %v422_v1  ;;  %v398_v4 = vld [vmem:[%s528_s1 + $0x48] sm:$0xff]   ;;  %v401_v7 = vld [vmem:[%s528_s1 + $0x50] sm:$0xff]  }
   0x2   :  { %v396_v2 = vld [vmem:[%s528_s1] sm:$0xff]   ;;  %342 = vmatprep.subr.bf16.mxu0 %v395_v0  ;;  %v399_v5 = vld [vmem:[%s528_s1 + $0x8] sm:$0xff]   ;;  %v402_v8 = vld [vmem:[%s528_s1 + $0x10] sm:$0xff]  }
   0x3   :  { %v397_v3 = vld [vmem:[%s528_s1 + $0x80] sm:$0xff]   ;;  %343 = vmatpush3.bf16.msra.mxu0 %v396_v2  ;;  %v400_v6 = vld [vmem:[%s528_s1 + $0x88] sm:$0xff]   ;;  %v403_v9 = vld [vmem:[%s528_s1 + $0x90] sm:$0xff]  }
   0x4   :  { %374 = vmatpush3.bf16.msra.mxu1 %v397_v3  ;;  %344 = vmatprep.subr.bf16.mxu0 %v398_v4  ;;  %v404_v10 = vld [vmem:[%s528_s1 + $0x58] sm:$0xff]   ;;  %v407_v13 = vld [vmem:[%s528_s1 + $0x60] sm:$0xff]   ;;  %v410_v16 = vld [vmem:[%s528_s1 + $0x68] sm:$0xff]  }
   0x5   :  { %375 = vmatprep.subr.bf16.mxu1 %v422_v1  ;;  %v405_v11 = vld [vmem:[%s528_s1 + $0x18] sm:$0xff]   ;;  %v408_v14 = vld [vmem:[%s528_s1 + $0x20] sm:$0xff]   ;;  %v411_v17 = vld [vmem:[%s528_s1 + $0x28] sm:$0xff]  }
   0x6   :  { %v406_v12 = vld [vmem:[%s528_s1 + $0x98] sm:$0xff]   ;;  %v409_v15 = vld [vmem:[%s528_s1 + $0xa0] sm:$0xff]   ;;  %v412_v18 = vld [vmem:[%s528_s1 + $0xa8] sm:$0xff]  }
   0x7   :  { %345 = vmatpush3.bf16.msra.mxu0 %v399_v5  ;;  %v413_v19 = vld [vmem:[%s528_s1 + $0x70] sm:$0xff]   ;;  %v15_v22 = vld [vmem:[%s529_s0] sm:$0xff]  ;;  %v416_v23 = vld [vmem:[%s528_s1 + $0x78] sm:$0xff]  }
   0x8   :  { %376 = vmatpush3.bf16.msra.mxu1 %v400_v6  ;;  %346 = vmatprep.subr.bf16.mxu0 %v401_v7  ;;  %v414_v20 = vld [vmem:[%s528_s1 + $0x30] sm:$0xff]   ;;  %v316_v24 = vcombine.high %v15_v22, %v15_v22  ;;  %v417_v25 = vld [vmem:[%s528_s1 + $0x38] sm:$0xff]   ;;  %v315_v27 = vcombine.low %v15_v22, %v15_v22  ;;  %v420_v28 = vld [vmem:[%s529_s0 + $0x8] ss:$0 sps:$4 sm:$0xff]  }
   0x9   :  { %377 = vmatprep.subr.bf16.mxu1 %v422_v1  ;;  %v415_v21 = vld [vmem:[%s528_s1 + $0xb0] sm:$0xff]   ;;  %v421_v26 = vld [vmem:[%s528_s1 + $0xb8] sm:$0xff]   ;;  %v314_v31 = vld [vmem:[%s530_s2] ss:$0 sm:$0xff] }
   0xa   :  { %259 = vmatprep.mubr.bf16.mxu0 %v316_v24 }
   0xb   :  { %347 = vmatpush3.bf16.msra.mxu0 %v402_v8 }
   0xc   :  { %378 = vmatpush3.bf16.msra.mxu1 %v403_v9  ;;  %348 = vmatprep.subr.bf16.mxu0 %v404_v10 }
   0xd   :  { %379 = vmatprep.subr.bf16.mxu1 %v422_v1 }
   0xf   :  { %349 = vmatpush3.bf16.msra.mxu0 %v405_v11 }
  0x10   :  { %380 = vmatpush3.bf16.msra.mxu1 %v406_v12  ;;  %350 = vmatprep.subr.bf16.mxu0 %v407_v13 }
  0x11   :  { %381 = vmatprep.subr.bf16.mxu1 %v422_v1 }
  0x13   :  { %351 = vmatpush3.bf16.msra.mxu0 %v408_v14 }
  0x14   :  { %382 = vmatpush3.bf16.msra.mxu1 %v409_v15  ;;  %352 = vmatprep.subr.bf16.mxu0 %v410_v16 }
  0x15   :  { %383 = vmatprep.subr.bf16.mxu1 %v422_v1 }
  0x17   :  { %353 = vmatpush3.bf16.msra.mxu0 %v411_v17 }
  0x18   :  { %384 = vmatpush3.bf16.msra.mxu1 %v412_v18  ;;  %354 = vmatprep.subr.bf16.mxu0 %v413_v19 }
  0x19   :  { %385 = vmatprep.subr.bf16.mxu1 %v422_v1 }
  0x1b   :  { %355 = vmatpush3.bf16.msra.mxu0 %v414_v20 }
  0x1c   :  { %386 = vmatpush3.bf16.msra.mxu1 %v415_v21  ;;  %356 = vmatprep.subr.bf16.mxu0 %v416_v23 }
  0x1d   :  { %387 = vmatprep.subr.bf16.mxu1 %v422_v1 }
  0x1f   :  { %357 = vmatpush3.bf16.msra.mxu0 %v417_v25 }
  0x20   :  { %388 = vmatpush3.bf16.msra.mxu1 %v421_v26 }
  0x22   :  { %260 = vmatmul.mubr.bf16.vlgmr.msra.gmra.mrb[0].mxu0 %v315_v27 }
  0x23   :  { %390 = vmatmul.mubr.bf16.vlgmr.msra.gmra.mrb[0].mxu1 %v420_v28 }
  0xf5   :  { %v358_v29 = vpop.f32.mrb[0].mxu0 }
  0xf6   :  { %v359_v30 = vpop.f32.mrb[1].mxu0  ;;  %v301_v32 = vpop.f32.mrb[0].mxu1 }
  0xf7   :  { %v360_v33 = vadd.f32 %v359_v30, %v358_v29  ;;  %v361_v34 = vpop.f32.mrb[2].mxu0  ;;  %v391_v35 = vpop.f32.mrb[1].mxu1 }
  0xf8   :  { %v362_v36 = vpop.f32.mrb[3].mxu0  ;;  %v304_v37 = vpop.f32.mrb[2].mxu1 }
  0xf9   :  { %v262_v38 = vadd.f32 %v360_v33, %v314_v31  ;;  %v392_v39 = vpop.f32.mrb[3].mxu1 }
  0xfb   :  { %v302_v40 = vadd.f32 %v301_v32, %v262_v38 }
  0xfd   :  { %v307_v41 = vmax.f32 %v302_v40, 0.0 }
  0xff   :  { %v308_v42 = vpack.c.bf16 %v307_v41, %v307_v41 }
 0x101   :  { %309 = vst [vmem:[%s531_s3] sm:$0xf] %v308_v42 }

// kernel: resnet_wsl_forward.41
= control target key start
LH: loop header
LB: loop body
LE: loop exit
PB: predicated region body
PF: predicated region fallthrough
CT: control target
= control target key end

     0   :  { %v656_v35 = vmov 0.0   ;;  %vm657_vm0 = vmmov 0   ;;  %s813_s1 = inlined_call_operand.vmem [shape: bf16[640,128], index: 1, kind: input, shape index: {}]   ;;  %s814_s0 = inlined_call_operand.vmem [shape: bf16[8,640], index: 0, kind: input, shape index: {}]   ;;  %s815_s2 = inlined_call_operand.vmem [shape: f32[1,128], index: 2, kind: input, shape index: {}]   ;;  %s816_s3 = inlined_call_operand.vmem [shape: bf16[8,128], index: 3, kind: output, shape index: {}]  }
   0x1   :  { %v611_v0 = vld [vmem:[%s813_s1 + $0x40] sm:$0xff]   ;;  %v615_v4 = vld [vmem:[%s813_s1 + $0x48] sm:$0xff]   ;;  %v619_v8 = vld [vmem:[%s813_s1 + $0x50] sm:$0xff]  }
   0x2   :  { %v612_v1 = vld [vmem:[%s813_s1] sm:$0xff]   ;;  %536 = vmatprep.subr.bf16.mxu0 %v611_v0  ;;  %v616_v5 = vld [vmem:[%s813_s1 + $0x8] sm:$0xff]   ;;  %v620_v9 = vld [vmem:[%s813_s1 + $0x10] sm:$0xff]  }
   0x3   :  { %v613_v2 = vld [vmem:[%s813_s1 + $0xc0] sm:$0xff]   ;;  %537 = vmatpush3.bf16.msra.mxu0 %v612_v1  ;;  %v617_v6 = vld [vmem:[%s813_s1 + $0xc8] sm:$0xff]   ;;  %v621_v10 = vld [vmem:[%s813_s1 + $0xd0] sm:$0xff]  }
   0x4   :  { %v614_v3 = vld [vmem:[%s813_s1 + $0x80] sm:$0xff]   ;;  %558 = vmatprep.subr.bf16.mxu1 %v613_v2  ;;  %538 = vmatprep.subr.bf16.mxu0 %v615_v4  ;;  %v618_v7 = vld [vmem:[%s813_s1 + $0x88] sm:$0xff]   ;;  %v622_v11 = vld [vmem:[%s813_s1 + $0x90] sm:$0xff]  }
   0x5   :  { %559 = vmatpush3.bf16.msra.mxu1 %v614_v3  ;;  %v623_v12 = vld [vmem:[%s813_s1 + $0x58] sm:$0xff]   ;;  %v627_v16 = vld [vmem:[%s813_s1 + $0x60] sm:$0xff]   ;;  %v631_v20 = vld [vmem:[%s813_s1 + $0x68] sm:$0xff]  }
   0x6   :  { %560 = vmatprep.subr.bf16.mxu1 %v617_v6  ;;  %v624_v13 = vld [vmem:[%s813_s1 + $0x18] sm:$0xff]   ;;  %v628_v17 = vld [vmem:[%s813_s1 + $0x20] sm:$0xff]   ;;  %v632_v21 = vld [vmem:[%s813_s1 + $0x28] sm:$0xff]  }
   0x7   :  { %539 = vmatpush3.bf16.msra.mxu0 %v616_v5  ;;  %v625_v14 = vld [vmem:[%s813_s1 + $0xd8] sm:$0xff]   ;;  %v629_v18 = vld [vmem:[%s813_s1 + $0xe0] sm:$0xff]   ;;  %v633_v22 = vld [vmem:[%s813_s1 + $0xe8] sm:$0xff]  }
   0x8   :  { %540 = vmatprep.subr.bf16.mxu0 %v619_v8  ;;  %v626_v15 = vld [vmem:[%s813_s1 + $0x98] sm:$0xff]   ;;  %v630_v19 = vld [vmem:[%s813_s1 + $0xa0] sm:$0xff]   ;;  %v634_v23 = vld [vmem:[%s813_s1 + $0xa8] sm:$0xff]  }
   0x9   :  { %561 = vmatpush3.bf16.msra.mxu1 %v618_v7  ;;  %v635_v24 = vld [vmem:[%s813_s1 + $0x70] sm:$0xff]   ;;  %v639_v28 = vld [vmem:[%s813_s1 + $0x78] sm:$0xff]   ;;  %v15_v31 = vld [vmem:[%s814_s0] sm:$0xff] }
   0xa   :  { %562 = vmatprep.subr.bf16.mxu1 %v621_v10  ;;  %v636_v25 = vld [vmem:[%s813_s1 + $0x30] sm:$0xff]   ;;  %v640_v29 = vld [vmem:[%s813_s1 + $0x38] sm:$0xff]   ;;  %v491_v32 = vcombine.low %v15_v31, %v15_v31  ;;  %v492_v33 = vcombine.high %v15_v31, %v15_v31  ;;  %v16_v36 = vld [vmem:[%s814_s0 + $0x8] sm:$0xff] }
   0xb   :  { %541 = vmatpush3.bf16.msra.mxu0 %v620_v9  ;;  %v637_v26 = vld [vmem:[%s813_s1 + $0xf0] sm:$0xff]   ;;  %v641_v30 = vld [vmem:[%s813_s1 + $0xf8] sm:$0xff]   ;;  %v493_v37 = vcombine.low %v16_v36, %v16_v36  ;;  %v494_v38 = vcombine.high %v16_v36, %v16_v36  ;;  %v648_v39 = vld [vmem:[%s813_s1 + $0x100] sm:$0xff]  }
   0xc   :  { %542 = vmatprep.subr.bf16.mxu0 %v623_v12  ;;  %v638_v27 = vld [vmem:[%s813_s1 + $0xb0] sm:$0xff]   ;;  %v645_v34 = vld [vmem:[%s813_s1 + $0xb8] sm:$0xff]   ;;  %395 = vmatprep.mubr.bf16.mxu0 %v492_v33  ;;  %v649_v40 = vld [vmem:[%s813_s1 + $0x108] sm:$0xff]  }
   0xd   :  { %563 = vmatpush3.bf16.msra.mxu1 %v622_v11  ;;  %435 = vmatprep.mubr.bf16.mxu1 %v494_v38  ;;  %v650_v41 = vld [vmem:[%s813_s1 + $0x110] sm:$0xff]   ;;  %v651_v42 = vld [vmem:[%s813_s1 + $0x118] sm:$0xff]   ;;  %v652_v43 = vld [vmem:[%s813_s1 + $0x120] sm:$0xff]  }
   0xe   :  { %564 = vmatprep.subr.bf16.mxu1 %v625_v14  ;;  %v653_v44 = vld [vmem:[%s813_s1 + $0x128] sm:$0xff]   ;;  %v654_v45 = vld [vmem:[%s813_s1 + $0x130] sm:$0xff]   ;;  %v655_v46 = vld [vmem:[%s813_s1 + $0x138] sm:$0xff]  }
   0xf   :  { %543 = vmatpush3.bf16.msra.mxu0 %v624_v13  ;;  %v644_v47 = vld [vmem:[%s814_s0 + $0x10] ss:$0 sps:$4 sm:$0xff]   ;;  %v490_v49 = vld [vmem:[%s815_s2] ss:$0 sm:$0xff] }
  0x10   :  { %544 = vmatprep.subr.bf16.mxu0 %v627_v16 }
  0x11   :  { %565 = vmatpush3.bf16.msra.mxu1 %v626_v15 }
  0x12   :  { %566 = vmatprep.subr.bf16.mxu1 %v629_v18 }
  0x13   :  { %545 = vmatpush3.bf16.msra.mxu0 %v628_v17 }
  0x14   :  { %546 = vmatprep.subr.bf16.mxu0 %v631_v20 }
  0x15   :  { %567 = vmatpush3.bf16.msra.mxu1 %v630_v19 }
  0x16   :  { %568 = vmatprep.subr.bf16.mxu1 %v633_v22 }
  0x17   :  { %547 = vmatpush3.bf16.msra.mxu0 %v632_v21 }
  0x18   :  { %548 = vmatprep.subr.bf16.mxu0 %v635_v24 }
  0x19   :  { %569 = vmatpush3.bf16.msra.mxu1 %v634_v23 }
  0x1a   :  { %570 = vmatprep.subr.bf16.mxu1 %v637_v26 }
  0x1b   :  { %549 = vmatpush3.bf16.msra.mxu0 %v636_v25 }
  0x1c   :  { %550 = vmatprep.subr.bf16.mxu0 %v639_v28 }
  0x1d   :  { %571 = vmatpush3.bf16.msra.mxu1 %v638_v27 }
  0x1e   :  { %572 = vmatprep.subr.bf16.mxu1 %v641_v30 }
  0x1f   :  { %551 = vmatpush3.bf16.msra.mxu0 %v640_v29 }
  0x20   :  { %589 = vmatprep.subr.bf16.mxu0 %v656_v35 }
  0x21   :  { %573 = vmatpush3.bf16.msra.mxu1 %v645_v34 }
  0x22   :  { %396 = vmatmul.mubr.bf16.vlgmr.msra.gmra.mrb[0].mxu0 %v491_v32 }
  0x23   :  { %590 = vmatpush3.bf16.msra.mxu0 %v648_v39  ;;  %605 = vmatprep.mubr.msk.bf16.mxu0 %vm657_vm0, %v656_v35 }
  0x24   :  { %436 = vmatmul.mubr.bf16.vlgmr.msra.gmra.mrb[0].mxu1 %v493_v37  ;;  %591 = vmatprep.subr.bf16.mxu0 %v656_v35 }
  0x27   :  { %592 = vmatpush3.bf16.msra.mxu0 %v649_v40 }
  0x28   :  { %593 = vmatprep.subr.bf16.mxu0 %v656_v35 }
  0x2b   :  { %594 = vmatpush3.bf16.msra.mxu0 %v650_v41 }
  0x2c   :  { %595 = vmatprep.subr.bf16.mxu0 %v656_v35 }
  0x2f   :  { %596 = vmatpush3.bf16.msra.mxu0 %v651_v42 }
  0x30   :  { %597 = vmatprep.subr.bf16.mxu0 %v656_v35 }
  0x33   :  { %598 = vmatpush3.bf16.msra.mxu0 %v652_v43 }
  0x34   :  { %599 = vmatprep.subr.bf16.mxu0 %v656_v35 }
  0x37   :  { %600 = vmatpush3.bf16.msra.mxu0 %v653_v44 }
  0x38   :  { %601 = vmatprep.subr.bf16.mxu0 %v656_v35 }
  0x3b   :  { %602 = vmatpush3.bf16.msra.mxu0 %v654_v45 }
  0x3c   :  { %603 = vmatprep.subr.bf16.mxu0 %v656_v35 }
  0x3f   :  { %604 = vmatpush3.bf16.msra.mxu0 %v655_v46 }
  0x42   :  { %606 = vmatmul.mubr.bf16.vlgmr.msra.gmra.mrb[4].mxu0 %v644_v47 }
  0xf5   :  { %v552_v48 = vpop.f32.mrb[0].mxu0 }
  0xf6   :  { %v553_v50 = vpop.f32.mrb[1].mxu0 }
  0xf7   :  { %v554_v51 = vadd.f32 %v553_v50, %v552_v48  ;;  %v555_v52 = vpop.f32.mrb[2].mxu0  ;;  %v574_v53 = vpop.f32.mrb[0].mxu1 }
  0xf8   :  { %v556_v54 = vpop.f32.mrb[3].mxu0  ;;  %v575_v55 = vpop.f32.mrb[1].mxu1 }
  0xf9   :  { %v398_v56 = vadd.f32 %v554_v51, %v490_v49  ;;  %v576_v57 = vadd.f32 %v575_v55, %v574_v53  ;;  %v577_v58 = vpop.f32.mrb[2].mxu1 }
  0xfa   :  { %v578_v59 = vpop.f32.mrb[3].mxu1 }
  0xfb   :  { %v438_v60 = vadd.f32 %v576_v57, %v398_v56 }
 0x115   :  { %v477_v61 = vpop.f32.mrb[4].mxu0 }
 0x116   :  { %v478_v62 = vadd.f32 %v477_v61, %v438_v60  ;;  %v607_v63 = vpop.f32.mrb[5].mxu0 }
 0x117   :  { %v480_v0 = vpop.f32.mrb[6].mxu0 }
 0x118   :  { %v483_v1 = vmax.f32 %v478_v62, 0.0  ;;  %v608_v2 = vpop.f32.mrb[7].mxu0 }
 0x11a   :  { %v484_v3 = vpack.c.bf16 %v483_v1, %v483_v1 }
 0x11c   :  { %485 = vst [vmem:[%s816_s3] sm:$0xf] %v484_v3 }

// kernel: resnet_wsl_forward.43
= control target key start
LH: loop header
LB: loop body
LE: loop exit
PB: predicated region body
PF: predicated region fallthrough
CT: control target
= control target key end

     0   :  { %8 = vsyncpa [#allocation3], 0  ;;  %s673_s0 = inlined_call_operand.vmem [shape: bf16[2,4,128], index: 0, kind: input, shape index: {}]   ;;  %s674_s1 = inlined_call_operand.vmem [shape: bf16[128,128], index: 1, kind: input, shape index: {}]   ;;  %s675_s2 = inlined_call_operand.vmem [shape: f32[1,128], index: 2, kind: input, shape index: {}]   ;;  %s676_s3 = inlined_call_operand.hbm [shape: f32[2,1,128], index: 3, kind: output, shape index: {}]  }
   0x1   :  { %10 = vsyncpa [#allocation3 + $0x1], 0  ;;  %s546_s12 = smov 0   ;;  %s548_s13 = smov 0  }
   0x2   :  { %s550_s14 = smov 0   ;;  %s552_s15 = smov 0  }
   0x3 LB: > { %s567_s16 = sadd.s32 4294967295, %s521_s15   ;;  %s364_s17 = sadd.s32 4294967294, %s521_s15   ;;  %s521_s15 = sphi %s552_s15, %s682_s15   ;;  %s517_s14 = sphi %s550_s14, %s681_s14   ;;  %s513_s13 = sphi %s548_s13, %s680_s13   ;;  %s509_s12 = sphi %s546_s12, %s679_s12  }
   0x4   : > { %s571_s18 = sadd.s32 1, %s521_s15   ;;  %s91_s19 = sadd.s32 1, %s517_s14 }
   0x5   : > { %s88_s20 = ssub.s32 %s521_s15, %s571_s18  ;;  %p101_p0 = scmp.ne.s32.totalorder %s517_s14, %s513_s13 }
   0x6   : > { %p89_p1 = scmp.eq.s32.totalorder %s88_s20, 0  ;;  %p102_p2 = scmp.eq.s32.totalorder %s567_s16, 1 }
   0x7   : > { %p107_p3 = scmp.ne.s32.totalorder %s513_s13, %s509_s12  ;;  %p108_p4 = scmp.eq.s32.totalorder %s364_s17, 1 }
   0x8   : > { %s582_s21 = scalar_select %p89_p1, %s517_s14, %s91_s19  }
   0x9   : > { %p584_p5 = por %p102_p2, %p101_p0  ;;  %p588_p6 = por %p108_p4, %p107_p3 }
   0xa   : > { %p367_p7 = scmp.ge.s32.totalorder %s521_s15, 1  ;;  %p139_p8 = scmp.lt.s32.totalorder %s521_s15, 3 }
   0xc   : > { %p140_p9 = pnand %p367_p7, %p139_p8 }
   0xd   : > { %v451_v0 = vld [vmem:[%s674_s1] sm:$0xff] (!%p140_p9)   ;;  %v523_v1 = vmov (!%p140_p9), 0.0   ;;  %v452_v2 = vld [vmem:[%s674_s1 + $0x8] sm:$0xff] (!%p140_p9)   ;;  %vm524_vm0 = vmmov (!%p140_p9), 0   ;;  %v453_v3 = vld [vmem:[%s674_s1 + $0x10] sm:$0xff] (!%p140_p9)   ;;  %p161_p10 = scmp.lt.s32.totalorder (!%p140_p9), %s567_s16, 1 }
   0xe   : > { %143 = sbr.rel (%p140_p9) target bundleno = 291 (0x123), region = 32  ;;  %390 = vmatprep.subr.bf16.mxu0 (!%p140_p9), %v523_v1  ;;  %406 = vmatprep.mubr.msk.bf16.mxu0 (!%p140_p9), %vm524_vm0, %v523_v1  ;;  %v454_v4 = vld [vmem:[%s674_s1 + $0x18] sm:$0xff] (!%p140_p9)   ;;  %v455_v5 = vld [vmem:[%s674_s1 + $0x20] sm:$0xff] (!%p140_p9)   ;;  %v456_v6 = vld [vmem:[%s674_s1 + $0x28] sm:$0xff] (!%p140_p9)   ;;  %vm278_vm1 = vcmask (!%p140_p9), 1043456   ;;  %s159_s29 = sand.u32 (!%p140_p9), 1, %s513_s13  }
   0xf   : > { %391 = vmatpush3.bf16.msra.mxu0 (!%p140_p9), %v451_v0  ;;  %v457_v7 = vld [vmem:[%s674_s1 + $0x30] sm:$0xff] (!%p140_p9)   ;;  %v458_v8 = vld [vmem:[%s674_s1 + $0x38] sm:$0xff] (!%p140_p9)   ;;  %v369_v10 = vld [vmem:[%s675_s2] ss:$0 sm:$0xff] (!%p140_p9)  ;;  %s378_s30 = sshll.u32 (!%p140_p9), %s567_s16, 4  ;;  %s160_s4 = scalar_lea.vmem (!%p140_p9), [#allocation2], %s159_s29 }
  0x10   : > { %392 = vmatprep.subr.bf16.mxu0 (!%p140_p9), %v523_v1  ;;  %s309_s5 = sshll.u32 (!%p140_p9), %s160_s4, 4  ;;  %s631_s8 = scalar_lea.hbm (!%p140_p9), %s676_s3, %s378_s30  ;;  %s633_s5 = int_to_ptr.vmem [resolvable:$true] %s309_s5 }
  0x11   : > { %s459_s10 = scalar_lea.vmem (!%p140_p9), %s633_s5, 16 }
  0x12   : > { %p460_p11 = scmp.ne.s32.totalorder (!%p140_p9), %s633_s5, %s459_s10 }
  0x13   : > { %393 = vmatpush3.bf16.msra.mxu0 (!%p140_p9), %v452_v2 }
  0x14   : > { %394 = vmatprep.subr.bf16.mxu0 (!%p140_p9), %v523_v1  ;;  %p461_p12 = pnand (!%p140_p9), %p460_p11, %p584_p5 }
  0x15   : > { %s162_s9 = scalar_select %p161_p10, %s567_s16, 1 }
  0x16   : > { %p462_p13 = pneg %p461_p12  ;;  %s525_s16 = smov [#allocation2]  }
  0x17   : > { %395 = vmatpush3.bf16.msra.mxu0 %v453_v3  ;;  %s368_s17 = sshll.u32 %s162_s9, 1  ;;  %s297_s9 = scalar_lea.sflag [#allocation3], %s159_s29 }
  0x18   : > { %396 = vmatprep.subr.bf16.mxu0 %v523_v1  ;;  %s164_s26 = scalar_lea.vmem %s673_s0, %s368_s17  ;;  %s463_s11 = sshll.u32 %s525_s16, 4  ;;  %s464_s11 = int_to_ptr.vmem [resolvable:$false] %s463_s11 }
  0x19   : > { %v166_v9 = vld [vmem:[%s164_s26] sm:$0x3]  ;;  %s465_s17 = scalar_lea.vmem %s464_s11, 32  ;;  %p466_p0 = scmp.lt.s32.totalorder %s633_s5, %s464_s11 }
  0x1a   : > { %p467_p1 = scmp.lt.s32.totalorder %s465_s17, %s459_s10 }
  0x1b   : > { %397 = vmatpush3.bf16.msra.mxu0 %v454_v4 }
  0x1c   : > { %398 = vmatprep.subr.bf16.mxu0 %v523_v1  ;;  %p468_p2 = por %p467_p1, %p466_p0 }
  0x1e   : > { %p469_p3 = pnand %p468_p2, %p462_p13 }
  0x1f   : > { %399 = vmatpush3.bf16.msra.mxu0 %v455_v5 }
  0x20   : > { %400 = vmatprep.subr.bf16.mxu0 %v523_v1 }
  0x23   : > { %401 = vmatpush3.bf16.msra.mxu0 %v456_v6 }
  0x24   : > { %402 = vmatprep.subr.bf16.mxu0 %v523_v1 }
  0x27   : > { %403 = vmatpush3.bf16.msra.mxu0 %v457_v7 }
  0x28   : > { %404 = vmatprep.subr.bf16.mxu0 %v523_v1 }
  0x2b   : > { %405 = vmatpush3.bf16.msra.mxu0 %v458_v8 }
  0x2e   : > { %407 = vmatmul.mubr.bf16.vlgmr.msra.gmra.mrb[0].mxu0 %v166_v9 }
 0x101   : > { %v272_v11 = vpop.f32.mrb[0].mxu0 }
 0x102   : > { %v273_v12 = vadd.f32 %v369_v10, %v272_v11  ;;  %v408_v13 = vpop.f32.mrb[1].mxu0 }
 0x103   : > { %v275_v14 = vpop.f32.mrb[2].mxu0 }
 0x104   : > { %v279_v15 = vsel %vm278_vm1, %v273_v12, -inf  ;;  %v286_v16 = vsel %vm278_vm1, %v273_v12, inf  ;;  %v409_v17 = vpop.f32.mrb[3].mxu0 }
 0x105   : > { %v280_v18 = vrot.slane %v279_v15, 4  ;;  %v287_v19 = vrot.slane %v286_v16, 4 }
 0x107   : > { %v281_v20 = vmax.f32 %v279_v15, %v280_v18  ;;  %v288_v21 = vmin.f32 %v286_v16, %v287_v19 }
 0x109   : > { %v282_v22 = vrot.slane %v281_v20, 2  ;;  %v289_v23 = vrot.slane %v288_v21, 2 }
 0x10b   : > { %v283_v24 = vmax.f32 %v281_v20, %v282_v22  ;;  %v290_v25 = vmin.f32 %v288_v21, %v289_v23 }
 0x10d   : > { %v284_v26 = vrot.slane %v283_v24, 1  ;;  %v291_v27 = vrot.slane %v290_v25, 1 }
 0x10f   : > { %v285_v28 = vmax.f32 %v283_v24, %v284_v26  ;;  %v292_v29 = vmin.f32 %v290_v25, %v291_v27 }
 0x111   : > { %v293_v30 = vadd.f32 %v292_v29, %v285_v28 }
 0x113   : > { %v294_v31 = vmul.f32 0.5, %v293_v30 }
 0x115   : > { %295 = vst [vmem:[%s160_s4] sm:$0x1] %v294_v31 }
 0x116   : > { %472 = shalt.err (!%p469_p3)
}
 0x117   : > { %s473_s19 = scalar_lea.hbm %s631_s8, 16  ;;  %s477_s25 = scalar_lea.hbm %s676_s3, 32 }
 0x118   : > { %p474_p4 = scmp.ne.s32.totalorder %s631_s8, %s473_s19  ;;  %p478_p9 = scmp.lt.u32.totalorder %s631_s8, %s676_s3 }
 0x119   : > { %p479_p10 = scmp.lt.u32.totalorder %s477_s25, %s473_s19  ;;  %p481_p12 = scmp.lt.u32.totalorder %s473_s19, %s631_s8 }
 0x11a   : > { %p475_p7 = pnand %p474_p4, %p584_p5 }
 0x11b   : > { %p480_p11 = por %p479_p10, %p478_p9 }
 0x11c   : > { %p476_p8 = pneg %p475_p7 }
 0x11d   : > { %p482_p13 = por %p481_p12, %p480_p11 }
 0x11f   : > { %p483_p0 = pnand %p482_p13, %p476_p8 }
 0x121   : > { %486 = shalt.err (!%p483_p0)
}
 0x122   : > { %410 = dma.vmem_to_hbm [thread:$0]  (%p584_p5), %s633_s5, 16, %s631_s8, %s297_s9  }
 0x123 PF: > { %p416_p1 = scmp.ge.s32.totalorder %s521_s15, 2  ;;  %s321_s28 = sand.u32 1, %s509_s12  }
 0x124   : > { %s322_s29 = scalar_lea.sflag [#allocation3], %s321_s28 }
 0x125   : > { %p413_p2 = pnand %p416_p1, %p588_p6 }
 0x127   : > { %504 = dma.done.wait (!%p413_p2), %s322_s29, 16  }
 0x128   : > { %506 = vsyncadd (!%p413_p2), %s322_s29, 4294967280  ;;  %p13_p3 = scmp.ge.s32.totalorder %s571_s18, 4   ;;  %s679_s12 = smov %s513_s13 }
 0x129   : > { %s680_s13 = smov %s517_s14  ;;  %s681_s14 = smov %s582_s21 }
 0x12a   : > { %s682_s15 = smov %s571_s18  ;;  %15 = sbr.rel (!%p13_p3) target bundleno = 3 (0x3), region = 67 }
 0x131   :  { %326 = vsyncpa [#allocation3], 1 }
 0x132   :  { %328 = vsyncpa [#allocation3 + $0x1], 1 }

// kernel: resnet_wsl_forward.40
= control target key start
LH: loop header
LB: loop body
LE: loop exit
PB: predicated region body
PF: predicated region fallthrough
CT: control target
= control target key end

     0   :  { %v662_v35 = vmov 0.0   ;;  %vm663_vm0 = vmmov 0   ;;  %s827_s1 = inlined_call_operand.vmem [shape: bf16[640,128], index: 1, kind: input, shape index: {}]   ;;  %s828_s0 = inlined_call_operand.vmem [shape: bf16[8,640], index: 0, kind: input, shape index: {}]   ;;  %s829_s2 = inlined_call_operand.vmem [shape: f32[1,128], index: 2, kind: input, shape index: {}]   ;;  %s830_s3 = inlined_call_operand.vmem [shape: bf16[8,128], index: 3, kind: input, shape index: {}]   ;;  %s831_s4 = inlined_call_operand.vmem [shape: bf16[8,128], index: 4, kind: output, shape index: {}]  }
   0x1   :  { %v617_v0 = vld [vmem:[%s827_s1 + $0x40] sm:$0xff]   ;;  %v621_v4 = vld [vmem:[%s827_s1 + $0x48] sm:$0xff]   ;;  %v625_v8 = vld [vmem:[%s827_s1 + $0x50] sm:$0xff]  }
   0x2   :  { %v618_v1 = vld [vmem:[%s827_s1] sm:$0xff]   ;;  %542 = vmatprep.subr.bf16.mxu0 %v617_v0  ;;  %v622_v5 = vld [vmem:[%s827_s1 + $0x8] sm:$0xff]   ;;  %v626_v9 = vld [vmem:[%s827_s1 + $0x10] sm:$0xff]  }
   0x3   :  { %v619_v2 = vld [vmem:[%s827_s1 + $0xc0] sm:$0xff]   ;;  %543 = vmatpush3.bf16.msra.mxu0 %v618_v1  ;;  %v623_v6 = vld [vmem:[%s827_s1 + $0xc8] sm:$0xff]   ;;  %v627_v10 = vld [vmem:[%s827_s1 + $0xd0] sm:$0xff]  }
   0x4   :  { %v620_v3 = vld [vmem:[%s827_s1 + $0x80] sm:$0xff]   ;;  %564 = vmatprep.subr.bf16.mxu1 %v619_v2  ;;  %544 = vmatprep.subr.bf16.mxu0 %v621_v4  ;;  %v624_v7 = vld [vmem:[%s827_s1 + $0x88] sm:$0xff]   ;;  %v628_v11 = vld [vmem:[%s827_s1 + $0x90] sm:$0xff]  }
   0x5   :  { %565 = vmatpush3.bf16.msra.mxu1 %v620_v3  ;;  %v629_v12 = vld [vmem:[%s827_s1 + $0x58] sm:$0xff]   ;;  %v633_v16 = vld [vmem:[%s827_s1 + $0x60] sm:$0xff]   ;;  %v637_v20 = vld [vmem:[%s827_s1 + $0x68] sm:$0xff]  }
   0x6   :  { %566 = vmatprep.subr.bf16.mxu1 %v623_v6  ;;  %v630_v13 = vld [vmem:[%s827_s1 + $0x18] sm:$0xff]   ;;  %v634_v17 = vld [vmem:[%s827_s1 + $0x20] sm:$0xff]   ;;  %v638_v21 = vld [vmem:[%s827_s1 + $0x28] sm:$0xff]  }
   0x7   :  { %545 = vmatpush3.bf16.msra.mxu0 %v622_v5  ;;  %v631_v14 = vld [vmem:[%s827_s1 + $0xd8] sm:$0xff]   ;;  %v635_v18 = vld [vmem:[%s827_s1 + $0xe0] sm:$0xff]   ;;  %v639_v22 = vld [vmem:[%s827_s1 + $0xe8] sm:$0xff]  }
   0x8   :  { %546 = vmatprep.subr.bf16.mxu0 %v625_v8  ;;  %v632_v15 = vld [vmem:[%s827_s1 + $0x98] sm:$0xff]   ;;  %v636_v19 = vld [vmem:[%s827_s1 + $0xa0] sm:$0xff]   ;;  %v640_v23 = vld [vmem:[%s827_s1 + $0xa8] sm:$0xff]  }
   0x9   :  { %567 = vmatpush3.bf16.msra.mxu1 %v624_v7  ;;  %v641_v24 = vld [vmem:[%s827_s1 + $0x70] sm:$0xff]   ;;  %v645_v28 = vld [vmem:[%s827_s1 + $0x78] sm:$0xff]   ;;  %v18_v31 = vld [vmem:[%s828_s0] sm:$0xff] }
   0xa   :  { %568 = vmatprep.subr.bf16.mxu1 %v627_v10  ;;  %v642_v25 = vld [vmem:[%s827_s1 + $0x30] sm:$0xff]   ;;  %v646_v29 = vld [vmem:[%s827_s1 + $0x38] sm:$0xff]   ;;  %v497_v32 = vcombine.low %v18_v31, %v18_v31  ;;  %v498_v33 = vcombine.high %v18_v31, %v18_v31  ;;  %v19_v36 = vld [vmem:[%s828_s0 + $0x8] sm:$0xff] }
   0xb   :  { %547 = vmatpush3.bf16.msra.mxu0 %v626_v9  ;;  %v643_v26 = vld [vmem:[%s827_s1 + $0xf0] sm:$0xff]   ;;  %v647_v30 = vld [vmem:[%s827_s1 + $0xf8] sm:$0xff]   ;;  %v499_v37 = vcombine.low %v19_v36, %v19_v36  ;;  %v500_v38 = vcombine.high %v19_v36, %v19_v36  ;;  %v654_v39 = vld [vmem:[%s827_s1 + $0x100] sm:$0xff]  }
   0xc   :  { %548 = vmatprep.subr.bf16.mxu0 %v629_v12  ;;  %v644_v27 = vld [vmem:[%s827_s1 + $0xb0] sm:$0xff]   ;;  %v651_v34 = vld [vmem:[%s827_s1 + $0xb8] sm:$0xff]   ;;  %398 = vmatprep.mubr.bf16.mxu0 %v498_v33  ;;  %v655_v40 = vld [vmem:[%s827_s1 + $0x108] sm:$0xff]  }
   0xd   :  { %569 = vmatpush3.bf16.msra.mxu1 %v628_v11  ;;  %438 = vmatprep.mubr.bf16.mxu1 %v500_v38  ;;  %v656_v41 = vld [vmem:[%s827_s1 + $0x110] sm:$0xff]   ;;  %v657_v42 = vld [vmem:[%s827_s1 + $0x118] sm:$0xff]   ;;  %v658_v43 = vld [vmem:[%s827_s1 + $0x120] sm:$0xff]  }
   0xe   :  { %570 = vmatprep.subr.bf16.mxu1 %v631_v14  ;;  %v659_v44 = vld [vmem:[%s827_s1 + $0x128] sm:$0xff]   ;;  %v660_v45 = vld [vmem:[%s827_s1 + $0x130] sm:$0xff]   ;;  %v661_v46 = vld [vmem:[%s827_s1 + $0x138] sm:$0xff]  }
   0xf   :  { %549 = vmatpush3.bf16.msra.mxu0 %v630_v13  ;;  %v650_v47 = vld [vmem:[%s828_s0 + $0x10] ss:$0 sps:$4 sm:$0xff]   ;;  %v496_v49 = vld [vmem:[%s829_s2] ss:$0 sm:$0xff] }
  0x10   :  { %550 = vmatprep.subr.bf16.mxu0 %v633_v16  ;;  %v486_v61 = vld [vmem:[%s830_s3] sm:$0xf] }
  0x11   :  { %571 = vmatpush3.bf16.msra.mxu1 %v632_v15  ;;  %v487_v62 = vunpack.c.l.bf16 %v486_v61 }
  0x12   :  { %572 = vmatprep.subr.bf16.mxu1 %v635_v18 }
  0x13   :  { %551 = vmatpush3.bf16.msra.mxu0 %v634_v17 }
  0x14   :  { %552 = vmatprep.subr.bf16.mxu0 %v637_v20 }
  0x15   :  { %573 = vmatpush3.bf16.msra.mxu1 %v636_v19 }
  0x16   :  { %574 = vmatprep.subr.bf16.mxu1 %v639_v22 }
  0x17   :  { %553 = vmatpush3.bf16.msra.mxu0 %v638_v21 }
  0x18   :  { %554 = vmatprep.subr.bf16.mxu0 %v641_v24 }
  0x19   :  { %575 = vmatpush3.bf16.msra.mxu1 %v640_v23 }
  0x1a   :  { %576 = vmatprep.subr.bf16.mxu1 %v643_v26 }
  0x1b   :  { %555 = vmatpush3.bf16.msra.mxu0 %v642_v25 }
  0x1c   :  { %556 = vmatprep.subr.bf16.mxu0 %v645_v28 }
  0x1d   :  { %577 = vmatpush3.bf16.msra.mxu1 %v644_v27 }
  0x1e   :  { %578 = vmatprep.subr.bf16.mxu1 %v647_v30 }
  0x1f   :  { %557 = vmatpush3.bf16.msra.mxu0 %v646_v29 }
  0x20   :  { %595 = vmatprep.subr.bf16.mxu0 %v662_v35 }
  0x21   :  { %579 = vmatpush3.bf16.msra.mxu1 %v651_v34 }
  0x22   :  { %399 = vmatmul.mubr.bf16.vlgmr.msra.gmra.mrb[0].mxu0 %v497_v32 }
  0x23   :  { %596 = vmatpush3.bf16.msra.mxu0 %v654_v39  ;;  %611 = vmatprep.mubr.msk.bf16.mxu0 %vm663_vm0, %v662_v35 }
  0x24   :  { %439 = vmatmul.mubr.bf16.vlgmr.msra.gmra.mrb[0].mxu1 %v499_v37  ;;  %597 = vmatprep.subr.bf16.mxu0 %v662_v35 }
  0x27   :  { %598 = vmatpush3.bf16.msra.mxu0 %v655_v40 }
  0x28   :  { %599 = vmatprep.subr.bf16.mxu0 %v662_v35 }
  0x2b   :  { %600 = vmatpush3.bf16.msra.mxu0 %v656_v41 }
  0x2c   :  { %601 = vmatprep.subr.bf16.mxu0 %v662_v35 }
  0x2f   :  { %602 = vmatpush3.bf16.msra.mxu0 %v657_v42 }
  0x30   :  { %603 = vmatprep.subr.bf16.mxu0 %v662_v35 }
  0x33   :  { %604 = vmatpush3.bf16.msra.mxu0 %v658_v43 }
  0x34   :  { %605 = vmatprep.subr.bf16.mxu0 %v662_v35 }
  0x37   :  { %606 = vmatpush3.bf16.msra.mxu0 %v659_v44 }
  0x38   :  { %607 = vmatprep.subr.bf16.mxu0 %v662_v35 }
  0x3b   :  { %608 = vmatpush3.bf16.msra.mxu0 %v660_v45 }
  0x3c   :  { %609 = vmatprep.subr.bf16.mxu0 %v662_v35 }
  0x3f   :  { %610 = vmatpush3.bf16.msra.mxu0 %v661_v46 }
  0x42   :  { %612 = vmatmul.mubr.bf16.vlgmr.msra.gmra.mrb[4].mxu0 %v650_v47 }
  0xf5   :  { %v558_v48 = vpop.f32.mrb[0].mxu0 }
  0xf6   :  { %v559_v50 = vpop.f32.mrb[1].mxu0 }
  0xf7   :  { %v560_v51 = vadd.f32 %v559_v50, %v558_v48  ;;  %v561_v52 = vpop.f32.mrb[2].mxu0  ;;  %v580_v53 = vpop.f32.mrb[0].mxu1 }
  0xf8   :  { %v562_v54 = vpop.f32.mrb[3].mxu0  ;;  %v581_v55 = vpop.f32.mrb[1].mxu1 }
  0xf9   :  { %v401_v56 = vadd.f32 %v560_v51, %v496_v49  ;;  %v582_v57 = vadd.f32 %v581_v55, %v580_v53  ;;  %v583_v58 = vpop.f32.mrb[2].mxu1 }
  0xfa   :  { %v584_v59 = vpop.f32.mrb[3].mxu1 }
  0xfb   :  { %v441_v60 = vadd.f32 %v582_v57, %v401_v56 }
 0x115   :  { %v480_v63 = vpop.f32.mrb[4].mxu0 }
 0x116   :  { %v481_v0 = vadd.f32 %v480_v63, %v441_v60  ;;  %v613_v1 = vpop.f32.mrb[5].mxu0 }
 0x117   :  { %v483_v2 = vpop.f32.mrb[6].mxu0 }
 0x118   :  { %v488_v3 = vadd.f32 %v487_v62, %v481_v0  ;;  %v614_v4 = vpop.f32.mrb[7].mxu0 }
 0x11a   :  { %v489_v5 = vmax.f32 %v488_v3, 0.0 }
 0x11c   :  { %v490_v6 = vpack.c.bf16 %v489_v5, %v489_v5 }
 0x11e   :  { %491 = vst [vmem:[%s831_s4] sm:$0xf] %v490_v6 }

</bundles_post_ra>
